<compile_context>
chip_gen: v7x
topology: tpu7x:2x2x1
jax: 0.10.0
libtpu: 0.0.40
codegen_flags: <defaults>
</compile_context>

<pallas_src>
import functools

import numpy as np
import jax
import jax.numpy as jnp
from jax.experimental import pallas as pl
from jax.experimental.pallas import tpu as pltpu

_PHASES = ((0, 0), (0, 1), (1, 0), (1, 1))  # (row parity, col parity) of conv1 output


def _round_up(x, m):
    return ((x + m - 1) // m) * m


# ---------------------------------------------------------------------------
# Kernel A: conv1 + ReLU + conv2 + ReLU, fully VMEM-resident.
# ---------------------------------------------------------------------------
def _conv_stack_kernel(rows_ref, w1_ref, b1_ref, w2_ref, b2_ref, out_ref,
                       h_ref, *, n_out, phase_len):
    # conv1 for all 4 parity phases in a single MXU matmul (bf16 x bf16 -> f32).
    h = jnp.dot(rows_ref[...], w1_ref[...], preferred_element_type=jnp.float32)
    h_ref[...] = jnp.maximum(h + b1_ref[...], 0.0)          # ReLU(conv1), f32

    # conv2 (4x4, stride 2): within a parity phase the tap offsets (di, dj)
    # become constant row shifts of 10*di + dj on the 10x10 phase grid, so
    # every operand is a contiguous slice of the conv1 scratch.
    acc = jnp.zeros((n_out, 32), jnp.float32)
    for f in range(4):
        base = f * phase_len
        for di in (0, 1):
            for dj in (0, 1):
                shift = 10 * di + dj
                tap = f * 4 + di * 2 + dj
                lhs = h_ref[pl.ds(base + shift, n_out), :]
                acc = acc + jnp.dot(lhs, w2_ref[tap],
                                    preferred_element_type=jnp.float32)
    out_ref[...] = jnp.maximum(acc + b2_ref[...], 0.0).astype(out_ref.dtype)


def conv_stack(rows, w1, b1, w2, b2, *, n_out, phase_len):
    kernel = functools.partial(_conv_stack_kernel, n_out=n_out,
                               phase_len=phase_len)
    return pl.pallas_call(
        kernel,
        out_shape=jax.ShapeDtypeStruct((n_out, 32), jnp.bfloat16),
        in_specs=[
            pl.BlockSpec(rows.shape, lambda: (0, 0)),
            pl.BlockSpec(w1.shape, lambda: (0, 0)),
            pl.BlockSpec(b1.shape, lambda: (0, 0)),
            pl.BlockSpec(w2.shape, lambda: (0, 0, 0)),
            pl.BlockSpec(b2.shape, lambda: (0, 0)),
        ],
        out_specs=pl.BlockSpec((n_out, 32), lambda: (0, 0)),
        scratch_shapes=[pltpu.VMEM((4 * phase_len, 16), jnp.float32)],
    )(rows, w1, b1, w2, b2)


# ---------------------------------------------------------------------------
# Kernel B: l1 + ReLU with l2 folded into the epilogue as a lane reduction.
# ---------------------------------------------------------------------------
def _head_kernel(x_ref, wl1_ref, bl1_ref, wl2_ref, bl2_ref, o_ref):
    h = jnp.dot(x_ref[...], wl1_ref[...], preferred_element_type=jnp.float32)
    h = jnp.maximum(h + bl1_ref[...], 0.0)                   # [B, 256]
    # l2 (256 -> 1): VPU multiply + lane reduction instead of an N=1 matmul.
    v = jnp.sum(h * wl2_ref[...], axis=-1, keepdims=True) + bl2_ref[...]
    o_ref[...] = v.astype(o_ref.dtype)


def head(x, wl1, bl1, wl2, bl2):
    batch = x.shape[0]
    return pl.pallas_call(
        _head_kernel,
        out_shape=jax.ShapeDtypeStruct((batch, 1), jnp.float32),
        in_specs=[
            pl.BlockSpec(x.shape, lambda: (0, 0)),
            pl.BlockSpec(wl1.shape, lambda: (0, 0)),
            pl.BlockSpec(bl1.shape, lambda: (0, 0)),
            pl.BlockSpec(wl2.shape, lambda: (0, 0)),
            pl.BlockSpec(bl2.shape, lambda: (0, 0)),
        ],
        out_specs=pl.BlockSpec((batch, 1), lambda: (0, 0)),
    )(x, wl1, bl1, wl2, bl2)


# ---------------------------------------------------------------------------
# Parameters (PyTorch-style init) + one-time layout preparation.
# ---------------------------------------------------------------------------
def init_critic_params(key):
    def uni(k, shape, fan_in):
        bound = 1.0 / float(np.sqrt(fan_in))
        return jax.random.uniform(k, shape, jnp.float32, -bound, bound)

    ks = jax.random.split(key, 8)
    return {
        "conv1_w": uni(ks[0], (16, 1, 8, 8), 64),
        "conv1_b": uni(ks[1], (16,), 64),
        "conv2_w": uni(ks[2], (32, 16, 4, 4), 256),
        "conv2_b": uni(ks[3], (32,), 256),
        "l1_w": uni(ks[4], (256, 2592), 2592),   # PyTorch layout [out, in]
        "l1_b": uni(ks[5], (256,), 2592),
        "l2_w": uni(ks[6], (1, 256), 256),
        "l2_b": uni(ks[7], (1,), 256),
    }


def prepare_params(params):
    """One-time weight layout prep (hoisted out of the per-step forward)."""
    w1 = params["conv1_w"].reshape(16, 64).T.astype(jnp.bfloat16)      # [64, 16]
    b1 = params["conv1_b"].reshape(1, 16).astype(jnp.float32)

    # conv2 taps keyed by (phase, di, dj): tap (i, j) = (2*di + r, 2*dj + s).
    taps = []
    for (r, s) in _PHASES:
        for di in (0, 1):
            for dj in (0, 1):
                taps.append(params["conv2_w"][:, :, 2 * di + r, 2 * dj + s].T)
    w2 = jnp.stack(taps, axis=0).astype(jnp.float32)                   # [16, 16, 32]
    b2 = params["conv2_b"].reshape(1, 32).astype(jnp.float32)

    # l1 weight, permuted + zero-padded so that the conv kernel's natural
    # (oh*10 + ow, channel) output layout (81 valid of 100 positions per
    # image) multiplies it directly: this absorbs the PyTorch NCHW
    # .view(B, -1) flatten into the weight; garbage positions hit zero rows.
    wl1_t = params["l1_w"].T                                           # [2592, 256]
    oh, ow, c = np.meshgrid(np.arange(9), np.arange(9), np.arange(32),
                            indexing="ij")
    dst = ((oh * 10 + ow) * 32 + c).reshape(-1)
    src = (c * 81 + oh * 9 + ow).reshape(-1)
    wl1 = jnp.zeros((100 * 32, 256), jnp.float32).at[dst].set(wl1_t[src])
    wl1 = wl1.astype(jnp.bfloat16)                                     # [3200, 256]

    return {
        "w1": w1, "b1": b1, "w2": w2, "b2": b2,
        "wl1": wl1,
        "bl1": params["l1_b"].reshape(1, 256).astype(jnp.float32),
        "wl2": params["l2_w"].reshape(1, 256).astype(jnp.float32),
        "bl2": params["l2_b"].reshape(1, 1).astype(jnp.float32),
    }


# ---------------------------------------------------------------------------
# Forward pass (matches Critic.forward semantics).
# ---------------------------------------------------------------------------
def _conv1_phase_rows(x, phase_len):
    """x: [B, 84, 84] -> phase-ordered conv1 im2col rows [4*phase_len, 64]."""
    batch = x.shape[0]
    pad = phase_len - batch * 100
    blocks = []
    for (r, s) in _PHASES:
        xr = x[:, 4 * r:4 * r + 80, 4 * s:4 * s + 80]
        xr = xr.reshape(batch, 10, 8, 10, 8)          # [B, p, i, q, j]
        xr = xr.transpose(0, 1, 3, 2, 4)              # [B, p, q, i, j]
        xr = xr.reshape(batch * 100, 64)
        blocks.append(jnp.pad(xr, ((0, pad), (0, 0))))
    return jnp.concatenate(blocks, axis=0).astype(jnp.bfloat16)


def critic_forward(prepped, state):
    """state: [B, 1, 84, 84] -> value [B, 1]."""
    batch = state.shape[0]
    n_out = batch * 100                         # conv2 rows: 10x10 grid, 9x9 valid
    phase_len = _round_up(batch * 100 + 11, 8)  # +11 covers the largest tap shift
    rows = _conv1_phase_rows(state[:, 0, :, :], phase_len)
    conv_out = conv_stack(rows, prepped["w1"], prepped["b1"],
                          prepped["w2"], prepped["b2"],
                          n_out=n_out, phase_len=phase_len)
    x = conv_out.reshape(batch, 100 * 32)       # layout-compatible (free) reshape
    return head(x, prepped["wl1"], prepped["bl1"], prepped["wl2"], prepped["bl2"])


if __name__ == "__main__":
    key = jax.random.PRNGKey(0)
    pkey, xkey = jax.random.split(key)
    params = init_critic_params(pkey)
    prepped = prepare_params(params)   # weight layout prep done once, off the hot path

    # 84x84 single-channel frames: the only spatial size consistent with
    # l1.in_features = 32 * 9 * 9 = 2592.  Batch of 2.
    state = jax.random.normal(xkey, (2, 1, 84, 84), dtype=jnp.float32)

    value = jax.jit(critic_forward)(prepped, state)
    value = jax.block_until_ready(value)
    assert value.shape == (2, 1) and value.dtype == jnp.float32
    print("KERNEL_OK")
</pallas_src>

<mosaic_0001>
module attributes {stable_mosaic.version = 11 : i64} {
  func.func @_conv_stack_kernel(%arg0: memref<864x64xbf16, #tpu.memory_space<vmem>>, %arg1: memref<64x16xbf16, #tpu.memory_space<vmem>>, %arg2: memref<1x16xf32, #tpu.memory_space<vmem>>, %arg3: memref<16x16x32xf32, #tpu.memory_space<vmem>>, %arg4: memref<1x32xf32, #tpu.memory_space<vmem>>, %arg5: memref<200x32xbf16, #tpu.memory_space<vmem>>, %arg6: memref<864x16xf32, #tpu.memory_space<vmem>>) attributes {dimension_semantics = [], scalar_prefetch = 0 : i64, scratch_operands = 1 : i64, tpu.core_type = #tpu.core_type<tc>} {
    %c0 = arith.constant 0 : index
    %c0_0 = arith.constant 0 : index
    %0 = vector.load %arg0[%c0, %c0_0] : memref<864x64xbf16, #tpu.memory_space<vmem>>, vector<864x64xbf16>
    %c0_1 = arith.constant 0 : index
    %c0_2 = arith.constant 0 : index
    %1 = vector.load %arg1[%c0_1, %c0_2] : memref<64x16xbf16, #tpu.memory_space<vmem>>, vector<64x16xbf16>
    %cst = arith.constant dense<0.000000e+00> : vector<864x16xf32>
    %2 = tpu.matmul %0, %1, %cst {dimension_numbers = #tpu.dot_dimension_numbers<[1], [0], [0], [1], [0, 0, 1, 1], [], []>} : vector<864x64xbf16>, vector<64x16xbf16>, vector<864x16xf32> -> vector<864x16xf32>
    %c0_3 = arith.constant 0 : index
    %c0_4 = arith.constant 0 : index
    %3 = vector.load %arg2[%c0_3, %c0_4] : memref<1x16xf32, #tpu.memory_space<vmem>>, vector<1x16xf32>
    %4 = vector.broadcast %3 : vector<1x16xf32> to vector<864x16xf32>
    %5 = arith.addf %2, %4 : vector<864x16xf32>
    %cst_5 = arith.constant 0.000000e+00 : f32
    %6 = vector.broadcast %cst_5 : f32 to vector<864x16xf32>
    %7 = arith.maximumf %5, %6 : vector<864x16xf32>
    %c0_6 = arith.constant 0 : index
    %c0_7 = arith.constant 0 : index
    %8 = vector.load %arg6[%c0_6, %c0_7] : memref<864x16xf32, #tpu.memory_space<vmem>>, vector<864x16xf32>
    tpu.vector_store %arg6[%c0_6, %c0_7], %7 {strides = array<i32>} : memref<864x16xf32, #tpu.memory_space<vmem>>, vector<864x16xf32>,
    %cst_8 = arith.constant 0.000000e+00 : f32
    %9 = vector.broadcast %cst_8 : f32 to vector<200x32xf32>
    %c0_9 = arith.constant 0 : index
    %c0_10 = arith.constant 0 : index
    %10 = vector.load %arg6[%c0_9, %c0_10] : memref<864x16xf32, #tpu.memory_space<vmem>>, vector<200x16xf32>
    %c0_11 = arith.constant 0 : index
    %c0_12 = arith.constant 0 : index
    %c0_13 = arith.constant 0 : index
    %11 = vector.load %arg3[%c0_11, %c0_12, %c0_13] : memref<16x16x32xf32, #tpu.memory_space<vmem>>, vector<1x16x32xf32>
    %12 = vector.shape_cast %11 : vector<1x16x32xf32> to vector<16x32xf32>
    %cst_14 = arith.constant dense<0.000000e+00> : vector<200x32xf32>
    %13 = tpu.matmul %10, %12, %cst_14 {dimension_numbers = #tpu.dot_dimension_numbers<[1], [0], [0], [1], [0, 0, 1, 1], [], []>} : vector<200x16xf32>, vector<16x32xf32>, vector<200x32xf32> -> vector<200x32xf32>
    %14 = arith.addf %9, %13 : vector<200x32xf32>
    %c1 = arith.constant 1 : index
    %c0_15 = arith.constant 0 : index
    %15 = vector.load %arg6[%c1, %c0_15] : memref<864x16xf32, #tpu.memory_space<vmem>>, vector<200x16xf32>
    %c1_16 = arith.constant 1 : index
    %c0_17 = arith.constant 0 : index
    %c0_18 = arith.constant 0 : index
    %16 = vector.load %arg3[%c1_16, %c0_17, %c0_18] : memref<16x16x32xf32, #tpu.memory_space<vmem>>, vector<1x16x32xf32>
    %17 = vector.shape_cast %16 : vector<1x16x32xf32> to vector<16x32xf32>
    %cst_19 = arith.constant dense<0.000000e+00> : vector<200x32xf32>
    %18 = tpu.matmul %15, %17, %cst_19 {dimension_numbers = #tpu.dot_dimension_numbers<[1], [0], [0], [1], [0, 0, 1, 1], [], []>} : vector<200x16xf32>, vector<16x32xf32>, vector<200x32xf32> -> vector<200x32xf32>
    %19 = arith.addf %14, %18 : vector<200x32xf32>
    %c10 = arith.constant 10 : index
    %c0_20 = arith.constant 0 : index
    %20 = vector.load %arg6[%c10, %c0_20] : memref<864x16xf32, #tpu.memory_space<vmem>>, vector<200x16xf32>
    %c2 = arith.constant 2 : index
    %c0_21 = arith.constant 0 : index
    %c0_22 = arith.constant 0 : index
    %21 = vector.load %arg3[%c2, %c0_21, %c0_22] : memref<16x16x32xf32, #tpu.memory_space<vmem>>, vector<1x16x32xf32>
    %22 = vector.shape_cast %21 : vector<1x16x32xf32> to vector<16x32xf32>
    %cst_23 = arith.constant dense<0.000000e+00> : vector<200x32xf32>
    %23 = tpu.matmul %20, %22, %cst_23 {dimension_numbers = #tpu.dot_dimension_numbers<[1], [0], [0], [1], [0, 0, 1, 1], [], []>} : vector<200x16xf32>, vector<16x32xf32>, vector<200x32xf32> -> vector<200x32xf32>
    %24 = arith.addf %19, %23 : vector<200x32xf32>
    %c11 = arith.constant 11 : index
    %c0_24 = arith.constant 0 : index
    %25 = vector.load %arg6[%c11, %c0_24] : memref<864x16xf32, #tpu.memory_space<vmem>>, vector<200x16xf32>
    %c3 = arith.constant 3 : index
    %c0_25 = arith.constant 0 : index
    %c0_26 = arith.constant 0 : index
    %26 = vector.load %arg3[%c3, %c0_25, %c0_26] : memref<16x16x32xf32, #tpu.memory_space<vmem>>, vector<1x16x32xf32>
    %27 = vector.shape_cast %26 : vector<1x16x32xf32> to vector<16x32xf32>
    %cst_27 = arith.constant dense<0.000000e+00> : vector<200x32xf32>
    %28 = tpu.matmul %25, %27, %cst_27 {dimension_numbers = #tpu.dot_dimension_numbers<[1], [0], [0], [1], [0, 0, 1, 1], [], []>} : vector<200x16xf32>, vector<16x32xf32>, vector<200x32xf32> -> vector<200x32xf32>
    %29 = arith.addf %24, %28 : vector<200x32xf32>
    %c216 = arith.constant 216 : index
    %c0_28 = arith.constant 0 : index
    %30 = vector.load %arg6[%c216, %c0_28] : memref<864x16xf32, #tpu.memory_space<vmem>>, vector<200x16xf32>
    %c4 = arith.constant 4 : index
    %c0_29 = arith.constant 0 : index
    %c0_30 = arith.constant 0 : index
    %31 = vector.load %arg3[%c4, %c0_29, %c0_30] : memref<16x16x32xf32, #tpu.memory_space<vmem>>, vector<1x16x32xf32>
    %32 = vector.shape_cast %31 : vector<1x16x32xf32> to vector<16x32xf32>
    %cst_31 = arith.constant dense<0.000000e+00> : vector<200x32xf32>
    %33 = tpu.matmul %30, %32, %cst_31 {dimension_numbers = #tpu.dot_dimension_numbers<[1], [0], [0], [1], [0, 0, 1, 1], [], []>} : vector<200x16xf32>, vector<16x32xf32>, vector<200x32xf32> -> vector<200x32xf32>
    %34 = arith.addf %29, %33 : vector<200x32xf32>
    %c217 = arith.constant 217 : index
    %c0_32 = arith.constant 0 : index
    %35 = vector.load %arg6[%c217, %c0_32] : memref<864x16xf32, #tpu.memory_space<vmem>>, vector<200x16xf32>
    %c5 = arith.constant 5 : index
    %c0_33 = arith.constant 0 : index
    %c0_34 = arith.constant 0 : index
    %36 = vector.load %arg3[%c5, %c0_33, %c0_34] : memref<16x16x32xf32, #tpu.memory_space<vmem>>, vector<1x16x32xf32>
    %37 = vector.shape_cast %36 : vector<1x16x32xf32> to vector<16x32xf32>
    %cst_35 = arith.constant dense<0.000000e+00> : vector<200x32xf32>
    %38 = tpu.matmul %35, %37, %cst_35 {dimension_numbers = #tpu.dot_dimension_numbers<[1], [0], [0], [1], [0, 0, 1, 1], [], []>} : vector<200x16xf32>, vector<16x32xf32>, vector<200x32xf32> -> vector<200x32xf32>
    %39 = arith.addf %34, %38 : vector<200x32xf32>
    %c226 = arith.constant 226 : index
    %c0_36 = arith.constant 0 : index
    %40 = vector.load %arg6[%c226, %c0_36] : memref<864x16xf32, #tpu.memory_space<vmem>>, vector<200x16xf32>
    %c6 = arith.constant 6 : index
    %c0_37 = arith.constant 0 : index
    %c0_38 = arith.constant 0 : index
    %41 = vector.load %arg3[%c6, %c0_37, %c0_38] : memref<16x16x32xf32, #tpu.memory_space<vmem>>, vector<1x16x32xf32>
    %42 = vector.shape_cast %41 : vector<1x16x32xf32> to vector<16x32xf32>
    %cst_39 = arith.constant dense<0.000000e+00> : vector<200x32xf32>
    %43 = tpu.matmul %40, %42, %cst_39 {dimension_numbers = #tpu.dot_dimension_numbers<[1], [0], [0], [1], [0, 0, 1, 1], [], []>} : vector<200x16xf32>, vector<16x32xf32>, vector<200x32xf32> -> vector<200x32xf32>
    %44 = arith.addf %39, %43 : vector<200x32xf32>
    %c227 = arith.constant 227 : index
    %c0_40 = arith.constant 0 : index
    %45 = vector.load %arg6[%c227, %c0_40] : memref<864x16xf32, #tpu.memory_space<vmem>>, vector<200x16xf32>
    %c7 = arith.constant 7 : index
    %c0_41 = arith.constant 0 : index
    %c0_42 = arith.constant 0 : index
    %46 = vector.load %arg3[%c7, %c0_41, %c0_42] : memref<16x16x32xf32, #tpu.memory_space<vmem>>, vector<1x16x32xf32>
    %47 = vector.shape_cast %46 : vector<1x16x32xf32> to vector<16x32xf32>
    %cst_43 = arith.constant dense<0.000000e+00> : vector<200x32xf32>
    %48 = tpu.matmul %45, %47, %cst_43 {dimension_numbers = #tpu.dot_dimension_numbers<[1], [0], [0], [1], [0, 0, 1, 1], [], []>} : vector<200x16xf32>, vector<16x32xf32>, vector<200x32xf32> -> vector<200x32xf32>
    %49 = arith.addf %44, %48 : vector<200x32xf32>
    %c432 = arith.constant 432 : index
    %c0_44 = arith.constant 0 : index
    %50 = vector.load %arg6[%c432, %c0_44] : memref<864x16xf32, #tpu.memory_space<vmem>>, vector<200x16xf32>
    %c8 = arith.constant 8 : index
    %c0_45 = arith.constant 0 : index
    %c0_46 = arith.constant 0 : index
    %51 = vector.load %arg3[%c8, %c0_45, %c0_46] : memref<16x16x32xf32, #tpu.memory_space<vmem>>, vector<1x16x32xf32>
    %52 = vector.shape_cast %51 : vector<1x16x32xf32> to vector<16x32xf32>
    %cst_47 = arith.constant dense<0.000000e+00> : vector<200x32xf32>
    %53 = tpu.matmul %50, %52, %cst_47 {dimension_numbers = #tpu.dot_dimension_numbers<[1], [0], [0], [1], [0, 0, 1, 1], [], []>} : vector<200x16xf32>, vector<16x32xf32>, vector<200x32xf32> -> vector<200x32xf32>
    %54 = arith.addf %49, %53 : vector<200x32xf32>
    %c433 = arith.constant 433 : index
    %c0_48 = arith.constant 0 : index
    %55 = vector.load %arg6[%c433, %c0_48] : memref<864x16xf32, #tpu.memory_space<vmem>>, vector<200x16xf32>
    %c9 = arith.constant 9 : index
    %c0_49 = arith.constant 0 : index
    %c0_50 = arith.constant 0 : index
    %56 = vector.load %arg3[%c9, %c0_49, %c0_50] : memref<16x16x32xf32, #tpu.memory_space<vmem>>, vector<1x16x32xf32>
    %57 = vector.shape_cast %56 : vector<1x16x32xf32> to vector<16x32xf32>
    %cst_51 = arith.constant dense<0.000000e+00> : vector<200x32xf32>
    %58 = tpu.matmul %55, %57, %cst_51 {dimension_numbers = #tpu.dot_dimension_numbers<[1], [0], [0], [1], [0, 0, 1, 1], [], []>} : vector<200x16xf32>, vector<16x32xf32>, vector<200x32xf32> -> vector<200x32xf32>
    %59 = arith.addf %54, %58 : vector<200x32xf32>
    %c442 = arith.constant 442 : index
    %c0_52 = arith.constant 0 : index
    %60 = vector.load %arg6[%c442, %c0_52] : memref<864x16xf32, #tpu.memory_space<vmem>>, vector<200x16xf32>
    %c10_53 = arith.constant 10 : index
    %c0_54 = arith.constant 0 : index
    %c0_55 = arith.constant 0 : index
    %61 = vector.load %arg3[%c10_53, %c0_54, %c0_55] : memref<16x16x32xf32, #tpu.memory_space<vmem>>, vector<1x16x32xf32>
    %62 = vector.shape_cast %61 : vector<1x16x32xf32> to vector<16x32xf32>
    %cst_56 = arith.constant dense<0.000000e+00> : vector<200x32xf32>
    %63 = tpu.matmul %60, %62, %cst_56 {dimension_numbers = #tpu.dot_dimension_numbers<[1], [0], [0], [1], [0, 0, 1, 1], [], []>} : vector<200x16xf32>, vector<16x32xf32>, vector<200x32xf32> -> vector<200x32xf32>
    %64 = arith.addf %59, %63 : vector<200x32xf32>
    %c443 = arith.constant 443 : index
    %c0_57 = arith.constant 0 : index
    %65 = vector.load %arg6[%c443, %c0_57] : memref<864x16xf32, #tpu.memory_space<vmem>>, vector<200x16xf32>
    %c11_58 = arith.constant 11 : index
    %c0_59 = arith.constant 0 : index
    %c0_60 = arith.constant 0 : index
    %66 = vector.load %arg3[%c11_58, %c0_59, %c0_60] : memref<16x16x32xf32, #tpu.memory_space<vmem>>, vector<1x16x32xf32>
    %67 = vector.shape_cast %66 : vector<1x16x32xf32> to vector<16x32xf32>
    %cst_61 = arith.constant dense<0.000000e+00> : vector<200x32xf32>
    %68 = tpu.matmul %65, %67, %cst_61 {dimension_numbers = #tpu.dot_dimension_numbers<[1], [0], [0], [1], [0, 0, 1, 1], [], []>} : vector<200x16xf32>, vector<16x32xf32>, vector<200x32xf32> -> vector<200x32xf32>
    %69 = arith.addf %64, %68 : vector<200x32xf32>
    %c648 = arith.constant 648 : index
    %c0_62 = arith.constant 0 : index
    %70 = vector.load %arg6[%c648, %c0_62] : memref<864x16xf32, #tpu.memory_space<vmem>>, vector<200x16xf32>
    %c12 = arith.constant 12 : index
    %c0_63 = arith.constant 0 : index
    %c0_64 = arith.constant 0 : index
    %71 = vector.load %arg3[%c12, %c0_63, %c0_64] : memref<16x16x32xf32, #tpu.memory_space<vmem>>, vector<1x16x32xf32>
    %72 = vector.shape_cast %71 : vector<1x16x32xf32> to vector<16x32xf32>
    %cst_65 = arith.constant dense<0.000000e+00> : vector<200x32xf32>
    %73 = tpu.matmul %70, %72, %cst_65 {dimension_numbers = #tpu.dot_dimension_numbers<[1], [0], [0], [1], [0, 0, 1, 1], [], []>} : vector<200x16xf32>, vector<16x32xf32>, vector<200x32xf32> -> vector<200x32xf32>
    %74 = arith.addf %69, %73 : vector<200x32xf32>
    %c649 = arith.constant 649 : index
    %c0_66 = arith.constant 0 : index
    %75 = vector.load %arg6[%c649, %c0_66] : memref<864x16xf32, #tpu.memory_space<vmem>>, vector<200x16xf32>
    %c13 = arith.constant 13 : index
    %c0_67 = arith.constant 0 : index
    %c0_68 = arith.constant 0 : index
    %76 = vector.load %arg3[%c13, %c0_67, %c0_68] : memref<16x16x32xf32, #tpu.memory_space<vmem>>, vector<1x16x32xf32>
    %77 = vector.shape_cast %76 : vector<1x16x32xf32> to vector<16x32xf32>
    %cst_69 = arith.constant dense<0.000000e+00> : vector<200x32xf32>
    %78 = tpu.matmul %75, %77, %cst_69 {dimension_numbers = #tpu.dot_dimension_numbers<[1], [0], [0], [1], [0, 0, 1, 1], [], []>} : vector<200x16xf32>, vector<16x32xf32>, vector<200x32xf32> -> vector<200x32xf32>
    %79 = arith.addf %74, %78 : vector<200x32xf32>
    %c658 = arith.constant 658 : index
    %c0_70 = arith.constant 0 : index
    %80 = vector.load %arg6[%c658, %c0_70] : memref<864x16xf32, #tpu.memory_space<vmem>>, vector<200x16xf32>
    %c14 = arith.constant 14 : index
    %c0_71 = arith.constant 0 : index
    %c0_72 = arith.constant 0 : index
    %81 = vector.load %arg3[%c14, %c0_71, %c0_72] : memref<16x16x32xf32, #tpu.memory_space<vmem>>, vector<1x16x32xf32>
    %82 = vector.shape_cast %81 : vector<1x16x32xf32> to vector<16x32xf32>
    %cst_73 = arith.constant dense<0.000000e+00> : vector<200x32xf32>
    %83 = tpu.matmul %80, %82, %cst_73 {dimension_numbers = #tpu.dot_dimension_numbers<[1], [0], [0], [1], [0, 0, 1, 1], [], []>} : vector<200x16xf32>, vector<16x32xf32>, vector<200x32xf32> -> vector<200x32xf32>
    %84 = arith.addf %79, %83 : vector<200x32xf32>
    %c659 = arith.constant 659 : index
    %c0_74 = arith.constant 0 : index
    %85 = vector.load %arg6[%c659, %c0_74] : memref<864x16xf32, #tpu.memory_space<vmem>>, vector<200x16xf32>
    %c15 = arith.constant 15 : index
    %c0_75 = arith.constant 0 : index
    %c0_76 = arith.constant 0 : index
    %86 = vector.load %arg3[%c15, %c0_75, %c0_76] : memref<16x16x32xf32, #tpu.memory_space<vmem>>, vector<1x16x32xf32>
    %87 = vector.shape_cast %86 : vector<1x16x32xf32> to vector<16x32xf32>
    %cst_77 = arith.constant dense<0.000000e+00> : vector<200x32xf32>
    %88 = tpu.matmul %85, %87, %cst_77 {dimension_numbers = #tpu.dot_dimension_numbers<[1], [0], [0], [1], [0, 0, 1, 1], [], []>} : vector<200x16xf32>, vector<16x32xf32>, vector<200x32xf32> -> vector<200x32xf32>
    %89 = arith.addf %84, %88 : vector<200x32xf32>
    %c0_78 = arith.constant 0 : index
    %c0_79 = arith.constant 0 : index
    %90 = vector.load %arg4[%c0_78, %c0_79] : memref<1x32xf32, #tpu.memory_space<vmem>>, vector<1x32xf32>
    %91 = vector.broadcast %90 : vector<1x32xf32> to vector<200x32xf32>
    %92 = arith.addf %89, %91 : vector<200x32xf32>
    %cst_80 = arith.constant 0.000000e+00 : f32
    %93 = vector.broadcast %cst_80 : f32 to vector<200x32xf32>
    %94 = arith.maximumf %92, %93 : vector<200x32xf32>
    %95 = arith.truncf %94 : vector<200x32xf32> to vector<200x32xbf16>
    %c0_81 = arith.constant 0 : index
    %c0_82 = arith.constant 0 : index
    %96 = vector.load %arg5[%c0_81, %c0_82] : memref<200x32xbf16, #tpu.memory_space<vmem>>, vector<200x32xbf16>
    tpu.vector_store %arg5[%c0_81, %c0_82], %95 {strides = array<i32>} : memref<200x32xbf16, #tpu.memory_space<vmem>>, vector<200x32xbf16>,
    return
  }
}

module attributes {stable_mosaic.version = 11 : i64} {
  func.func @_head_kernel(%arg0: memref<2x3200xbf16, #tpu.memory_space<vmem>>, %arg1: memref<3200x256xbf16, #tpu.memory_space<vmem>>, %arg2: memref<1x256xf32, #tpu.memory_space<vmem>>, %arg3: memref<1x256xf32, #tpu.memory_space<vmem>>, %arg4: memref<1x1xf32, #tpu.memory_space<vmem>>, %arg5: memref<2x1xf32, #tpu.memory_space<vmem>>) attributes {dimension_semantics = [], scalar_prefetch = 0 : i64, scratch_operands = 0 : i64, tpu.core_type = #tpu.core_type<tc>} {
    %c0 = arith.constant 0 : index
    %c0_0 = arith.constant 0 : index
    %0 = vector.load %arg0[%c0, %c0_0] : memref<2x3200xbf16, #tpu.memory_space<vmem>>, vector<2x3200xbf16>
    %c0_1 = arith.constant 0 : index
    %c0_2 = arith.constant 0 : index
    %1 = vector.load %arg1[%c0_1, %c0_2] : memref<3200x256xbf16, #tpu.memory_space<vmem>>, vector<3200x256xbf16>
    %cst = arith.constant dense<0.000000e+00> : vector<2x256xf32>
    %2 = tpu.matmul %0, %1, %cst {dimension_numbers = #tpu.dot_dimension_numbers<[1], [0], [0], [1], [0, 0, 1, 1], [], []>} : vector<2x3200xbf16>, vector<3200x256xbf16>, vector<2x256xf32> -> vector<2x256xf32>
    %c0_3 = arith.constant 0 : index
    %c0_4 = arith.constant 0 : index
    %3 = vector.load %arg2[%c0_3, %c0_4] : memref<1x256xf32, #tpu.memory_space<vmem>>, vector<1x256xf32>
    %4 = vector.broadcast %3 : vector<1x256xf32> to vector<2x256xf32>
    %5 = arith.addf %2, %4 : vector<2x256xf32>
    %cst_5 = arith.constant 0.000000e+00 : f32
    %6 = vector.broadcast %cst_5 : f32 to vector<2x256xf32>
    %7 = arith.maximumf %5, %6 : vector<2x256xf32>
    %c0_6 = arith.constant 0 : index
    %c0_7 = arith.constant 0 : index
    %8 = vector.load %arg3[%c0_6, %c0_7] : memref<1x256xf32, #tpu.memory_space<vmem>>, vector<1x256xf32>
    %9 = vector.broadcast %8 : vector<1x256xf32> to vector<2x256xf32>
    %10 = arith.mulf %7, %9 : vector<2x256xf32>
    %cst_8 = arith.constant dense<0.000000e+00> : vector<2xf32>
    %11 = vector.multi_reduction <add>, %10, %cst_8 [1] : vector<2x256xf32> to vector<2xf32>
    %12 = vector.shape_cast %11 : vector<2xf32> to vector<2x1xf32>
    %c0_9 = arith.constant 0 : index
    %c0_10 = arith.constant 0 : index
    %13 = vector.load %arg4[%c0_9, %c0_10] : memref<1x1xf32, #tpu.memory_space<vmem>>, vector<1x1xf32>
    %14 = vector.broadcast %13 : vector<1x1xf32> to vector<2x1xf32>
    %15 = arith.addf %12, %14 : vector<2x1xf32>
    %c0_11 = arith.constant 0 : index
    %c0_12 = arith.constant 0 : index
    %16 = vector.load %arg5[%c0_11, %c0_12] : memref<2x1xf32, #tpu.memory_space<vmem>>, vector<2x1xf32>
    tpu.vector_store %arg5[%c0_11, %c0_12], %15 {strides = array<i32>} : memref<2x1xf32, #tpu.memory_space<vmem>>, vector<2x1xf32>,
    return
  }
}

</mosaic_0001>

<bundles_post_ra>
// kernel: critic_forward.3
= control target key start
LH: loop header
LB: loop body
LE: loop exit
PB: predicated region body
PF: predicated region fallthrough
CT: control target
= control target key end

     0   :  { %v429_v36 = vlaneseq  ;;  %v4255_v37 = vmov 1966171168   ;;  %vm3178_vm0 = vcmask 1041408   ;;  %vm3192_vm1 = vcmask 1024   ;;  %s5619_s1 = inlined_call_operand.vmem [shape: bf16[3200,256], index: 1, kind: input, shape index: {}]   ;;  %s5620_s0 = inlined_call_operand.vmem [shape: bf16[2,3200], index: 0, kind: input, shape index: {}]   ;;  %s5621_s4 = inlined_call_operand.<no memory space> [shape: f32[1,1], index: 4, kind: input, shape index: {}]   ;;  %s5622_s2 = inlined_call_operand.vmem [shape: f32[1,256], index: 2, kind: input, shape index: {}]   ;;  %s5623_s3 = inlined_call_operand.vmem [shape: f32[1,256], index: 3, kind: input, shape index: {}]   ;;  %s5624_s5 = inlined_call_operand.vmem [shape: f32[2,1], index: 5, kind: output, shape index: {}]  }
   0x1   :  { %v3650_v0 = vld [vmem:[%s5619_s1 + $0x4] ss:$8 sps:$4 sm:$0xff]   ;;  %v3654_v2 = vld [vmem:[%s5619_s1] ss:$8 sps:$4 sm:$0xff]   ;;  %v3656_v4 = vld [vmem:[%s5619_s1 + $0x14] ss:$8 sps:$4 sm:$0xff]   ;;  %v445_v38 = vunpack.c.l.s4 %v4255_v37 }
   0x2   :  { %v3652_v1 = vld [vmem:[%s5619_s1 + $0x604] ss:$8 sps:$4 sm:$0xff]   ;;  %2629 = vmatprep.subr.bf16.mxu1 %v3650_v0  ;;  %v3655_v3 = vld [vmem:[%s5619_s1 + $0x600] ss:$8 sps:$4 sm:$0xff]   ;;  %v3658_v5 = vld [vmem:[%s5619_s1 + $0x614] ss:$8 sps:$4 sm:$0xff]  }
   0x3   :  { %2875 = vmatprep.subr.bf16.mxu0 %v3652_v1  ;;  %2630 = vmatpush1.bf16.msra.mxu1 %v3654_v2  ;;  %v3660_v6 = vld [vmem:[%s5619_s1 + $0x10] ss:$8 sps:$4 sm:$0xff]   ;;  %v3662_v8 = vld [vmem:[%s5619_s1 + $0x24] ss:$8 sps:$4 sm:$0xff]   ;;  %v3666_v10 = vld [vmem:[%s5619_s1 + $0x20] ss:$8 sps:$4 sm:$0xff]   ;;  %v446_v43 = vunpack.c.0.s8 %v445_v38 }
   0x4   :  { %2876 = vmatpush1.bf16.msra.mxu0 %v3655_v3  ;;  %2631 = vmatprep.subr.bf16.mxu1 %v3656_v4  ;;  %v3661_v7 = vld [vmem:[%s5619_s1 + $0x610] ss:$8 sps:$4 sm:$0xff]   ;;  %v3664_v9 = vld [vmem:[%s5619_s1 + $0x624] ss:$8 sps:$4 sm:$0xff]   ;;  %v3667_v11 = vld [vmem:[%s5619_s1 + $0x620] ss:$8 sps:$4 sm:$0xff]  }
   0x5   :  { %2877 = vmatprep.subr.bf16.mxu0 %v3658_v5  ;;  %v3668_v12 = vld [vmem:[%s5619_s1 + $0x34] ss:$8 sps:$4 sm:$0xff]   ;;  %v3672_v14 = vld [vmem:[%s5619_s1 + $0x30] ss:$8 sps:$4 sm:$0xff]   ;;  %v3674_v16 = vld [vmem:[%s5619_s1 + $0x44] ss:$8 sps:$4 sm:$0xff]  }
   0x6   :  { %v3670_v13 = vld [vmem:[%s5619_s1 + $0x634] ss:$8 sps:$4 sm:$0xff]   ;;  %v3673_v15 = vld [vmem:[%s5619_s1 + $0x630] ss:$8 sps:$4 sm:$0xff]   ;;  %v3676_v17 = vld [vmem:[%s5619_s1 + $0x644] ss:$8 sps:$4 sm:$0xff]  }
   0x7   :  { %2632 = vmatpush1.bf16.msra.mxu1 %v3660_v6  ;;  %v3678_v18 = vld [vmem:[%s5619_s1 + $0x40] ss:$8 sps:$4 sm:$0xff]   ;;  %v3680_v20 = vld [vmem:[%s5619_s1 + $0x54] ss:$8 sps:$4 sm:$0xff]   ;;  %v3684_v22 = vld [vmem:[%s5619_s1 + $0x50] ss:$8 sps:$4 sm:$0xff]  }
   0x8   :  { %2878 = vmatpush1.bf16.msra.mxu0 %v3661_v7  ;;  %2633 = vmatprep.subr.bf16.mxu1 %v3662_v8  ;;  %v3679_v19 = vld [vmem:[%s5619_s1 + $0x640] ss:$8 sps:$4 sm:$0xff]   ;;  %v3682_v21 = vld [vmem:[%s5619_s1 + $0x654] ss:$8 sps:$4 sm:$0xff]   ;;  %v3685_v23 = vld [vmem:[%s5619_s1 + $0x650] ss:$8 sps:$4 sm:$0xff]  }
   0x9   :  { %2879 = vmatprep.subr.bf16.mxu0 %v3664_v9  ;;  %v3686_v24 = vld [vmem:[%s5619_s1 + $0x64] ss:$8 sps:$4 sm:$0xff]   ;;  %v3690_v26 = vld [vmem:[%s5619_s1 + $0x60] ss:$8 sps:$4 sm:$0xff]   ;;  %v3692_v28 = vld [vmem:[%s5619_s1 + $0x74] ss:$8 sps:$4 sm:$0xff]  }
   0xa   :  { %v3688_v25 = vld [vmem:[%s5619_s1 + $0x664] ss:$8 sps:$4 sm:$0xff]   ;;  %v3691_v27 = vld [vmem:[%s5619_s1 + $0x660] ss:$8 sps:$4 sm:$0xff]   ;;  %v3694_v29 = vld [vmem:[%s5619_s1 + $0x674] ss:$8 sps:$4 sm:$0xff]  }
   0xb   :  { %2634 = vmatpush1.bf16.msra.mxu1 %v3666_v10  ;;  %v3696_v30 = vld [vmem:[%s5619_s1 + $0x70] ss:$8 sps:$4 sm:$0xff]   ;;  %v3698_v32 = vld [vmem:[%s5619_s1 + $0x84] ss:$8 sps:$4 sm:$0xff]   ;;  %v3702_v34 = vld [vmem:[%s5619_s1 + $0x80] ss:$8 sps:$4 sm:$0xff]  }
   0xc   :  { %2880 = vmatpush1.bf16.msra.mxu0 %v3667_v11  ;;  %2635 = vmatprep.subr.bf16.mxu1 %v3668_v12  ;;  %v3697_v31 = vld [vmem:[%s5619_s1 + $0x670] ss:$8 sps:$4 sm:$0xff]   ;;  %v3700_v33 = vld [vmem:[%s5619_s1 + $0x684] ss:$8 sps:$4 sm:$0xff]   ;;  %v3703_v35 = vld [vmem:[%s5619_s1 + $0x680] ss:$8 sps:$4 sm:$0xff]  }
   0xd   :  { %2881 = vmatprep.subr.bf16.mxu0 %v3670_v13  ;;  %v3704_v39 = vld [vmem:[%s5619_s1 + $0x94] ss:$8 sps:$4 sm:$0xff]   ;;  %v3708_v41 = vld [vmem:[%s5619_s1 + $0x90] ss:$8 sps:$4 sm:$0xff]   ;;  %v4404_v42 = vshrl.u32 %v429_v36, 7  ;;  %v4433_v52 = vld [vmem:[%s5620_s0] sm:$0xff] }
   0xe   :  { %v3706_v40 = vld [vmem:[%s5619_s1 + $0x694] ss:$8 sps:$4 sm:$0xff]   ;;  %v3709_v44 = vld [vmem:[%s5619_s1 + $0x690] ss:$8 sps:$4 sm:$0xff]   ;;  %v3710_v45 = vld [vmem:[%s5619_s1 + $0xa4] ss:$8 sps:$4 sm:$0xff]  }
   0xf   :  { %2636 = vmatpush1.bf16.msra.mxu1 %v3672_v14  ;;  %v3712_v46 = vld [vmem:[%s5619_s1 + $0x6a4] ss:$8 sps:$4 sm:$0xff]   ;;  %v3714_v47 = vld [vmem:[%s5619_s1 + $0xa0] ss:$8 sps:$4 sm:$0xff]   ;;  %v4422_v49 = vsub.s32 %v446_v43, %v4404_v42  ;;  %v3716_v50 = vld [vmem:[%s5619_s1 + $0xb4] ss:$8 sps:$4 sm:$0xff]  }
  0x10   :  { %2882 = vmatpush1.bf16.msra.mxu0 %v3673_v15  ;;  %2637 = vmatprep.subr.bf16.mxu1 %v3674_v16  ;;  %v3715_v48 = vld [vmem:[%s5619_s1 + $0x6a0] ss:$8 sps:$4 sm:$0xff]   ;;  %v3718_v51 = vld [vmem:[%s5619_s1 + $0x6b4] ss:$8 sps:$4 sm:$0xff]   ;;  %v3720_v53 = vld [vmem:[%s5619_s1 + $0xb0] ss:$8 sps:$4 sm:$0xff]  }
  0x11   :  { %2883 = vmatprep.subr.bf16.mxu0 %v3676_v17  ;;  %v450_v54 = vrot.slane %v4433_v52, %v4422_v49  ;;  %v3721_v55 = vld [vmem:[%s5619_s1 + $0x6b0] ss:$8 sps:$4 sm:$0xff]   ;;  %v24_v56 = vld [vmem:[%s5620_s0 + $0x8] sm:$0xff]  ;;  %v3728_v1 = vld [vmem:[%s5619_s1 + $0xd4] ss:$8 sps:$4 sm:$0xff]  }
  0x12   :  { %v3722_v57 = vld [vmem:[%s5619_s1 + $0xc4] ss:$8 sps:$4 sm:$0xff]   ;;  %v492_v60 = vcombine.high %v24_v56, %v24_v56  ;;  %v3726_v63 = vld [vmem:[%s5619_s1 + $0xc0] ss:$8 sps:$4 sm:$0xff]   ;;  %v3730_v2 = vld [vmem:[%s5619_s1 + $0x6d4] ss:$8 sps:$4 sm:$0xff]  }
  0x13   :  { %2638 = vmatpush1.bf16.msra.mxu1 %v3678_v18  ;;  %v3724_v58 = vld [vmem:[%s5619_s1 + $0x6c4] ss:$8 sps:$4 sm:$0xff]   ;;  %v458_v59 = vcombine.high %v450_v54, %v450_v54  ;;  %v3727_v0 = vld [vmem:[%s5619_s1 + $0x6c0] ss:$8 sps:$4 sm:$0xff]   ;;  %v3732_v5 = vld [vmem:[%s5619_s1 + $0xd0] ss:$8 sps:$4 sm:$0xff]   ;;  %v4504_v17 = vrot.slane %v450_v54, %v4422_v49 }
  0x14   :  { %2884 = vmatpush1.bf16.msra.mxu0 %v3679_v19  ;;  %2639 = vmatprep.subr.bf16.mxu1 %v3680_v20  ;;  %v506_v62 = vrot.slane %v492_v60, %v4422_v49  ;;  %v3733_v6 = vld [vmem:[%s5619_s1 + $0x6d0] ss:$8 sps:$4 sm:$0xff]   ;;  %v3734_v7 = vld [vmem:[%s5619_s1 + $0xe4] ss:$8 sps:$4 sm:$0xff]   ;;  %v3738_v9 = vld [vmem:[%s5619_s1 + $0xe0] ss:$8 sps:$4 sm:$0xff]  }
  0x15   :  { %2885 = vmatprep.subr.bf16.mxu0 %v3682_v21  ;;  %v480_v61 = vrot.slane %v458_v59, %v4422_v49  ;;  %v3736_v8 = vld [vmem:[%s5619_s1 + $0x6e4] ss:$8 sps:$4 sm:$0xff]   ;;  %v3739_v10 = vld [vmem:[%s5619_s1 + $0x6e0] ss:$8 sps:$4 sm:$0xff]   ;;  %v3740_v11 = vld [vmem:[%s5619_s1 + $0xf4] ss:$8 sps:$4 sm:$0xff]  }
  0x16   :  { %v508_v3 = vcombine.high %v506_v62, %v506_v62  ;;  %v3742_v12 = vld [vmem:[%s5619_s1 + $0x6f4] ss:$8 sps:$4 sm:$0xff]   ;;  %v3744_v13 = vld [vmem:[%s5619_s1 + $0xf0] ss:$8 sps:$4 sm:$0xff]   ;;  %v3749_v15 = vld [vmem:[%s5619_s1 + $0x104] ss:$8 sps:$4 sm:$0xff]   ;;  %v4507_v18 = vrot.slane %v506_v62, %v4422_v49 }
  0x17   :  { %2640 = vmatpush1.bf16.msra.mxu1 %v3684_v22  ;;  %2661 = vmatprep.mubr.bf16.mxu1 %v480_v61  ;;  %v3745_v14 = vld [vmem:[%s5619_s1 + $0x6f0] ss:$8 sps:$4 sm:$0xff]   ;;  %v3753_v16 = vld [vmem:[%s5619_s1 + $0x704] ss:$8 sps:$4 sm:$0xff]   ;;  %v3747_v19 = vld [vmem:[%s5619_s1 + $0x100] ss:$8 sps:$4 sm:$0xff]  }
  0x18   :  { %2886 = vmatpush1.bf16.msra.mxu0 %v3685_v23  ;;  %2641 = vmatprep.subr.bf16.mxu1 %v3686_v24  ;;  %v536_v4 = vrot.slane %v508_v3, %v4422_v49  ;;  %v3751_v20 = vld [vmem:[%s5619_s1 + $0x700] ss:$8 sps:$4 sm:$0xff]   ;;  %v3756_v21 = vld [vmem:[%s5619_s1 + $0x114] ss:$8 sps:$4 sm:$0xff]   ;;  %v490_v23 = vcombine.high %v480_v61, %v480_v61  ;;  %v3777_v36 = vld [vmem:[%s5619_s1 + $0x744] ss:$8 sps:$4 sm:$0xff]  }
  0x19   :  { %2887 = vmatprep.subr.bf16.mxu0 %v3688_v25  ;;  %v3759_v22 = vld [vmem:[%s5619_s1 + $0x714] ss:$8 sps:$4 sm:$0xff]   ;;  %v3754_v25 = vld [vmem:[%s5619_s1 + $0x110] ss:$8 sps:$4 sm:$0xff]   ;;  %v3772_v37 = vld [vmem:[%s5619_s1 + $0x140] ss:$8 sps:$4 sm:$0xff]  }
  0x1a   :  { %2907 = vmatprep.mubr.bf16.mxu0 %v536_v4  ;;  %v540_v24 = vcombine.high %v536_v4, %v536_v4  ;;  %v3775_v38 = vld [vmem:[%s5619_s1 + $0x740] ss:$8 sps:$4 sm:$0xff]   ;;  %v3781_v43 = vld [vmem:[%s5619_s1 + $0x750] ss:$8 sps:$4 sm:$0xff]   ;;  %v3798_v54 = vld [vmem:[%s5619_s1 + $0x184] ss:$8 sps:$4 sm:$0xff]  }
  0x1b   :  { %2642 = vmatpush1.bf16.msra.mxu1 %v3690_v26  ;;  %v3757_v26 = vld [vmem:[%s5619_s1 + $0x710] ss:$8 sps:$4 sm:$0xff]   ;;  %v3796_v56 = vld [vmem:[%s5619_s1 + $0x180] ss:$8 sps:$4 sm:$0xff]   ;;  %v3807_v59 = vld [vmem:[%s5619_s1 + $0x794] ss:$8 sps:$4 sm:$0xff]  }
  0x1c   :  { %2888 = vmatpush1.bf16.msra.mxu0 %v3691_v27  ;;  %2643 = vmatprep.subr.bf16.mxu1 %v3692_v28  ;;  %v3762_v27 = vld [vmem:[%s5619_s1 + $0x124] ss:$8 sps:$4 sm:$0xff]   ;;  %v3802_v60 = vld [vmem:[%s5619_s1 + $0x190] ss:$8 sps:$4 sm:$0xff]   ;;  %v3819_v3 = vld [vmem:[%s5619_s1 + $0x7b4] ss:$8 sps:$4 sm:$0xff]  }
  0x1d   :  { %2889 = vmatprep.subr.bf16.mxu0 %v3694_v29  ;;  %v3765_v28 = vld [vmem:[%s5619_s1 + $0x724] ss:$8 sps:$4 sm:$0xff]   ;;  %v3760_v29 = vld [vmem:[%s5619_s1 + $0x120] ss:$8 sps:$4 sm:$0xff]   ;;  %v3805_v61 = vld [vmem:[%s5619_s1 + $0x790] ss:$8 sps:$4 sm:$0xff]  }
  0x1e   :  { %v3810_v62 = vld [vmem:[%s5619_s1 + $0x1a4] ss:$8 sps:$4 sm:$0xff]   ;;  %v3814_v4 = vld [vmem:[%s5619_s1 + $0x1b0] ss:$8 sps:$4 sm:$0xff]  }
  0x1f   :  { %2644 = vmatpush1.bf16.msra.mxu1 %v3696_v30  ;;  %v3763_v30 = vld [vmem:[%s5619_s1 + $0x720] ss:$8 sps:$4 sm:$0xff]  }
  0x20   :  { %2890 = vmatpush1.bf16.msra.mxu0 %v3697_v31  ;;  %2645 = vmatprep.subr.bf16.mxu1 %v3698_v32  ;;  %v3768_v31 = vld [vmem:[%s5619_s1 + $0x134] ss:$8 sps:$4 sm:$0xff]  }
  0x21   :  { %2891 = vmatprep.subr.bf16.mxu0 %v3700_v33  ;;  %v3771_v32 = vld [vmem:[%s5619_s1 + $0x734] ss:$8 sps:$4 sm:$0xff]   ;;  %v3766_v33 = vld [vmem:[%s5619_s1 + $0x130] ss:$8 sps:$4 sm:$0xff]  }
  0x23   :  { %2646 = vmatpush1.bf16.msra.mxu1 %v3702_v34  ;;  %v3769_v34 = vld [vmem:[%s5619_s1 + $0x730] ss:$8 sps:$4 sm:$0xff]  }
  0x24   :  { %2892 = vmatpush1.bf16.msra.mxu0 %v3703_v35  ;;  %2647 = vmatprep.subr.bf16.mxu1 %v3704_v39  ;;  %v3774_v35 = vld [vmem:[%s5619_s1 + $0x144] ss:$8 sps:$4 sm:$0xff]   ;;  %v3780_v39 = vld [vmem:[%s5619_s1 + $0x154] ss:$8 sps:$4 sm:$0xff]  }
  0x25   :  { %2893 = vmatprep.subr.bf16.mxu0 %v3706_v40  ;;  %v3783_v40 = vld [vmem:[%s5619_s1 + $0x754] ss:$8 sps:$4 sm:$0xff]  }
  0x27   :  { %2648 = vmatpush1.bf16.msra.mxu1 %v3708_v41  ;;  %v3778_v41 = vld [vmem:[%s5619_s1 + $0x150] ss:$8 sps:$4 sm:$0xff]  }
  0x28   :  { %2894 = vmatpush1.bf16.msra.mxu0 %v3709_v44  ;;  %2649 = vmatprep.subr.bf16.mxu1 %v3710_v45  ;;  %v3786_v44 = vld [vmem:[%s5619_s1 + $0x164] ss:$8 sps:$4 sm:$0xff]  }
  0x29   :  { %2895 = vmatprep.subr.bf16.mxu0 %v3712_v46  ;;  %v3789_v45 = vld [vmem:[%s5619_s1 + $0x764] ss:$8 sps:$4 sm:$0xff]   ;;  %v3784_v46 = vld [vmem:[%s5619_s1 + $0x160] ss:$8 sps:$4 sm:$0xff]  }
  0x2b   :  { %2650 = vmatpush1.bf16.msra.mxu1 %v3714_v47  ;;  %v3787_v47 = vld [vmem:[%s5619_s1 + $0x760] ss:$8 sps:$4 sm:$0xff]  }
  0x2c   :  { %2896 = vmatpush1.bf16.msra.mxu0 %v3715_v48  ;;  %2651 = vmatprep.subr.bf16.mxu1 %v3716_v50  ;;  %v3792_v48 = vld [vmem:[%s5619_s1 + $0x174] ss:$8 sps:$4 sm:$0xff]  }
  0x2d   :  { %2897 = vmatprep.subr.bf16.mxu0 %v3718_v51  ;;  %v3795_v50 = vld [vmem:[%s5619_s1 + $0x774] ss:$8 sps:$4 sm:$0xff]   ;;  %v3790_v51 = vld [vmem:[%s5619_s1 + $0x170] ss:$8 sps:$4 sm:$0xff]  }
  0x2f   :  { %2652 = vmatpush1.bf16.msra.mxu1 %v3720_v53  ;;  %v3793_v53 = vld [vmem:[%s5619_s1 + $0x770] ss:$8 sps:$4 sm:$0xff]  }
  0x30   :  { %2898 = vmatpush1.bf16.msra.mxu0 %v3721_v55  ;;  %2653 = vmatprep.subr.bf16.mxu1 %v3722_v57  ;;  %v3801_v55 = vld [vmem:[%s5619_s1 + $0x784] ss:$8 sps:$4 sm:$0xff]   ;;  %v3799_v57 = vld [vmem:[%s5619_s1 + $0x780] ss:$8 sps:$4 sm:$0xff]  }
  0x31   :  { %2899 = vmatprep.subr.bf16.mxu0 %v3724_v58  ;;  %v3804_v58 = vld [vmem:[%s5619_s1 + $0x194] ss:$8 sps:$4 sm:$0xff]  }
  0x33   :  { %2654 = vmatpush1.bf16.msra.mxu1 %v3726_v63  ;;  %v3813_v63 = vld [vmem:[%s5619_s1 + $0x7a4] ss:$8 sps:$4 sm:$0xff]  }
  0x34   :  { %2900 = vmatpush1.bf16.msra.mxu0 %v3727_v0  ;;  %2655 = vmatprep.subr.bf16.mxu1 %v3728_v1  ;;  %v3808_v0 = vld [vmem:[%s5619_s1 + $0x1a0] ss:$8 sps:$4 sm:$0xff]  }
  0x35   :  { %2901 = vmatprep.subr.bf16.mxu0 %v3730_v2  ;;  %v3811_v1 = vld [vmem:[%s5619_s1 + $0x7a0] ss:$8 sps:$4 sm:$0xff]   ;;  %v3816_v2 = vld [vmem:[%s5619_s1 + $0x1b4] ss:$8 sps:$4 sm:$0xff]  }
  0x37   :  { %2656 = vmatpush1.bf16.msra.mxu1 %v3732_v5  ;;  %v3817_v5 = vld [vmem:[%s5619_s1 + $0x7b0] ss:$8 sps:$4 sm:$0xff]  }
  0x38   :  { %2902 = vmatpush1.bf16.msra.mxu0 %v3733_v6  ;;  %2657 = vmatprep.subr.bf16.mxu1 %v3734_v7  ;;  %v3822_v6 = vld [vmem:[%s5619_s1 + $0x1c4] ss:$8 sps:$4 sm:$0xff]  }
  0x39   :  { %2903 = vmatprep.subr.bf16.mxu0 %v3736_v8  ;;  %v3825_v7 = vld [vmem:[%s5619_s1 + $0x7c4] ss:$8 sps:$4 sm:$0xff]   ;;  %v3820_v8 = vld [vmem:[%s5619_s1 + $0x1c0] ss:$8 sps:$4 sm:$0xff]  }
  0x3b   :  { %2658 = vmatpush1.bf16.msra.mxu1 %v3738_v9  ;;  %v3823_v9 = vld [vmem:[%s5619_s1 + $0x7c0] ss:$8 sps:$4 sm:$0xff]  }
  0x3c   :  { %2904 = vmatpush1.bf16.msra.mxu0 %v3739_v10  ;;  %2659 = vmatprep.subr.bf16.mxu1 %v3740_v11  ;;  %v3828_v10 = vld [vmem:[%s5619_s1 + $0x1d4] ss:$8 sps:$4 sm:$0xff]  }
  0x3d   :  { %2905 = vmatprep.subr.bf16.mxu0 %v3742_v12  ;;  %v3831_v11 = vld [vmem:[%s5619_s1 + $0x7d4] ss:$8 sps:$4 sm:$0xff]   ;;  %v3826_v12 = vld [vmem:[%s5619_s1 + $0x1d0] ss:$8 sps:$4 sm:$0xff]  }
  0x3f   :  { %2660 = vmatpush1.bf16.msra.mxu1 %v3744_v13  ;;  %v3829_v13 = vld [vmem:[%s5619_s1 + $0x7d0] ss:$8 sps:$4 sm:$0xff]  }
  0x40   :  { %2906 = vmatpush1.bf16.msra.mxu0 %v3745_v14  ;;  %2670 = vmatprep.subr.bf16.mxu1 %v3749_v15  ;;  %v3834_v14 = vld [vmem:[%s5619_s1 + $0x1e4] ss:$8 sps:$4 sm:$0xff]  }
  0x41   :  { %2916 = vmatprep.subr.bf16.mxu0 %v3753_v16  ;;  %v3837_v15 = vld [vmem:[%s5619_s1 + $0x7e4] ss:$8 sps:$4 sm:$0xff]   ;;  %v443_v16 = vcombine.high %v4433_v52, %v4433_v52  ;;  %v3843_v52 = vld [vmem:[%s5619_s1 + $0x7f4] ss:$8 sps:$4 sm:$0xff]  }
  0x42   :  { %2662 = vmatmul.mubr.bf16.vlgmr.msra.gmra.mrb[0].mxu1 %v4504_v17 }
  0x43   :  { %2908 = vmatmul.mubr.bf16.vlgmr.msra.gmra.mrb[0].mxu0 %v4507_v18  ;;  %2671 = vmatpush1.bf16.msra.mxu1 %v3747_v19  ;;  %v3832_v19 = vld [vmem:[%s5619_s1 + $0x1e0] ss:$8 sps:$4 sm:$0xff]  }
  0x44   :  { %2917 = vmatpush1.bf16.msra.mxu0 %v3751_v20  ;;  %2672 = vmatprep.subr.bf16.mxu1 %v3756_v21  ;;  %v3835_v20 = vld [vmem:[%s5619_s1 + $0x7e0] ss:$8 sps:$4 sm:$0xff]   ;;  %v3840_v21 = vld [vmem:[%s5619_s1 + $0x1f4] ss:$8 sps:$4 sm:$0xff]  }
  0x45   :  { %2918 = vmatprep.subr.bf16.mxu0 %v3759_v22  ;;  %2702 = vmatprep.mubr.bf16.mxu1 %v490_v23  ;;  %v4694_v22 = vrot.slane %v443_v16, %v4422_v49  ;;  %v3838_v23 = vld [vmem:[%s5619_s1 + $0x1f0] ss:$8 sps:$4 sm:$0xff]  }
  0x46   :  { %2948 = vmatprep.mubr.bf16.mxu0 %v540_v24  ;;  %v3841_v24 = vld [vmem:[%s5619_s1 + $0x7f0] ss:$8 sps:$4 sm:$0xff]  }
  0x47   :  { %2673 = vmatpush1.bf16.msra.mxu1 %v3754_v25  ;;  %v3846_v25 = vld [vmem:[%s5619_s1 + $0x204] ss:$8 sps:$4 sm:$0xff]   ;;  %v3910_v16 = vld [vmem:[%s5619_s1 + $0x2b0] ss:$8 sps:$4 sm:$0xff]  }
  0x48   :  { %2919 = vmatpush1.bf16.msra.mxu0 %v3757_v26  ;;  %2674 = vmatprep.subr.bf16.mxu1 %v3762_v27  ;;  %v3849_v26 = vld [vmem:[%s5619_s1 + $0x804] ss:$8 sps:$4 sm:$0xff]   ;;  %v459_v27 = vcombine.high %v4694_v22, %v4694_v22 }
  0x49   :  { %2920 = vmatprep.subr.bf16.mxu0 %v3765_v28  ;;  %v488_v28 = vcombine.high %v4504_v17, %v4504_v17  ;;  %v3855_v17 = vld [vmem:[%s5619_s1 + $0x814] ss:$8 sps:$4 sm:$0xff]  }
  0x4b   :  { %2675 = vmatpush1.bf16.msra.mxu1 %v3760_v29  ;;  %v538_v29 = vcombine.high %v4507_v18, %v4507_v18  ;;  %v4727_v18 = vrot.slane %v459_v27, %v4422_v49  ;;  %v3925_v27 = vld [vmem:[%s5619_s1 + $0x8d0] ss:$8 sps:$4 sm:$0xff]  }
  0x4c   :  { %2921 = vmatpush1.bf16.msra.mxu0 %v3763_v30  ;;  %2676 = vmatprep.subr.bf16.mxu1 %v3768_v31  ;;  %v3844_v30 = vld [vmem:[%s5619_s1 + $0x200] ss:$8 sps:$4 sm:$0xff]  }
  0x4d   :  { %2922 = vmatprep.subr.bf16.mxu0 %v3771_v32  ;;  %v3847_v31 = vld [vmem:[%s5619_s1 + $0x800] ss:$8 sps:$4 sm:$0xff]   ;;  %v3852_v32 = vld [vmem:[%s5619_s1 + $0x214] ss:$8 sps:$4 sm:$0xff]  }
  0x4f   :  { %2677 = vmatpush1.bf16.msra.mxu1 %v3766_v33  ;;  %v4732_v33 = vld [vmem:[%s5620_s0 + $0x10] sm:$0xff] }
  0x50   :  { %2923 = vmatpush1.bf16.msra.mxu0 %v3769_v34  ;;  %2678 = vmatprep.subr.bf16.mxu1 %v3774_v35  ;;  %v3850_v34 = vld [vmem:[%s5619_s1 + $0x210] ss:$8 sps:$4 sm:$0xff]   ;;  %v4739_v35 = vrot.slane %v4732_v33, %v4422_v49 }
  0x51   :  { %2924 = vmatprep.subr.bf16.mxu0 %v3777_v36  ;;  %v3853_v36 = vld [vmem:[%s5619_s1 + $0x810] ss:$8 sps:$4 sm:$0xff]  }
  0x53   :  { %2679 = vmatpush1.bf16.msra.mxu1 %v3772_v37  ;;  %v3858_v37 = vld [vmem:[%s5619_s1 + $0x224] ss:$8 sps:$4 sm:$0xff]  }
  0x54   :  { %2925 = vmatpush1.bf16.msra.mxu0 %v3775_v38  ;;  %2680 = vmatprep.subr.bf16.mxu1 %v3780_v39  ;;  %v3861_v38 = vld [vmem:[%s5619_s1 + $0x824] ss:$8 sps:$4 sm:$0xff]   ;;  %v556_v39 = vcombine.high %v4739_v35, %v4739_v35 }
  0x55   :  { %2926 = vmatprep.subr.bf16.mxu0 %v3783_v40  ;;  %v3856_v40 = vld [vmem:[%s5619_s1 + $0x220] ss:$8 sps:$4 sm:$0xff]  }
  0x57   :  { %2681 = vmatpush1.bf16.msra.mxu1 %v3778_v41  ;;  %v4757_v41 = vrot.slane %v556_v39, %v4422_v49  ;;  %v3940_v39 = vld [vmem:[%s5619_s1 + $0x300] ss:$8 sps:$4 sm:$0xff]  }
  0x58   :  { %2927 = vmatpush1.bf16.msra.mxu0 %v3781_v43  ;;  %2682 = vmatprep.subr.bf16.mxu1 %v3786_v44  ;;  %v3859_v43 = vld [vmem:[%s5619_s1 + $0x820] ss:$8 sps:$4 sm:$0xff]   ;;  %v3864_v44 = vld [vmem:[%s5619_s1 + $0x234] ss:$8 sps:$4 sm:$0xff]  }
  0x59   :  { %2928 = vmatprep.subr.bf16.mxu0 %v3789_v45  ;;  %v3867_v45 = vld [vmem:[%s5619_s1 + $0x834] ss:$8 sps:$4 sm:$0xff]  }
  0x5b   :  { %2683 = vmatpush1.bf16.msra.mxu1 %v3784_v46  ;;  %v3862_v46 = vld [vmem:[%s5619_s1 + $0x230] ss:$8 sps:$4 sm:$0xff]  }
  0x5c   :  { %2929 = vmatpush1.bf16.msra.mxu0 %v3787_v47  ;;  %2684 = vmatprep.subr.bf16.mxu1 %v3792_v48  ;;  %v3865_v47 = vld [vmem:[%s5619_s1 + $0x830] ss:$8 sps:$4 sm:$0xff]   ;;  %v3870_v48 = vld [vmem:[%s5619_s1 + $0x244] ss:$8 sps:$4 sm:$0xff]  }
  0x5d   :  { %2930 = vmatprep.subr.bf16.mxu0 %v3795_v50  ;;  %v3873_v50 = vld [vmem:[%s5619_s1 + $0x844] ss:$8 sps:$4 sm:$0xff]  }
  0x5f   :  { %2685 = vmatpush1.bf16.msra.mxu1 %v3790_v51  ;;  %v3868_v51 = vld [vmem:[%s5619_s1 + $0x240] ss:$8 sps:$4 sm:$0xff]  }
  0x60   :  { %2931 = vmatpush1.bf16.msra.mxu0 %v3793_v53  ;;  %2686 = vmatprep.subr.bf16.mxu1 %v3798_v54  ;;  %v3871_v53 = vld [vmem:[%s5619_s1 + $0x840] ss:$8 sps:$4 sm:$0xff]   ;;  %v3876_v54 = vld [vmem:[%s5619_s1 + $0x254] ss:$8 sps:$4 sm:$0xff]  }
  0x61   :  { %2932 = vmatprep.subr.bf16.mxu0 %v3801_v55  ;;  %v3879_v55 = vld [vmem:[%s5619_s1 + $0x854] ss:$8 sps:$4 sm:$0xff]  }
  0x63   :  { %2687 = vmatpush1.bf16.msra.mxu1 %v3796_v56  ;;  %v3874_v56 = vld [vmem:[%s5619_s1 + $0x250] ss:$8 sps:$4 sm:$0xff]  }
  0x64   :  { %2933 = vmatpush1.bf16.msra.mxu0 %v3799_v57  ;;  %2688 = vmatprep.subr.bf16.mxu1 %v3804_v58  ;;  %v3877_v57 = vld [vmem:[%s5619_s1 + $0x850] ss:$8 sps:$4 sm:$0xff]   ;;  %v3882_v58 = vld [vmem:[%s5619_s1 + $0x264] ss:$8 sps:$4 sm:$0xff]  }
  0x65   :  { %2934 = vmatprep.subr.bf16.mxu0 %v3807_v59  ;;  %v3885_v59 = vld [vmem:[%s5619_s1 + $0x864] ss:$8 sps:$4 sm:$0xff]  }
  0x67   :  { %2689 = vmatpush1.bf16.msra.mxu1 %v3802_v60  ;;  %v3880_v60 = vld [vmem:[%s5619_s1 + $0x260] ss:$8 sps:$4 sm:$0xff]  }
  0x68   :  { %2935 = vmatpush1.bf16.msra.mxu0 %v3805_v61  ;;  %2690 = vmatprep.subr.bf16.mxu1 %v3810_v62  ;;  %v3883_v61 = vld [vmem:[%s5619_s1 + $0x860] ss:$8 sps:$4 sm:$0xff]   ;;  %v3888_v62 = vld [vmem:[%s5619_s1 + $0x274] ss:$8 sps:$4 sm:$0xff]  }
  0x69   :  { %2936 = vmatprep.subr.bf16.mxu0 %v3813_v63  ;;  %v3891_v63 = vld [vmem:[%s5619_s1 + $0x874] ss:$8 sps:$4 sm:$0xff]  }
  0x6b   :  { %2691 = vmatpush1.bf16.msra.mxu1 %v3808_v0  ;;  %v3886_v0 = vld [vmem:[%s5619_s1 + $0x270] ss:$8 sps:$4 sm:$0xff]  }
  0x6c   :  { %2937 = vmatpush1.bf16.msra.mxu0 %v3811_v1  ;;  %2692 = vmatprep.subr.bf16.mxu1 %v3816_v2  ;;  %v3889_v1 = vld [vmem:[%s5619_s1 + $0x870] ss:$8 sps:$4 sm:$0xff]   ;;  %v3894_v2 = vld [vmem:[%s5619_s1 + $0x284] ss:$8 sps:$4 sm:$0xff]  }
  0x6d   :  { %2938 = vmatprep.subr.bf16.mxu0 %v3819_v3  ;;  %v3897_v3 = vld [vmem:[%s5619_s1 + $0x884] ss:$8 sps:$4 sm:$0xff]  }
  0x6f   :  { %2693 = vmatpush1.bf16.msra.mxu1 %v3814_v4  ;;  %v3892_v4 = vld [vmem:[%s5619_s1 + $0x280] ss:$8 sps:$4 sm:$0xff]  }
  0x70   :  { %2939 = vmatpush1.bf16.msra.mxu0 %v3817_v5  ;;  %2694 = vmatprep.subr.bf16.mxu1 %v3822_v6  ;;  %v3895_v5 = vld [vmem:[%s5619_s1 + $0x880] ss:$8 sps:$4 sm:$0xff]   ;;  %v3900_v6 = vld [vmem:[%s5619_s1 + $0x294] ss:$8 sps:$4 sm:$0xff]  }
  0x71   :  { %2940 = vmatprep.subr.bf16.mxu0 %v3825_v7  ;;  %v3903_v7 = vld [vmem:[%s5619_s1 + $0x894] ss:$8 sps:$4 sm:$0xff]  }
  0x73   :  { %2695 = vmatpush1.bf16.msra.mxu1 %v3820_v8  ;;  %v3898_v8 = vld [vmem:[%s5619_s1 + $0x290] ss:$8 sps:$4 sm:$0xff]  }
  0x74   :  { %2941 = vmatpush1.bf16.msra.mxu0 %v3823_v9  ;;  %2696 = vmatprep.subr.bf16.mxu1 %v3828_v10  ;;  %v3901_v9 = vld [vmem:[%s5619_s1 + $0x890] ss:$8 sps:$4 sm:$0xff]   ;;  %v3906_v10 = vld [vmem:[%s5619_s1 + $0x2a4] ss:$8 sps:$4 sm:$0xff]  }
  0x75   :  { %2942 = vmatprep.subr.bf16.mxu0 %v3831_v11  ;;  %v3909_v11 = vld [vmem:[%s5619_s1 + $0x8a4] ss:$8 sps:$4 sm:$0xff]  }
  0x77   :  { %2697 = vmatpush1.bf16.msra.mxu1 %v3826_v12  ;;  %v3904_v12 = vld [vmem:[%s5619_s1 + $0x2a0] ss:$8 sps:$4 sm:$0xff]  }
  0x78   :  { %2943 = vmatpush1.bf16.msra.mxu0 %v3829_v13  ;;  %2698 = vmatprep.subr.bf16.mxu1 %v3834_v14  ;;  %v3907_v13 = vld [vmem:[%s5619_s1 + $0x8a0] ss:$8 sps:$4 sm:$0xff]   ;;  %v3912_v14 = vld [vmem:[%s5619_s1 + $0x2b4] ss:$8 sps:$4 sm:$0xff]  }
  0x79   :  { %2944 = vmatprep.subr.bf16.mxu0 %v3837_v15  ;;  %v3915_v15 = vld [vmem:[%s5619_s1 + $0x8b4] ss:$8 sps:$4 sm:$0xff]  }
  0x7b   :  { %2699 = vmatpush1.bf16.msra.mxu1 %v3832_v19  ;;  %v3913_v19 = vld [vmem:[%s5619_s1 + $0x8b0] ss:$8 sps:$4 sm:$0xff]  }
  0x7c   :  { %2945 = vmatpush1.bf16.msra.mxu0 %v3835_v20  ;;  %2700 = vmatprep.subr.bf16.mxu1 %v3840_v21  ;;  %v3918_v20 = vld [vmem:[%s5619_s1 + $0x2c4] ss:$8 sps:$4 sm:$0xff]  }
  0x7d   :  { %2946 = vmatprep.subr.bf16.mxu0 %v3843_v52  ;;  %v3921_v21 = vld [vmem:[%s5619_s1 + $0x8c4] ss:$8 sps:$4 sm:$0xff]   ;;  %v3916_v52 = vld [vmem:[%s5619_s1 + $0x2c0] ss:$8 sps:$4 sm:$0xff]  }
  0x7f   :  { %2701 = vmatpush1.bf16.msra.mxu1 %v3838_v23  ;;  %v3919_v23 = vld [vmem:[%s5619_s1 + $0x8c0] ss:$8 sps:$4 sm:$0xff]  }
  0x80   :  { %2947 = vmatpush1.bf16.msra.mxu0 %v3841_v24  ;;  %2711 = vmatprep.subr.bf16.mxu1 %v3846_v25  ;;  %v3924_v24 = vld [vmem:[%s5619_s1 + $0x2d4] ss:$8 sps:$4 sm:$0xff]  }
  0x81   :  { %2957 = vmatprep.subr.bf16.mxu0 %v3849_v26  ;;  %v3927_v25 = vld [vmem:[%s5619_s1 + $0x8d4] ss:$8 sps:$4 sm:$0xff]   ;;  %v3922_v26 = vld [vmem:[%s5619_s1 + $0x2d0] ss:$8 sps:$4 sm:$0xff]  }
  0x82   :  { %2703 = vmatmul.mubr.bf16.vlgmr.msra.gmra.mrb[0].mxu1 %v488_v28  ;;  %v3930_v28 = vld [vmem:[%s5619_s1 + $0x2e4] ss:$8 sps:$4 sm:$0xff]  }
  0x83   :  { %2949 = vmatmul.mubr.bf16.vlgmr.msra.gmra.mrb[0].mxu0 %v538_v29  ;;  %2712 = vmatpush1.bf16.msra.mxu1 %v3844_v30  ;;  %v3933_v29 = vld [vmem:[%s5619_s1 + $0x8e4] ss:$8 sps:$4 sm:$0xff]   ;;  %v3928_v30 = vld [vmem:[%s5619_s1 + $0x2e0] ss:$8 sps:$4 sm:$0xff]  }
  0x84   :  { %2958 = vmatpush1.bf16.msra.mxu0 %v3847_v31  ;;  %2713 = vmatprep.subr.bf16.mxu1 %v3852_v32  ;;  %v3931_v31 = vld [vmem:[%s5619_s1 + $0x8e0] ss:$8 sps:$4 sm:$0xff]   ;;  %v3936_v32 = vld [vmem:[%s5619_s1 + $0x2f4] ss:$8 sps:$4 sm:$0xff]  }
  0x85   :  { %2959 = vmatprep.subr.bf16.mxu0 %v3855_v17  ;;  %2743 = vmatprep.mubr.bf16.mxu1 %v4727_v18  ;;  %v3939_v17 = vld [vmem:[%s5619_s1 + $0x8f4] ss:$8 sps:$4 sm:$0xff]  }
  0x86   :  { %2989 = vmatprep.mubr.bf16.mxu0 %v4757_v41 }
  0x87   :  { %2714 = vmatpush1.bf16.msra.mxu1 %v3850_v34  ;;  %v3934_v34 = vld [vmem:[%s5619_s1 + $0x2f0] ss:$8 sps:$4 sm:$0xff]  }
  0x88   :  { %2960 = vmatpush1.bf16.msra.mxu0 %v3853_v36  ;;  %2715 = vmatprep.subr.bf16.mxu1 %v3858_v37  ;;  %v3937_v36 = vld [vmem:[%s5619_s1 + $0x8f0] ss:$8 sps:$4 sm:$0xff]   ;;  %v3942_v37 = vld [vmem:[%s5619_s1 + $0x304] ss:$8 sps:$4 sm:$0xff]  }
  0x89   :  { %2961 = vmatprep.subr.bf16.mxu0 %v3861_v38  ;;  %v3945_v38 = vld [vmem:[%s5619_s1 + $0x904] ss:$8 sps:$4 sm:$0xff]  }
  0x8b   :  { %2716 = vmatpush1.bf16.msra.mxu1 %v3856_v40  ;;  %v4930_v40 = vrot.slane %v4694_v22, %v4422_v49  ;;  %v3951_v22 = vld [vmem:[%s5619_s1 + $0x914] ss:$8 sps:$4 sm:$0xff]  }
  0x8c   :  { %2962 = vmatpush1.bf16.msra.mxu0 %v3859_v43  ;;  %2717 = vmatprep.subr.bf16.mxu1 %v3864_v44  ;;  %v4934_v43 = vrot.slane %v4739_v35, %v4422_v49  ;;  %v3943_v44 = vld [vmem:[%s5619_s1 + $0x900] ss:$8 sps:$4 sm:$0xff]   ;;  %v491_v35 = vcombine.high %v4727_v18, %v4727_v18  ;;  %v3954_v18 = vld [vmem:[%s5619_s1 + $0x324] ss:$8 sps:$4 sm:$0xff]  }
  0x8d   :  { %2963 = vmatprep.subr.bf16.mxu0 %v3867_v45  ;;  %v3948_v45 = vld [vmem:[%s5619_s1 + $0x314] ss:$8 sps:$4 sm:$0xff]  }
  0x8f   :  { %2718 = vmatpush1.bf16.msra.mxu1 %v3862_v46  ;;  %v588_v46 = vcombine.high %v4757_v41, %v4757_v41  ;;  %v3957_v41 = vld [vmem:[%s5619_s1 + $0x924] ss:$8 sps:$4 sm:$0xff]  }
  0x90   :  { %2964 = vmatpush1.bf16.msra.mxu0 %v3865_v47  ;;  %2719 = vmatprep.subr.bf16.mxu1 %v3870_v48  ;;  %v3946_v47 = vld [vmem:[%s5619_s1 + $0x310] ss:$8 sps:$4 sm:$0xff]  }
  0x91   :  { %2965 = vmatprep.subr.bf16.mxu0 %v3873_v50  ;;  %v3949_v48 = vld [vmem:[%s5619_s1 + $0x910] ss:$8 sps:$4 sm:$0xff]   ;;  %v3952_v50 = vld [vmem:[%s5619_s1 + $0x320] ss:$8 sps:$4 sm:$0xff]  }
  0x93   :  { %2720 = vmatpush1.bf16.msra.mxu1 %v3868_v51  ;;  %v3955_v51 = vld [vmem:[%s5619_s1 + $0x920] ss:$8 sps:$4 sm:$0xff]  }
  0x94   :  { %2966 = vmatpush1.bf16.msra.mxu0 %v3871_v53  ;;  %2721 = vmatprep.subr.bf16.mxu1 %v3876_v54  ;;  %v3960_v53 = vld [vmem:[%s5619_s1 + $0x334] ss:$8 sps:$4 sm:$0xff]  }
  0x95   :  { %2967 = vmatprep.subr.bf16.mxu0 %v3879_v55  ;;  %v3963_v54 = vld [vmem:[%s5619_s1 + $0x934] ss:$8 sps:$4 sm:$0xff]   ;;  %v3958_v55 = vld [vmem:[%s5619_s1 + $0x330] ss:$8 sps:$4 sm:$0xff]  }
  0x97   :  { %2722 = vmatpush1.bf16.msra.mxu1 %v3874_v56  ;;  %v3961_v56 = vld [vmem:[%s5619_s1 + $0x930] ss:$8 sps:$4 sm:$0xff]  }
  0x98   :  { %2968 = vmatpush1.bf16.msra.mxu0 %v3877_v57  ;;  %2723 = vmatprep.subr.bf16.mxu1 %v3882_v58  ;;  %v3966_v57 = vld [vmem:[%s5619_s1 + $0x344] ss:$8 sps:$4 sm:$0xff]  }
  0x99   :  { %2969 = vmatprep.subr.bf16.mxu0 %v3885_v59  ;;  %v3969_v58 = vld [vmem:[%s5619_s1 + $0x944] ss:$8 sps:$4 sm:$0xff]   ;;  %v3964_v59 = vld [vmem:[%s5619_s1 + $0x340] ss:$8 sps:$4 sm:$0xff]  }
  0x9b   :  { %2724 = vmatpush1.bf16.msra.mxu1 %v3880_v60  ;;  %v3967_v60 = vld [vmem:[%s5619_s1 + $0x940] ss:$8 sps:$4 sm:$0xff]  }
  0x9c   :  { %2970 = vmatpush1.bf16.msra.mxu0 %v3883_v61  ;;  %2725 = vmatprep.subr.bf16.mxu1 %v3888_v62  ;;  %v3972_v61 = vld [vmem:[%s5619_s1 + $0x354] ss:$8 sps:$4 sm:$0xff]  }
  0x9d   :  { %2971 = vmatprep.subr.bf16.mxu0 %v3891_v63  ;;  %v3975_v62 = vld [vmem:[%s5619_s1 + $0x954] ss:$8 sps:$4 sm:$0xff]   ;;  %v3970_v63 = vld [vmem:[%s5619_s1 + $0x350] ss:$8 sps:$4 sm:$0xff]  }
  0x9f   :  { %2726 = vmatpush1.bf16.msra.mxu1 %v3886_v0  ;;  %v3973_v0 = vld [vmem:[%s5619_s1 + $0x950] ss:$8 sps:$4 sm:$0xff]  }
  0xa0   :  { %2972 = vmatpush1.bf16.msra.mxu0 %v3889_v1  ;;  %2727 = vmatprep.subr.bf16.mxu1 %v3894_v2  ;;  %v3978_v1 = vld [vmem:[%s5619_s1 + $0x364] ss:$8 sps:$4 sm:$0xff]  }
  0xa1   :  { %2973 = vmatprep.subr.bf16.mxu0 %v3897_v3  ;;  %v3981_v2 = vld [vmem:[%s5619_s1 + $0x964] ss:$8 sps:$4 sm:$0xff]   ;;  %v3976_v3 = vld [vmem:[%s5619_s1 + $0x360] ss:$8 sps:$4 sm:$0xff]  }
  0xa3   :  { %2728 = vmatpush1.bf16.msra.mxu1 %v3892_v4  ;;  %v3979_v4 = vld [vmem:[%s5619_s1 + $0x960] ss:$8 sps:$4 sm:$0xff]  }
  0xa4   :  { %2974 = vmatpush1.bf16.msra.mxu0 %v3895_v5  ;;  %2729 = vmatprep.subr.bf16.mxu1 %v3900_v6  ;;  %v3984_v5 = vld [vmem:[%s5619_s1 + $0x374] ss:$8 sps:$4 sm:$0xff]  }
  0xa5   :  { %2975 = vmatprep.subr.bf16.mxu0 %v3903_v7  ;;  %v3987_v6 = vld [vmem:[%s5619_s1 + $0x974] ss:$8 sps:$4 sm:$0xff]   ;;  %v3982_v7 = vld [vmem:[%s5619_s1 + $0x370] ss:$8 sps:$4 sm:$0xff]  }
  0xa7   :  { %2730 = vmatpush1.bf16.msra.mxu1 %v3898_v8  ;;  %v3985_v8 = vld [vmem:[%s5619_s1 + $0x970] ss:$8 sps:$4 sm:$0xff]  }
  0xa8   :  { %2976 = vmatpush1.bf16.msra.mxu0 %v3901_v9  ;;  %2731 = vmatprep.subr.bf16.mxu1 %v3906_v10  ;;  %v3990_v9 = vld [vmem:[%s5619_s1 + $0x384] ss:$8 sps:$4 sm:$0xff]  }
  0xa9   :  { %2977 = vmatprep.subr.bf16.mxu0 %v3909_v11  ;;  %v3993_v10 = vld [vmem:[%s5619_s1 + $0x984] ss:$8 sps:$4 sm:$0xff]   ;;  %v3988_v11 = vld [vmem:[%s5619_s1 + $0x380] ss:$8 sps:$4 sm:$0xff]  }
  0xab   :  { %2732 = vmatpush1.bf16.msra.mxu1 %v3904_v12  ;;  %v3991_v12 = vld [vmem:[%s5619_s1 + $0x980] ss:$8 sps:$4 sm:$0xff]  }
  0xac   :  { %2978 = vmatpush1.bf16.msra.mxu0 %v3907_v13  ;;  %2733 = vmatprep.subr.bf16.mxu1 %v3912_v14  ;;  %v3996_v13 = vld [vmem:[%s5619_s1 + $0x394] ss:$8 sps:$4 sm:$0xff]  }
  0xad   :  { %2979 = vmatprep.subr.bf16.mxu0 %v3915_v15  ;;  %v3999_v14 = vld [vmem:[%s5619_s1 + $0x994] ss:$8 sps:$4 sm:$0xff]   ;;  %v3994_v15 = vld [vmem:[%s5619_s1 + $0x390] ss:$8 sps:$4 sm:$0xff]  }
  0xaf   :  { %2734 = vmatpush1.bf16.msra.mxu1 %v3910_v16  ;;  %v3997_v16 = vld [vmem:[%s5619_s1 + $0x990] ss:$8 sps:$4 sm:$0xff]  }
  0xb0   :  { %2980 = vmatpush1.bf16.msra.mxu0 %v3913_v19  ;;  %2735 = vmatprep.subr.bf16.mxu1 %v3918_v20  ;;  %v4002_v19 = vld [vmem:[%s5619_s1 + $0x3a4] ss:$8 sps:$4 sm:$0xff]  }
  0xb1   :  { %2981 = vmatprep.subr.bf16.mxu0 %v3921_v21  ;;  %v4005_v20 = vld [vmem:[%s5619_s1 + $0x9a4] ss:$8 sps:$4 sm:$0xff]   ;;  %v4000_v21 = vld [vmem:[%s5619_s1 + $0x3a0] ss:$8 sps:$4 sm:$0xff]  }
  0xb3   :  { %2736 = vmatpush1.bf16.msra.mxu1 %v3916_v52  ;;  %v4003_v52 = vld [vmem:[%s5619_s1 + $0x9a0] ss:$8 sps:$4 sm:$0xff]  }
  0xb4   :  { %2982 = vmatpush1.bf16.msra.mxu0 %v3919_v23  ;;  %2737 = vmatprep.subr.bf16.mxu1 %v3924_v24  ;;  %v4008_v23 = vld [vmem:[%s5619_s1 + $0x3b4] ss:$8 sps:$4 sm:$0xff]  }
  0xb5   :  { %2983 = vmatprep.subr.bf16.mxu0 %v3927_v25  ;;  %v4011_v24 = vld [vmem:[%s5619_s1 + $0x9b4] ss:$8 sps:$4 sm:$0xff]   ;;  %v4006_v25 = vld [vmem:[%s5619_s1 + $0x3b0] ss:$8 sps:$4 sm:$0xff]  }
  0xb7   :  { %2738 = vmatpush1.bf16.msra.mxu1 %v3922_v26  ;;  %v4009_v26 = vld [vmem:[%s5619_s1 + $0x9b0] ss:$8 sps:$4 sm:$0xff]  }
  0xb8   :  { %2984 = vmatpush1.bf16.msra.mxu0 %v3925_v27  ;;  %2739 = vmatprep.subr.bf16.mxu1 %v3930_v28  ;;  %v4014_v27 = vld [vmem:[%s5619_s1 + $0x3c4] ss:$8 sps:$4 sm:$0xff]  }
  0xb9   :  { %2985 = vmatprep.subr.bf16.mxu0 %v3933_v29  ;;  %v4017_v28 = vld [vmem:[%s5619_s1 + $0x9c4] ss:$8 sps:$4 sm:$0xff]   ;;  %v4012_v29 = vld [vmem:[%s5619_s1 + $0x3c0] ss:$8 sps:$4 sm:$0xff]  }
  0xbb   :  { %2740 = vmatpush1.bf16.msra.mxu1 %v3928_v30  ;;  %v4015_v30 = vld [vmem:[%s5619_s1 + $0x9c0] ss:$8 sps:$4 sm:$0xff]  }
  0xbc   :  { %2986 = vmatpush1.bf16.msra.mxu0 %v3931_v31  ;;  %2741 = vmatprep.subr.bf16.mxu1 %v3936_v32  ;;  %v4020_v31 = vld [vmem:[%s5619_s1 + $0x3d4] ss:$8 sps:$4 sm:$0xff]  }
  0xbd   :  { %2987 = vmatprep.subr.bf16.mxu0 %v3939_v17  ;;  %v4023_v32 = vld [vmem:[%s5619_s1 + $0x9d4] ss:$8 sps:$4 sm:$0xff]   ;;  %v4018_v17 = vld [vmem:[%s5619_s1 + $0x3d0] ss:$8 sps:$4 sm:$0xff]  }
  0xbf   :  { %2742 = vmatpush1.bf16.msra.mxu1 %v3934_v34  ;;  %v4021_v34 = vld [vmem:[%s5619_s1 + $0x9d0] ss:$8 sps:$4 sm:$0xff]  }
  0xc0   :  { %2988 = vmatpush1.bf16.msra.mxu0 %v3937_v36  ;;  %2752 = vmatprep.subr.bf16.mxu1 %v3942_v37  ;;  %v4026_v36 = vld [vmem:[%s5619_s1 + $0x3e4] ss:$8 sps:$4 sm:$0xff]  }
  0xc1   :  { %2998 = vmatprep.subr.bf16.mxu0 %v3945_v38  ;;  %v4029_v37 = vld [vmem:[%s5619_s1 + $0x9e4] ss:$8 sps:$4 sm:$0xff]   ;;  %v541_v38 = vcombine.high %v4732_v33, %v4732_v33  ;;  %v4035_v33 = vld [vmem:[%s5619_s1 + $0x9f4] ss:$8 sps:$4 sm:$0xff]  }
  0xc2   :  { %2744 = vmatmul.mubr.bf16.vlgmr.msra.gmra.mrb[0].mxu1 %v4930_v40 }
  0xc3   :  { %2990 = vmatmul.mubr.bf16.vlgmr.msra.gmra.mrb[0].mxu0 %v4934_v43  ;;  %2753 = vmatpush1.bf16.msra.mxu1 %v3940_v39  ;;  %v4024_v39 = vld [vmem:[%s5619_s1 + $0x3e0] ss:$8 sps:$4 sm:$0xff]  }
  0xc4   :  { %2999 = vmatpush1.bf16.msra.mxu0 %v3943_v44  ;;  %2754 = vmatprep.subr.bf16.mxu1 %v3948_v45  ;;  %v4027_v44 = vld [vmem:[%s5619_s1 + $0x9e0] ss:$8 sps:$4 sm:$0xff]   ;;  %v4032_v45 = vld [vmem:[%s5619_s1 + $0x3f4] ss:$8 sps:$4 sm:$0xff]  }
  0xc5   :  { %3000 = vmatprep.subr.bf16.mxu0 %v3951_v22  ;;  %2784 = vmatprep.mubr.bf16.mxu1 %v491_v35  ;;  %v5124_v22 = vld.sshfl [vmem:[%s5620_s0 + $0x8] sm:$0xff pattern:$0x75316420]  ;;  %v5127_v35 = vrot.slane %v541_v38, %v4422_v49  ;;  %v4105_v38 = vld [vmem:[%s5619_s1 + $0xab0] ss:$8 sps:$4 sm:$0xff]  }
  0xc6   :  { %3030 = vmatprep.mubr.bf16.mxu0 %v588_v46  ;;  %v4030_v46 = vld [vmem:[%s5619_s1 + $0x3f0] ss:$8 sps:$4 sm:$0xff]  }
  0xc7   :  { %2755 = vmatpush1.bf16.msra.mxu1 %v3946_v47  ;;  %v4033_v47 = vld [vmem:[%s5619_s1 + $0x9f0] ss:$8 sps:$4 sm:$0xff]  }
  0xc8   :  { %3001 = vmatpush1.bf16.msra.mxu0 %v3949_v48  ;;  %2756 = vmatprep.subr.bf16.mxu1 %v3954_v18  ;;  %v4038_v48 = vld [vmem:[%s5619_s1 + $0x404] ss:$8 sps:$4 sm:$0xff]  }
  0xc9   :  { %3002 = vmatprep.subr.bf16.mxu0 %v3957_v41  ;;  %v4041_v18 = vld [vmem:[%s5619_s1 + $0xa04] ss:$8 sps:$4 sm:$0xff]   ;;  %v507_v41 = vcombine.high %v5124_v22, %v5124_v22 }
  0xcb   :  { %2757 = vmatpush1.bf16.msra.mxu1 %v3952_v50  ;;  %v557_v50 = vcombine.high %v5127_v35, %v5127_v35 }
  0xcc   :  { %3003 = vmatpush1.bf16.msra.mxu0 %v3955_v51  ;;  %2758 = vmatprep.subr.bf16.mxu1 %v3960_v53  ;;  %v4036_v51 = vld [vmem:[%s5619_s1 + $0x400] ss:$8 sps:$4 sm:$0xff]   ;;  %v489_v53 = vcombine.high %v4930_v40, %v4930_v40  ;;  %v4042_v40 = vld [vmem:[%s5619_s1 + $0x410] ss:$8 sps:$4 sm:$0xff]  }
  0xcd   :  { %3004 = vmatprep.subr.bf16.mxu0 %v3963_v54  ;;  %v586_v54 = vcombine.high %v4934_v43, %v4934_v43  ;;  %v4045_v43 = vld [vmem:[%s5619_s1 + $0xa10] ss:$8 sps:$4 sm:$0xff]  }
  0xcf   :  { %2759 = vmatpush1.bf16.msra.mxu1 %v3958_v55  ;;  %v4039_v55 = vld [vmem:[%s5619_s1 + $0xa00] ss:$8 sps:$4 sm:$0xff]  }
  0xd0   :  { %3005 = vmatpush1.bf16.msra.mxu0 %v3961_v56  ;;  %2760 = vmatprep.subr.bf16.mxu1 %v3966_v57  ;;  %v4044_v56 = vld [vmem:[%s5619_s1 + $0x414] ss:$8 sps:$4 sm:$0xff]  }
  0xd1   :  { %3006 = vmatprep.subr.bf16.mxu0 %v3969_v58  ;;  %v4047_v57 = vld [vmem:[%s5619_s1 + $0xa14] ss:$8 sps:$4 sm:$0xff]   ;;  %v5168_v58 = vrot.slane %v507_v41, %v4422_v49  ;;  %v4122_v41 = vld [vmem:[%s5619_s1 + $0x4e4] ss:$8 sps:$4 sm:$0xff]  }
  0xd3   :  { %2761 = vmatpush1.bf16.msra.mxu1 %v3964_v59  ;;  %v5171_v59 = vrot.slane %v557_v50, %v4422_v49  ;;  %v4125_v50 = vld [vmem:[%s5619_s1 + $0xae4] ss:$8 sps:$4 sm:$0xff]  }
  0xd4   :  { %3007 = vmatpush1.bf16.msra.mxu0 %v3967_v60  ;;  %2762 = vmatprep.subr.bf16.mxu1 %v3972_v61  ;;  %v4050_v60 = vld [vmem:[%s5619_s1 + $0x424] ss:$8 sps:$4 sm:$0xff]  }
  0xd5   :  { %3008 = vmatprep.subr.bf16.mxu0 %v3975_v62  ;;  %v4053_v61 = vld [vmem:[%s5619_s1 + $0xa24] ss:$8 sps:$4 sm:$0xff]   ;;  %v4048_v62 = vld [vmem:[%s5619_s1 + $0x420] ss:$8 sps:$4 sm:$0xff]  }
  0xd7   :  { %2763 = vmatpush1.bf16.msra.mxu1 %v3970_v63  ;;  %v4051_v63 = vld [vmem:[%s5619_s1 + $0xa20] ss:$8 sps:$4 sm:$0xff]  }
  0xd8   :  { %3009 = vmatpush1.bf16.msra.mxu0 %v3973_v0  ;;  %2764 = vmatprep.subr.bf16.mxu1 %v3978_v1  ;;  %v4056_v0 = vld [vmem:[%s5619_s1 + $0x434] ss:$8 sps:$4 sm:$0xff]  }
  0xd9   :  { %3010 = vmatprep.subr.bf16.mxu0 %v3981_v2  ;;  %v4059_v1 = vld [vmem:[%s5619_s1 + $0xa34] ss:$8 sps:$4 sm:$0xff]   ;;  %v4054_v2 = vld [vmem:[%s5619_s1 + $0x430] ss:$8 sps:$4 sm:$0xff]  }
  0xdb   :  { %2765 = vmatpush1.bf16.msra.mxu1 %v3976_v3  ;;  %v4057_v3 = vld [vmem:[%s5619_s1 + $0xa30] ss:$8 sps:$4 sm:$0xff]  }
  0xdc   :  { %3011 = vmatpush1.bf16.msra.mxu0 %v3979_v4  ;;  %2766 = vmatprep.subr.bf16.mxu1 %v3984_v5  ;;  %v4062_v4 = vld [vmem:[%s5619_s1 + $0x444] ss:$8 sps:$4 sm:$0xff]  }
  0xdd   :  { %3012 = vmatprep.subr.bf16.mxu0 %v3987_v6  ;;  %v4065_v5 = vld [vmem:[%s5619_s1 + $0xa44] ss:$8 sps:$4 sm:$0xff]   ;;  %v4060_v6 = vld [vmem:[%s5619_s1 + $0x440] ss:$8 sps:$4 sm:$0xff]  }
  0xdf   :  { %2767 = vmatpush1.bf16.msra.mxu1 %v3982_v7  ;;  %v4063_v7 = vld [vmem:[%s5619_s1 + $0xa40] ss:$8 sps:$4 sm:$0xff]  }
  0xe0   :  { %3013 = vmatpush1.bf16.msra.mxu0 %v3985_v8  ;;  %2768 = vmatprep.subr.bf16.mxu1 %v3990_v9  ;;  %v4068_v8 = vld [vmem:[%s5619_s1 + $0x454] ss:$8 sps:$4 sm:$0xff]  }
  0xe1   :  { %3014 = vmatprep.subr.bf16.mxu0 %v3993_v10  ;;  %v4071_v9 = vld [vmem:[%s5619_s1 + $0xa54] ss:$8 sps:$4 sm:$0xff]   ;;  %v4066_v10 = vld [vmem:[%s5619_s1 + $0x450] ss:$8 sps:$4 sm:$0xff]  }
  0xe3   :  { %2769 = vmatpush1.bf16.msra.mxu1 %v3988_v11  ;;  %v4069_v11 = vld [vmem:[%s5619_s1 + $0xa50] ss:$8 sps:$4 sm:$0xff]  }
  0xe4   :  { %3015 = vmatpush1.bf16.msra.mxu0 %v3991_v12  ;;  %2770 = vmatprep.subr.bf16.mxu1 %v3996_v13  ;;  %v4074_v12 = vld [vmem:[%s5619_s1 + $0x464] ss:$8 sps:$4 sm:$0xff]  }
  0xe5   :  { %3016 = vmatprep.subr.bf16.mxu0 %v3999_v14  ;;  %v4077_v13 = vld [vmem:[%s5619_s1 + $0xa64] ss:$8 sps:$4 sm:$0xff]   ;;  %v4072_v14 = vld [vmem:[%s5619_s1 + $0x460] ss:$8 sps:$4 sm:$0xff]  }
  0xe7   :  { %2771 = vmatpush1.bf16.msra.mxu1 %v3994_v15  ;;  %v4075_v15 = vld [vmem:[%s5619_s1 + $0xa60] ss:$8 sps:$4 sm:$0xff]  }
  0xe8   :  { %3017 = vmatpush1.bf16.msra.mxu0 %v3997_v16  ;;  %2772 = vmatprep.subr.bf16.mxu1 %v4002_v19  ;;  %v4080_v16 = vld [vmem:[%s5619_s1 + $0x474] ss:$8 sps:$4 sm:$0xff]  }
  0xe9   :  { %3018 = vmatprep.subr.bf16.mxu0 %v4005_v20  ;;  %v4083_v19 = vld [vmem:[%s5619_s1 + $0xa74] ss:$8 sps:$4 sm:$0xff]   ;;  %v4078_v20 = vld [vmem:[%s5619_s1 + $0x470] ss:$8 sps:$4 sm:$0xff]  }
  0xeb   :  { %2773 = vmatpush1.bf16.msra.mxu1 %v4000_v21  ;;  %v4081_v21 = vld [vmem:[%s5619_s1 + $0xa70] ss:$8 sps:$4 sm:$0xff]  }
  0xec   :  { %3019 = vmatpush1.bf16.msra.mxu0 %v4003_v52  ;;  %2774 = vmatprep.subr.bf16.mxu1 %v4008_v23  ;;  %v4086_v52 = vld [vmem:[%s5619_s1 + $0x484] ss:$8 sps:$4 sm:$0xff]  }
  0xed   :  { %3020 = vmatprep.subr.bf16.mxu0 %v4011_v24  ;;  %v4089_v23 = vld [vmem:[%s5619_s1 + $0xa84] ss:$8 sps:$4 sm:$0xff]   ;;  %v4084_v24 = vld [vmem:[%s5619_s1 + $0x480] ss:$8 sps:$4 sm:$0xff]  }
  0xef   :  { %2775 = vmatpush1.bf16.msra.mxu1 %v4006_v25  ;;  %v4087_v25 = vld [vmem:[%s5619_s1 + $0xa80] ss:$8 sps:$4 sm:$0xff]  }
  0xf0   :  { %3021 = vmatpush1.bf16.msra.mxu0 %v4009_v26  ;;  %2776 = vmatprep.subr.bf16.mxu1 %v4014_v27  ;;  %v4092_v26 = vld [vmem:[%s5619_s1 + $0x494] ss:$8 sps:$4 sm:$0xff]  }
  0xf1   :  { %3022 = vmatprep.subr.bf16.mxu0 %v4017_v28  ;;  %v4095_v27 = vld [vmem:[%s5619_s1 + $0xa94] ss:$8 sps:$4 sm:$0xff]   ;;  %v4090_v28 = vld [vmem:[%s5619_s1 + $0x490] ss:$8 sps:$4 sm:$0xff]  }
  0xf3   :  { %2777 = vmatpush1.bf16.msra.mxu1 %v4012_v29  ;;  %v4093_v29 = vld [vmem:[%s5619_s1 + $0xa90] ss:$8 sps:$4 sm:$0xff]  }
  0xf4   :  { %3023 = vmatpush1.bf16.msra.mxu0 %v4015_v30  ;;  %2778 = vmatprep.subr.bf16.mxu1 %v4020_v31  ;;  %v4098_v30 = vld [vmem:[%s5619_s1 + $0x4a4] ss:$8 sps:$4 sm:$0xff]  }
  0xf5   :  { %3024 = vmatprep.subr.bf16.mxu0 %v4023_v32  ;;  %v4101_v31 = vld [vmem:[%s5619_s1 + $0xaa4] ss:$8 sps:$4 sm:$0xff]   ;;  %v4096_v32 = vld [vmem:[%s5619_s1 + $0x4a0] ss:$8 sps:$4 sm:$0xff]  }
  0xf7   :  { %2779 = vmatpush1.bf16.msra.mxu1 %v4018_v17  ;;  %v4099_v17 = vld [vmem:[%s5619_s1 + $0xaa0] ss:$8 sps:$4 sm:$0xff]  }
  0xf8   :  { %3025 = vmatpush1.bf16.msra.mxu0 %v4021_v34  ;;  %2780 = vmatprep.subr.bf16.mxu1 %v4026_v36  ;;  %v4104_v34 = vld [vmem:[%s5619_s1 + $0x4b4] ss:$8 sps:$4 sm:$0xff]  }
  0xf9   :  { %3026 = vmatprep.subr.bf16.mxu0 %v4029_v37  ;;  %v4107_v36 = vld [vmem:[%s5619_s1 + $0xab4] ss:$8 sps:$4 sm:$0xff]   ;;  %v4102_v37 = vld [vmem:[%s5619_s1 + $0x4b0] ss:$8 sps:$4 sm:$0xff]  }
  0xfb   :  { %2781 = vmatpush1.bf16.msra.mxu1 %v4024_v39  ;;  %v4110_v39 = vld [vmem:[%s5619_s1 + $0x4c4] ss:$8 sps:$4 sm:$0xff]  }
  0xfc   :  { %3027 = vmatpush1.bf16.msra.mxu0 %v4027_v44  ;;  %2782 = vmatprep.subr.bf16.mxu1 %v4032_v45  ;;  %v4113_v44 = vld [vmem:[%s5619_s1 + $0xac4] ss:$8 sps:$4 sm:$0xff]   ;;  %v4108_v45 = vld [vmem:[%s5619_s1 + $0x4c0] ss:$8 sps:$4 sm:$0xff]  }
  0xfd   :  { %3028 = vmatprep.subr.bf16.mxu0 %v4035_v33  ;;  %v4111_v33 = vld [vmem:[%s5619_s1 + $0xac0] ss:$8 sps:$4 sm:$0xff]  }
  0xff   :  { %2783 = vmatpush1.bf16.msra.mxu1 %v4030_v46  ;;  %v4116_v46 = vld [vmem:[%s5619_s1 + $0x4d4] ss:$8 sps:$4 sm:$0xff]  }
 0x100   :  { %3029 = vmatpush1.bf16.msra.mxu0 %v4033_v47  ;;  %2793 = vmatprep.subr.bf16.mxu1 %v4038_v48  ;;  %v4119_v47 = vld [vmem:[%s5619_s1 + $0xad4] ss:$8 sps:$4 sm:$0xff]   ;;  %v4114_v48 = vld [vmem:[%s5619_s1 + $0x4d0] ss:$8 sps:$4 sm:$0xff]  }
 0x101   :  { %3039 = vmatprep.subr.bf16.mxu0 %v4041_v18  ;;  %v4117_v18 = vld [vmem:[%s5619_s1 + $0xad0] ss:$8 sps:$4 sm:$0xff]  }
 0x102   :  { %2785 = vmatmul.mubr.bf16.vlgmr.msra.gmra.mrb[0].mxu1 %v489_v53  ;;  %v4123_v53 = vld [vmem:[%s5619_s1 + $0xae0] ss:$8 sps:$4 sm:$0xff]  }
 0x103   :  { %3031 = vmatmul.mubr.bf16.vlgmr.msra.gmra.mrb[0].mxu0 %v586_v54  ;;  %2794 = vmatpush1.bf16.msra.mxu1 %v4036_v51  ;;  %v4120_v51 = vld [vmem:[%s5619_s1 + $0x4e0] ss:$8 sps:$4 sm:$0xff]   ;;  %v4128_v54 = vld [vmem:[%s5619_s1 + $0x4f4] ss:$8 sps:$4 sm:$0xff]  }
 0x104   :  { %3040 = vmatpush1.bf16.msra.mxu0 %v4039_v55  ;;  %2795 = vmatprep.subr.bf16.mxu1 %v4044_v56  ;;  %v4131_v55 = vld [vmem:[%s5619_s1 + $0xaf4] ss:$8 sps:$4 sm:$0xff]   ;;  %v4126_v56 = vld [vmem:[%s5619_s1 + $0x4f0] ss:$8 sps:$4 sm:$0xff]  }
 0x105   :  { %3041 = vmatprep.subr.bf16.mxu0 %v4047_v57  ;;  %2825 = vmatprep.mubr.bf16.mxu1 %v5168_v58  ;;  %v4129_v57 = vld [vmem:[%s5619_s1 + $0xaf0] ss:$8 sps:$4 sm:$0xff]  }
 0x106   :  { %3071 = vmatprep.mubr.bf16.mxu0 %v5171_v59 }
 0x107   :  { %2796 = vmatpush1.bf16.msra.mxu1 %v4042_v40  ;;  %v4134_v40 = vld [vmem:[%s5619_s1 + $0x504] ss:$8 sps:$4 sm:$0xff]  }
 0x108   :  { %3042 = vmatpush1.bf16.msra.mxu0 %v4045_v43  ;;  %2797 = vmatprep.subr.bf16.mxu1 %v4050_v60  ;;  %v4138_v43 = vld [vmem:[%s5619_s1 + $0xb04] ss:$8 sps:$4 sm:$0xff]   ;;  %v5351_v60 = vrot.slane %v5124_v22, %v4422_v49  ;;  %v4141_v22 = vld [vmem:[%s5619_s1 + $0x514] ss:$8 sps:$4 sm:$0xff]  }
 0x109   :  { %3043 = vmatprep.subr.bf16.mxu0 %v4053_v61  ;;  %v5355_v61 = vrot.slane %v5127_v35, %v4422_v49  ;;  %v4144_v35 = vld [vmem:[%s5619_s1 + $0xb14] ss:$8 sps:$4 sm:$0xff]  }
 0x10b   :  { %2798 = vmatpush1.bf16.msra.mxu1 %v4048_v62  ;;  %v4132_v62 = vld [vmem:[%s5619_s1 + $0x500] ss:$8 sps:$4 sm:$0xff]  }
 0x10c   :  { %3044 = vmatpush1.bf16.msra.mxu0 %v4051_v63  ;;  %2799 = vmatprep.subr.bf16.mxu1 %v4056_v0  ;;  %v4136_v63 = vld [vmem:[%s5619_s1 + $0xb00] ss:$8 sps:$4 sm:$0xff]   ;;  %v539_v0 = vcombine.high %v5168_v58, %v5168_v58  ;;  %v4147_v58 = vld [vmem:[%s5619_s1 + $0x524] ss:$8 sps:$4 sm:$0xff]  }
 0x10d   :  { %3045 = vmatprep.subr.bf16.mxu0 %v4059_v1  ;;  %v589_v1 = vcombine.high %v5171_v59, %v5171_v59  ;;  %v4150_v59 = vld [vmem:[%s5619_s1 + $0xb24] ss:$8 sps:$4 sm:$0xff]  }
 0x10f   :  { %2800 = vmatpush1.bf16.msra.mxu1 %v4054_v2  ;;  %v4139_v2 = vld [vmem:[%s5619_s1 + $0x510] ss:$8 sps:$4 sm:$0xff]  }
 0x110   :  { %3046 = vmatpush1.bf16.msra.mxu0 %v4057_v3  ;;  %2801 = vmatprep.subr.bf16.mxu1 %v4062_v4  ;;  %v4142_v3 = vld [vmem:[%s5619_s1 + $0xb10] ss:$8 sps:$4 sm:$0xff]   ;;  %v4145_v4 = vld [vmem:[%s5619_s1 + $0x520] ss:$8 sps:$4 sm:$0xff]  }
 0x111   :  { %3047 = vmatprep.subr.bf16.mxu0 %v4065_v5  ;;  %v4148_v5 = vld [vmem:[%s5619_s1 + $0xb20] ss:$8 sps:$4 sm:$0xff]  }
 0x113   :  { %2802 = vmatpush1.bf16.msra.mxu1 %v4060_v6  ;;  %v4153_v6 = vld [vmem:[%s5619_s1 + $0x534] ss:$8 sps:$4 sm:$0xff]  }
 0x114   :  { %3048 = vmatpush1.bf16.msra.mxu0 %v4063_v7  ;;  %2803 = vmatprep.subr.bf16.mxu1 %v4068_v8  ;;  %v4156_v7 = vld [vmem:[%s5619_s1 + $0xb34] ss:$8 sps:$4 sm:$0xff]   ;;  %v4151_v8 = vld [vmem:[%s5619_s1 + $0x530] ss:$8 sps:$4 sm:$0xff]  }
 0x115   :  { %3049 = vmatprep.subr.bf16.mxu0 %v4071_v9  ;;  %v4154_v9 = vld [vmem:[%s5619_s1 + $0xb30] ss:$8 sps:$4 sm:$0xff]  }
 0x117   :  { %2804 = vmatpush1.bf16.msra.mxu1 %v4066_v10  ;;  %v4159_v10 = vld [vmem:[%s5619_s1 + $0x544] ss:$8 sps:$4 sm:$0xff]  }
 0x118   :  { %3050 = vmatpush1.bf16.msra.mxu0 %v4069_v11  ;;  %2805 = vmatprep.subr.bf16.mxu1 %v4074_v12  ;;  %v4162_v11 = vld [vmem:[%s5619_s1 + $0xb44] ss:$8 sps:$4 sm:$0xff]   ;;  %v4157_v12 = vld [vmem:[%s5619_s1 + $0x540] ss:$8 sps:$4 sm:$0xff]  }
 0x119   :  { %3051 = vmatprep.subr.bf16.mxu0 %v4077_v13  ;;  %v4160_v13 = vld [vmem:[%s5619_s1 + $0xb40] ss:$8 sps:$4 sm:$0xff]  }
 0x11b   :  { %2806 = vmatpush1.bf16.msra.mxu1 %v4072_v14  ;;  %v4165_v14 = vld [vmem:[%s5619_s1 + $0x554] ss:$8 sps:$4 sm:$0xff]  }
 0x11c   :  { %3052 = vmatpush1.bf16.msra.mxu0 %v4075_v15  ;;  %2807 = vmatprep.subr.bf16.mxu1 %v4080_v16  ;;  %v4168_v15 = vld [vmem:[%s5619_s1 + $0xb54] ss:$8 sps:$4 sm:$0xff]   ;;  %v4163_v16 = vld [vmem:[%s5619_s1 + $0x550] ss:$8 sps:$4 sm:$0xff]  }
 0x11d   :  { %3053 = vmatprep.subr.bf16.mxu0 %v4083_v19  ;;  %v4166_v19 = vld [vmem:[%s5619_s1 + $0xb50] ss:$8 sps:$4 sm:$0xff]  }
 0x11f   :  { %2808 = vmatpush1.bf16.msra.mxu1 %v4078_v20  ;;  %v4171_v20 = vld [vmem:[%s5619_s1 + $0x564] ss:$8 sps:$4 sm:$0xff]  }
 0x120   :  { %3054 = vmatpush1.bf16.msra.mxu0 %v4081_v21  ;;  %2809 = vmatprep.subr.bf16.mxu1 %v4086_v52  ;;  %v4174_v21 = vld [vmem:[%s5619_s1 + $0xb64] ss:$8 sps:$4 sm:$0xff]   ;;  %v4169_v52 = vld [vmem:[%s5619_s1 + $0x560] ss:$8 sps:$4 sm:$0xff]  }
 0x121   :  { %3055 = vmatprep.subr.bf16.mxu0 %v4089_v23  ;;  %v4172_v23 = vld [vmem:[%s5619_s1 + $0xb60] ss:$8 sps:$4 sm:$0xff]  }
 0x123   :  { %2810 = vmatpush1.bf16.msra.mxu1 %v4084_v24  ;;  %v4177_v24 = vld [vmem:[%s5619_s1 + $0x574] ss:$8 sps:$4 sm:$0xff]  }
 0x124   :  { %3056 = vmatpush1.bf16.msra.mxu0 %v4087_v25  ;;  %2811 = vmatprep.subr.bf16.mxu1 %v4092_v26  ;;  %v4180_v25 = vld [vmem:[%s5619_s1 + $0xb74] ss:$8 sps:$4 sm:$0xff]   ;;  %v4175_v26 = vld [vmem:[%s5619_s1 + $0x570] ss:$8 sps:$4 sm:$0xff]  }
 0x125   :  { %3057 = vmatprep.subr.bf16.mxu0 %v4095_v27  ;;  %v4178_v27 = vld [vmem:[%s5619_s1 + $0xb70] ss:$8 sps:$4 sm:$0xff]  }
 0x127   :  { %2812 = vmatpush1.bf16.msra.mxu1 %v4090_v28  ;;  %v4183_v28 = vld [vmem:[%s5619_s1 + $0x584] ss:$8 sps:$4 sm:$0xff]  }
 0x128   :  { %3058 = vmatpush1.bf16.msra.mxu0 %v4093_v29  ;;  %2813 = vmatprep.subr.bf16.mxu1 %v4098_v30  ;;  %v4186_v29 = vld [vmem:[%s5619_s1 + $0xb84] ss:$8 sps:$4 sm:$0xff]   ;;  %v4181_v30 = vld [vmem:[%s5619_s1 + $0x580] ss:$8 sps:$4 sm:$0xff]  }
 0x129   :  { %3059 = vmatprep.subr.bf16.mxu0 %v4101_v31  ;;  %v4184_v31 = vld [vmem:[%s5619_s1 + $0xb80] ss:$8 sps:$4 sm:$0xff]  }
 0x12b   :  { %2814 = vmatpush1.bf16.msra.mxu1 %v4096_v32  ;;  %v4189_v32 = vld [vmem:[%s5619_s1 + $0x594] ss:$8 sps:$4 sm:$0xff]  }
 0x12c   :  { %3060 = vmatpush1.bf16.msra.mxu0 %v4099_v17  ;;  %2815 = vmatprep.subr.bf16.mxu1 %v4104_v34  ;;  %v4192_v17 = vld [vmem:[%s5619_s1 + $0xb94] ss:$8 sps:$4 sm:$0xff]   ;;  %v4187_v34 = vld [vmem:[%s5619_s1 + $0x590] ss:$8 sps:$4 sm:$0xff]  }
 0x12d   :  { %3061 = vmatprep.subr.bf16.mxu0 %v4107_v36  ;;  %v4190_v36 = vld [vmem:[%s5619_s1 + $0xb90] ss:$8 sps:$4 sm:$0xff]  }
 0x12f   :  { %2816 = vmatpush1.bf16.msra.mxu1 %v4102_v37  ;;  %v4195_v37 = vld [vmem:[%s5619_s1 + $0x5a4] ss:$8 sps:$4 sm:$0xff]  }
 0x130   :  { %3062 = vmatpush1.bf16.msra.mxu0 %v4105_v38  ;;  %2817 = vmatprep.subr.bf16.mxu1 %v4110_v39  ;;  %v4198_v38 = vld [vmem:[%s5619_s1 + $0xba4] ss:$8 sps:$4 sm:$0xff]   ;;  %v4193_v39 = vld [vmem:[%s5619_s1 + $0x5a0] ss:$8 sps:$4 sm:$0xff]  }
 0x131   :  { %3063 = vmatprep.subr.bf16.mxu0 %v4113_v44  ;;  %v4196_v44 = vld [vmem:[%s5619_s1 + $0xba0] ss:$8 sps:$4 sm:$0xff]  }
 0x133   :  { %2818 = vmatpush1.bf16.msra.mxu1 %v4108_v45  ;;  %v4201_v45 = vld [vmem:[%s5619_s1 + $0x5b4] ss:$8 sps:$4 sm:$0xff]  }
 0x134   :  { %3064 = vmatpush1.bf16.msra.mxu0 %v4111_v33  ;;  %2819 = vmatprep.subr.bf16.mxu1 %v4116_v46  ;;  %v4204_v33 = vld [vmem:[%s5619_s1 + $0xbb4] ss:$8 sps:$4 sm:$0xff]   ;;  %v4199_v46 = vld [vmem:[%s5619_s1 + $0x5b0] ss:$8 sps:$4 sm:$0xff]  }
 0x135   :  { %3065 = vmatprep.subr.bf16.mxu0 %v4119_v47  ;;  %v4202_v47 = vld [vmem:[%s5619_s1 + $0xbb0] ss:$8 sps:$4 sm:$0xff]  }
 0x137   :  { %2820 = vmatpush1.bf16.msra.mxu1 %v4114_v48  ;;  %v4207_v48 = vld [vmem:[%s5619_s1 + $0x5c4] ss:$8 sps:$4 sm:$0xff]  }
 0x138   :  { %3066 = vmatpush1.bf16.msra.mxu0 %v4117_v18  ;;  %2821 = vmatprep.subr.bf16.mxu1 %v4122_v41  ;;  %v4210_v18 = vld [vmem:[%s5619_s1 + $0xbc4] ss:$8 sps:$4 sm:$0xff]   ;;  %v4205_v41 = vld [vmem:[%s5619_s1 + $0x5c0] ss:$8 sps:$4 sm:$0xff]  }
 0x139   :  { %3067 = vmatprep.subr.bf16.mxu0 %v4125_v50  ;;  %v4208_v50 = vld [vmem:[%s5619_s1 + $0xbc0] ss:$8 sps:$4 sm:$0xff]  }
 0x13b   :  { %2822 = vmatpush1.bf16.msra.mxu1 %v4120_v51  ;;  %v4213_v51 = vld [vmem:[%s5619_s1 + $0x5d4] ss:$8 sps:$4 sm:$0xff]  }
 0x13c   :  { %3068 = vmatpush1.bf16.msra.mxu0 %v4123_v53  ;;  %2823 = vmatprep.subr.bf16.mxu1 %v4128_v54  ;;  %v4216_v53 = vld [vmem:[%s5619_s1 + $0xbd4] ss:$8 sps:$4 sm:$0xff]   ;;  %v4211_v54 = vld [vmem:[%s5619_s1 + $0x5d0] ss:$8 sps:$4 sm:$0xff]  }
 0x13d   :  { %3069 = vmatprep.subr.bf16.mxu0 %v4131_v55  ;;  %v4214_v55 = vld [vmem:[%s5619_s1 + $0xbd0] ss:$8 sps:$4 sm:$0xff]  }
 0x13f   :  { %2824 = vmatpush1.bf16.msra.mxu1 %v4126_v56  ;;  %v4219_v56 = vld [vmem:[%s5619_s1 + $0x5e4] ss:$8 sps:$4 sm:$0xff]  }
 0x140   :  { %3070 = vmatpush1.bf16.msra.mxu0 %v4129_v57  ;;  %2834 = vmatprep.subr.bf16.mxu1 %v4134_v40  ;;  %v4222_v57 = vld [vmem:[%s5619_s1 + $0xbe4] ss:$8 sps:$4 sm:$0xff]   ;;  %v4217_v40 = vld [vmem:[%s5619_s1 + $0x5e0] ss:$8 sps:$4 sm:$0xff]  }
 0x141   :  { %3080 = vmatprep.subr.bf16.mxu0 %v4138_v43  ;;  %v4220_v43 = vld [vmem:[%s5619_s1 + $0xbe0] ss:$8 sps:$4 sm:$0xff]  }
 0x142   :  { %2826 = vmatmul.mubr.bf16.vlgmr.msra.gmra.mrb[0].mxu1 %v5351_v60 }
 0x143   :  { %3072 = vmatmul.mubr.bf16.vlgmr.msra.gmra.mrb[0].mxu0 %v5355_v61  ;;  %2835 = vmatpush1.bf16.msra.mxu1 %v4132_v62  ;;  %v4225_v62 = vld [vmem:[%s5619_s1 + $0x5f4] ss:$8 sps:$4 sm:$0xff]  }
 0x144   :  { %3081 = vmatpush1.bf16.msra.mxu0 %v4136_v63  ;;  %2836 = vmatprep.subr.bf16.mxu1 %v4141_v22  ;;  %v4228_v63 = vld [vmem:[%s5619_s1 + $0xbf4] ss:$8 sps:$4 sm:$0xff]   ;;  %v4223_v22 = vld [vmem:[%s5619_s1 + $0x5f0] ss:$8 sps:$4 sm:$0xff]  }
 0x145   :  { %3082 = vmatprep.subr.bf16.mxu0 %v4144_v35  ;;  %2866 = vmatprep.mubr.bf16.mxu1 %v539_v0  ;;  %v4226_v35 = vld [vmem:[%s5619_s1 + $0xbf0] ss:$8 sps:$4 sm:$0xff]   ;;  %v4231_v0 = vld [vmem:[%s5619_s1 + $0xc04] ss:$8 sps:$4 sm:$0xff]  }
 0x146   :  { %3112 = vmatprep.mubr.bf16.mxu0 %v589_v1  ;;  %v537_v1 = vcombine.high %v5351_v60, %v5351_v60  ;;  %v4232_v60 = vld [vmem:[%s5619_s1 + $0xc10] ss:$8 sps:$4 sm:$0xff]  }
 0x147   :  { %2837 = vmatpush1.bf16.msra.mxu1 %v4139_v2  ;;  %v587_v2 = vcombine.high %v5355_v61, %v5355_v61  ;;  %v4237_v61 = vld [vmem:[%s5619_s1 + $0xc24] ss:$8 sps:$4 sm:$0xff]  }
 0x148   :  { %3083 = vmatpush1.bf16.msra.mxu0 %v4142_v3  ;;  %2838 = vmatprep.subr.bf16.mxu1 %v4147_v58  ;;  %v4229_v3 = vld [vmem:[%s5619_s1 + $0xc00] ss:$8 sps:$4 sm:$0xff]   ;;  %v4234_v58 = vld [vmem:[%s5619_s1 + $0xc14] ss:$8 sps:$4 sm:$0xff]  }
 0x149   :  { %3084 = vmatprep.subr.bf16.mxu0 %v4150_v59  ;;  %v4256_v59 = vmov 0  }
 0x14b   :  { %2839 = vmatpush1.bf16.msra.mxu1 %v4145_v4  ;;  %v4235_v4 = vld [vmem:[%s5619_s1 + $0xc20] ss:$8 sps:$4 sm:$0xff]  }
 0x14c   :  { %3085 = vmatpush1.bf16.msra.mxu0 %v4148_v5  ;;  %2840 = vmatprep.subr.bf16.mxu1 %v4153_v6  ;;  %v4240_v5 = vld [vmem:[%s5619_s1 + $0xc34] ss:$8 sps:$4 sm:$0xff]   ;;  %v4238_v6 = vld [vmem:[%s5619_s1 + $0xc30] ss:$8 sps:$4 sm:$0xff]  }
 0x14d   :  { %3086 = vmatprep.subr.bf16.mxu0 %v4156_v7  ;;  %v4243_v7 = vld [vmem:[%s5619_s1 + $0xc44] ss:$8 sps:$4 sm:$0xff]  }
 0x14f   :  { %2841 = vmatpush1.bf16.msra.mxu1 %v4151_v8  ;;  %v4241_v8 = vld [vmem:[%s5619_s1 + $0xc40] ss:$8 sps:$4 sm:$0xff]  }
 0x150   :  { %3087 = vmatpush1.bf16.msra.mxu0 %v4154_v9  ;;  %2842 = vmatprep.subr.bf16.mxu1 %v4159_v10  ;;  %v4246_v9 = vld [vmem:[%s5619_s1 + $0xc54] ss:$8 sps:$4 sm:$0xff]   ;;  %v4244_v10 = vld [vmem:[%s5619_s1 + $0xc50] ss:$8 sps:$4 sm:$0xff]  }
 0x151   :  { %3088 = vmatprep.subr.bf16.mxu0 %v4162_v11  ;;  %v4249_v11 = vld [vmem:[%s5619_s1 + $0xc64] ss:$8 sps:$4 sm:$0xff]  }
 0x153   :  { %2843 = vmatpush1.bf16.msra.mxu1 %v4157_v12  ;;  %v4247_v12 = vld [vmem:[%s5619_s1 + $0xc60] ss:$8 sps:$4 sm:$0xff]  }
 0x154   :  { %3089 = vmatpush1.bf16.msra.mxu0 %v4160_v13  ;;  %2844 = vmatprep.subr.bf16.mxu1 %v4165_v14  ;;  %v4252_v13 = vld [vmem:[%s5619_s1 + $0xc74] ss:$8 sps:$4 sm:$0xff]   ;;  %v4250_v14 = vld [vmem:[%s5619_s1 + $0xc70] ss:$8 sps:$4 sm:$0xff]  }
 0x155   :  { %3090 = vmatprep.subr.bf16.mxu0 %v4168_v15  ;;  %v3198_v15 = vld.sshfl [vmem:[%s5620_s0 + $0x18] sm:$0x1 pattern:$0x75316420] }
 0x157   :  { %2845 = vmatpush1.bf16.msra.mxu1 %v4163_v16  ;;  %v603_v16 = vrot.slane %v3198_v15, %v4422_v49 }
 0x158   :  { %3091 = vmatpush1.bf16.msra.mxu0 %v4166_v19  ;;  %2846 = vmatprep.subr.bf16.mxu1 %v4171_v20  ;;  %v10_v19 = vstv %s5621_s4 }
 0x159   :  { %3092 = vmatprep.subr.bf16.mxu0 %v4174_v21  ;;  %11 = vst [vmem:[#allocation2] sm:$0x1] %v10_v19 }
 0x15b   :  { %2847 = vmatpush1.bf16.msra.mxu1 %v4169_v52 }
 0x15c   :  { %3093 = vmatpush1.bf16.msra.mxu0 %v4172_v23  ;;  %2848 = vmatprep.subr.bf16.mxu1 %v4177_v24  ;;  %v431_v24 = vsub.s32 0, %v4404_v42 }
 0x15d   :  { %3094 = vmatprep.subr.bf16.mxu0 %v4180_v25  ;;  %v427_v25 = vld [vmem:[%s5622_s2] sm:$0x3] }
 0x15e   :  { %v432_v49 = vrot.slane %v427_v25, %v431_v24 }
 0x15f   :  { %2849 = vmatpush1.bf16.msra.mxu1 %v4175_v26  ;;  %v435_v26 = vsub.s32 1, %v4404_v42 }
 0x160   :  { %3095 = vmatpush1.bf16.msra.mxu0 %v4178_v27  ;;  %2850 = vmatprep.subr.bf16.mxu1 %v4183_v28  ;;  %v3164_v28 = vld [vmem:[%s5623_s3] sm:$0x3] }
 0x161   :  { %3096 = vmatprep.subr.bf16.mxu0 %v4186_v29  ;;  %v436_v27 = vrot.slane %v427_v25, %v435_v26 }
 0x163   :  { %2851 = vmatpush1.bf16.msra.mxu1 %v4181_v30 }
 0x164   :  { %3097 = vmatpush1.bf16.msra.mxu0 %v4184_v31  ;;  %2852 = vmatprep.subr.bf16.mxu1 %v4189_v32 }
 0x165   :  { %3098 = vmatprep.subr.bf16.mxu0 %v4192_v17 }
 0x167   :  { %2853 = vmatpush1.bf16.msra.mxu1 %v4187_v34  ;;  %v3169_v34 = vrot.slane %v3164_v28, %v431_v24 }
 0x168   :  { %3099 = vmatpush1.bf16.msra.mxu0 %v4190_v36  ;;  %2854 = vmatprep.subr.bf16.mxu1 %v4195_v37 }
 0x169   :  { %3100 = vmatprep.subr.bf16.mxu0 %v4198_v38  ;;  %v3173_v38 = vrot.slane %v3164_v28, %v435_v26 }
 0x16b   :  { %2855 = vmatpush1.bf16.msra.mxu1 %v4193_v39 }
 0x16c   :  { %3101 = vmatpush1.bf16.msra.mxu0 %v4196_v44  ;;  %2856 = vmatprep.subr.bf16.mxu1 %v4201_v45 }
 0x16d   :  { %3102 = vmatprep.subr.bf16.mxu0 %v4204_v33 }
 0x16f   :  { %2857 = vmatpush1.bf16.msra.mxu1 %v4199_v46 }
 0x170   :  { %3103 = vmatpush1.bf16.msra.mxu0 %v4202_v47  ;;  %2858 = vmatprep.subr.bf16.mxu1 %v4207_v48 }
 0x171   :  { %3104 = vmatprep.subr.bf16.mxu0 %v4210_v18  ;;  %v3599_v18 = vld [vmem:[#allocation2] ss:$0 sm:$0xff] }
 0x173   :  { %2859 = vmatpush1.bf16.msra.mxu1 %v4205_v41 }
 0x174   :  { %3105 = vmatpush1.bf16.msra.mxu0 %v4208_v50  ;;  %2860 = vmatprep.subr.bf16.mxu1 %v4213_v51 }
 0x175   :  { %3106 = vmatprep.subr.bf16.mxu0 %v4216_v53 }
 0x177   :  { %2861 = vmatpush1.bf16.msra.mxu1 %v4211_v54 }
 0x178   :  { %3107 = vmatpush1.bf16.msra.mxu0 %v4214_v55  ;;  %2862 = vmatprep.subr.bf16.mxu1 %v4219_v56 }
 0x179   :  { %3108 = vmatprep.subr.bf16.mxu0 %v4222_v57 }
 0x17b   :  { %2863 = vmatpush1.bf16.msra.mxu1 %v4217_v40 }
 0x17c   :  { %3109 = vmatpush1.bf16.msra.mxu0 %v4220_v43  ;;  %2864 = vmatprep.subr.bf16.mxu1 %v4225_v62 }
 0x17d   :  { %3110 = vmatprep.subr.bf16.mxu0 %v4228_v63 }
 0x17f   :  { %2865 = vmatpush1.bf16.msra.mxu1 %v4223_v22 }
 0x180   :  { %3111 = vmatpush1.bf16.msra.mxu0 %v4226_v35 }
 0x181   :  { %3121 = vmatprep.subr.bf16.mxu0 %v4231_v0 }
 0x182   :  { %2867 = vmatmul.mubr.bf16.vlgmr.msra.gmra.mrb[0].mxu1 %v537_v1 }
 0x183   :  { %3113 = vmatmul.mubr.bf16.vlgmr.msra.gmra.mrb[0].mxu0 %v587_v2 }
 0x184   :  { %3122 = vmatpush1.bf16.msra.mxu0 %v4229_v3  ;;  %3153 = vmatprep.mubr.bf16.mxu0 %v4256_v59 }
 0x185   :  { %3123 = vmatprep.subr.bf16.mxu0 %v4234_v58 }
 0x188   :  { %3124 = vmatpush1.bf16.msra.mxu0 %v4232_v60 }
 0x189   :  { %3125 = vmatprep.subr.bf16.mxu0 %v4237_v61 }
 0x18c   :  { %3126 = vmatpush1.bf16.msra.mxu0 %v4235_v4 }
 0x18d   :  { %3127 = vmatprep.subr.bf16.mxu0 %v4240_v5 }
 0x190   :  { %3128 = vmatpush1.bf16.msra.mxu0 %v4238_v6 }
 0x191   :  { %3129 = vmatprep.subr.bf16.mxu0 %v4243_v7 }
 0x194   :  { %3130 = vmatpush1.bf16.msra.mxu0 %v4241_v8 }
 0x195   :  { %3131 = vmatprep.subr.bf16.mxu0 %v4246_v9 }
 0x198   :  { %3132 = vmatpush1.bf16.msra.mxu0 %v4244_v10 }
 0x199   :  { %3133 = vmatprep.subr.bf16.mxu0 %v4249_v11 }
 0x19c   :  { %3134 = vmatpush1.bf16.msra.mxu0 %v4247_v12 }
 0x19d   :  { %3135 = vmatprep.subr.bf16.mxu0 %v4252_v13 }
 0x1a0   :  { %3136 = vmatpush1.bf16.msra.mxu0 %v4250_v14 }
 0x1a3   :  { %3154 = vmatmul.mubr.bf16.vlgmr.msra.gmra.mrb[0].mxu0 %v603_v16 }
 0x255   :  { %v2868_v20 = vpop.f32.mrb[0].mxu1 }
 0x256   :  { %v2870_v21 = vpop.f32.mrb[1].mxu1  ;;  %v3600_v29 = vadd.f32 %v2868_v20, %v432_v49 }
 0x257   :  { %v2872_v52 = vpop.f32.mrb[2].mxu1  ;;  %v3602_v30 = vadd.f32 %v2870_v21, %v436_v27 }
 0x258   :  { %v2873_v23 = vpop.f32.mrb[3].mxu1 }
 0x276   :  { %v3155_v31 = vpop.f32.mrb[0].mxu0 }
 0x277   :  { %v3601_v32 = vadd.f32 %v3600_v29, %v3155_v31  ;;  %v3157_v17 = vpop.f32.mrb[1].mxu0 }
 0x278   :  { %v3603_v36 = vadd.f32 %v3602_v30, %v3157_v17  ;;  %v3159_v37 = vpop.f32.mrb[2].mxu0 }
 0x279   :  { %v3162_v39 = vmax.f32 %v3601_v32, 0.0  ;;  %v3160_v44 = vpop.f32.mrb[3].mxu0 }
 0x27a   :  { %v3163_v45 = vmax.f32 %v3603_v36, 0.0 }
 0x27b   :  { %v3176_v42 = vmul.f32 %v3169_v34, %v3162_v39 }
 0x27c   :  { %v3177_v33 = vmul.f32 %v3173_v38, %v3163_v45 }
 0x27d   :  { %v3179_v46 = vsel %vm3178_vm0, %v3176_v42, 0.0 }
 0x27e   :  { %v3180_v47 = vsel %vm3178_vm0, %v3177_v33, 0.0 }
 0x27f   :  { %v3181_v48 = vadd.f32 %v3180_v47, %v3179_v46 }
 0x281   :  { %3182 = vadd.xlane.f32.xlu0 %v3181_v48 }
 0x30e   :  { %v3183_v41 = vpop.xlane.xlu0 %3182 }
 0x30f   :  { %v3191_v50 = vadd.f32 %v3599_v18, %v3183_v41 }
 0x311   :  { %3193 = vst.msk [vmem:[%s5624_s5] sm:$0x3] %vm3192_vm1, %v3191_v50 }

// kernel: critic_forward.2
= control target key start
LH: loop header
LB: loop body
LE: loop exit
PB: predicated region body
PF: predicated region fallthrough
CT: control target
= control target key end

     0   :  { %vm438_vm0 = vcmask 523264   ;;  %v12140_v36 = vmov 0.0|0.0   ;;  %vm9085_vm1 = vmmov 0   ;;  %v12142_v38 = vmov 0.0   ;;  %s12134_s1 = inlined_call_operand.vmem [shape: bf16[64,16], index: 1, kind: input, shape index: {}]   ;;  %s12135_s0 = inlined_call_operand.vmem [shape: bf16[864,64], index: 0, kind: input, shape index: {}]   ;;  %s12136_s3 = inlined_call_operand.vmem [shape: f32[16,16,32], index: 3, kind: input, shape index: {}]   ;;  %s12137_s2 = inlined_call_operand.vmem [shape: f32[1,16], index: 2, kind: input, shape index: {}]   ;;  %s12138_s4 = inlined_call_operand.vmem [shape: f32[1,32], index: 4, kind: input, shape index: {}]   ;;  %s12139_s5 = inlined_call_operand.vmem [shape: bf16[200,32], index: 5, kind: output, shape index: {}]  }
   0x1   :  { %v9025_v0 = vld [vmem:[%s12134_s1] sm:$0xff]   ;;  %v9026_v1 = vld [vmem:[%s12134_s1 + $0x8] sm:$0xff]   ;;  %v9027_v2 = vld [vmem:[%s12134_s1 + $0x10] sm:$0xff]   ;;  %8972 = vmatprep.subr.bf16.mxu1 %v12140_v36  ;;  %7712 = vmatprep.mubr.msk.f32.mxu1 %vm9085_vm1, %v12142_v38  ;;  %vm1174_vm2 = vcmask 130048   ;;  %vm6478_vm3 = vcmask 257024  }
   0x2   :  { %7592 = vmatprep.subr.bf16.mxu0 %v9025_v0  ;;  %v9029_v3 = vld [vmem:[%s12135_s0] sm:$0xff]   ;;  %v9028_v4 = vld [vmem:[%s12134_s1 + $0x18] sm:$0xff]   ;;  %v9030_v5 = vld [vmem:[%s12135_s0 + $0x8] sm:$0xff]  }
   0x3   :  { %7593 = vmatpush3.bf16.msra.mxu0 %v9025_v0  ;;  %7600 = vmatprep.mubr.msk.bf16.mxu0 %vm438_vm0, %v9029_v3  ;;  %v9031_v6 = vld [vmem:[%s12135_s0 + $0x10] sm:$0xff]   ;;  %v9032_v7 = vld [vmem:[%s12135_s0 + $0x18] sm:$0xff]   ;;  %v9033_v8 = vld [vmem:[%s12135_s0 + $0x20] sm:$0xff]  }
   0x4   :  { %7594 = vmatprep.subr.bf16.mxu0 %v9026_v1  ;;  %v9034_v9 = vld [vmem:[%s12135_s0 + $0x28] sm:$0xff]   ;;  %v9035_v10 = vld [vmem:[%s12135_s0 + $0x30] sm:$0xff]   ;;  %v9036_v11 = vld [vmem:[%s12135_s0 + $0x38] sm:$0xff]  }
   0x5   :  { %v9037_v12 = vld [vmem:[%s12135_s0 + $0x40] sm:$0xff]   ;;  %v9038_v13 = vld [vmem:[%s12135_s0 + $0x48] sm:$0xff]   ;;  %v9039_v14 = vld [vmem:[%s12135_s0 + $0x50] sm:$0xff]  }
   0x6   :  { %v9040_v15 = vld [vmem:[%s12135_s0 + $0x58] sm:$0xff]   ;;  %v9041_v16 = vld [vmem:[%s12135_s0 + $0x60] sm:$0xff]   ;;  %v9042_v17 = vld [vmem:[%s12135_s0 + $0x68] sm:$0xff]  }
   0x7   :  { %7595 = vmatpush3.bf16.msra.mxu0 %v9026_v1  ;;  %v9043_v18 = vld [vmem:[%s12135_s0 + $0x70] sm:$0xff]   ;;  %v9044_v19 = vld [vmem:[%s12135_s0 + $0x78] sm:$0xff]   ;;  %v9045_v20 = vld [vmem:[%s12135_s0 + $0x80] sm:$0xff]  }
   0x8   :  { %7596 = vmatprep.subr.bf16.mxu0 %v9027_v2  ;;  %v9046_v21 = vld [vmem:[%s12135_s0 + $0x88] sm:$0xff]   ;;  %v9047_v22 = vld [vmem:[%s12135_s0 + $0x90] sm:$0xff]   ;;  %v9048_v23 = vld [vmem:[%s12135_s0 + $0x98] sm:$0xff]  }
   0x9   :  { %v9049_v24 = vld [vmem:[%s12135_s0 + $0xa0] sm:$0xff]   ;;  %v9050_v25 = vld [vmem:[%s12135_s0 + $0xa8] sm:$0xff]   ;;  %v9051_v26 = vld [vmem:[%s12135_s0 + $0xb0] sm:$0xff]  }
   0xa   :  { %v9052_v27 = vld [vmem:[%s12135_s0 + $0xb8] sm:$0xff]   ;;  %v9053_v28 = vld [vmem:[%s12135_s0 + $0xc0] sm:$0xff]   ;;  %v9054_v29 = vld [vmem:[%s12135_s0 + $0xc8] sm:$0xff]  }
   0xb   :  { %7597 = vmatpush3.bf16.msra.mxu0 %v9027_v2  ;;  %v9055_v30 = vld [vmem:[%s12135_s0 + $0xd0] sm:$0xff]   ;;  %v6622_v32 = vld [vmem:[%s12136_s3 + $0x18] sm:$0xff]  ;;  %v9057_v40 = vld [vmem:[%s12135_s0 + $0xe0] sm:$0xff]  }
   0xc   :  { %7598 = vmatprep.subr.bf16.mxu0 %v9028_v4  ;;  %v6621_v31 = vld [vmem:[%s12136_s3 + $0x10] sm:$0xff]  ;;  %v6701_v35 = vld [vmem:[%s12136_s3 + $0x38] sm:$0xff]  ;;  %v9058_v41 = vld [vmem:[%s12135_s0 + $0xe8] sm:$0xff]  }
   0xd   :  { %v6700_v33 = vld [vmem:[%s12136_s3 + $0x30] sm:$0xff]  ;;  %v8973_v34 = vpack.c.bf16 %v6622_v32, %v6621_v31  ;;  %v9056_v39 = vld [vmem:[%s12135_s0 + $0xd8] sm:$0xff]   ;;  %v9061_v44 = vld [vmem:[%s12135_s0 + $0x100] sm:$0xff]  }
   0xe   :  { %v9249_v37 = vpack.c.bf16 %v6701_v35, %v6700_v33  ;;  %v9059_v42 = vld [vmem:[%s12135_s0 + $0xf0] sm:$0xff]   ;;  %v9060_v43 = vld [vmem:[%s12135_s0 + $0xf8] sm:$0xff]   ;;  %v9062_v45 = vld [vmem:[%s12135_s0 + $0x108] sm:$0xff]  }
   0xf   :  { %7599 = vmatpush3.bf16.msra.mxu0 %v9028_v4  ;;  %8974 = vmatpush3.bf16.msra.mxu1 %v8973_v34  ;;  %v9063_v46 = vld [vmem:[%s12135_s0 + $0x110] sm:$0xff]   ;;  %v9064_v47 = vld [vmem:[%s12135_s0 + $0x118] sm:$0xff]   ;;  %v9065_v48 = vld [vmem:[%s12135_s0 + $0x120] sm:$0xff]  }
  0x10   :  { %8981 = vmatprep.subr.bf16.mxu0 %v12140_v36  ;;  %8975 = vmatprep.subr.bf16.mxu1 %v12140_v36  ;;  %v9066_v49 = vld [vmem:[%s12135_s0 + $0x128] sm:$0xff]   ;;  %v9067_v50 = vld [vmem:[%s12135_s0 + $0x130] sm:$0xff]   ;;  %v9068_v51 = vld [vmem:[%s12135_s0 + $0x138] sm:$0xff]  }
  0x11   :  { %v9069_v52 = vld [vmem:[%s12135_s0 + $0x140] sm:$0xff]   ;;  %v9070_v53 = vld [vmem:[%s12135_s0 + $0x148] sm:$0xff]   ;;  %v9071_v54 = vld [vmem:[%s12135_s0 + $0x150] sm:$0xff]  }
  0x12   :  { %7601 = vmatmul.mubr.msk.bf16.vlgmr.msra.gmra.mrb[0].mxu0 %vm438_vm0, %v9030_v5  ;;  %v9072_v55 = vld [vmem:[%s12135_s0 + $0x158] sm:$0xff]   ;;  %v9073_v56 = vld [vmem:[%s12135_s0 + $0x160] sm:$0xff]   ;;  %v9074_v57 = vld [vmem:[%s12135_s0 + $0x168] sm:$0xff]  }
  0x13   :  { %7604 = vmatprep.mubr.msk.bf16.mxu0 %vm438_vm0, %v9031_v6  ;;  %8983 = vmatpush3.bf16.msra.mxu0 %v9249_v37  ;;  %v9075_v58 = vld [vmem:[%s12135_s0 + $0x170] sm:$0xff]   ;;  %v9076_v59 = vld [vmem:[%s12135_s0 + $0x178] sm:$0xff]   ;;  %v9077_v60 = vld [vmem:[%s12135_s0 + $0x180] sm:$0xff]  }
  0x14   :  { %8987 = vmatprep.subr.bf16.mxu0 %v12140_v36  ;;  %v9078_v61 = vld [vmem:[%s12135_s0 + $0x188] sm:$0xff]   ;;  %v9079_v62 = vld [vmem:[%s12135_s0 + $0x190] sm:$0xff]   ;;  %v9080_v63 = vld [vmem:[%s12135_s0 + $0x198] sm:$0xff]  }
  0x15   :  { %v9081_v0 = vld [vmem:[%s12135_s0 + $0x1a0] sm:$0xff]   ;;  %v9082_v1 = vld [vmem:[%s12135_s0 + $0x1a8] sm:$0xff]  }
  0x16   :  { %v9369_v2 = vld [vmem:[%s12137_s2] ss:$0 sm:$0xff] }
  0x1a   :  { %7605 = vmatmul.mubr.msk.bf16.gmra.mrb[4].mxu0 %vm438_vm0, %v9032_v7 }
  0x1b   :  { %7608 = vmatprep.mubr.msk.bf16.mxu0 %vm438_vm0, %v9033_v8 }
  0x22   :  { %7609 = vmatmul.mubr.msk.bf16.gmra.mrb[8].mxu0 %vm438_vm0, %v9034_v9 }
  0x23   :  { %7612 = vmatprep.mubr.msk.bf16.mxu0 %vm438_vm0, %v9035_v10 }
  0x2a   :  { %7613 = vmatmul.mubr.msk.bf16.gmra.mrb[12].mxu0 %vm438_vm0, %v9036_v11 }
  0x2b   :  { %7616 = vmatprep.mubr.msk.bf16.mxu0 %vm438_vm0, %v9037_v12 }
  0x32   :  { %7617 = vmatmul.mubr.msk.bf16.gmra.mrb[16].mxu0 %vm438_vm0, %v9038_v13 }
  0x33   :  { %7620 = vmatprep.mubr.msk.bf16.mxu0 %vm438_vm0, %v9039_v14 }
  0x3a   :  { %7621 = vmatmul.mubr.msk.bf16.gmra.mrb[20].mxu0 %vm438_vm0, %v9040_v15 }
  0x3b   :  { %7624 = vmatprep.mubr.msk.bf16.mxu0 %vm438_vm0, %v9041_v16 }
  0x42   :  { %7625 = vmatmul.mubr.msk.bf16.gmra.mrb[24].mxu0 %vm438_vm0, %v9042_v17 }
  0x43   :  { %7628 = vmatprep.mubr.msk.bf16.mxu0 %vm438_vm0, %v9043_v18 }
  0x4a   :  { %7629 = vmatmul.mubr.msk.bf16.gmra.mrb[28].mxu0 %vm438_vm0, %v9044_v19 }
  0x4b   :  { %7632 = vmatprep.mubr.msk.bf16.mxu0 %vm438_vm0, %v9045_v20  ;;  %v1308_v20 = vld [vmem:[%s12136_s3] sm:$0xff] }
  0x52   :  { %7633 = vmatmul.mubr.msk.bf16.gmra.mrb[32].mxu0 %vm438_vm0, %v9046_v21  ;;  %v1309_v21 = vld [vmem:[%s12136_s3 + $0x8] sm:$0xff] }
  0x53   :  { %7636 = vmatprep.mubr.msk.bf16.mxu0 %vm438_vm0, %v9047_v22 }
  0x5a   :  { %7637 = vmatmul.mubr.msk.bf16.gmra.mrb[36].mxu0 %vm438_vm0, %v9048_v23 }
  0x5b   :  { %7640 = vmatprep.mubr.msk.bf16.mxu0 %vm438_vm0, %v9049_v24 }
  0x62   :  { %7641 = vmatmul.mubr.msk.bf16.gmra.mrb[40].mxu0 %vm438_vm0, %v9050_v25  ;;  %v6754_v25 = vld [vmem:[%s12136_s3 + $0x50] sm:$0xff] }
  0x63   :  { %7644 = vmatprep.mubr.msk.bf16.mxu0 %vm438_vm0, %v9051_v26  ;;  %v6755_v26 = vld [vmem:[%s12136_s3 + $0x58] sm:$0xff] }
  0x64   :  { %v8988_v32 = vpack.c.bf16 %v6755_v26, %v6754_v25 }
  0x6a   :  { %7645 = vmatmul.mubr.msk.bf16.gmra.mrb[44].mxu0 %vm438_vm0, %v9052_v27 }
  0x6b   :  { %7648 = vmatprep.mubr.msk.bf16.mxu0 %vm438_vm0, %v9053_v28 }
  0x72   :  { %7649 = vmatmul.mubr.msk.bf16.gmra.mrb[48].mxu0 %vm438_vm0, %v9054_v29 }
  0x73   :  { %7652 = vmatprep.mubr.msk.bf16.mxu0 %vm438_vm0, %v9055_v30  ;;  %v8976_v30 = vpack.c.bf16 %v1309_v21, %v1308_v20 }
  0x7a   :  { %7653 = vmatmul.mubr.msk.bf16.gmra.mrb[52].mxu0 %vm438_vm0, %v9056_v39 }
  0x7b   :  { %7656 = vmatprep.mubr.msk.bf16.mxu0 %vm438_vm0, %v9057_v40 }
  0x82   :  { %7657 = vmatmul.mubr.msk.bf16.gmra.mrb[56].mxu0 %vm438_vm0, %v9058_v41 }
  0x83   :  { %7660 = vmatprep.mubr.msk.bf16.mxu0 %vm438_vm0, %v9059_v42 }
  0x8a   :  { %7661 = vmatmul.mubr.msk.bf16.gmra.mrb[60].mxu0 %vm438_vm0, %v9060_v43 }
  0x8b   :  { %7664 = vmatprep.mubr.msk.bf16.mxu0 %vm438_vm0, %v9061_v44 }
  0x92   :  { %7665 = vmatmul.mubr.msk.bf16.gmra.mrb[64].mxu0 %vm438_vm0, %v9062_v45 }
  0x93   :  { %7668 = vmatprep.mubr.msk.bf16.mxu0 %vm438_vm0, %v9063_v46 }
  0x9a   :  { %7669 = vmatmul.mubr.msk.bf16.gmra.mrb[68].mxu0 %vm438_vm0, %v9064_v47 }
  0x9b   :  { %7672 = vmatprep.mubr.msk.bf16.mxu0 %vm438_vm0, %v9065_v48 }
  0xa2   :  { %7673 = vmatmul.mubr.msk.bf16.gmra.mrb[72].mxu0 %vm438_vm0, %v9066_v49 }
  0xa3   :  { %7676 = vmatprep.mubr.msk.bf16.mxu0 %vm438_vm0, %v9067_v50 }
  0xaa   :  { %7677 = vmatmul.mubr.msk.bf16.gmra.mrb[76].mxu0 %vm438_vm0, %v9068_v51 }
  0xab   :  { %7680 = vmatprep.mubr.msk.bf16.mxu0 %vm438_vm0, %v9069_v52 }
  0xb2   :  { %7681 = vmatmul.mubr.msk.bf16.gmra.mrb[80].mxu0 %vm438_vm0, %v9070_v53 }
  0xb3   :  { %7684 = vmatprep.mubr.msk.bf16.mxu0 %vm438_vm0, %v9071_v54 }
  0xba   :  { %7685 = vmatmul.mubr.msk.bf16.gmra.mrb[84].mxu0 %vm438_vm0, %v9072_v55 }
  0xbb   :  { %7688 = vmatprep.mubr.msk.bf16.mxu0 %vm438_vm0, %v9073_v56 }
  0xc2   :  { %7689 = vmatmul.mubr.msk.bf16.gmra.mrb[88].mxu0 %vm438_vm0, %v9074_v57 }
  0xc3   :  { %7692 = vmatprep.mubr.msk.bf16.mxu0 %vm438_vm0, %v9075_v58 }
  0xca   :  { %7693 = vmatmul.mubr.msk.bf16.gmra.mrb[92].mxu0 %vm438_vm0, %v9076_v59 }
  0xcb   :  { %7696 = vmatprep.mubr.msk.bf16.mxu0 %vm438_vm0, %v9077_v60 }
  0xd2   :  { %7697 = vmatmul.mubr.msk.bf16.gmra.mrb[96].mxu0 %vm438_vm0, %v9078_v61 }
  0xd3   :  { %7700 = vmatprep.mubr.msk.bf16.mxu0 %vm438_vm0, %v9079_v62 }
  0xda   :  { %7701 = vmatmul.mubr.msk.bf16.gmra.mrb[100].mxu0 %vm438_vm0, %v9080_v63 }
  0xdb   :  { %7704 = vmatprep.mubr.msk.bf16.mxu0 %vm438_vm0, %v9081_v0 }
  0xe2   :  { %7705 = vmatmul.mubr.msk.bf16.gmra.mrb[104].mxu0 %vm438_vm0, %v9082_v1 }
  0xe3   :  { %7949 = vmatprep.mubr.msk.f32.mxu0 %vm9085_vm1, %v12142_v38 }
  0xe5   :  { %v7602_v3 = vpop.f32.mrb[0].mxu0 }
  0xe6   :  { %v644_v4 = vadd.f32 %v7602_v3, %v9369_v2  ;;  %v635_v5 = vpop.f32.mrb[1].mxu0 }
  0xe7   :  { %v636_v6 = vadd.f32 %v9369_v2, %v635_v5  ;;  %v7603_v7 = vpop.f32.mrb[2].mxu0 }
  0xe8   :  { %v1068_v8 = vmax.f32 %v644_v4, 0.0  ;;  %v647_v9 = vadd.f32 %v7603_v7, %v9369_v2  ;;  %v638_v10 = vpop.f32.mrb[3].mxu0 }
  0xe9   :  { %v1066_v11 = vmax.f32 %v636_v6, 0.0  ;;  %v639_v12 = vadd.f32 %v9369_v2, %v638_v10 }
  0xea   :  { %1177 = vst.msk [vmem:[#allocation2 + $0x10] sm:$0xff] %vm1174_vm2, %v1068_v8  ;;  %v1069_v13 = vmax.f32 %v647_v9, 0.0 }
  0xeb   :  { %1175 = vst.msk [vmem:[#allocation2] sm:$0xff] %vm1174_vm2, %v1066_v11  ;;  %v1067_v14 = vmax.f32 %v639_v12, 0.0 }
  0xec   :  { %1178 = vst.msk [vmem:[#allocation2 + $0x18] sm:$0xff] %vm1174_vm2, %v1069_v13 }
  0xed   :  { %1176 = vst.msk [vmem:[#allocation2 + $0x8] sm:$0xff] %vm1174_vm2, %v1067_v14  ;;  %v7606_v15 = vpop.f32.mrb[4].mxu0 }
  0xee   :  { %v660_v16 = vadd.f32 %v7606_v15, %v9369_v2  ;;  %v651_v17 = vpop.f32.mrb[5].mxu0 }
  0xef   :  { %v652_v18 = vadd.f32 %v9369_v2, %v651_v17  ;;  %v7607_v19 = vpop.f32.mrb[6].mxu0 }
  0xf0   :  { %v1072_v22 = vmax.f32 %v660_v16, 0.0  ;;  %v663_v23 = vadd.f32 %v7607_v19, %v9369_v2  ;;  %v654_v24 = vpop.f32.mrb[7].mxu0 }
  0xf1   :  { %v1070_v27 = vmax.f32 %v652_v18, 0.0  ;;  %v655_v28 = vadd.f32 %v9369_v2, %v654_v24 }
  0xf2   :  { %1181 = vst.msk [vmem:[#allocation2 + $0x30] sm:$0xff] %vm1174_vm2, %v1072_v22  ;;  %v1073_v29 = vmax.f32 %v663_v23, 0.0 }
  0xf3   :  { %1179 = vst.msk [vmem:[#allocation2 + $0x20] sm:$0xff] %vm1174_vm2, %v1070_v27  ;;  %v1071_v31 = vmax.f32 %v655_v28, 0.0  ;;  %v2187_v45 = vld [vmem:[#allocation2 + $0x13] sm:$0xff] }
  0xf4   :  { %1182 = vst.msk [vmem:[#allocation2 + $0x38] sm:$0xff] %vm1174_vm2, %v1073_v29  ;;  %v1310_v33 = vld [vmem:[#allocation2 + $0x1] sm:$0xff]  ;;  %v2186_v34 = vld [vmem:[#allocation2 + $0xb] sm:$0xff] }
  0xf5   :  { %1180 = vst.msk [vmem:[#allocation2 + $0x28] sm:$0xff] %vm1174_vm2, %v1071_v31  ;;  %v7610_v35 = vpop.f32.mrb[8].mxu0  ;;  %7713 = vmatmul.mubr.msk.f32.vlgmr.msra.gmra.mrb[0].mxu1 %vm1174_vm2, %v1310_v33  ;;  %7950 = vmatmul.mubr.msk.f32.vlgmr.msra.gmra.mrb[108].mxu0 %vm1174_vm2, %v2186_v34  ;;  %v1311_v44 = vld [vmem:[#allocation2 + $0x9] sm:$0xff]  ;;  %v1312_v52 = vld [vmem:[#allocation2 + $0x11] sm:$0xff] }
  0xf6   :  { %v676_v39 = vadd.f32 %v7610_v35, %v9369_v2  ;;  %8977 = vmatpush3.bf16.msra.mxu1 %v8976_v30  ;;  %v667_v40 = vpop.f32.mrb[9].mxu0  ;;  %7715 = vmatprep.mubr.msk.f32.mxu1 %vm9085_vm1, %v12142_v38 }
  0xf7   :  { %v668_v41 = vadd.f32 %v9369_v2, %v667_v40  ;;  %7952 = vmatprep.mubr.msk.f32.mxu0 %vm9085_vm1, %v12142_v38  ;;  %v7611_v42 = vpop.f32.mrb[10].mxu0  ;;  %8989 = vmatpush3.bf16.msra.mxu0 %v8988_v32 }
  0xf8   :  { %v1076_v43 = vmax.f32 %v676_v39, 0.0  ;;  %v679_v46 = vadd.f32 %v7611_v42, %v9369_v2  ;;  %v670_v47 = vpop.f32.mrb[11].mxu0  ;;  %8978 = vmatprep.subr.bf16.mxu1 %v12140_v36  ;;  %8993 = vmatprep.subr.bf16.mxu0 %v12140_v36 }
  0xf9   :  { %v1074_v48 = vmax.f32 %v668_v41, 0.0  ;;  %7716 = vmatmul.mubr.msk.f32.gmra.mrb[2].mxu1 %vm1174_vm2, %v1311_v44  ;;  %7953 = vmatmul.mubr.msk.f32.gmra.mrb[110].mxu0 %vm1174_vm2, %v2187_v45  ;;  %v671_v49 = vadd.f32 %v9369_v2, %v670_v47 }
  0xfa   :  { %1185 = vst.msk [vmem:[#allocation2 + $0x50] sm:$0xff] %vm1174_vm2, %v1076_v43  ;;  %7718 = vmatprep.mubr.msk.f32.mxu1 %vm9085_vm1, %v12142_v38  ;;  %7955 = vmatprep.mubr.msk.f32.mxu0 %vm9085_vm1, %v12142_v38  ;;  %v1077_v50 = vmax.f32 %v679_v46, 0.0  ;;  %v2188_v53 = vld [vmem:[#allocation2 + $0x1b] sm:$0xff] }
  0xfb   :  { %1183 = vst.msk [vmem:[#allocation2 + $0x40] sm:$0xff] %vm1174_vm2, %v1074_v48  ;;  %v1075_v51 = vmax.f32 %v671_v49, 0.0  ;;  %v1313_v60 = vld [vmem:[#allocation2 + $0x19] sm:$0xff]  ;;  %v1316_v21 = vld [vmem:[#allocation2 + $0x31] sm:$0xff] }
  0xfc   :  { %1186 = vst.msk [vmem:[#allocation2 + $0x58] sm:$0xff] %vm1174_vm2, %v1077_v50  ;;  %v2189_v55 = vld [vmem:[#allocation2 + $0x23] sm:$0xff]  ;;  %v2190_v6 = vld [vmem:[#allocation2 + $0x2b] sm:$0xff]  ;;  %v2191_v13 = vld [vmem:[#allocation2 + $0x33] sm:$0xff] }
  0xfd   :  { %7719 = vmatmul.mubr.msk.f32.gmra.mrb[4].mxu1 %vm1174_vm2, %v1312_v52  ;;  %7956 = vmatmul.mubr.msk.f32.gmra.mrb[112].mxu0 %vm1174_vm2, %v2188_v53  ;;  %1184 = vst.msk [vmem:[#allocation2 + $0x48] sm:$0xff] %vm1174_vm2, %v1075_v51  ;;  %v7614_v54 = vpop.f32.mrb[12].mxu0  ;;  %v1314_v5 = vld [vmem:[#allocation2 + $0x21] sm:$0xff]  ;;  %v1315_v12 = vld [vmem:[#allocation2 + $0x29] sm:$0xff] }
  0xfe   :  { %7721 = vmatprep.mubr.msk.f32.mxu1 %vm9085_vm1, %v12142_v38  ;;  %7958 = vmatprep.mubr.msk.f32.mxu0 %vm9085_vm1, %v12142_v38  ;;  %v692_v56 = vadd.f32 %v7614_v54, %v9369_v2  ;;  %v683_v57 = vpop.f32.mrb[13].mxu0 }
  0xff   :  { %v684_v58 = vadd.f32 %v9369_v2, %v683_v57  ;;  %v7615_v59 = vpop.f32.mrb[14].mxu0 }
 0x100   :  { %v1080_v61 = vmax.f32 %v692_v56, 0.0  ;;  %v695_v62 = vadd.f32 %v7615_v59, %v9369_v2  ;;  %v686_v63 = vpop.f32.mrb[15].mxu0 }
 0x101   :  { %7722 = vmatmul.mubr.msk.f32.gmra.mrb[6].mxu1 %vm1174_vm2, %v1313_v60  ;;  %7959 = vmatmul.mubr.msk.f32.gmra.mrb[114].mxu0 %vm1174_vm2, %v2189_v55  ;;  %v1078_v0 = vmax.f32 %v684_v58, 0.0  ;;  %v687_v1 = vadd.f32 %v9369_v2, %v686_v63 }
 0x102   :  { %1189 = vst.msk [vmem:[#allocation2 + $0x70] sm:$0xff] %vm1174_vm2, %v1080_v61  ;;  %7724 = vmatprep.mubr.msk.f32.mxu1 %vm9085_vm1, %v12142_v38  ;;  %7961 = vmatprep.mubr.msk.f32.mxu0 %vm9085_vm1, %v12142_v38  ;;  %v1081_v3 = vmax.f32 %v695_v62, 0.0  ;;  %v2192_v22 = vld [vmem:[#allocation2 + $0x3b] sm:$0xff] }
 0x103   :  { %1187 = vst.msk [vmem:[#allocation2 + $0x60] sm:$0xff] %vm1174_vm2, %v1078_v0  ;;  %v1079_v4 = vmax.f32 %v687_v1, 0.0  ;;  %v1317_v29 = vld [vmem:[#allocation2 + $0x39] sm:$0xff]  ;;  %v1320_v56 = vld [vmem:[#allocation2 + $0x51] sm:$0xff] }
 0x104   :  { %1190 = vst.msk [vmem:[#allocation2 + $0x78] sm:$0xff] %vm1174_vm2, %v1081_v3  ;;  %v2193_v24 = vld [vmem:[#allocation2 + $0x43] sm:$0xff]  ;;  %v2194_v41 = vld [vmem:[#allocation2 + $0x4b] sm:$0xff]  ;;  %v2195_v48 = vld [vmem:[#allocation2 + $0x53] sm:$0xff] }
 0x105   :  { %7725 = vmatmul.mubr.msk.f32.gmra.mrb[8].mxu1 %vm1174_vm2, %v1314_v5  ;;  %7962 = vmatmul.mubr.msk.f32.gmra.mrb[116].mxu0 %vm1174_vm2, %v2190_v6  ;;  %1188 = vst.msk [vmem:[#allocation2 + $0x68] sm:$0xff] %vm1174_vm2, %v1079_v4  ;;  %v7618_v7 = vpop.f32.mrb[16].mxu0  ;;  %v1318_v40 = vld [vmem:[#allocation2 + $0x41] sm:$0xff]  ;;  %v1319_v47 = vld [vmem:[#allocation2 + $0x49] sm:$0xff] }
 0x106   :  { %7727 = vmatprep.mubr.msk.f32.mxu1 %vm9085_vm1, %v12142_v38  ;;  %7964 = vmatprep.mubr.msk.f32.mxu0 %vm9085_vm1, %v12142_v38  ;;  %v708_v8 = vadd.f32 %v7618_v7, %v9369_v2  ;;  %v699_v9 = vpop.f32.mrb[17].mxu0 }
 0x107   :  { %v700_v10 = vadd.f32 %v9369_v2, %v699_v9  ;;  %v7619_v11 = vpop.f32.mrb[18].mxu0 }
 0x108   :  { %v1084_v14 = vmax.f32 %v708_v8, 0.0  ;;  %v711_v15 = vadd.f32 %v7619_v11, %v9369_v2  ;;  %v702_v16 = vpop.f32.mrb[19].mxu0 }
 0x109   :  { %7728 = vmatmul.mubr.msk.f32.gmra.mrb[10].mxu1 %vm1174_vm2, %v1315_v12  ;;  %7965 = vmatmul.mubr.msk.f32.gmra.mrb[118].mxu0 %vm1174_vm2, %v2191_v13  ;;  %v1082_v17 = vmax.f32 %v700_v10, 0.0  ;;  %v703_v18 = vadd.f32 %v9369_v2, %v702_v16 }
 0x10a   :  { %7730 = vmatprep.mubr.msk.f32.mxu1 %vm9085_vm1, %v12142_v38  ;;  %7967 = vmatprep.mubr.msk.f32.mxu0 %vm9085_vm1, %v12142_v38  ;;  %1193 = vst.msk [vmem:[#allocation2 + $0x90] sm:$0xff] %vm1174_vm2, %v1084_v14  ;;  %v1085_v19 = vmax.f32 %v711_v15, 0.0  ;;  %v2196_v57 = vld [vmem:[#allocation2 + $0x5b] sm:$0xff] }
 0x10b   :  { %1191 = vst.msk [vmem:[#allocation2 + $0x80] sm:$0xff] %vm1174_vm2, %v1082_v17  ;;  %v1083_v20 = vmax.f32 %v703_v18, 0.0  ;;  %v1321_v0 = vld [vmem:[#allocation2 + $0x59] sm:$0xff] }
 0x10c   :  { %1194 = vst.msk [vmem:[#allocation2 + $0x98] sm:$0xff] %vm1174_vm2, %v1085_v19  ;;  %v2197_v59 = vld [vmem:[#allocation2 + $0x63] sm:$0xff]  ;;  %v2198_v10 = vld [vmem:[#allocation2 + $0x6b] sm:$0xff]  ;;  %v2199_v17 = vld [vmem:[#allocation2 + $0x73] sm:$0xff] }
 0x10d   :  { %7731 = vmatmul.mubr.msk.f32.gmra.mrb[12].mxu1 %vm1174_vm2, %v1316_v21  ;;  %7968 = vmatmul.mubr.msk.f32.gmra.mrb[120].mxu0 %vm1174_vm2, %v2192_v22  ;;  %1192 = vst.msk [vmem:[#allocation2 + $0x88] sm:$0xff] %vm1174_vm2, %v1083_v20  ;;  %v7622_v23 = vpop.f32.mrb[20].mxu0  ;;  %v1322_v9 = vld [vmem:[#allocation2 + $0x61] sm:$0xff]  ;;  %v1323_v16 = vld [vmem:[#allocation2 + $0x69] sm:$0xff] }
 0x10e   :  { %7733 = vmatprep.mubr.msk.f32.mxu1 %vm9085_vm1, %v12142_v38  ;;  %7970 = vmatprep.mubr.msk.f32.mxu0 %vm9085_vm1, %v12142_v38  ;;  %v724_v25 = vadd.f32 %v7622_v23, %v9369_v2  ;;  %v715_v26 = vpop.f32.mrb[21].mxu0 }
 0x10f   :  { %v716_v27 = vadd.f32 %v9369_v2, %v715_v26  ;;  %v7623_v28 = vpop.f32.mrb[22].mxu0 }
 0x110   :  { %v1088_v30 = vmax.f32 %v724_v25, 0.0  ;;  %v727_v31 = vadd.f32 %v7623_v28, %v9369_v2  ;;  %v718_v32 = vpop.f32.mrb[23].mxu0  ;;  %v1324_v25 = vld [vmem:[#allocation2 + $0x71] sm:$0xff] }
 0x111   :  { %7734 = vmatmul.mubr.msk.f32.gmra.mrb[14].mxu1 %vm1174_vm2, %v1317_v29  ;;  %7971 = vmatmul.mubr.msk.f32.gmra.mrb[122].mxu0 %vm1174_vm2, %v2193_v24  ;;  %v1086_v33 = vmax.f32 %v716_v27, 0.0  ;;  %v719_v34 = vadd.f32 %v9369_v2, %v718_v32 }
 0x112   :  { %7736 = vmatprep.mubr.msk.f32.mxu1 %vm9085_vm1, %v12142_v38  ;;  %7973 = vmatprep.mubr.msk.f32.mxu0 %vm9085_vm1, %v12142_v38  ;;  %1197 = vst.msk [vmem:[#allocation2 + $0xb0] sm:$0xff] %vm1174_vm2, %v1088_v30  ;;  %v1089_v35 = vmax.f32 %v727_v31, 0.0  ;;  %v2200_v26 = vld [vmem:[#allocation2 + $0x7b] sm:$0xff] }
 0x113   :  { %1195 = vst.msk [vmem:[#allocation2 + $0xa0] sm:$0xff] %vm1174_vm2, %v1086_v33  ;;  %v1087_v39 = vmax.f32 %v719_v34, 0.0  ;;  %v1325_v33 = vld [vmem:[#allocation2 + $0x79] sm:$0xff] }
 0x114   :  { %1198 = vst.msk [vmem:[#allocation2 + $0xb8] sm:$0xff] %vm1174_vm2, %v1089_v35  ;;  %v2201_v28 = vld [vmem:[#allocation2 + $0x83] sm:$0xff] }
 0x115   :  { %7737 = vmatmul.mubr.msk.f32.gmra.mrb[16].mxu1 %vm1174_vm2, %v1318_v40  ;;  %7974 = vmatmul.mubr.msk.f32.gmra.mrb[124].mxu0 %vm1174_vm2, %v2194_v41  ;;  %1196 = vst.msk [vmem:[#allocation2 + $0xa8] sm:$0xff] %vm1174_vm2, %v1087_v39  ;;  %v7626_v42 = vpop.f32.mrb[24].mxu0 }
 0x116   :  { %7739 = vmatprep.mubr.msk.f32.mxu1 %vm9085_vm1, %v12142_v38  ;;  %7976 = vmatprep.mubr.msk.f32.mxu0 %vm9085_vm1, %v12142_v38  ;;  %v740_v43 = vadd.f32 %v7626_v42, %v9369_v2  ;;  %v731_v44 = vpop.f32.mrb[25].mxu0 }
 0x117   :  { %v732_v45 = vadd.f32 %v9369_v2, %v731_v44  ;;  %v7627_v46 = vpop.f32.mrb[26].mxu0  ;;  %v1326_v44 = vld [vmem:[#allocation2 + $0x81] sm:$0xff] }
 0x118   :  { %v1092_v49 = vmax.f32 %v740_v43, 0.0  ;;  %v743_v50 = vadd.f32 %v7627_v46, %v9369_v2  ;;  %v734_v51 = vpop.f32.mrb[27].mxu0 }
 0x119   :  { %7740 = vmatmul.mubr.msk.f32.gmra.mrb[18].mxu1 %vm1174_vm2, %v1319_v47  ;;  %7977 = vmatmul.mubr.msk.f32.gmra.mrb[126].mxu0 %vm1174_vm2, %v2195_v48  ;;  %v1090_v52 = vmax.f32 %v732_v45, 0.0  ;;  %v735_v53 = vadd.f32 %v9369_v2, %v734_v51  ;;  %v2202_v45 = vld [vmem:[#allocation2 + $0x8b] sm:$0xff] }
 0x11a   :  { %7742 = vmatprep.mubr.msk.f32.mxu1 %vm9085_vm1, %v12142_v38  ;;  %7979 = vmatprep.mubr.msk.f32.mxu0 %vm9085_vm1, %v12142_v38  ;;  %1201 = vst.msk [vmem:[#allocation2 + $0xd0] sm:$0xff] %vm1174_vm2, %v1092_v49  ;;  %v1093_v54 = vmax.f32 %v743_v50, 0.0  ;;  %v1327_v51 = vld [vmem:[#allocation2 + $0x89] sm:$0xff] }
 0x11b   :  { %1199 = vst.msk [vmem:[#allocation2 + $0xc0] sm:$0xff] %vm1174_vm2, %v1090_v52  ;;  %v1091_v55 = vmax.f32 %v735_v53, 0.0  ;;  %v2203_v52 = vld [vmem:[#allocation2 + $0x93] sm:$0xff] }
 0x11c   :  { %1202 = vst.msk [vmem:[#allocation2 + $0xd8] sm:$0xff] %vm1174_vm2, %v1093_v54 }
 0x11d   :  { %7743 = vmatmul.mubr.msk.f32.gmra.mrb[20].mxu1 %vm1174_vm2, %v1320_v56  ;;  %7980 = vmatmul.mubr.msk.f32.gmra.mrb[128].mxu0 %vm1174_vm2, %v2196_v57  ;;  %1200 = vst.msk [vmem:[#allocation2 + $0xc8] sm:$0xff] %vm1174_vm2, %v1091_v55  ;;  %v7630_v58 = vpop.f32.mrb[28].mxu0 }
 0x11e   :  { %7745 = vmatprep.mubr.msk.f32.mxu1 %vm9085_vm1, %v12142_v38  ;;  %7982 = vmatprep.mubr.msk.f32.mxu0 %vm9085_vm1, %v12142_v38  ;;  %v756_v60 = vadd.f32 %v7630_v58, %v9369_v2  ;;  %v747_v61 = vpop.f32.mrb[29].mxu0 }
 0x11f   :  { %v748_v62 = vadd.f32 %v9369_v2, %v747_v61  ;;  %v7631_v63 = vpop.f32.mrb[30].mxu0  ;;  %v2204_v61 = vld [vmem:[#allocation2 + $0x9b] sm:$0xff] }
 0x120   :  { %v1096_v1 = vmax.f32 %v756_v60, 0.0  ;;  %v759_v3 = vadd.f32 %v7631_v63, %v9369_v2  ;;  %v750_v4 = vpop.f32.mrb[31].mxu0  ;;  %v1328_v60 = vld [vmem:[#allocation2 + $0x91] sm:$0xff]  ;;  %v2205_v63 = vld [vmem:[#allocation2 + $0xa3] sm:$0xff] }
 0x121   :  { %7746 = vmatmul.mubr.msk.f32.gmra.mrb[22].mxu1 %vm1174_vm2, %v1321_v0  ;;  %7983 = vmatmul.mubr.msk.f32.gmra.mrb[130].mxu0 %vm1174_vm2, %v2197_v59  ;;  %v1094_v5 = vmax.f32 %v748_v62, 0.0  ;;  %v751_v6 = vadd.f32 %v9369_v2, %v750_v4 }
 0x122   :  { %7748 = vmatprep.mubr.msk.f32.mxu1 %vm9085_vm1, %v12142_v38  ;;  %7985 = vmatprep.mubr.msk.f32.mxu0 %vm9085_vm1, %v12142_v38  ;;  %1205 = vst.msk [vmem:[#allocation2 + $0xf0] sm:$0xff] %vm1174_vm2, %v1096_v1  ;;  %v1097_v7 = vmax.f32 %v759_v3, 0.0 }
 0x123   :  { %1203 = vst.msk [vmem:[#allocation2 + $0xe0] sm:$0xff] %vm1174_vm2, %v1094_v5  ;;  %v1095_v8 = vmax.f32 %v751_v6, 0.0  ;;  %v1329_v5 = vld [vmem:[#allocation2 + $0x99] sm:$0xff] }
 0x124   :  { %1206 = vst.msk [vmem:[#allocation2 + $0xf8] sm:$0xff] %vm1174_vm2, %v1097_v7 }
 0x125   :  { %7749 = vmatmul.mubr.msk.f32.gmra.mrb[24].mxu1 %vm1174_vm2, %v1322_v9  ;;  %7986 = vmatmul.mubr.msk.f32.gmra.mrb[132].mxu0 %vm1174_vm2, %v2198_v10  ;;  %1204 = vst.msk [vmem:[#allocation2 + $0xe8] sm:$0xff] %vm1174_vm2, %v1095_v8  ;;  %v7634_v11 = vpop.f32.mrb[32].mxu0 }
 0x126   :  { %7751 = vmatprep.mubr.msk.f32.mxu1 %vm9085_vm1, %v12142_v38  ;;  %7988 = vmatprep.mubr.msk.f32.mxu0 %vm9085_vm1, %v12142_v38  ;;  %v772_v12 = vadd.f32 %v7634_v11, %v9369_v2  ;;  %v763_v13 = vpop.f32.mrb[33].mxu0 }
 0x127   :  { %v764_v14 = vadd.f32 %v9369_v2, %v763_v13  ;;  %v7635_v15 = vpop.f32.mrb[34].mxu0  ;;  %v1330_v13 = vld [vmem:[#allocation2 + $0xa1] sm:$0xff] }
 0x128   :  { %v1100_v18 = vmax.f32 %v772_v12, 0.0  ;;  %v775_v19 = vadd.f32 %v7635_v15, %v9369_v2  ;;  %v766_v20 = vpop.f32.mrb[35].mxu0 }
 0x129   :  { %7752 = vmatmul.mubr.msk.f32.gmra.mrb[26].mxu1 %vm1174_vm2, %v1323_v16  ;;  %7989 = vmatmul.mubr.msk.f32.gmra.mrb[134].mxu0 %vm1174_vm2, %v2199_v17  ;;  %v1098_v21 = vmax.f32 %v764_v14, 0.0  ;;  %v767_v22 = vadd.f32 %v9369_v2, %v766_v20  ;;  %v2206_v14 = vld [vmem:[#allocation2 + $0xab] sm:$0xff] }
 0x12a   :  { %7754 = vmatprep.mubr.msk.f32.mxu1 %vm9085_vm1, %v12142_v38  ;;  %7991 = vmatprep.mubr.msk.f32.mxu0 %vm9085_vm1, %v12142_v38  ;;  %1209 = vst.msk [vmem:[#allocation2 + $0x110] sm:$0xff] %vm1174_vm2, %v1100_v18  ;;  %v1101_v23 = vmax.f32 %v775_v19, 0.0  ;;  %v2207_v18 = vld [vmem:[#allocation2 + $0xb3] sm:$0xff] }
 0x12b   :  { %1207 = vst.msk [vmem:[#allocation2 + $0x100] sm:$0xff] %vm1174_vm2, %v1098_v21  ;;  %v1099_v24 = vmax.f32 %v767_v22, 0.0  ;;  %v1331_v21 = vld [vmem:[#allocation2 + $0xa9] sm:$0xff] }
 0x12c   :  { %1210 = vst.msk [vmem:[#allocation2 + $0x118] sm:$0xff] %vm1174_vm2, %v1101_v23 }
 0x12d   :  { %7755 = vmatmul.mubr.msk.f32.gmra.mrb[28].mxu1 %vm1174_vm2, %v1324_v25  ;;  %7992 = vmatmul.mubr.msk.f32.gmra.mrb[136].mxu0 %vm1174_vm2, %v2200_v26  ;;  %1208 = vst.msk [vmem:[#allocation2 + $0x108] sm:$0xff] %vm1174_vm2, %v1099_v24  ;;  %v7638_v27 = vpop.f32.mrb[36].mxu0  ;;  %v6808_v25 = vld [vmem:[%s12136_s3 + $0x70] sm:$0xff]  ;;  %v6809_v26 = vld [vmem:[%s12136_s3 + $0x78] sm:$0xff] }
 0x12e   :  { %7757 = vmatprep.mubr.msk.f32.mxu1 %vm9085_vm1, %v12142_v38  ;;  %7994 = vmatprep.mubr.msk.f32.mxu0 %vm9085_vm1, %v12142_v38  ;;  %v788_v29 = vadd.f32 %v7638_v27, %v9369_v2  ;;  %v779_v30 = vpop.f32.mrb[37].mxu0 }
 0x12f   :  { %v780_v31 = vadd.f32 %v9369_v2, %v779_v30  ;;  %v7639_v32 = vpop.f32.mrb[38].mxu0 }
 0x130   :  { %v1104_v34 = vmax.f32 %v788_v29, 0.0  ;;  %v791_v35 = vadd.f32 %v7639_v32, %v9369_v2  ;;  %v782_v39 = vpop.f32.mrb[39].mxu0  ;;  %v2822_v29 = vld [vmem:[#allocation2 + $0xd9] sm:$0xff]  ;;  %v8994_v32 = vpack.c.bf16 %v6809_v26, %v6808_v25 }
 0x131   :  { %7758 = vmatmul.mubr.msk.f32.gmra.mrb[30].mxu1 %vm1174_vm2, %v1325_v33  ;;  %7995 = vmatmul.mubr.msk.f32.gmra.mrb[138].mxu0 %vm1174_vm2, %v2201_v28  ;;  %v1102_v40 = vmax.f32 %v780_v31, 0.0  ;;  %v783_v41 = vadd.f32 %v9369_v2, %v782_v39  ;;  %v1332_v33 = vld [vmem:[#allocation2 + $0xb1] sm:$0xff] }
 0x132   :  { %7760 = vmatprep.mubr.msk.f32.mxu1 %vm9085_vm1, %v12142_v38  ;;  %7997 = vmatprep.mubr.msk.f32.mxu0 %vm9085_vm1, %v12142_v38  ;;  %1213 = vst.msk [vmem:[#allocation2 + $0x130] sm:$0xff] %vm1174_vm2, %v1104_v34  ;;  %v1105_v42 = vmax.f32 %v791_v35, 0.0  ;;  %v2823_v35 = vld [vmem:[#allocation2 + $0xe1] sm:$0xff] }
 0x133   :  { %1211 = vst.msk [vmem:[#allocation2 + $0x120] sm:$0xff] %vm1174_vm2, %v1102_v40  ;;  %v1103_v43 = vmax.f32 %v783_v41, 0.0  ;;  %v2829_v26 = vld [vmem:[#allocation2 + $0x111] sm:$0xff] }
 0x134   :  { %1214 = vst.msk [vmem:[#allocation2 + $0x138] sm:$0xff] %vm1174_vm2, %v1105_v42 }
 0x135   :  { %7761 = vmatmul.mubr.msk.f32.gmra.mrb[32].mxu1 %vm1174_vm2, %v1326_v44  ;;  %7998 = vmatmul.mubr.msk.f32.gmra.mrb[140].mxu0 %vm1174_vm2, %v2202_v45  ;;  %1212 = vst.msk [vmem:[#allocation2 + $0x128] sm:$0xff] %vm1174_vm2, %v1103_v43  ;;  %v7642_v46 = vpop.f32.mrb[40].mxu0  ;;  %v1333_v43 = vld [vmem:[#allocation2 + $0xb9] sm:$0xff] }
 0x136   :  { %7763 = vmatprep.mubr.msk.f32.mxu1 %vm9085_vm1, %v12142_v38  ;;  %8000 = vmatprep.mubr.msk.f32.mxu0 %vm9085_vm1, %v12142_v38  ;;  %v804_v47 = vadd.f32 %v7642_v46, %v9369_v2  ;;  %v795_v48 = vpop.f32.mrb[41].mxu0 }
 0x137   :  { %v796_v49 = vadd.f32 %v9369_v2, %v795_v48  ;;  %v7643_v50 = vpop.f32.mrb[42].mxu0 }
 0x138   :  { %v1108_v53 = vmax.f32 %v804_v47, 0.0  ;;  %v807_v54 = vadd.f32 %v7643_v50, %v9369_v2  ;;  %v798_v55 = vpop.f32.mrb[43].mxu0 }
 0x139   :  { %7764 = vmatmul.mubr.msk.f32.gmra.mrb[34].mxu1 %vm1174_vm2, %v1327_v51  ;;  %8001 = vmatmul.mubr.msk.f32.gmra.mrb[142].mxu0 %vm1174_vm2, %v2203_v52  ;;  %v1106_v56 = vmax.f32 %v796_v49, 0.0  ;;  %v799_v57 = vadd.f32 %v9369_v2, %v798_v55  ;;  %v2824_v49 = vld [vmem:[#allocation2 + $0xe9] sm:$0xff]  ;;  %v6673_v51 = vld [vmem:[%s12136_s3 + $0x20] sm:$0xff] }
 0x13a   :  { %7766 = vmatprep.mubr.msk.f32.mxu1 %vm9085_vm1, %v12142_v38  ;;  %8003 = vmatprep.mubr.msk.f32.mxu0 %vm9085_vm1, %v12142_v38  ;;  %1217 = vst.msk [vmem:[#allocation2 + $0x150] sm:$0xff] %vm1174_vm2, %v1108_v53  ;;  %v1109_v58 = vmax.f32 %v807_v54, 0.0  ;;  %v6674_v52 = vld [vmem:[%s12136_s3 + $0x28] sm:$0xff] }
 0x13b   :  { %1215 = vst.msk [vmem:[#allocation2 + $0x140] sm:$0xff] %vm1174_vm2, %v1106_v56  ;;  %v1107_v59 = vmax.f32 %v799_v57, 0.0  ;;  %v1334_v54 = vld [vmem:[#allocation2 + $0xc1] sm:$0xff]  ;;  %v8979_v56 = vpack.c.bf16 %v6674_v52, %v6673_v51  ;;  %v2825_v57 = vld [vmem:[#allocation2 + $0xf1] sm:$0xff] }
 0x13c   :  { %1218 = vst.msk [vmem:[#allocation2 + $0x158] sm:$0xff] %vm1174_vm2, %v1109_v58 }
 0x13d   :  { %7767 = vmatmul.mubr.msk.f32.gmra.mrb[36].mxu1 %vm1174_vm2, %v1328_v60  ;;  %8004 = vmatmul.mubr.msk.f32.gmra.mrb[144].mxu0 %vm1174_vm2, %v2204_v61  ;;  %1216 = vst.msk [vmem:[#allocation2 + $0x148] sm:$0xff] %vm1174_vm2, %v1107_v59  ;;  %v7646_v62 = vpop.f32.mrb[44].mxu0 }
 0x13e   :  { %7769 = vmatprep.mubr.msk.f32.mxu1 %vm9085_vm1, %v12142_v38  ;;  %8006 = vmatprep.mubr.msk.f32.mxu0 %vm9085_vm1, %v12142_v38  ;;  %v820_v0 = vadd.f32 %v7646_v62, %v9369_v2  ;;  %v811_v1 = vpop.f32.mrb[45].mxu0  ;;  %v1283_v62 = vld [vmem:[#allocation2] sm:$0xff] }
 0x13f   :  { %v812_v3 = vadd.f32 %v9369_v2, %v811_v1  ;;  %v7647_v4 = vpop.f32.mrb[46].mxu0 }
 0x140   :  { %v1112_v6 = vmax.f32 %v820_v0, 0.0  ;;  %v823_v7 = vadd.f32 %v7647_v4, %v9369_v2  ;;  %v814_v8 = vpop.f32.mrb[47].mxu0 }
 0x141   :  { %7770 = vmatmul.mubr.msk.f32.gmra.mrb[38].mxu1 %vm1174_vm2, %v1329_v5  ;;  %8007 = vmatmul.mubr.msk.f32.gmra.mrb[146].mxu0 %vm1174_vm2, %v2205_v63  ;;  %v1110_v9 = vmax.f32 %v812_v3, 0.0  ;;  %v815_v10 = vadd.f32 %v9369_v2, %v814_v8  ;;  %v2826_v5 = vld [vmem:[#allocation2 + $0xf9] sm:$0xff]  ;;  %v1284_v8 = vld [vmem:[#allocation2 + $0x8] sm:$0xff] }
 0x142   :  { %7772 = vmatprep.mubr.msk.f32.mxu1 %vm9085_vm1, %v12142_v38  ;;  %8009 = vmatprep.mubr.msk.f32.mxu0 %vm9085_vm1, %v12142_v38  ;;  %1221 = vst.msk [vmem:[#allocation2 + $0x170] sm:$0xff] %vm1174_vm2, %v1112_v6  ;;  %v1113_v11 = vmax.f32 %v823_v7, 0.0 }
 0x143   :  { %1219 = vst.msk [vmem:[#allocation2 + $0x160] sm:$0xff] %vm1174_vm2, %v1110_v9  ;;  %v1111_v12 = vmax.f32 %v815_v10, 0.0  ;;  %v2827_v10 = vld [vmem:[#allocation2 + $0x101] sm:$0xff] }
 0x144   :  { %1222 = vst.msk [vmem:[#allocation2 + $0x178] sm:$0xff] %vm1174_vm2, %v1113_v11 }
 0x145   :  { %7773 = vmatmul.mubr.msk.f32.gmra.mrb[40].mxu1 %vm1174_vm2, %v1330_v13  ;;  %8010 = vmatmul.mubr.msk.f32.gmra.mrb[148].mxu0 %vm1174_vm2, %v2206_v14  ;;  %1220 = vst.msk [vmem:[#allocation2 + $0x168] sm:$0xff] %vm1174_vm2, %v1111_v12  ;;  %v7650_v15 = vpop.f32.mrb[48].mxu0 }
 0x146   :  { %7775 = vmatprep.mubr.msk.f32.mxu1 %vm9085_vm1, %v12142_v38  ;;  %8012 = vmatprep.mubr.msk.f32.mxu0 %vm9085_vm1, %v12142_v38  ;;  %v836_v16 = vadd.f32 %v7650_v15, %v9369_v2  ;;  %v827_v17 = vpop.f32.mrb[49].mxu0  ;;  %v1285_v15 = vld [vmem:[#allocation2 + $0x10] sm:$0xff] }
 0x147   :  { %v828_v19 = vadd.f32 %v9369_v2, %v827_v17  ;;  %v7651_v20 = vpop.f32.mrb[50].mxu0 }
 0x148   :  { %v1116_v22 = vmax.f32 %v836_v16, 0.0  ;;  %v839_v23 = vadd.f32 %v7651_v20, %v9369_v2  ;;  %v830_v24 = vpop.f32.mrb[51].mxu0 }
 0x149   :  { %7776 = vmatmul.mubr.msk.f32.gmra.mrb[42].mxu1 %vm1174_vm2, %v1331_v21  ;;  %8013 = vmatmul.mubr.msk.f32.gmra.mrb[150].mxu0 %vm1174_vm2, %v2207_v18  ;;  %v1114_v27 = vmax.f32 %v828_v19, 0.0  ;;  %v831_v28 = vadd.f32 %v9369_v2, %v830_v24  ;;  %v2828_v21 = vld [vmem:[#allocation2 + $0x109] sm:$0xff]  ;;  %v1286_v24 = vld [vmem:[#allocation2 + $0x18] sm:$0xff] }
 0x14a   :  { %7778 = vmatprep.mubr.msk.f32.mxu1 %vm9085_vm1, %v12142_v38  ;;  %8107 = vmatprep.mubr.msk.f32.mxu0 %vm9085_vm1, %v12142_v38  ;;  %1225 = vst.msk [vmem:[#allocation2 + $0x190] sm:$0xff] %vm1174_vm2, %v1116_v22  ;;  %v1117_v30 = vmax.f32 %v839_v23, 0.0 }
 0x14b   :  { %1223 = vst.msk [vmem:[#allocation2 + $0x180] sm:$0xff] %vm1174_vm2, %v1114_v27  ;;  %v1115_v31 = vmax.f32 %v831_v28, 0.0 }
 0x14c   :  { %1226 = vst.msk [vmem:[#allocation2 + $0x198] sm:$0xff] %vm1174_vm2, %v1117_v30 }
 0x14d   :  { %7779 = vmatmul.mubr.msk.f32.gmra.mrb[44].mxu1 %vm1174_vm2, %v1332_v33  ;;  %8108 = vmatmul.mubr.msk.f32.vlgmr.msra.gmra.mrb[152].mxu0 %vm1174_vm2, %v2822_v29  ;;  %1224 = vst.msk [vmem:[#allocation2 + $0x188] sm:$0xff] %vm1174_vm2, %v1115_v31  ;;  %v7654_v34 = vpop.f32.mrb[52].mxu0  ;;  %v1287_v31 = vld [vmem:[#allocation2 + $0x20] sm:$0xff] }
 0x14e   :  { %7781 = vmatprep.mubr.msk.f32.mxu1 %vm9085_vm1, %v12142_v38  ;;  %8110 = vmatprep.mubr.msk.f32.mxu0 %vm9085_vm1, %v12142_v38  ;;  %v852_v39 = vadd.f32 %v7654_v34, %v9369_v2  ;;  %v843_v40 = vpop.f32.mrb[53].mxu0 }
 0x14f   :  { %v844_v41 = vadd.f32 %v9369_v2, %v843_v40  ;;  %v7655_v42 = vpop.f32.mrb[54].mxu0  ;;  %8995 = vmatpush3.bf16.msra.mxu0 %v8994_v32  ;;  %v2830_v40 = vld [vmem:[#allocation2 + $0x119] sm:$0xff] }
 0x150   :  { %v1120_v44 = vmax.f32 %v852_v39, 0.0  ;;  %v855_v45 = vadd.f32 %v7655_v42, %v9369_v2  ;;  %v846_v46 = vpop.f32.mrb[55].mxu0  ;;  %8999 = vmatprep.subr.bf16.mxu0 %v12140_v36 }
 0x151   :  { %7782 = vmatmul.mubr.msk.f32.gmra.mrb[46].mxu1 %vm1174_vm2, %v1333_v43  ;;  %8111 = vmatmul.mubr.msk.f32.gmra.mrb[154].mxu0 %vm1174_vm2, %v2823_v35  ;;  %v1118_v47 = vmax.f32 %v844_v41, 0.0  ;;  %v847_v48 = vadd.f32 %v9369_v2, %v846_v46  ;;  %v1288_v43 = vld [vmem:[#allocation2 + $0x28] sm:$0xff] }
 0x152   :  { %7784 = vmatprep.mubr.msk.f32.mxu1 %vm9085_vm1, %v12142_v38  ;;  %8113 = vmatprep.mubr.msk.f32.mxu0 %vm9085_vm1, %v12142_v38  ;;  %1229 = vst.msk [vmem:[#allocation2 + $0x1b0] sm:$0xff] %vm1174_vm2, %v1120_v44  ;;  %v1121_v50 = vmax.f32 %v855_v45, 0.0  ;;  %v2831_v45 = vld [vmem:[#allocation2 + $0x121] sm:$0xff] }
 0x153   :  { %1227 = vst.msk [vmem:[#allocation2 + $0x1a0] sm:$0xff] %vm1174_vm2, %v1118_v47  ;;  %v1119_v53 = vmax.f32 %v847_v48, 0.0 }
 0x154   :  { %1230 = vst.msk [vmem:[#allocation2 + $0x1b8] sm:$0xff] %vm1174_vm2, %v1121_v50  ;;  %v1289_v50 = vld [vmem:[#allocation2 + $0x30] sm:$0xff] }
 0x155   :  { %7785 = vmatmul.mubr.msk.f32.gmra.mrb[48].mxu1 %vm1174_vm2, %v1334_v54  ;;  %8114 = vmatmul.mubr.msk.f32.gmra.mrb[156].mxu0 %vm1174_vm2, %v2824_v49  ;;  %1228 = vst.msk [vmem:[#allocation2 + $0x1a8] sm:$0xff] %vm1174_vm2, %v1119_v53  ;;  %v7658_v55 = vpop.f32.mrb[56].mxu0 }
 0x156   :  { %7791 = vmatprep.mubr.msk.f32.mxu1 %vm9085_vm1, %v12142_v38  ;;  %8116 = vmatprep.mubr.msk.f32.mxu0 %vm9085_vm1, %v12142_v38  ;;  %v868_v58 = vadd.f32 %v7658_v55, %v9369_v2  ;;  %v859_v59 = vpop.f32.mrb[57].mxu0 }
 0x157   :  { %v860_v60 = vadd.f32 %v9369_v2, %v859_v59  ;;  %v7659_v61 = vpop.f32.mrb[58].mxu0  ;;  %v1290_v59 = vld [vmem:[#allocation2 + $0x38] sm:$0xff] }
 0x158   :  { %v1124_v63 = vmax.f32 %v868_v58, 0.0  ;;  %v871_v0 = vadd.f32 %v7659_v61, %v9369_v2  ;;  %v862_v1 = vpop.f32.mrb[59].mxu0  ;;  %v2833_v61 = vld [vmem:[#allocation2 + $0x131] sm:$0xff] }
 0x159   :  { %7792 = vmatmul.mubr.msk.f32.vlgmr.msra.gmra.mrb[50].mxu1 %vm1174_vm2, %v1283_v62  ;;  %8117 = vmatmul.mubr.msk.f32.gmra.mrb[158].mxu0 %vm1174_vm2, %v2825_v57  ;;  %v1122_v3 = vmax.f32 %v860_v60, 0.0  ;;  %v863_v4 = vadd.f32 %v9369_v2, %v862_v1 }
 0x15a   :  { %8980 = vmatpush3.bf16.msra.mxu1 %v8979_v56  ;;  %7794 = vmatprep.mubr.msk.f32.mxu1 %vm9085_vm1, %v12142_v38  ;;  %1233 = vst.msk [vmem:[#allocation2 + $0x1d0] sm:$0xff] %vm1174_vm2, %v1124_v63  ;;  %v1125_v6 = vmax.f32 %v871_v0, 0.0  ;;  %v2832_v56 = vld [vmem:[#allocation2 + $0x129] sm:$0xff]  ;;  %v9747_v0 = vld [vmem:[%s12137_s2] ss:$0 sm:$0xff] }
 0x15b   :  { %8119 = vmatprep.mubr.msk.f32.mxu0 %vm9085_vm1, %v12142_v38  ;;  %1231 = vst.msk [vmem:[#allocation2 + $0x1c0] sm:$0xff] %vm1174_vm2, %v1122_v3  ;;  %v1123_v7 = vmax.f32 %v863_v4, 0.0  ;;  %9020 = vmatprep.subr.bf16.mxu1 %v12140_v36  ;;  %v1291_v4 = vld [vmem:[#allocation2 + $0x40] sm:$0xff] }
 0x15c   :  { %1234 = vst.msk [vmem:[#allocation2 + $0x1d8] sm:$0xff] %vm1174_vm2, %v1125_v6 }
 0x15d   :  { %7795 = vmatmul.mubr.msk.f32.gmra.mrb[52].mxu1 %vm1174_vm2, %v1284_v8  ;;  %8120 = vmatmul.mubr.msk.f32.gmra.mrb[160].mxu0 %vm1174_vm2, %v2826_v5  ;;  %1232 = vst.msk [vmem:[#allocation2 + $0x1c8] sm:$0xff] %vm1174_vm2, %v1123_v7  ;;  %v7662_v9 = vpop.f32.mrb[60].mxu0 }
 0x15e   :  { %7797 = vmatprep.mubr.msk.f32.mxu1 %vm9085_vm1, %v12142_v38  ;;  %8122 = vmatprep.mubr.msk.f32.mxu0 %vm9085_vm1, %v12142_v38  ;;  %v884_v11 = vadd.f32 %v7662_v9, %v9369_v2  ;;  %v875_v12 = vpop.f32.mrb[61].mxu0  ;;  %v2834_v9 = vld [vmem:[#allocation2 + $0x139] sm:$0xff] }
 0x15f   :  { %v876_v13 = vadd.f32 %v9369_v2, %v875_v12  ;;  %v7663_v14 = vpop.f32.mrb[62].mxu0  ;;  %v1292_v12 = vld [vmem:[#allocation2 + $0x48] sm:$0xff] }
 0x160   :  { %v1128_v16 = vmax.f32 %v884_v11, 0.0  ;;  %v887_v17 = vadd.f32 %v7663_v14, %v9369_v2  ;;  %v878_v18 = vpop.f32.mrb[63].mxu0  ;;  %v2835_v14 = vld [vmem:[#allocation2 + $0x141] sm:$0xff] }
 0x161   :  { %7798 = vmatmul.mubr.msk.f32.gmra.mrb[54].mxu1 %vm1174_vm2, %v1285_v15  ;;  %8123 = vmatmul.mubr.msk.f32.gmra.mrb[162].mxu0 %vm1174_vm2, %v2827_v10  ;;  %v1126_v19 = vmax.f32 %v876_v13, 0.0  ;;  %v879_v20 = vadd.f32 %v9369_v2, %v878_v18 }
 0x162   :  { %7800 = vmatprep.mubr.msk.f32.mxu1 %vm9085_vm1, %v12142_v38  ;;  %8125 = vmatprep.mubr.msk.f32.mxu0 %vm9085_vm1, %v12142_v38  ;;  %1237 = vst.msk [vmem:[#allocation2 + $0x1f0] sm:$0xff] %vm1174_vm2, %v1128_v16  ;;  %v1129_v22 = vmax.f32 %v887_v17, 0.0 }
 0x163   :  { %1235 = vst.msk [vmem:[#allocation2 + $0x1e0] sm:$0xff] %vm1174_vm2, %v1126_v19  ;;  %v1127_v23 = vmax.f32 %v879_v20, 0.0  ;;  %v1293_v19 = vld [vmem:[#allocation2 + $0x50] sm:$0xff] }
 0x164   :  { %1238 = vst.msk [vmem:[#allocation2 + $0x1f8] sm:$0xff] %vm1174_vm2, %v1129_v22 }
 0x165   :  { %7801 = vmatmul.mubr.msk.f32.gmra.mrb[56].mxu1 %vm1174_vm2, %v1286_v24  ;;  %8126 = vmatmul.mubr.msk.f32.gmra.mrb[164].mxu0 %vm1174_vm2, %v2828_v21  ;;  %1236 = vst.msk [vmem:[#allocation2 + $0x1e8] sm:$0xff] %vm1174_vm2, %v1127_v23  ;;  %v7666_v25 = vpop.f32.mrb[64].mxu0 }
 0x166   :  { %7803 = vmatprep.mubr.msk.f32.mxu1 %vm9085_vm1, %v12142_v38  ;;  %8128 = vmatprep.mubr.msk.f32.mxu0 %vm9085_vm1, %v12142_v38  ;;  %v900_v27 = vadd.f32 %v7666_v25, %v9369_v2  ;;  %v891_v28 = vpop.f32.mrb[65].mxu0  ;;  %v2836_v25 = vld [vmem:[#allocation2 + $0x149] sm:$0xff] }
 0x167   :  { %v892_v29 = vadd.f32 %v9369_v2, %v891_v28  ;;  %v7667_v30 = vpop.f32.mrb[66].mxu0  ;;  %v1294_v28 = vld [vmem:[#allocation2 + $0x58] sm:$0xff] }
 0x168   :  { %v1132_v32 = vmax.f32 %v900_v27, 0.0  ;;  %v903_v33 = vadd.f32 %v7667_v30, %v9369_v2  ;;  %v894_v34 = vpop.f32.mrb[67].mxu0  ;;  %v2837_v30 = vld [vmem:[#allocation2 + $0x151] sm:$0xff] }
 0x169   :  { %7804 = vmatmul.mubr.msk.f32.gmra.mrb[58].mxu1 %vm1174_vm2, %v1287_v31  ;;  %8129 = vmatmul.mubr.msk.f32.gmra.mrb[166].mxu0 %vm1174_vm2, %v2829_v26  ;;  %v1130_v35 = vmax.f32 %v892_v29, 0.0  ;;  %v895_v39 = vadd.f32 %v9369_v2, %v894_v34 }
 0x16a   :  { %7806 = vmatprep.mubr.msk.f32.mxu1 %vm9085_vm1, %v12142_v38  ;;  %8131 = vmatprep.mubr.msk.f32.mxu0 %vm9085_vm1, %v12142_v38  ;;  %1241 = vst.msk [vmem:[#allocation2 + $0x210] sm:$0xff] %vm1174_vm2, %v1132_v32  ;;  %v1133_v41 = vmax.f32 %v903_v33, 0.0 }
 0x16b   :  { %1239 = vst.msk [vmem:[#allocation2 + $0x200] sm:$0xff] %vm1174_vm2, %v1130_v35  ;;  %v1131_v42 = vmax.f32 %v895_v39, 0.0  ;;  %v1295_v35 = vld [vmem:[#allocation2 + $0x60] sm:$0xff] }
 0x16c   :  { %1242 = vst.msk [vmem:[#allocation2 + $0x218] sm:$0xff] %vm1174_vm2, %v1133_v41 }
 0x16d   :  { %7807 = vmatmul.mubr.msk.f32.gmra.mrb[60].mxu1 %vm1174_vm2, %v1288_v43  ;;  %8132 = vmatmul.mubr.msk.f32.gmra.mrb[168].mxu0 %vm1174_vm2, %v2830_v40  ;;  %1240 = vst.msk [vmem:[#allocation2 + $0x208] sm:$0xff] %vm1174_vm2, %v1131_v42  ;;  %v7670_v44 = vpop.f32.mrb[68].mxu0 }
 0x16e   :  { %7809 = vmatprep.mubr.msk.f32.mxu1 %vm9085_vm1, %v12142_v38  ;;  %8134 = vmatprep.mubr.msk.f32.mxu0 %vm9085_vm1, %v12142_v38  ;;  %v916_v46 = vadd.f32 %v7670_v44, %v9369_v2  ;;  %v907_v47 = vpop.f32.mrb[69].mxu0  ;;  %v2838_v44 = vld [vmem:[#allocation2 + $0x159] sm:$0xff] }
 0x16f   :  { %v908_v48 = vadd.f32 %v9369_v2, %v907_v47  ;;  %v7671_v49 = vpop.f32.mrb[70].mxu0  ;;  %v1296_v47 = vld [vmem:[#allocation2 + $0x68] sm:$0xff] }
 0x170   :  { %v1136_v51 = vmax.f32 %v916_v46, 0.0  ;;  %v919_v52 = vadd.f32 %v7671_v49, %v9369_v2  ;;  %v910_v53 = vpop.f32.mrb[71].mxu0  ;;  %v2839_v49 = vld [vmem:[#allocation2 + $0x161] sm:$0xff] }
 0x171   :  { %7810 = vmatmul.mubr.msk.f32.gmra.mrb[62].mxu1 %vm1174_vm2, %v1289_v50  ;;  %8135 = vmatmul.mubr.msk.f32.gmra.mrb[170].mxu0 %vm1174_vm2, %v2831_v45  ;;  %v1134_v54 = vmax.f32 %v908_v48, 0.0  ;;  %v911_v55 = vadd.f32 %v9369_v2, %v910_v53 }
 0x172   :  { %7812 = vmatprep.mubr.msk.f32.mxu1 %vm9085_vm1, %v12142_v38  ;;  %8137 = vmatprep.mubr.msk.f32.mxu0 %vm9085_vm1, %v12142_v38  ;;  %1245 = vst.msk [vmem:[#allocation2 + $0x230] sm:$0xff] %vm1174_vm2, %v1136_v51  ;;  %v1137_v57 = vmax.f32 %v919_v52, 0.0 }
 0x173   :  { %1243 = vst.msk [vmem:[#allocation2 + $0x220] sm:$0xff] %vm1174_vm2, %v1134_v54  ;;  %v1135_v58 = vmax.f32 %v911_v55, 0.0  ;;  %v1297_v54 = vld [vmem:[#allocation2 + $0x70] sm:$0xff] }
 0x174   :  { %1246 = vst.msk [vmem:[#allocation2 + $0x238] sm:$0xff] %vm1174_vm2, %v1137_v57 }
 0x175   :  { %7813 = vmatmul.mubr.msk.f32.gmra.mrb[64].mxu1 %vm1174_vm2, %v1290_v59  ;;  %8138 = vmatmul.mubr.msk.f32.gmra.mrb[172].mxu0 %vm1174_vm2, %v2832_v56  ;;  %1244 = vst.msk [vmem:[#allocation2 + $0x228] sm:$0xff] %vm1174_vm2, %v1135_v58  ;;  %v7674_v60 = vpop.f32.mrb[72].mxu0 }
 0x176   :  { %7815 = vmatprep.mubr.msk.f32.mxu1 %vm9085_vm1, %v12142_v38  ;;  %8140 = vmatprep.mubr.msk.f32.mxu0 %vm9085_vm1, %v12142_v38  ;;  %v932_v62 = vadd.f32 %v7674_v60, %v9369_v2  ;;  %v923_v63 = vpop.f32.mrb[73].mxu0  ;;  %v2840_v60 = vld [vmem:[#allocation2 + $0x169] sm:$0xff] }
 0x177   :  { %v924_v1 = vadd.f32 %v9747_v0, %v923_v63  ;;  %v7675_v3 = vpop.f32.mrb[74].mxu0  ;;  %v1298_v63 = vld [vmem:[#allocation2 + $0x78] sm:$0xff] }
 0x178   :  { %v1140_v5 = vmax.f32 %v932_v62, 0.0  ;;  %v935_v6 = vadd.f32 %v9747_v0, %v7675_v3  ;;  %v926_v7 = vpop.f32.mrb[75].mxu0  ;;  %v2841_v3 = vld [vmem:[#allocation2 + $0x171] sm:$0xff] }
 0x179   :  { %7816 = vmatmul.mubr.msk.f32.gmra.mrb[66].mxu1 %vm1174_vm2, %v1291_v4  ;;  %8141 = vmatmul.mubr.msk.f32.gmra.mrb[174].mxu0 %vm1174_vm2, %v2833_v61  ;;  %v1138_v8 = vmax.f32 %v924_v1, 0.0  ;;  %v927_v2 = vadd.f32 %v9747_v0, %v926_v7 }
 0x17a   :  { %7818 = vmatprep.mubr.msk.f32.mxu1 %vm9085_vm1, %v12142_v38  ;;  %8143 = vmatprep.mubr.msk.f32.mxu0 %vm9085_vm1, %v12142_v38  ;;  %1249 = vst.msk [vmem:[#allocation2 + $0x250] sm:$0xff] %vm1174_vm2, %v1140_v5  ;;  %v1141_v10 = vmax.f32 %v935_v6, 0.0 }
 0x17b   :  { %1247 = vst.msk [vmem:[#allocation2 + $0x240] sm:$0xff] %vm1174_vm2, %v1138_v8  ;;  %v1139_v11 = vmax.f32 %v927_v2, 0.0  ;;  %v1299_v8 = vld [vmem:[#allocation2 + $0x80] sm:$0xff] }
 0x17c   :  { %1250 = vst.msk [vmem:[#allocation2 + $0x258] sm:$0xff] %vm1174_vm2, %v1141_v10 }
 0x17d   :  { %7819 = vmatmul.mubr.msk.f32.gmra.mrb[68].mxu1 %vm1174_vm2, %v1292_v12  ;;  %8144 = vmatmul.mubr.msk.f32.gmra.mrb[176].mxu0 %vm1174_vm2, %v2834_v9  ;;  %1248 = vst.msk [vmem:[#allocation2 + $0x248] sm:$0xff] %vm1174_vm2, %v1139_v11  ;;  %v7678_v13 = vpop.f32.mrb[76].mxu0 }
 0x17e   :  { %7821 = vmatprep.mubr.msk.f32.mxu1 %vm9085_vm1, %v12142_v38  ;;  %8146 = vmatprep.mubr.msk.f32.mxu0 %vm9085_vm1, %v12142_v38  ;;  %v948_v15 = vadd.f32 %v9747_v0, %v7678_v13  ;;  %v939_v16 = vpop.f32.mrb[77].mxu0  ;;  %v2842_v13 = vld [vmem:[#allocation2 + $0x179] sm:$0xff] }
 0x17f   :  { %v940_v17 = vadd.f32 %v9747_v0, %v939_v16  ;;  %v7679_v18 = vpop.f32.mrb[78].mxu0  ;;  %v1300_v16 = vld [vmem:[#allocation2 + $0x88] sm:$0xff] }
 0x180   :  { %v1144_v20 = vmax.f32 %v948_v15, 0.0  ;;  %v951_v21 = vadd.f32 %v9747_v0, %v7679_v18  ;;  %v942_v22 = vpop.f32.mrb[79].mxu0  ;;  %v2843_v18 = vld [vmem:[#allocation2 + $0x181] sm:$0xff] }
 0x181   :  { %7822 = vmatmul.mubr.msk.f32.gmra.mrb[70].mxu1 %vm1174_vm2, %v1293_v19  ;;  %8147 = vmatmul.mubr.msk.f32.gmra.mrb[178].mxu0 %vm1174_vm2, %v2835_v14  ;;  %v1142_v23 = vmax.f32 %v940_v17, 0.0  ;;  %v943_v24 = vadd.f32 %v9747_v0, %v942_v22 }
 0x182   :  { %7824 = vmatprep.mubr.msk.f32.mxu1 %vm9085_vm1, %v12142_v38  ;;  %8149 = vmatprep.mubr.msk.f32.mxu0 %vm9085_vm1, %v12142_v38  ;;  %1253 = vst.msk [vmem:[#allocation2 + $0x270] sm:$0xff] %vm1174_vm2, %v1144_v20  ;;  %v1145_v26 = vmax.f32 %v951_v21, 0.0 }
 0x183   :  { %1251 = vst.msk [vmem:[#allocation2 + $0x260] sm:$0xff] %vm1174_vm2, %v1142_v23  ;;  %v1143_v27 = vmax.f32 %v943_v24, 0.0  ;;  %v1301_v23 = vld [vmem:[#allocation2 + $0x90] sm:$0xff] }
 0x184   :  { %1254 = vst.msk [vmem:[#allocation2 + $0x278] sm:$0xff] %vm1174_vm2, %v1145_v26 }
 0x185   :  { %7825 = vmatmul.mubr.msk.f32.gmra.mrb[72].mxu1 %vm1174_vm2, %v1294_v28  ;;  %8150 = vmatmul.mubr.msk.f32.gmra.mrb[180].mxu0 %vm1174_vm2, %v2836_v25  ;;  %1252 = vst.msk [vmem:[#allocation2 + $0x268] sm:$0xff] %vm1174_vm2, %v1143_v27  ;;  %v7682_v29 = vpop.f32.mrb[80].mxu0 }
 0x186   :  { %7827 = vmatprep.mubr.msk.f32.mxu1 %vm9085_vm1, %v12142_v38  ;;  %8152 = vmatprep.mubr.msk.f32.mxu0 %vm9085_vm1, %v12142_v38  ;;  %v964_v31 = vadd.f32 %v9747_v0, %v7682_v29  ;;  %v955_v32 = vpop.f32.mrb[81].mxu0  ;;  %v2844_v29 = vld [vmem:[#allocation2 + $0x189] sm:$0xff] }
 0x187   :  { %v956_v33 = vadd.f32 %v9747_v0, %v955_v32  ;;  %v7683_v34 = vpop.f32.mrb[82].mxu0  ;;  %v1302_v32 = vld [vmem:[#allocation2 + $0x98] sm:$0xff] }
 0x188   :  { %v1148_v39 = vmax.f32 %v964_v31, 0.0  ;;  %v967_v40 = vadd.f32 %v9747_v0, %v7683_v34  ;;  %v958_v41 = vpop.f32.mrb[83].mxu0  ;;  %v2845_v34 = vld [vmem:[#allocation2 + $0x191] sm:$0xff] }
 0x189   :  { %7828 = vmatmul.mubr.msk.f32.gmra.mrb[74].mxu1 %vm1174_vm2, %v1295_v35  ;;  %8153 = vmatmul.mubr.msk.f32.gmra.mrb[182].mxu0 %vm1174_vm2, %v2837_v30  ;;  %v1146_v42 = vmax.f32 %v956_v33, 0.0  ;;  %v959_v43 = vadd.f32 %v9747_v0, %v958_v41 }
 0x18a   :  { %7830 = vmatprep.mubr.msk.f32.mxu1 %vm9085_vm1, %v12142_v38  ;;  %8155 = vmatprep.mubr.msk.f32.mxu0 %vm9085_vm1, %v12142_v38  ;;  %1257 = vst.msk [vmem:[#allocation2 + $0x290] sm:$0xff] %vm1174_vm2, %v1148_v39  ;;  %v1149_v45 = vmax.f32 %v967_v40, 0.0 }
 0x18b   :  { %1255 = vst.msk [vmem:[#allocation2 + $0x280] sm:$0xff] %vm1174_vm2, %v1146_v42  ;;  %v1147_v46 = vmax.f32 %v959_v43, 0.0  ;;  %v1303_v42 = vld [vmem:[#allocation2 + $0xa0] sm:$0xff] }
 0x18c   :  { %1258 = vst.msk [vmem:[#allocation2 + $0x298] sm:$0xff] %vm1174_vm2, %v1149_v45 }
 0x18d   :  { %7831 = vmatmul.mubr.msk.f32.gmra.mrb[76].mxu1 %vm1174_vm2, %v1296_v47  ;;  %8156 = vmatmul.mubr.msk.f32.gmra.mrb[184].mxu0 %vm1174_vm2, %v2838_v44  ;;  %1256 = vst.msk [vmem:[#allocation2 + $0x288] sm:$0xff] %vm1174_vm2, %v1147_v46  ;;  %v7686_v48 = vpop.f32.mrb[84].mxu0 }
 0x18e   :  { %7833 = vmatprep.mubr.msk.f32.mxu1 %vm9085_vm1, %v12142_v38  ;;  %8158 = vmatprep.mubr.msk.f32.mxu0 %vm9085_vm1, %v12142_v38  ;;  %v980_v50 = vadd.f32 %v9747_v0, %v7686_v48  ;;  %v971_v51 = vpop.f32.mrb[85].mxu0  ;;  %v2846_v48 = vld [vmem:[#allocation2 + $0x199] sm:$0xff] }
 0x18f   :  { %v972_v52 = vadd.f32 %v9747_v0, %v971_v51  ;;  %v7687_v53 = vpop.f32.mrb[86].mxu0  ;;  %v1304_v51 = vld [vmem:[#allocation2 + $0xa8] sm:$0xff] }
 0x190   :  { %v1152_v55 = vmax.f32 %v980_v50, 0.0  ;;  %v983_v56 = vadd.f32 %v9747_v0, %v7687_v53  ;;  %v974_v57 = vpop.f32.mrb[87].mxu0  ;;  %v6863_v53 = vld [vmem:[%s12136_s3 + $0x98] sm:$0xff] }
 0x191   :  { %7834 = vmatmul.mubr.msk.f32.gmra.mrb[78].mxu1 %vm1174_vm2, %v1297_v54  ;;  %8159 = vmatmul.mubr.msk.f32.gmra.mrb[186].mxu0 %vm1174_vm2, %v2839_v49  ;;  %v1150_v58 = vmax.f32 %v972_v52, 0.0  ;;  %v975_v59 = vadd.f32 %v9747_v0, %v974_v57  ;;  %v6862_v52 = vld [vmem:[%s12136_s3 + $0x90] sm:$0xff] }
 0x192   :  { %7836 = vmatprep.mubr.msk.f32.mxu1 %vm9085_vm1, %v12142_v38  ;;  %8161 = vmatprep.mubr.msk.f32.mxu0 %vm9085_vm1, %v12142_v38  ;;  %1261 = vst.msk [vmem:[#allocation2 + $0x2b0] sm:$0xff] %vm1174_vm2, %v1152_v55  ;;  %v1153_v61 = vmax.f32 %v983_v56, 0.0  ;;  %v3458_v55 = vld [vmem:[#allocation2 + $0xe3] sm:$0xff] }
 0x193   :  { %1259 = vst.msk [vmem:[#allocation2 + $0x2a0] sm:$0xff] %vm1174_vm2, %v1150_v58  ;;  %v1151_v62 = vmax.f32 %v975_v59, 0.0 }
 0x194   :  { %1262 = vst.msk [vmem:[#allocation2 + $0x2b8] sm:$0xff] %vm1174_vm2, %v1153_v61  ;;  %v1305_v61 = vld [vmem:[#allocation2 + $0xb0] sm:$0xff] }
 0x195   :  { %7837 = vmatmul.mubr.msk.f32.gmra.mrb[80].mxu1 %vm1174_vm2, %v1298_v63  ;;  %8162 = vmatmul.mubr.msk.f32.gmra.mrb[188].mxu0 %vm1174_vm2, %v2840_v60  ;;  %1260 = vst.msk [vmem:[#allocation2 + $0x2a8] sm:$0xff] %vm1174_vm2, %v1151_v62  ;;  %v7690_v1 = vpop.f32.mrb[88].mxu0  ;;  %v9000_v60 = vpack.c.bf16 %v6863_v53, %v6862_v52  ;;  %v3468_v53 = vld [vmem:[#allocation2 + $0x133] sm:$0xff] }
 0x196   :  { %7839 = vmatprep.mubr.msk.f32.mxu1 %vm9085_vm1, %v12142_v38  ;;  %8164 = vmatprep.mubr.msk.f32.mxu0 %vm9085_vm1, %v12142_v38  ;;  %v996_v4 = vadd.f32 %v9747_v0, %v7690_v1  ;;  %v987_v5 = vpop.f32.mrb[89].mxu0 }
 0x197   :  { %v988_v6 = vadd.f32 %v9747_v0, %v987_v5  ;;  %v7691_v7 = vpop.f32.mrb[90].mxu0  ;;  %v3459_v5 = vld [vmem:[#allocation2 + $0xeb] sm:$0xff] }
 0x198   :  { %v1156_v2 = vmax.f32 %v996_v4, 0.0  ;;  %v999_v9 = vadd.f32 %v9747_v0, %v7691_v7  ;;  %v990_v10 = vpop.f32.mrb[91].mxu0 }
 0x199   :  { %7840 = vmatmul.mubr.msk.f32.gmra.mrb[82].mxu1 %vm1174_vm2, %v1299_v8  ;;  %8165 = vmatmul.mubr.msk.f32.gmra.mrb[190].mxu0 %vm1174_vm2, %v2841_v3  ;;  %v1154_v11 = vmax.f32 %v988_v6, 0.0  ;;  %v991_v12 = vadd.f32 %v9747_v0, %v990_v10  ;;  %v1306_v8 = vld [vmem:[#allocation2 + $0xb8] sm:$0xff] }
 0x19a   :  { %7842 = vmatprep.mubr.msk.f32.mxu1 %vm9085_vm1, %v12142_v38  ;;  %8167 = vmatprep.mubr.msk.f32.mxu0 %vm9085_vm1, %v12142_v38  ;;  %1265 = vst.msk [vmem:[#allocation2 + $0x2d0] sm:$0xff] %vm1174_vm2, %v1156_v2  ;;  %v1157_v14 = vmax.f32 %v999_v9, 0.0  ;;  %v3460_v9 = vld [vmem:[#allocation2 + $0xf3] sm:$0xff] }
 0x19b   :  { %1263 = vst.msk [vmem:[#allocation2 + $0x2c0] sm:$0xff] %vm1174_vm2, %v1154_v11  ;;  %v1155_v15 = vmax.f32 %v991_v12, 0.0 }
 0x19c   :  { %1266 = vst.msk [vmem:[#allocation2 + $0x2d8] sm:$0xff] %vm1174_vm2, %v1157_v14  ;;  %v1307_v14 = vld [vmem:[#allocation2 + $0xc0] sm:$0xff] }
 0x19d   :  { %7843 = vmatmul.mubr.msk.f32.gmra.mrb[84].mxu1 %vm1174_vm2, %v1300_v16  ;;  %8168 = vmatmul.mubr.msk.f32.gmra.mrb[192].mxu0 %vm1174_vm2, %v2842_v13  ;;  %1264 = vst.msk [vmem:[#allocation2 + $0x2c8] sm:$0xff] %vm1174_vm2, %v1155_v15  ;;  %v7694_v17 = vpop.f32.mrb[92].mxu0 }
 0x19e   :  { %7845 = vmatprep.mubr.msk.f32.mxu1 %vm9085_vm1, %v12142_v38  ;;  %8170 = vmatprep.mubr.msk.f32.mxu0 %vm9085_vm1, %v12142_v38  ;;  %v1012_v19 = vadd.f32 %v9747_v0, %v7694_v17  ;;  %v1003_v20 = vpop.f32.mrb[93].mxu0 }
 0x19f   :  { %v1004_v21 = vadd.f32 %v9747_v0, %v1003_v20  ;;  %v7695_v22 = vpop.f32.mrb[94].mxu0  ;;  %v3461_v20 = vld [vmem:[#allocation2 + $0xfb] sm:$0xff] }
 0x1a0   :  { %v1160_v24 = vmax.f32 %v1012_v19, 0.0  ;;  %v1015_v25 = vadd.f32 %v9747_v0, %v7695_v22  ;;  %v1006_v26 = vpop.f32.mrb[95].mxu0 }
 0x1a1   :  { %7846 = vmatmul.mubr.msk.f32.gmra.mrb[86].mxu1 %vm1174_vm2, %v1301_v23  ;;  %8171 = vmatmul.mubr.msk.f32.gmra.mrb[194].mxu0 %vm1174_vm2, %v2843_v18  ;;  %v1158_v27 = vmax.f32 %v1004_v21, 0.0  ;;  %v1007_v28 = vadd.f32 %v9747_v0, %v1006_v26  ;;  %v1868_v23 = vld [vmem:[#allocation2 + $0xa] sm:$0xff]  ;;  %v3464_v26 = vld [vmem:[#allocation2 + $0x113] sm:$0xff] }
 0x1a2   :  { %7848 = vmatprep.mubr.msk.f32.mxu1 %vm9085_vm1, %v12142_v38  ;;  %8173 = vmatprep.mubr.msk.f32.mxu0 %vm9085_vm1, %v12142_v38  ;;  %1269 = vst.msk [vmem:[#allocation2 + $0x2f0] sm:$0xff] %vm1174_vm2, %v1160_v24  ;;  %v1161_v30 = vmax.f32 %v1015_v25, 0.0  ;;  %v1869_v24 = vld [vmem:[#allocation2 + $0x12] sm:$0xff]  ;;  %v1870_v25 = vld [vmem:[#allocation2 + $0x1a] sm:$0xff] }
 0x1a3   :  { %1267 = vst.msk [vmem:[#allocation2 + $0x2e0] sm:$0xff] %vm1174_vm2, %v1158_v27  ;;  %v1159_v31 = vmax.f32 %v1007_v28, 0.0 }
 0x1a4   :  { %1270 = vst.msk [vmem:[#allocation2 + $0x2f8] sm:$0xff] %vm1174_vm2, %v1161_v30 }
 0x1a5   :  { %7849 = vmatmul.mubr.msk.f32.gmra.mrb[88].mxu1 %vm1174_vm2, %v1302_v32  ;;  %8174 = vmatmul.mubr.msk.f32.gmra.mrb[196].mxu0 %vm1174_vm2, %v2844_v29  ;;  %1268 = vst.msk [vmem:[#allocation2 + $0x2e8] sm:$0xff] %vm1174_vm2, %v1159_v31  ;;  %v7698_v33 = vpop.f32.mrb[96].mxu0  ;;  %v1871_v29 = vld [vmem:[#allocation2 + $0x22] sm:$0xff] }
 0x1a6   :  { %7851 = vmatprep.mubr.msk.f32.mxu1 %vm9085_vm1, %v12142_v38  ;;  %8176 = vmatprep.mubr.msk.f32.mxu0 %vm9085_vm1, %v12142_v38  ;;  %v1028_v35 = vadd.f32 %v9747_v0, %v7698_v33  ;;  %v1019_v39 = vpop.f32.mrb[97].mxu0  ;;  %v3465_v32 = vld [vmem:[#allocation2 + $0x11b] sm:$0xff] }
 0x1a7   :  { %v1020_v40 = vadd.f32 %v9747_v0, %v1019_v39  ;;  %v7699_v41 = vpop.f32.mrb[98].mxu0 }
 0x1a8   :  { %v1164_v43 = vmax.f32 %v1028_v35, 0.0  ;;  %v1031_v44 = vadd.f32 %v9747_v0, %v7699_v41  ;;  %v1022_v45 = vpop.f32.mrb[99].mxu0  ;;  %v1872_v35 = vld [vmem:[#allocation2 + $0x2a] sm:$0xff] }
 0x1a9   :  { %7852 = vmatmul.mubr.msk.f32.gmra.mrb[90].mxu1 %vm1174_vm2, %v1303_v42  ;;  %8177 = vmatmul.mubr.msk.f32.gmra.mrb[198].mxu0 %vm1174_vm2, %v2845_v34  ;;  %v1162_v46 = vmax.f32 %v1020_v40, 0.0  ;;  %v1023_v47 = vadd.f32 %v9747_v0, %v1022_v45  ;;  %v3466_v41 = vld [vmem:[#allocation2 + $0x123] sm:$0xff] }
 0x1aa   :  { %7854 = vmatprep.mubr.msk.f32.mxu1 %vm9085_vm1, %v12142_v38  ;;  %8179 = vmatprep.mubr.msk.f32.mxu0 %vm9085_vm1, %v12142_v38  ;;  %1273 = vst.msk [vmem:[#allocation2 + $0x310] sm:$0xff] %vm1174_vm2, %v1164_v43  ;;  %v1165_v49 = vmax.f32 %v1031_v44, 0.0  ;;  %v1873_v44 = vld [vmem:[#allocation2 + $0x32] sm:$0xff] }
 0x1ab   :  { %1271 = vst.msk [vmem:[#allocation2 + $0x300] sm:$0xff] %vm1174_vm2, %v1162_v46  ;;  %v1163_v50 = vmax.f32 %v1023_v47, 0.0  ;;  %v3467_v47 = vld [vmem:[#allocation2 + $0x12b] sm:$0xff] }
 0x1ac   :  { %1274 = vst.msk [vmem:[#allocation2 + $0x318] sm:$0xff] %vm1174_vm2, %v1165_v49 }
 0x1ad   :  { %7855 = vmatmul.mubr.msk.f32.gmra.mrb[92].mxu1 %vm1174_vm2, %v1304_v51  ;;  %8180 = vmatmul.mubr.msk.f32.gmra.mrb[200].mxu0 %vm1174_vm2, %v2846_v48  ;;  %1272 = vst.msk [vmem:[#allocation2 + $0x308] sm:$0xff] %vm1174_vm2, %v1163_v50  ;;  %v7702_v54 = vpop.f32.mrb[100].mxu0  ;;  %v1874_v50 = vld [vmem:[#allocation2 + $0x3a] sm:$0xff] }
 0x1ae   :  { %7857 = vmatprep.mubr.msk.f32.mxu1 %vm9085_vm1, %v12142_v38  ;;  %8265 = vmatprep.mubr.msk.f32.mxu0 %vm9085_vm1, %v12142_v38  ;;  %v1044_v56 = vadd.f32 %v9747_v0, %v7702_v54  ;;  %v1035_v57 = vpop.f32.mrb[101].mxu0 }
 0x1af   :  { %v1036_v58 = vadd.f32 %v9747_v0, %v1035_v57  ;;  %v7703_v59 = vpop.f32.mrb[102].mxu0 }
 0x1b0   :  { %v1168_v62 = vmax.f32 %v1044_v56, 0.0  ;;  %v1047_v63 = vadd.f32 %v9747_v0, %v7703_v59  ;;  %v1038_v1 = vpop.f32.mrb[103].mxu0  ;;  %v1875_v56 = vld [vmem:[#allocation2 + $0x42] sm:$0xff] }
 0x1b1   :  { %7858 = vmatmul.mubr.msk.f32.gmra.mrb[94].mxu1 %vm1174_vm2, %v1305_v61  ;;  %8266 = vmatmul.mubr.msk.f32.vlgmr.msra.gmra.mrb[202].mxu0 %vm1174_vm2, %v3458_v55  ;;  %v1166_v3 = vmax.f32 %v1036_v58, 0.0  ;;  %v1039_v4 = vadd.f32 %v9747_v0, %v1038_v1  ;;  %v3469_v59 = vld [vmem:[#allocation2 + $0x13b] sm:$0xff] }
 0x1b2   :  { %7860 = vmatprep.mubr.msk.f32.mxu1 %vm9085_vm1, %v12142_v38  ;;  %8268 = vmatprep.mubr.msk.f32.mxu0 %vm9085_vm1, %v12142_v38  ;;  %1277 = vst.msk [vmem:[#allocation2 + $0x330] sm:$0xff] %vm1174_vm2, %v1168_v62  ;;  %v1169_v6 = vmax.f32 %v1047_v63, 0.0  ;;  %v1876_v62 = vld [vmem:[#allocation2 + $0x4a] sm:$0xff] }
 0x1b3   :  { %1275 = vst.msk [vmem:[#allocation2 + $0x320] sm:$0xff] %vm1174_vm2, %v1166_v3  ;;  %v1167_v7 = vmax.f32 %v1039_v4, 0.0  ;;  %9001 = vmatpush3.bf16.msra.mxu0 %v9000_v60  ;;  %v3470_v3 = vld [vmem:[#allocation2 + $0x143] sm:$0xff] }
 0x1b4   :  { %1278 = vst.msk [vmem:[#allocation2 + $0x338] sm:$0xff] %vm1174_vm2, %v1169_v6  ;;  %9005 = vmatprep.subr.bf16.mxu0 %v12140_v36  ;;  %v1877_v6 = vld [vmem:[#allocation2 + $0x52] sm:$0xff] }
 0x1b5   :  { %7861 = vmatmul.mubr.msk.f32.gmra.mrb[96].mxu1 %vm1174_vm2, %v1306_v8  ;;  %8269 = vmatmul.mubr.msk.f32.gmra.mrb[204].mxu0 %vm1174_vm2, %v3459_v5  ;;  %1276 = vst.msk [vmem:[#allocation2 + $0x328] sm:$0xff] %vm1174_vm2, %v1167_v7  ;;  %v7706_v2 = vpop.f32.mrb[104].mxu0 }
 0x1b6   :  { %7863 = vmatprep.mubr.msk.f32.mxu1 %vm9085_vm1, %v12142_v38  ;;  %8271 = vmatprep.mubr.msk.f32.mxu0 %vm9085_vm1, %v12142_v38  ;;  %v1060_v10 = vadd.f32 %v9747_v0, %v7706_v2  ;;  %v1051_v11 = vpop.f32.mrb[105].mxu0  ;;  %v3471_v2 = vld [vmem:[#allocation2 + $0x14b] sm:$0xff] }
 0x1b7   :  { %v1052_v12 = vadd.f32 %v9747_v0, %v1051_v11  ;;  %v7707_v13 = vpop.f32.mrb[106].mxu0  ;;  %v1878_v11 = vld [vmem:[#allocation2 + $0x5a] sm:$0xff] }
 0x1b8   :  { %v1172_v15 = vmax.f32 %v1060_v10, 0.0  ;;  %v1063_v16 = vadd.f32 %v9747_v0, %v7707_v13  ;;  %v1054_v17 = vpop.f32.mrb[107].mxu0 }
 0x1b9   :  { %7864 = vmatmul.mubr.msk.f32.gmra.mrb[98].mxu1 %vm1174_vm2, %v1307_v14  ;;  %8272 = vmatmul.mubr.msk.f32.gmra.mrb[206].mxu0 %vm1174_vm2, %v3460_v9  ;;  %v1170_v18 = vmax.f32 %v1052_v12, 0.0  ;;  %v1055_v19 = vadd.f32 %v9747_v0, %v1054_v17  ;;  %v3462_v0 = vld [vmem:[#allocation2 + $0x103] sm:$0xff]  ;;  %v3472_v14 = vld [vmem:[#allocation2 + $0x153] sm:$0xff] }
 0x1ba   :  { %7870 = vmatprep.mubr.msk.f32.mxu1 %vm9085_vm1, %v12142_v38  ;;  %8274 = vmatprep.mubr.msk.f32.mxu0 %vm9085_vm1, %v12142_v38  ;;  %1281 = vst.msk [vmem:[#allocation2 + $0x350] sm:$0xff] %vm1174_vm2, %v1172_v15  ;;  %v1173_v21 = vmax.f32 %v1063_v16, 0.0  ;;  %v1879_v17 = vld [vmem:[#allocation2 + $0x62] sm:$0xff] }
 0x1bb   :  { %1279 = vst.msk [vmem:[#allocation2 + $0x340] sm:$0xff] %vm1174_vm2, %v1170_v18  ;;  %v1171_v22 = vmax.f32 %v1055_v19, 0.0 }
 0x1bc   :  { %1282 = vst.msk [vmem:[#allocation2 + $0x358] sm:$0xff] %vm1174_vm2, %v1173_v21 }
 0x1bd   :  { %7871 = vmatmul.mubr.msk.f32.vlgmr.msra.gmra.mrb[100].mxu1 %vm1174_vm2, %v1868_v23  ;;  %8275 = vmatmul.mubr.msk.f32.gmra.mrb[208].mxu0 %vm1174_vm2, %v3461_v20  ;;  %1280 = vst.msk [vmem:[#allocation2 + $0x348] sm:$0xff] %vm1174_vm2, %v1171_v22  ;;  %v3473_v20 = vld [vmem:[#allocation2 + $0x15b] sm:$0xff]  ;;  %v1880_v23 = vld [vmem:[#allocation2 + $0x6a] sm:$0xff] }
 0x1be   :  { %9021 = vmatpush3.bf16.msra.mxu1 %v9249_v37  ;;  %7873 = vmatprep.mubr.msk.f32.mxu1 %vm9085_vm1, %v12142_v38  ;;  %v3463_v37 = vld [vmem:[#allocation2 + $0x10b] sm:$0xff] }
 0x1bf   :  { %8277 = vmatprep.mubr.msk.f32.mxu0 %vm9085_vm1, %v12142_v38  ;;  %8984 = vmatprep.subr.bf16.mxu1 %v12140_v36 }
 0x1c1   :  { %7874 = vmatmul.mubr.msk.f32.gmra.mrb[102].mxu1 %vm1174_vm2, %v1869_v24  ;;  %8278 = vmatmul.mubr.msk.f32.gmra.mrb[210].mxu0 %vm1174_vm2, %v3462_v0 }
 0x1c2   :  { %7876 = vmatprep.mubr.msk.f32.mxu1 %vm9085_vm1, %v12142_v38  ;;  %8280 = vmatprep.mubr.msk.f32.mxu0 %vm9085_vm1, %v12142_v38 }
 0x1c5   :  { %7877 = vmatmul.mubr.msk.f32.gmra.mrb[104].mxu1 %vm1174_vm2, %v1870_v25  ;;  %8281 = vmatmul.mubr.msk.f32.gmra.mrb[212].mxu0 %vm1174_vm2, %v3463_v37  ;;  %v3474_v37 = vld [vmem:[#allocation2 + $0x163] sm:$0xff] }
 0x1c6   :  { %7879 = vmatprep.mubr.msk.f32.mxu1 %vm9085_vm1, %v12142_v38  ;;  %8283 = vmatprep.mubr.msk.f32.mxu0 %vm9085_vm1, %v12142_v38 }
 0x1c8   :  { %v9949_v27 = vpop.f32.mrb[0].mxu1  ;;  %v9951_v28 = vpop.f32.mrb[108].mxu0 }
 0x1c9   :  { %v7714_v30 = vpop.f32.mrb[1].mxu1  ;;  %7880 = vmatmul.mubr.msk.f32.gmra.mrb[106].mxu1 %vm1174_vm2, %v1871_v29  ;;  %v7951_v31 = vpop.f32.mrb[109].mxu0  ;;  %8284 = vmatmul.mubr.msk.f32.gmra.mrb[214].mxu0 %vm1174_vm2, %v3464_v26  ;;  %v1881_v29 = vld [vmem:[#allocation2 + $0x72] sm:$0xff] }
 0x1ca   :  { %7882 = vmatprep.mubr.msk.f32.mxu1 %vm9085_vm1, %v12142_v38  ;;  %8286 = vmatprep.mubr.msk.f32.mxu0 %vm9085_vm1, %v12142_v38 }
 0x1cc   :  { %v9959_v33 = vpop.f32.mrb[2].mxu1  ;;  %v9961_v34 = vpop.f32.mrb[110].mxu0 }
 0x1cd   :  { %v7717_v39 = vpop.f32.mrb[3].mxu1  ;;  %7883 = vmatmul.mubr.msk.f32.gmra.mrb[108].mxu1 %vm1174_vm2, %v1872_v35  ;;  %v7954_v40 = vpop.f32.mrb[111].mxu0  ;;  %8287 = vmatmul.mubr.msk.f32.gmra.mrb[216].mxu0 %vm1174_vm2, %v3465_v32  ;;  %v3475_v32 = vld [vmem:[#allocation2 + $0x16b] sm:$0xff] }
 0x1ce   :  { %7885 = vmatprep.mubr.msk.f32.mxu1 %vm9085_vm1, %v12142_v38  ;;  %8289 = vmatprep.mubr.msk.f32.mxu0 %vm9085_vm1, %v12142_v38  ;;  %v1882_v40 = vld [vmem:[#allocation2 + $0x7a] sm:$0xff] }
 0x1d0   :  { %v9969_v42 = vpop.f32.mrb[4].mxu1  ;;  %v9971_v43 = vpop.f32.mrb[112].mxu0 }
 0x1d1   :  { %v7720_v45 = vpop.f32.mrb[5].mxu1  ;;  %7886 = vmatmul.mubr.msk.f32.gmra.mrb[110].mxu1 %vm1174_vm2, %v1873_v44  ;;  %v7957_v46 = vpop.f32.mrb[113].mxu0  ;;  %8290 = vmatmul.mubr.msk.f32.gmra.mrb[218].mxu0 %vm1174_vm2, %v3466_v41 }
 0x1d2   :  { %7888 = vmatprep.mubr.msk.f32.mxu1 %vm9085_vm1, %v12142_v38  ;;  %8292 = vmatprep.mubr.msk.f32.mxu0 %vm9085_vm1, %v12142_v38  ;;  %v3476_v45 = vld [vmem:[#allocation2 + $0x173] sm:$0xff] }
 0x1d4   :  { %v9979_v48 = vpop.f32.mrb[6].mxu1  ;;  %v9981_v49 = vpop.f32.mrb[114].mxu0 }
 0x1d5   :  { %v7723_v51 = vpop.f32.mrb[7].mxu1  ;;  %7889 = vmatmul.mubr.msk.f32.gmra.mrb[112].mxu1 %vm1174_vm2, %v1874_v50  ;;  %v7960_v52 = vpop.f32.mrb[115].mxu0  ;;  %8293 = vmatmul.mubr.msk.f32.gmra.mrb[220].mxu0 %vm1174_vm2, %v3467_v47  ;;  %v1883_v50 = vld [vmem:[#allocation2 + $0x82] sm:$0xff] }
 0x1d6   :  { %7891 = vmatprep.mubr.msk.f32.mxu1 %vm9085_vm1, %v12142_v38  ;;  %8295 = vmatprep.mubr.msk.f32.mxu0 %vm9085_vm1, %v12142_v38 }
 0x1d8   :  { %v9989_v54 = vpop.f32.mrb[8].mxu1  ;;  %v9991_v55 = vpop.f32.mrb[116].mxu0 }
 0x1d9   :  { %v7726_v57 = vpop.f32.mrb[9].mxu1  ;;  %7892 = vmatmul.mubr.msk.f32.gmra.mrb[114].mxu1 %vm1174_vm2, %v1875_v56  ;;  %v7963_v58 = vpop.f32.mrb[117].mxu0  ;;  %8296 = vmatmul.mubr.msk.f32.gmra.mrb[222].mxu0 %vm1174_vm2, %v3468_v53  ;;  %v3477_v53 = vld [vmem:[#allocation2 + $0x17b] sm:$0xff] }
 0x1da   :  { %7894 = vmatprep.mubr.msk.f32.mxu1 %vm9085_vm1, %v12142_v38  ;;  %8298 = vmatprep.mubr.msk.f32.mxu0 %vm9085_vm1, %v12142_v38  ;;  %v1884_v58 = vld [vmem:[#allocation2 + $0x8a] sm:$0xff] }
 0x1dc   :  { %v9999_v60 = vpop.f32.mrb[10].mxu1  ;;  %v10001_v61 = vpop.f32.mrb[118].mxu0 }
 0x1dd   :  { %v7729_v63 = vpop.f32.mrb[11].mxu1  ;;  %7895 = vmatmul.mubr.msk.f32.gmra.mrb[116].mxu1 %vm1174_vm2, %v1876_v62  ;;  %v7966_v1 = vpop.f32.mrb[119].mxu0  ;;  %8299 = vmatmul.mubr.msk.f32.gmra.mrb[224].mxu0 %vm1174_vm2, %v3469_v59 }
 0x1de   :  { %7897 = vmatprep.mubr.msk.f32.mxu1 %vm9085_vm1, %v12142_v38  ;;  %8301 = vmatprep.mubr.msk.f32.mxu0 %vm9085_vm1, %v12142_v38  ;;  %v3478_v63 = vld [vmem:[#allocation2 + $0x183] sm:$0xff] }
 0x1e0   :  { %v10009_v4 = vpop.f32.mrb[12].mxu1  ;;  %v10011_v5 = vpop.f32.mrb[120].mxu0 }
 0x1e1   :  { %v7732_v7 = vpop.f32.mrb[13].mxu1  ;;  %7898 = vmatmul.mubr.msk.f32.gmra.mrb[118].mxu1 %vm1174_vm2, %v1877_v6  ;;  %v7969_v8 = vpop.f32.mrb[121].mxu0  ;;  %8302 = vmatmul.mubr.msk.f32.gmra.mrb[226].mxu0 %vm1174_vm2, %v3470_v3  ;;  %v1885_v6 = vld [vmem:[#allocation2 + $0x92] sm:$0xff] }
 0x1e2   :  { %7900 = vmatprep.mubr.msk.f32.mxu1 %vm9085_vm1, %v12142_v38  ;;  %8304 = vmatprep.mubr.msk.f32.mxu0 %vm9085_vm1, %v12142_v38 }
 0x1e4   :  { %v10019_v9 = vpop.f32.mrb[14].mxu1  ;;  %v10021_v10 = vpop.f32.mrb[122].mxu0 }
 0x1e5   :  { %v7735_v12 = vpop.f32.mrb[15].mxu1  ;;  %7901 = vmatmul.mubr.msk.f32.gmra.mrb[120].mxu1 %vm1174_vm2, %v1878_v11  ;;  %v7972_v13 = vpop.f32.mrb[123].mxu0  ;;  %8305 = vmatmul.mubr.msk.f32.gmra.mrb[228].mxu0 %vm1174_vm2, %v3471_v2  ;;  %v3479_v2 = vld [vmem:[#allocation2 + $0x18b] sm:$0xff] }
 0x1e6   :  { %7903 = vmatprep.mubr.msk.f32.mxu1 %vm9085_vm1, %v12142_v38  ;;  %8307 = vmatprep.mubr.msk.f32.mxu0 %vm9085_vm1, %v12142_v38  ;;  %v1886_v13 = vld [vmem:[#allocation2 + $0x9a] sm:$0xff] }
 0x1e8   :  { %v10029_v15 = vpop.f32.mrb[16].mxu1  ;;  %v10031_v16 = vpop.f32.mrb[124].mxu0 }
 0x1e9   :  { %v7738_v18 = vpop.f32.mrb[17].mxu1  ;;  %7904 = vmatmul.mubr.msk.f32.gmra.mrb[122].mxu1 %vm1174_vm2, %v1879_v17  ;;  %v7975_v19 = vpop.f32.mrb[125].mxu0  ;;  %8308 = vmatmul.mubr.msk.f32.gmra.mrb[230].mxu0 %vm1174_vm2, %v3472_v14 }
 0x1ea   :  { %7906 = vmatprep.mubr.msk.f32.mxu1 %vm9085_vm1, %v12142_v38  ;;  %8310 = vmatprep.mubr.msk.f32.mxu0 %vm9085_vm1, %v12142_v38  ;;  %v3480_v18 = vld [vmem:[#allocation2 + $0x193] sm:$0xff] }
 0x1ec   :  { %v10039_v21 = vpop.f32.mrb[18].mxu1  ;;  %v10041_v22 = vpop.f32.mrb[126].mxu0 }
 0x1ed   :  { %v7741_v0 = vpop.f32.mrb[19].mxu1  ;;  %7907 = vmatmul.mubr.msk.f32.gmra.mrb[124].mxu1 %vm1174_vm2, %v1880_v23  ;;  %v7978_v24 = vpop.f32.mrb[127].mxu0  ;;  %8311 = vmatmul.mubr.msk.f32.gmra.mrb[232].mxu0 %vm1174_vm2, %v3473_v20  ;;  %v1887_v23 = vld [vmem:[#allocation2 + $0xa2] sm:$0xff] }
 0x1ee   :  { %7909 = vmatprep.mubr.msk.f32.mxu1 %vm9085_vm1, %v12142_v38  ;;  %8313 = vmatprep.mubr.msk.f32.mxu0 %vm9085_vm1, %v12142_v38 }
 0x1f0   :  { %v10049_v25 = vpop.f32.mrb[20].mxu1  ;;  %v10051_v26 = vpop.f32.mrb[128].mxu0 }
 0x1f1   :  { %v7744_v30 = vpop.f32.mrb[21].mxu1  ;;  %7910 = vmatmul.mubr.msk.f32.gmra.mrb[126].mxu1 %vm1174_vm2, %v1881_v29  ;;  %v7981_v31 = vpop.f32.mrb[129].mxu0  ;;  %8314 = vmatmul.mubr.msk.f32.gmra.mrb[234].mxu0 %vm1174_vm2, %v3474_v37  ;;  %v3481_v37 = vld [vmem:[#allocation2 + $0x19b] sm:$0xff] }
 0x1f2   :  { %7912 = vmatprep.mubr.msk.f32.mxu1 %vm9085_vm1, %v12142_v38  ;;  %8316 = vmatprep.mubr.msk.f32.mxu0 %vm9085_vm1, %v12142_v38  ;;  %v1888_v31 = vld [vmem:[#allocation2 + $0xaa] sm:$0xff] }
 0x1f4   :  { %v10059_v35 = vpop.f32.mrb[22].mxu1  ;;  %v10061_v39 = vpop.f32.mrb[130].mxu0 }
 0x1f5   :  { %v7747_v41 = vpop.f32.mrb[23].mxu1  ;;  %7913 = vmatmul.mubr.msk.f32.gmra.mrb[128].mxu1 %vm1174_vm2, %v1882_v40  ;;  %v7984_v44 = vpop.f32.mrb[131].mxu0  ;;  %8317 = vmatmul.mubr.msk.f32.gmra.mrb[236].mxu0 %vm1174_vm2, %v3475_v32 }
 0x1f6   :  { %7915 = vmatprep.mubr.msk.f32.mxu1 %vm9085_vm1, %v12142_v38  ;;  %8319 = vmatprep.mubr.msk.f32.mxu0 %vm9085_vm1, %v12142_v38  ;;  %v3482_v41 = vld [vmem:[#allocation2 + $0x1a3] sm:$0xff] }
 0x1f8   :  { %v10069_v46 = vpop.f32.mrb[24].mxu1  ;;  %v10071_v47 = vpop.f32.mrb[132].mxu0 }
 0x1f9   :  { %v7750_v51 = vpop.f32.mrb[25].mxu1  ;;  %7916 = vmatmul.mubr.msk.f32.gmra.mrb[130].mxu1 %vm1174_vm2, %v1883_v50  ;;  %v7987_v52 = vpop.f32.mrb[133].mxu0  ;;  %8320 = vmatmul.mubr.msk.f32.gmra.mrb[238].mxu0 %vm1174_vm2, %v3476_v45  ;;  %v1889_v50 = vld [vmem:[#allocation2 + $0xb2] sm:$0xff] }
 0x1fa   :  { %7918 = vmatprep.mubr.msk.f32.mxu1 %vm9085_vm1, %v12142_v38  ;;  %8322 = vmatprep.mubr.msk.f32.mxu0 %vm9085_vm1, %v12142_v38  ;;  %v6916_v51 = vld [vmem:[%s12136_s3 + $0xb0] sm:$0xff]  ;;  %v6917_v52 = vld [vmem:[%s12136_s3 + $0xb8] sm:$0xff] }
 0x1fc   :  { %v10079_v56 = vpop.f32.mrb[26].mxu1  ;;  %v10081_v57 = vpop.f32.mrb[134].mxu0 }
 0x1fd   :  { %v7753_v59 = vpop.f32.mrb[27].mxu1  ;;  %7919 = vmatmul.mubr.msk.f32.gmra.mrb[132].mxu1 %vm1174_vm2, %v1884_v58  ;;  %v7990_v62 = vpop.f32.mrb[135].mxu0  ;;  %8323 = vmatmul.mubr.msk.f32.gmra.mrb[240].mxu0 %vm1174_vm2, %v3477_v53 }
 0x1fe   :  { %7921 = vmatprep.mubr.msk.f32.mxu1 %vm9085_vm1, %v12142_v38  ;;  %8325 = vmatprep.mubr.msk.f32.mxu0 %vm9085_vm1, %v12142_v38  ;;  %v4094_v59 = vld [vmem:[#allocation2 + $0x1b1] sm:$0xff]  ;;  %v9006_v62 = vpack.c.bf16 %v6917_v52, %v6916_v51 }
 0x200   :  { %v10089_v1 = vpop.f32.mrb[28].mxu1  ;;  %v10091_v3 = vpop.f32.mrb[136].mxu0 }
 0x201   :  { %v7756_v7 = vpop.f32.mrb[29].mxu1  ;;  %7922 = vmatmul.mubr.msk.f32.gmra.mrb[134].mxu1 %vm1174_vm2, %v1885_v6  ;;  %v7993_v8 = vpop.f32.mrb[137].mxu0  ;;  %8326 = vmatmul.mubr.msk.f32.gmra.mrb[242].mxu0 %vm1174_vm2, %v3478_v63 }
 0x202   :  { %7924 = vmatprep.mubr.msk.f32.mxu1 %vm9085_vm1, %v12142_v38  ;;  %8328 = vmatprep.mubr.msk.f32.mxu0 %vm9085_vm1, %v12142_v38  ;;  %v1890_v7 = vld [vmem:[#allocation2 + $0xba] sm:$0xff] }
 0x204   :  { %v10099_v11 = vpop.f32.mrb[30].mxu1  ;;  %v10101_v12 = vpop.f32.mrb[138].mxu0 }
 0x205   :  { %v7759_v14 = vpop.f32.mrb[31].mxu1  ;;  %7925 = vmatmul.mubr.msk.f32.gmra.mrb[136].mxu1 %vm1174_vm2, %v1886_v13  ;;  %v7996_v17 = vpop.f32.mrb[139].mxu0  ;;  %8329 = vmatmul.mubr.msk.f32.gmra.mrb[244].mxu0 %vm1174_vm2, %v3479_v2  ;;  %v4095_v13 = vld [vmem:[#allocation2 + $0x1b9] sm:$0xff] }
 0x206   :  { %7927 = vmatprep.mubr.msk.f32.mxu1 %vm9085_vm1, %v12142_v38  ;;  %8331 = vmatprep.mubr.msk.f32.mxu0 %vm9085_vm1, %v12142_v38 }
 0x208   :  { %v10109_v19 = vpop.f32.mrb[32].mxu1  ;;  %v10111_v20 = vpop.f32.mrb[140].mxu0 }
 0x209   :  { %v7762_v0 = vpop.f32.mrb[33].mxu1  ;;  %7928 = vmatmul.mubr.msk.f32.gmra.mrb[138].mxu1 %vm1174_vm2, %v1887_v23  ;;  %v7999_v24 = vpop.f32.mrb[141].mxu0  ;;  %8332 = vmatmul.mubr.msk.f32.gmra.mrb[246].mxu0 %vm1174_vm2, %v3480_v18  ;;  %v1891_v18 = vld [vmem:[#allocation2 + $0xc2] sm:$0xff] }
 0x20a   :  { %7930 = vmatprep.mubr.msk.f32.mxu1 %vm9085_vm1, %v12142_v38  ;;  %8334 = vmatprep.mubr.msk.f32.mxu0 %vm9085_vm1, %v12142_v38  ;;  %v4096_v24 = vld [vmem:[#allocation2 + $0x1c1] sm:$0xff] }
 0x20c   :  { %v10119_v29 = vpop.f32.mrb[34].mxu1  ;;  %v10121_v30 = vpop.f32.mrb[142].mxu0 }
 0x20d   :  { %v7765_v32 = vpop.f32.mrb[35].mxu1  ;;  %7931 = vmatmul.mubr.msk.f32.gmra.mrb[140].mxu1 %vm1174_vm2, %v1888_v31  ;;  %v8002_v40 = vpop.f32.mrb[143].mxu0  ;;  %8335 = vmatmul.mubr.msk.f32.gmra.mrb[248].mxu0 %vm1174_vm2, %v3481_v37  ;;  %v6727_v37 = vld [vmem:[%s12136_s3 + $0x40] sm:$0xff]  ;;  %v6728_v31 = vld [vmem:[%s12136_s3 + $0x48] sm:$0xff] }
 0x20e   :  { %7933 = vmatprep.mubr.msk.f32.mxu1 %vm9085_vm1, %v12142_v38  ;;  %8337 = vmatprep.mubr.msk.f32.mxu0 %vm9085_vm1, %v12142_v38  ;;  %v8985_v52 = vpack.c.bf16 %v6728_v31, %v6727_v37  ;;  %v6782_v37 = vld [vmem:[%s12136_s3 + $0x68] sm:$0xff] }
 0x210   :  { %v10129_v44 = vpop.f32.mrb[36].mxu1  ;;  %v10131_v45 = vpop.f32.mrb[144].mxu0 }
 0x211   :  { %v7768_v53 = vpop.f32.mrb[37].mxu1  ;;  %7934 = vmatmul.mubr.msk.f32.gmra.mrb[142].mxu1 %vm1174_vm2, %v1889_v50  ;;  %v8005_v58 = vpop.f32.mrb[145].mxu0  ;;  %8338 = vmatmul.mubr.msk.f32.gmra.mrb[250].mxu0 %vm1174_vm2, %v3482_v41  ;;  %v1892_v41 = vld [vmem:[#allocation2 + $0xca] sm:$0xff] }
 0x212   :  { %7936 = vmatprep.mubr.msk.f32.mxu1 %vm9085_vm1, %v12142_v38  ;;  %8423 = vmatprep.mubr.msk.f32.mxu0 %vm9085_vm1, %v12142_v38  ;;  %v4097_v53 = vld [vmem:[#allocation2 + $0x1c9] sm:$0xff] }
 0x214   :  { %v10145_v63 = vpop.f32.mrb[38].mxu1  ;;  %v10147_v6 = vpop.f32.mrb[146].mxu0 }
 0x215   :  { %v7771_v8 = vpop.f32.mrb[39].mxu1  ;;  %7937 = vmatmul.mubr.msk.f32.gmra.mrb[144].mxu1 %vm1174_vm2, %v1890_v7  ;;  %v8008_v2 = vpop.f32.mrb[147].mxu0  ;;  %8424 = vmatmul.mubr.msk.f32.vlgmr.msra.gmra.mrb[252].mxu0 %vm1174_vm2, %v4094_v59  ;;  %v2208_v59 = vld [vmem:[#allocation2 + $0xbb] sm:$0xff] }
 0x216   :  { %7939 = vmatprep.mubr.msk.f32.mxu1 %vm9085_vm1, %v12142_v38  ;;  %8426 = vmatprep.mubr.msk.f32.mxu0 %vm9085_vm1, %v12142_v38  ;;  %v4098_v2 = vld [vmem:[#allocation2 + $0x1d1] sm:$0xff] }
 0x217   :  { %9007 = vmatpush3.bf16.msra.mxu0 %v9006_v62 }
 0x218   :  { %v10155_v14 = vpop.f32.mrb[40].mxu1  ;;  %v10157_v17 = vpop.f32.mrb[148].mxu0  ;;  %9011 = vmatprep.subr.bf16.mxu0 %v12140_v36 }
 0x219   :  { %v7774_v23 = vpop.f32.mrb[41].mxu1  ;;  %7940 = vmatmul.mubr.msk.f32.gmra.mrb[146].mxu1 %vm1174_vm2, %v1891_v18  ;;  %v8011_v0 = vpop.f32.mrb[149].mxu0  ;;  %8427 = vmatmul.mubr.msk.f32.gmra.mrb[254].mxu0 %vm1174_vm2, %v4095_v13  ;;  %v2209_v18 = vld [vmem:[#allocation2 + $0xc3] sm:$0xff] }
 0x21a   :  { %7942 = vmatprep.mubr.msk.f32.mxu1 %vm9085_vm1, %v12142_v38  ;;  %8429 = vmatprep.mubr.msk.f32.mxu0 %vm9085_vm1, %v12142_v38  ;;  %v4099_v0 = vld [vmem:[#allocation2 + $0x1d9] sm:$0xff] }
 0x21c   :  { %v10172_v32 = vpop.f32.mrb[42].mxu1  ;;  %v10174_v40 = vpop.f32.mrb[150].mxu0 }
 0x21d   :  { %v7777_v50 = vpop.f32.mrb[43].mxu1  ;;  %7943 = vmatmul.mubr.msk.f32.gmra.mrb[148].mxu1 %vm1174_vm2, %v1892_v41  ;;  %v8014_v51 = vpop.f32.mrb[151].mxu0  ;;  %8430 = vmatmul.mubr.msk.f32.gmra.mrb[0].mxu0 %vm1174_vm2, %v4096_v24  ;;  %v6781_v24 = vld [vmem:[%s12136_s3 + $0x60] sm:$0xff]  ;;  %v2210_v41 = vld [vmem:[#allocation2 + $0xcb] sm:$0xff] }
 0x21e   :  { %8015 = vmatprep.mubr.msk.f32.mxu1 %vm9085_vm1, %v12142_v38  ;;  %8432 = vmatprep.mubr.msk.f32.mxu0 %vm9085_vm1, %v12142_v38  ;;  %v8991_v51 = vpack.c.bf16 %v6782_v37, %v6781_v24  ;;  %v4102_v37 = vld [vmem:[#allocation2 + $0x1f1] sm:$0xff] }
 0x220   :  { %v10182_v58 = vpop.f32.mrb[44].mxu1  ;;  %v10184_v62 = vpop.f32.mrb[152].mxu0 }
 0x221   :  { %v7780_v7 = vpop.f32.mrb[45].mxu1  ;;  %8016 = vmatmul.mubr.msk.f32.vlgmr.msra.gmra.mrb[150].mxu1 %vm1174_vm2, %v2208_v59  ;;  %8433 = vmatmul.mubr.msk.f32.gmra.mrb[2].mxu0 %vm1174_vm2, %v4097_v53  ;;  %v8109_v8 = vpop.f32.mrb[153].mxu0  ;;  %v2504_v59 = vld [vmem:[#allocation2 + $0xd8] sm:$0xff] }
 0x222   :  { %8986 = vmatpush3.bf16.msra.mxu1 %v8985_v52  ;;  %8018 = vmatprep.mubr.msk.f32.mxu1 %vm9085_vm1, %v12142_v38  ;;  %v4100_v52 = vld [vmem:[#allocation2 + $0x1e1] sm:$0xff] }
 0x223   :  { %8435 = vmatprep.mubr.msk.f32.mxu0 %vm9085_vm1, %v12142_v38  ;;  %8990 = vmatprep.subr.bf16.mxu1 %v12140_v36 }
 0x224   :  { %v10193_v13 = vpop.f32.mrb[46].mxu1  ;;  %v10230_v24 = vpop.f32.mrb[154].mxu0 }
 0x225   :  { %v7783_v23 = vpop.f32.mrb[47].mxu1  ;;  %8019 = vmatmul.mubr.msk.f32.gmra.mrb[152].mxu1 %vm1174_vm2, %v2209_v18  ;;  %8436 = vmatmul.mubr.msk.f32.gmra.mrb[4].mxu0 %vm1174_vm2, %v4098_v2  ;;  %v4101_v2 = vld [vmem:[#allocation2 + $0x1e9] sm:$0xff] }
 0x226   :  { %8021 = vmatprep.mubr.msk.f32.mxu1 %vm9085_vm1, %v12142_v38  ;;  %8438 = vmatprep.mubr.msk.f32.mxu0 %vm9085_vm1, %v12142_v38  ;;  %v2505_v23 = vld [vmem:[#allocation2 + $0xe0] sm:$0xff] }
 0x228   :  { %v10207_v31 = vpop.f32.mrb[48].mxu1 }
 0x229   :  { %v7786_v50 = vpop.f32.mrb[49].mxu1  ;;  %8022 = vmatmul.mubr.msk.f32.gmra.mrb[154].mxu1 %vm1174_vm2, %v2210_v41  ;;  %8439 = vmatmul.mubr.msk.f32.gmra.mrb[6].mxu0 %vm1174_vm2, %v4099_v0  ;;  %v8112_v41 = vpop.f32.mrb[155].mxu0 }
 0x22a   :  { %8028 = vmatprep.mubr.msk.f32.mxu1 %vm9085_vm1, %v12142_v38  ;;  %8441 = vmatprep.mubr.msk.f32.mxu0 %vm9085_vm1, %v12142_v38 }
 0x22c   :  { %v1744_v53 = vpop.f32.mrb[50].mxu1 }
 0x22d   :  { %v10216_v7 = vadd.f32 %v1744_v53, %v9949_v27  ;;  %v7793_v8 = vpop.f32.mrb[51].mxu1  ;;  %8029 = vmatmul.mubr.msk.f32.vlgmr.msra.gmra.mrb[156].mxu1 %vm1174_vm2, %v2504_v59  ;;  %8442 = vmatmul.mubr.msk.f32.gmra.mrb[8].mxu0 %vm1174_vm2, %v4100_v52  ;;  %v10241_v53 = vpop.f32.mrb[156].mxu0  ;;  %v4103_v59 = vld [vmem:[#allocation2 + $0x1f9] sm:$0xff] }
 0x22e   :  { %8992 = vmatpush3.bf16.msra.mxu1 %v8991_v51  ;;  %8031 = vmatprep.mubr.msk.f32.mxu1 %vm9085_vm1, %v12142_v38  ;;  %v2506_v51 = vld [vmem:[#allocation2 + $0xe8] sm:$0xff]  ;;  %12144 = vst [vmem:[#allocation3_spill] sm:$0xff] %v10241_v53  ;;  %v8115_v8 = vpop.f32.mrb[157].mxu0 }
 0x22f   :  { %8444 = vmatprep.mubr.msk.f32.mxu0 %vm9085_vm1, %v12142_v38  ;;  %8996 = vmatprep.subr.bf16.mxu1 %v12140_v36  ;;  %v4736_v53 = vld [vmem:[#allocation2 + $0x1eb] sm:$0xff] }
 0x230   :  { %v1749_v18 = vpop.f32.mrb[52].mxu1 }
 0x231   :  { %v10226_v27 = vadd.f32 %v1749_v18, %v9959_v33  ;;  %v7796_v0 = vpop.f32.mrb[53].mxu1  ;;  %8032 = vmatmul.mubr.msk.f32.gmra.mrb[158].mxu1 %vm1174_vm2, %v2505_v23  ;;  %8445 = vmatmul.mubr.msk.f32.gmra.mrb[10].mxu0 %vm1174_vm2, %v4101_v2  ;;  %v10247_v2 = vpop.f32.mrb[158].mxu0 }
 0x232   :  { %8034 = vmatprep.mubr.msk.f32.mxu1 %vm9085_vm1, %v12142_v38  ;;  %8447 = vmatprep.mubr.msk.f32.mxu0 %vm9085_vm1, %v12142_v38  ;;  %12145 = vst [vmem:[#allocation4_spill] sm:$0xff] %v10247_v2  ;;  %v8118_v23 = vpop.f32.mrb[159].mxu0  ;;  %v4730_v2 = vld [vmem:[#allocation2 + $0x1bb] sm:$0xff] }
 0x234   :  { %v1754_v50 = vpop.f32.mrb[54].mxu1 }
 0x235   :  { %v10237_v33 = vadd.f32 %v1754_v50, %v9969_v42  ;;  %v7799_v52 = vpop.f32.mrb[55].mxu1  ;;  %8035 = vmatmul.mubr.msk.f32.gmra.mrb[160].mxu1 %vm1174_vm2, %v2506_v51  ;;  %8448 = vmatmul.mubr.msk.f32.gmra.mrb[12].mxu0 %vm1174_vm2, %v4102_v37  ;;  %v2507_v42 = vld [vmem:[#allocation2 + $0xf0] sm:$0xff]  ;;  %v10254_v37 = vpop.f32.mrb[160].mxu0  ;;  %v4104_v50 = vld [vmem:[#allocation2 + $0x201] sm:$0xff] }
 0x236   :  { %8037 = vmatprep.mubr.msk.f32.mxu1 %vm9085_vm1, %v12142_v38  ;;  %8450 = vmatprep.mubr.msk.f32.mxu0 %vm9085_vm1, %v12142_v38  ;;  %12146 = vst [vmem:[#allocation5_spill] sm:$0xff] %v10254_v37  ;;  %v8121_v51 = vpop.f32.mrb[161].mxu0  ;;  %v2523_v37 = vld [vmem:[#allocation2 + $0x170] sm:$0xff] }
 0x237   :  { %v10260_v52 = vpop.f32.mrb[162].mxu0 }
 0x238   :  { %v1759_v18 = vpop.f32.mrb[56].mxu1  ;;  %12147 = vst [vmem:[#allocation6_spill] sm:$0xff] %v10260_v52 }
 0x239   :  { %v10250_v0 = vadd.f32 %v1759_v18, %v9979_v48  ;;  %v7802_v41 = vpop.f32.mrb[57].mxu1  ;;  %8038 = vmatmul.mubr.msk.f32.gmra.mrb[162].mxu1 %vm1174_vm2, %v2507_v42  ;;  %8451 = vmatmul.mubr.msk.f32.gmra.mrb[14].mxu0 %vm1174_vm2, %v4103_v59  ;;  %v2508_v48 = vld [vmem:[#allocation2 + $0xf8] sm:$0xff]  ;;  %v8124_v18 = vpop.f32.mrb[163].mxu0 }
 0x23a   :  { %8040 = vmatprep.mubr.msk.f32.mxu1 %vm9085_vm1, %v12142_v38  ;;  %8453 = vmatprep.mubr.msk.f32.mxu0 %vm9085_vm1, %v12142_v38  ;;  %v10267_v59 = vpop.f32.mrb[164].mxu0  ;;  %v4105_v41 = vld [vmem:[#allocation2 + $0x209] sm:$0xff] }
 0x23b   :  { %12148 = vst [vmem:[#allocation7_spill] sm:$0xff] %v10267_v59  ;;  %v8127_v51 = vpop.f32.mrb[165].mxu0 }
 0x23c   :  { %v1764_v8 = vpop.f32.mrb[58].mxu1  ;;  %v10273_v36 = vpop.f32.mrb[166].mxu0  ;;  %v4106_v51 = vld [vmem:[#allocation2 + $0x211] sm:$0xff] }
 0x23d   :  { %v10263_v23 = vadd.f32 %v1764_v8, %v9989_v54  ;;  %v7805_v42 = vpop.f32.mrb[59].mxu1  ;;  %8041 = vmatmul.mubr.msk.f32.gmra.mrb[164].mxu1 %vm1174_vm2, %v2508_v48  ;;  %8454 = vmatmul.mubr.msk.f32.gmra.mrb[16].mxu0 %vm1174_vm2, %v4104_v50  ;;  %12149 = vst [vmem:[#allocation8_spill] sm:$0xff] %v10273_v36  ;;  %v2509_v54 = vld [vmem:[#allocation2 + $0x100] sm:$0xff]  ;;  %v8130_v8 = vpop.f32.mrb[167].mxu0 }
 0x23e   :  { %8043 = vmatprep.mubr.msk.f32.mxu1 %vm9085_vm1, %v12142_v38  ;;  %8456 = vmatprep.mubr.msk.f32.mxu0 %vm9085_vm1, %v12142_v38  ;;  %v2510_v8 = vld [vmem:[#allocation2 + $0x108] sm:$0xff] }
 0x240   :  { %v1769_v18 = vpop.f32.mrb[60].mxu1  ;;  %v10280_v50 = vpop.f32.mrb[168].mxu0 }
 0x241   :  { %v10276_v42 = vadd.f32 %v1769_v18, %v9999_v60  ;;  %v7808_v48 = vpop.f32.mrb[61].mxu1  ;;  %8044 = vmatmul.mubr.msk.f32.gmra.mrb[166].mxu1 %vm1174_vm2, %v2509_v54  ;;  %8457 = vmatmul.mubr.msk.f32.gmra.mrb[18].mxu0 %vm1174_vm2, %v4105_v41  ;;  %12150 = vst [vmem:[#allocation9_spill] sm:$0xff] %v10280_v50  ;;  %v8133_v36 = vpop.f32.mrb[169].mxu0 }
 0x242   :  { %8046 = vmatprep.mubr.msk.f32.mxu1 %vm9085_vm1, %v12142_v38  ;;  %8459 = vmatprep.mubr.msk.f32.mxu0 %vm9085_vm1, %v12142_v38  ;;  %v4107_v36 = vld [vmem:[#allocation2 + $0x219] sm:$0xff]  ;;  %v2511_v48 = vld [vmem:[#allocation2 + $0x110] sm:$0xff] }
 0x244   :  { %v1774_v59 = vpop.f32.mrb[62].mxu1  ;;  %v10286_v52 = vpop.f32.mrb[170].mxu0 }
 0x245   :  { %12151 = vst [vmem:[#allocation10_spill] sm:$0xff] %v10286_v52  ;;  %v10289_v60 = vadd.f32 %v1774_v59, %v10009_v4  ;;  %v7811_v18 = vpop.f32.mrb[63].mxu1  ;;  %8047 = vmatmul.mubr.msk.f32.gmra.mrb[168].mxu1 %vm1174_vm2, %v2510_v8  ;;  %8460 = vmatmul.mubr.msk.f32.gmra.mrb[20].mxu0 %vm1174_vm2, %v4106_v51  ;;  %v8136_v41 = vpop.f32.mrb[171].mxu0  ;;  %v4108_v8 = vld [vmem:[#allocation2 + $0x221] sm:$0xff] }
 0x246   :  { %8049 = vmatprep.mubr.msk.f32.mxu1 %vm9085_vm1, %v12142_v38  ;;  %8462 = vmatprep.mubr.msk.f32.mxu0 %vm9085_vm1, %v12142_v38  ;;  %v2512_v41 = vld [vmem:[#allocation2 + $0x118] sm:$0xff] }
 0x248   :  { %v1779_v54 = vpop.f32.mrb[64].mxu1  ;;  %v10297_v50 = vpop.f32.mrb[172].mxu0 }
 0x249   :  { %12152 = vst [vmem:[#allocation11_spill] sm:$0xff] %v10297_v50  ;;  %v10300_v4 = vadd.f32 %v1779_v54, %v10019_v9  ;;  %v7814_v59 = vpop.f32.mrb[65].mxu1  ;;  %8050 = vmatmul.mubr.msk.f32.gmra.mrb[170].mxu1 %vm1174_vm2, %v2511_v48  ;;  %8463 = vmatmul.mubr.msk.f32.gmra.mrb[22].mxu0 %vm1174_vm2, %v4107_v36  ;;  %v8139_v51 = vpop.f32.mrb[173].mxu0  ;;  %v4109_v48 = vld [vmem:[#allocation2 + $0x229] sm:$0xff] }
 0x24a   :  { %8052 = vmatprep.mubr.msk.f32.mxu1 %vm9085_vm1, %v12142_v38  ;;  %8465 = vmatprep.mubr.msk.f32.mxu0 %vm9085_vm1, %v12142_v38  ;;  %v2513_v51 = vld [vmem:[#allocation2 + $0x120] sm:$0xff] }
 0x24c   :  { %v1784_v18 = vpop.f32.mrb[66].mxu1  ;;  %v10308_v52 = vpop.f32.mrb[174].mxu0 }
 0x24d   :  { %12153 = vst [vmem:[#allocation12_spill] sm:$0xff] %v10308_v52  ;;  %v10311_v9 = vadd.f32 %v1784_v18, %v10029_v15  ;;  %v7817_v54 = vpop.f32.mrb[67].mxu1  ;;  %8053 = vmatmul.mubr.msk.f32.gmra.mrb[172].mxu1 %vm1174_vm2, %v2512_v41  ;;  %8466 = vmatmul.mubr.msk.f32.gmra.mrb[24].mxu0 %vm1174_vm2, %v4108_v8  ;;  %v8142_v36 = vpop.f32.mrb[175].mxu0  ;;  %v4110_v41 = vld [vmem:[#allocation2 + $0x231] sm:$0xff] }
 0x24e   :  { %8055 = vmatprep.mubr.msk.f32.mxu1 %vm9085_vm1, %v12142_v38  ;;  %8468 = vmatprep.mubr.msk.f32.mxu0 %vm9085_vm1, %v12142_v38  ;;  %v2514_v36 = vld [vmem:[#allocation2 + $0x128] sm:$0xff] }
 0x250   :  { %v1789_v59 = vpop.f32.mrb[68].mxu1  ;;  %v10319_v50 = vpop.f32.mrb[176].mxu0 }
 0x251   :  { %12154 = vst [vmem:[#allocation13_spill] sm:$0xff] %v10319_v50  ;;  %v10322_v15 = vadd.f32 %v1789_v59, %v10039_v21  ;;  %v7820_v18 = vpop.f32.mrb[69].mxu1  ;;  %8056 = vmatmul.mubr.msk.f32.gmra.mrb[174].mxu1 %vm1174_vm2, %v2513_v51  ;;  %8469 = vmatmul.mubr.msk.f32.gmra.mrb[26].mxu0 %vm1174_vm2, %v4109_v48  ;;  %v8145_v8 = vpop.f32.mrb[177].mxu0  ;;  %v4111_v51 = vld [vmem:[#allocation2 + $0x239] sm:$0xff] }
 0x252   :  { %8058 = vmatprep.mubr.msk.f32.mxu1 %vm9085_vm1, %v12142_v38  ;;  %8471 = vmatprep.mubr.msk.f32.mxu0 %vm9085_vm1, %v12142_v38  ;;  %v2515_v8 = vld [vmem:[#allocation2 + $0x130] sm:$0xff] }
 0x254   :  { %v1794_v54 = vpop.f32.mrb[70].mxu1  ;;  %v10330_v52 = vpop.f32.mrb[178].mxu0 }
 0x255   :  { %12155 = vst [vmem:[#allocation14_spill] sm:$0xff] %v10330_v52  ;;  %v10333_v21 = vadd.f32 %v1794_v54, %v10049_v25  ;;  %v7823_v59 = vpop.f32.mrb[71].mxu1  ;;  %8059 = vmatmul.mubr.msk.f32.gmra.mrb[176].mxu1 %vm1174_vm2, %v2514_v36  ;;  %8472 = vmatmul.mubr.msk.f32.gmra.mrb[28].mxu0 %vm1174_vm2, %v4110_v41  ;;  %v8148_v48 = vpop.f32.mrb[179].mxu0  ;;  %v4112_v36 = vld [vmem:[#allocation2 + $0x241] sm:$0xff] }
 0x256   :  { %8061 = vmatprep.mubr.msk.f32.mxu1 %vm9085_vm1, %v12142_v38  ;;  %8474 = vmatprep.mubr.msk.f32.mxu0 %vm9085_vm1, %v12142_v38  ;;  %v2516_v48 = vld [vmem:[#allocation2 + $0x138] sm:$0xff] }
 0x258   :  { %v1799_v18 = vpop.f32.mrb[72].mxu1  ;;  %v10341_v50 = vpop.f32.mrb[180].mxu0 }
 0x259   :  { %12156 = vst [vmem:[#allocation15_spill] sm:$0xff] %v10341_v50  ;;  %v10344_v25 = vadd.f32 %v1799_v18, %v10059_v35  ;;  %v7826_v54 = vpop.f32.mrb[73].mxu1  ;;  %8062 = vmatmul.mubr.msk.f32.gmra.mrb[178].mxu1 %vm1174_vm2, %v2515_v8  ;;  %8475 = vmatmul.mubr.msk.f32.gmra.mrb[30].mxu0 %vm1174_vm2, %v4111_v51  ;;  %v8151_v41 = vpop.f32.mrb[181].mxu0  ;;  %v4113_v8 = vld [vmem:[#allocation2 + $0x249] sm:$0xff] }
 0x25a   :  { %8064 = vmatprep.mubr.msk.f32.mxu1 %vm9085_vm1, %v12142_v38  ;;  %8477 = vmatprep.mubr.msk.f32.mxu0 %vm9085_vm1, %v12142_v38  ;;  %v2517_v41 = vld [vmem:[#allocation2 + $0x140] sm:$0xff] }
 0x25c   :  { %v1804_v59 = vpop.f32.mrb[74].mxu1  ;;  %v10352_v52 = vpop.f32.mrb[182].mxu0 }
 0x25d   :  { %12157 = vst [vmem:[#allocation16_spill] sm:$0xff] %v10352_v52  ;;  %v10355_v35 = vadd.f32 %v1804_v59, %v10069_v46  ;;  %v7829_v18 = vpop.f32.mrb[75].mxu1  ;;  %8065 = vmatmul.mubr.msk.f32.gmra.mrb[180].mxu1 %vm1174_vm2, %v2516_v48  ;;  %8478 = vmatmul.mubr.msk.f32.gmra.mrb[32].mxu0 %vm1174_vm2, %v4112_v36  ;;  %v8154_v51 = vpop.f32.mrb[183].mxu0  ;;  %v4114_v48 = vld [vmem:[#allocation2 + $0x251] sm:$0xff] }
 0x25e   :  { %8067 = vmatprep.mubr.msk.f32.mxu1 %vm9085_vm1, %v12142_v38  ;;  %8480 = vmatprep.mubr.msk.f32.mxu0 %vm9085_vm1, %v12142_v38  ;;  %v2518_v51 = vld [vmem:[#allocation2 + $0x148] sm:$0xff] }
 0x260   :  { %v1809_v54 = vpop.f32.mrb[76].mxu1  ;;  %v10363_v50 = vpop.f32.mrb[184].mxu0 }
 0x261   :  { %12158 = vst [vmem:[#allocation17_spill] sm:$0xff] %v10363_v50  ;;  %v10366_v46 = vadd.f32 %v1809_v54, %v10079_v56  ;;  %v7832_v59 = vpop.f32.mrb[77].mxu1  ;;  %8068 = vmatmul.mubr.msk.f32.gmra.mrb[182].mxu1 %vm1174_vm2, %v2517_v41  ;;  %8481 = vmatmul.mubr.msk.f32.gmra.mrb[34].mxu0 %vm1174_vm2, %v4113_v8  ;;  %v8157_v36 = vpop.f32.mrb[185].mxu0  ;;  %v4115_v41 = vld [vmem:[#allocation2 + $0x259] sm:$0xff] }
 0x262   :  { %8070 = vmatprep.mubr.msk.f32.mxu1 %vm9085_vm1, %v12142_v38  ;;  %8483 = vmatprep.mubr.msk.f32.mxu0 %vm9085_vm1, %v12142_v38  ;;  %v2519_v36 = vld [vmem:[#allocation2 + $0x150] sm:$0xff] }
 0x264   :  { %v1814_v18 = vpop.f32.mrb[78].mxu1  ;;  %v10374_v52 = vpop.f32.mrb[186].mxu0 }
 0x265   :  { %12159 = vst [vmem:[#allocation18_spill] sm:$0xff] %v10374_v52  ;;  %v10377_v56 = vadd.f32 %v1814_v18, %v10089_v1  ;;  %v7835_v54 = vpop.f32.mrb[79].mxu1  ;;  %8071 = vmatmul.mubr.msk.f32.gmra.mrb[184].mxu1 %vm1174_vm2, %v2518_v51  ;;  %8484 = vmatmul.mubr.msk.f32.gmra.mrb[36].mxu0 %vm1174_vm2, %v4114_v48  ;;  %v8160_v8 = vpop.f32.mrb[187].mxu0  ;;  %v4116_v51 = vld [vmem:[#allocation2 + $0x261] sm:$0xff] }
 0x266   :  { %8073 = vmatprep.mubr.msk.f32.mxu1 %vm9085_vm1, %v12142_v38  ;;  %8486 = vmatprep.mubr.msk.f32.mxu0 %vm9085_vm1, %v12142_v38  ;;  %v2520_v8 = vld [vmem:[#allocation2 + $0x158] sm:$0xff] }
 0x268   :  { %v1819_v59 = vpop.f32.mrb[80].mxu1  ;;  %v10385_v50 = vpop.f32.mrb[188].mxu0 }
 0x269   :  { %12160 = vst [vmem:[#allocation19_spill] sm:$0xff] %v10385_v50  ;;  %v10388_v1 = vadd.f32 %v1819_v59, %v10099_v11  ;;  %v7838_v18 = vpop.f32.mrb[81].mxu1  ;;  %8074 = vmatmul.mubr.msk.f32.gmra.mrb[186].mxu1 %vm1174_vm2, %v2519_v36  ;;  %8487 = vmatmul.mubr.msk.f32.gmra.mrb[38].mxu0 %vm1174_vm2, %v4115_v41  ;;  %v8163_v48 = vpop.f32.mrb[189].mxu0  ;;  %v4117_v36 = vld [vmem:[#allocation2 + $0x269] sm:$0xff] }
 0x26a   :  { %8076 = vmatprep.mubr.msk.f32.mxu1 %vm9085_vm1, %v12142_v38  ;;  %8489 = vmatprep.mubr.msk.f32.mxu0 %vm9085_vm1, %v12142_v38  ;;  %v2521_v48 = vld [vmem:[#allocation2 + $0x160] sm:$0xff] }
 0x26c   :  { %v1824_v54 = vpop.f32.mrb[82].mxu1  ;;  %v10396_v52 = vpop.f32.mrb[190].mxu0 }
 0x26d   :  { %12161 = vst [vmem:[#allocation20_spill] sm:$0xff] %v10396_v52  ;;  %v10399_v11 = vadd.f32 %v1824_v54, %v10109_v19  ;;  %v7841_v59 = vpop.f32.mrb[83].mxu1  ;;  %8077 = vmatmul.mubr.msk.f32.gmra.mrb[188].mxu1 %vm1174_vm2, %v2520_v8  ;;  %8490 = vmatmul.mubr.msk.f32.gmra.mrb[40].mxu0 %vm1174_vm2, %v4116_v51  ;;  %v8166_v41 = vpop.f32.mrb[191].mxu0  ;;  %v4118_v8 = vld [vmem:[#allocation2 + $0x271] sm:$0xff] }
 0x26e   :  { %8079 = vmatprep.mubr.msk.f32.mxu1 %vm9085_vm1, %v12142_v38  ;;  %8492 = vmatprep.mubr.msk.f32.mxu0 %vm9085_vm1, %v12142_v38  ;;  %v2522_v41 = vld [vmem:[#allocation2 + $0x168] sm:$0xff] }
 0x270   :  { %v1829_v18 = vpop.f32.mrb[84].mxu1  ;;  %v10407_v50 = vpop.f32.mrb[192].mxu0 }
 0x271   :  { %12162 = vst [vmem:[#allocation21_spill] sm:$0xff] %v10407_v50  ;;  %v10410_v19 = vadd.f32 %v1829_v18, %v10119_v29  ;;  %v7844_v54 = vpop.f32.mrb[85].mxu1  ;;  %8080 = vmatmul.mubr.msk.f32.gmra.mrb[190].mxu1 %vm1174_vm2, %v2521_v48  ;;  %8493 = vmatmul.mubr.msk.f32.gmra.mrb[42].mxu0 %vm1174_vm2, %v4117_v36  ;;  %v8169_v51 = vpop.f32.mrb[193].mxu0  ;;  %v6970_v29 = vld [vmem:[%s12136_s3 + $0xd0] sm:$0xff]  ;;  %v6971_v18 = vld [vmem:[%s12136_s3 + $0xd8] sm:$0xff] }
 0x272   :  { %8082 = vmatprep.mubr.msk.f32.mxu1 %vm9085_vm1, %v12142_v38  ;;  %8495 = vmatprep.mubr.msk.f32.mxu0 %vm9085_vm1, %v12142_v38  ;;  %v9012_v50 = vpack.c.bf16 %v6971_v18, %v6970_v29  ;;  %v2524_v29 = vld [vmem:[#allocation2 + $0x178] sm:$0xff]  ;;  %v4731_v18 = vld [vmem:[#allocation2 + $0x1c3] sm:$0xff] }
 0x274   :  { %v1834_v59 = vpop.f32.mrb[86].mxu1  ;;  %v10424_v48 = vpop.f32.mrb[194].mxu0 }
 0x275   :  { %12163 = vst [vmem:[#allocation22_spill] sm:$0xff] %v10424_v48  ;;  %v10427_v36 = vadd.f32 %v1834_v59, %v10129_v44  ;;  %v7847_v54 = vpop.f32.mrb[87].mxu1  ;;  %8083 = vmatmul.mubr.msk.f32.gmra.mrb[192].mxu1 %vm1174_vm2, %v2522_v41  ;;  %8496 = vmatmul.mubr.msk.f32.gmra.mrb[44].mxu0 %vm1174_vm2, %v4118_v8  ;;  %v8172_v51 = vpop.f32.mrb[195].mxu0 }
 0x276   :  { %8085 = vmatprep.mubr.msk.f32.mxu1 %vm9085_vm1, %v12142_v38  ;;  %8581 = vmatprep.mubr.msk.f32.mxu0 %vm9085_vm1, %v12142_v38  ;;  %v2525_v51 = vld [vmem:[#allocation2 + $0x180] sm:$0xff] }
 0x278   :  { %v1839_v52 = vpop.f32.mrb[88].mxu1  ;;  %v10435_v48 = vpop.f32.mrb[196].mxu0 }
 0x279   :  { %12164 = vst [vmem:[#allocation23_spill] sm:$0xff] %v10435_v48  ;;  %v10438_v44 = vadd.f32 %v1839_v52, %v10145_v63  ;;  %v7850_v59 = vpop.f32.mrb[89].mxu1  ;;  %8086 = vmatmul.mubr.msk.f32.gmra.mrb[194].mxu1 %vm1174_vm2, %v2523_v37  ;;  %8582 = vmatmul.mubr.msk.f32.vlgmr.msra.gmra.mrb[46].mxu0 %vm1174_vm2, %v4730_v2  ;;  %v8175_v8 = vpop.f32.mrb[197].mxu0  ;;  %v12166_v63 = vmov 0.0|0.0   ;;  %v3140_v48 = vld [vmem:[#allocation2 + $0xe2] sm:$0xff] }
 0x27a   :  { %8088 = vmatprep.mubr.msk.f32.mxu1 %vm9085_vm1, %v12142_v38  ;;  %8584 = vmatprep.mubr.msk.f32.mxu0 %vm9085_vm1, %v12142_v38  ;;  %v4732_v59 = vld [vmem:[#allocation2 + $0x1cb] sm:$0xff] }
 0x27b   :  { %9013 = vmatpush3.bf16.msra.mxu0 %v9012_v50 }
 0x27c   :  { %v1844_v41 = vpop.f32.mrb[90].mxu1  ;;  %v10446_v54 = vpop.f32.mrb[198].mxu0  ;;  %9017 = vmatprep.subr.bf16.mxu0 %v12166_v63 }
 0x27d   :  { %12165 = vst [vmem:[#allocation24_spill] sm:$0xff] %v10446_v54  ;;  %v10450_v52 = vadd.f32 %v1844_v41, %v10155_v14  ;;  %v7853_v37 = vpop.f32.mrb[91].mxu1  ;;  %8089 = vmatmul.mubr.msk.f32.gmra.mrb[196].mxu1 %vm1174_vm2, %v2524_v29  ;;  %8585 = vmatmul.mubr.msk.f32.gmra.mrb[48].mxu0 %vm1174_vm2, %v4731_v18  ;;  %v8178_v2 = vpop.f32.mrb[199].mxu0 }
 0x27e   :  { %8091 = vmatprep.mubr.msk.f32.mxu1 %vm9085_vm1, %v12142_v38  ;;  %8587 = vmatprep.mubr.msk.f32.mxu0 %vm9085_vm1, %v12142_v38  ;;  %v2526_v37 = vld [vmem:[#allocation2 + $0x188] sm:$0xff]  ;;  %v4733_v2 = vld [vmem:[#allocation2 + $0x1d3] sm:$0xff] }
 0x280   :  { %v1849_v50 = vpop.f32.mrb[92].mxu1  ;;  %v10458_v8 = vpop.f32.mrb[200].mxu0 }
 0x281   :  { %12167 = vst [vmem:[#allocation25_spill] sm:$0xff] %v10458_v8  ;;  %v10461_v14 = vadd.f32 %v1849_v50, %v10172_v32  ;;  %v7856_v41 = vpop.f32.mrb[93].mxu1  ;;  %8092 = vmatmul.mubr.msk.f32.gmra.mrb[198].mxu1 %vm1174_vm2, %v2525_v51  ;;  %8588 = vmatmul.mubr.msk.f32.gmra.mrb[50].mxu0 %vm1174_vm2, %v4732_v59  ;;  %v8181_v29 = vpop.f32.mrb[201].mxu0 }
 0x282   :  { %8094 = vmatprep.mubr.msk.f32.mxu1 %vm9085_vm1, %v12142_v38  ;;  %8590 = vmatprep.mubr.msk.f32.mxu0 %vm9085_vm1, %v12142_v38  ;;  %v2527_v41 = vld [vmem:[#allocation2 + $0x190] sm:$0xff]  ;;  %v4734_v29 = vld [vmem:[#allocation2 + $0x1db] sm:$0xff] }
 0x284   :  { %v1854_v18 = vpop.f32.mrb[94].mxu1  ;;  %v10469_v54 = vpop.f32.mrb[202].mxu0 }
 0x285   :  { %12168 = vst [vmem:[#allocation26_spill] sm:$0xff] %v10469_v54  ;;  %v10472_v32 = vadd.f32 %v1854_v18, %v10182_v58  ;;  %v7859_v50 = vpop.f32.mrb[95].mxu1  ;;  %8095 = vmatmul.mubr.msk.f32.gmra.mrb[200].mxu1 %vm1174_vm2, %v2526_v37  ;;  %8591 = vmatmul.mubr.msk.f32.gmra.mrb[52].mxu0 %vm1174_vm2, %v4733_v2  ;;  %v8267_v51 = vpop.f32.mrb[203].mxu0  ;;  %v6835_v2 = vld [vmem:[%s12136_s3 + $0x80] sm:$0xff] }
 0x286   :  { %8097 = vmatprep.mubr.msk.f32.mxu1 %vm9085_vm1, %v12142_v38  ;;  %8593 = vmatprep.mubr.msk.f32.mxu0 %vm9085_vm1, %v12142_v38  ;;  %v2528_v51 = vld [vmem:[#allocation2 + $0x198] sm:$0xff] }
 0x288   :  { %v1859_v59 = vpop.f32.mrb[96].mxu1  ;;  %v10480_v8 = vpop.f32.mrb[204].mxu0 }
 0x289   :  { %12169 = vst [vmem:[#allocation27_spill] sm:$0xff] %v10480_v8  ;;  %v10483_v58 = vadd.f32 %v1859_v59, %v10193_v13  ;;  %v7862_v18 = vpop.f32.mrb[97].mxu1  ;;  %8098 = vmatmul.mubr.msk.f32.gmra.mrb[202].mxu1 %vm1174_vm2, %v2527_v41  ;;  %8594 = vmatmul.mubr.msk.f32.gmra.mrb[54].mxu0 %vm1174_vm2, %v4734_v29  ;;  %v8270_v37 = vpop.f32.mrb[205].mxu0  ;;  %v6836_v13 = vld [vmem:[%s12136_s3 + $0x88] sm:$0xff] }
 0x28a   :  { %8100 = vmatprep.mubr.msk.f32.mxu1 %vm9085_vm1, %v12142_v38  ;;  %8596 = vmatprep.mubr.msk.f32.mxu0 %vm9085_vm1, %v12142_v38  ;;  %v4735_v59 = vld [vmem:[#allocation2 + $0x1e3] sm:$0xff]  ;;  %v8997_v8 = vpack.c.bf16 %v6836_v13, %v6835_v2 }
 0x28c   :  { %v1864_v50 = vpop.f32.mrb[98].mxu1  ;;  %v10497_v41 = vpop.f32.mrb[206].mxu0 }
 0x28d   :  { %12170 = vst [vmem:[#allocation28_spill] sm:$0xff] %v10497_v41  ;;  %v10500_v29 = vadd.f32 %v1864_v50, %v10207_v31  ;;  %v7865_v18 = vpop.f32.mrb[99].mxu1  ;;  %8101 = vmatmul.mubr.msk.f32.gmra.mrb[204].mxu1 %vm1174_vm2, %v2528_v51  ;;  %8597 = vmatmul.mubr.msk.f32.gmra.mrb[56].mxu0 %vm1174_vm2, %v4735_v59  ;;  %v8273_v37 = vpop.f32.mrb[207].mxu0 }
 0x28e   :  { %8186 = vmatprep.mubr.msk.f32.mxu1 %vm9085_vm1, %v12142_v38  ;;  %8599 = vmatprep.mubr.msk.f32.mxu0 %vm9085_vm1, %v12142_v38  ;;  %v3142_v37 = vld [vmem:[#allocation2 + $0xf2] sm:$0xff] }
 0x290   :  { %v2037_v54 = vpop.f32.mrb[100].mxu1  ;;  %v10508_v41 = vpop.f32.mrb[208].mxu0 }
 0x291   :  { %v2161_v31 = vadd.f32 %v2037_v54, %v10216_v7  ;;  %v7872_v50 = vpop.f32.mrb[101].mxu1  ;;  %8187 = vmatmul.mubr.msk.f32.vlgmr.msra.gmra.mrb[206].mxu1 %vm1174_vm2, %v3140_v48  ;;  %8600 = vmatmul.mubr.msk.f32.gmra.mrb[58].mxu0 %vm1174_vm2, %v4736_v53  ;;  %v8276_v51 = vpop.f32.mrb[209].mxu0  ;;  %v3141_v7 = vld [vmem:[#allocation2 + $0xea] sm:$0xff]  ;;  %v4737_v54 = vld [vmem:[#allocation2 + $0x1f3] sm:$0xff] }
 0x292   :  { %8998 = vmatpush3.bf16.msra.mxu1 %v8997_v8  ;;  %8189 = vmatprep.mubr.msk.f32.mxu1 %vm9085_vm1, %v12142_v38 }
 0x293   :  { %8602 = vmatprep.mubr.msk.f32.mxu0 %vm9085_vm1, %v12142_v38  ;;  %9002 = vmatprep.subr.bf16.mxu1 %v12166_v63  ;;  %v10519_v2 = vadd.f32 %v9951_v28, %v2161_v31  ;;  %v4738_v31 = vld [vmem:[#allocation2 + $0x1fb] sm:$0xff] }
 0x294   :  { %v2042_v13 = vpop.f32.mrb[102].mxu1  ;;  %v10521_v59 = vpop.f32.mrb[210].mxu0 }
 0x295   :  { %v2162_v53 = vadd.f32 %v2042_v13, %v10226_v27  ;;  %v7875_v48 = vpop.f32.mrb[103].mxu1  ;;  %8190 = vmatmul.mubr.msk.f32.gmra.mrb[208].mxu1 %vm1174_vm2, %v3141_v7  ;;  %8603 = vmatmul.mubr.msk.f32.gmra.mrb[60].mxu0 %vm1174_vm2, %v4737_v54  ;;  %v8279_v8 = vpop.f32.mrb[211].mxu0  ;;  %v3143_v54 = vld [vmem:[#allocation2 + $0xfa] sm:$0xff] }
 0x296   :  { %8192 = vmatprep.mubr.msk.f32.mxu1 %vm9085_vm1, %v12142_v38  ;;  %8605 = vmatprep.mubr.msk.f32.mxu0 %vm9085_vm1, %v12142_v38 }
 0x297   :  { %v10531_v28 = vadd.f32 %v9961_v34, %v2162_v53  ;;  %v4739_v53 = vld [vmem:[#allocation2 + $0x203] sm:$0xff] }
 0x298   :  { %v2047_v18 = vpop.f32.mrb[104].mxu1  ;;  %v10533_v50 = vpop.f32.mrb[212].mxu0 }
 0x299   :  { %v2163_v27 = vadd.f32 %v2047_v18, %v10237_v33  ;;  %v7878_v51 = vpop.f32.mrb[105].mxu1  ;;  %8193 = vmatmul.mubr.msk.f32.gmra.mrb[210].mxu1 %vm1174_vm2, %v3142_v37  ;;  %8606 = vmatmul.mubr.msk.f32.gmra.mrb[62].mxu0 %vm1174_vm2, %v4738_v31  ;;  %v8282_v13 = vpop.f32.mrb[213].mxu0  ;;  %v3144_v31 = vld [vmem:[#allocation2 + $0x102] sm:$0xff] }
 0x29a   :  { %8195 = vmatprep.mubr.msk.f32.mxu1 %vm9085_vm1, %v12142_v38  ;;  %8608 = vmatprep.mubr.msk.f32.mxu0 %vm9085_vm1, %v12142_v38 }
 0x29b   :  { %v10543_v34 = vadd.f32 %v9971_v43, %v2163_v27  ;;  %v4740_v27 = vld [vmem:[#allocation2 + $0x20b] sm:$0xff] }
 0x29c   :  { %v2052_v7 = vpop.f32.mrb[106].mxu1  ;;  %v10545_v48 = vpop.f32.mrb[214].mxu0 }
 0x29d   :  { %v2164_v33 = vadd.f32 %v2052_v7, %v10250_v0  ;;  %v7881_v8 = vpop.f32.mrb[107].mxu1  ;;  %8196 = vmatmul.mubr.msk.f32.gmra.mrb[212].mxu1 %vm1174_vm2, %v3143_v54  ;;  %8609 = vmatmul.mubr.msk.f32.gmra.mrb[64].mxu0 %vm1174_vm2, %v4739_v53  ;;  %v8285_v18 = vpop.f32.mrb[215].mxu0  ;;  %v3145_v53 = vld [vmem:[#allocation2 + $0x10a] sm:$0xff] }
 0x29e   :  { %8198 = vmatprep.mubr.msk.f32.mxu1 %vm9085_vm1, %v12142_v38  ;;  %8611 = vmatprep.mubr.msk.f32.mxu0 %vm9085_vm1, %v12142_v38 }
 0x29f   :  { %v10555_v43 = vadd.f32 %v9981_v49, %v2164_v33  ;;  %v4741_v33 = vld [vmem:[#allocation2 + $0x213] sm:$0xff] }
 0x2a0   :  { %v2057_v37 = vpop.f32.mrb[108].mxu1  ;;  %v10557_v51 = vpop.f32.mrb[216].mxu0 }
 0x2a1   :  { %v2165_v0 = vadd.f32 %v2057_v37, %v10263_v23  ;;  %v7884_v13 = vpop.f32.mrb[109].mxu1  ;;  %8199 = vmatmul.mubr.msk.f32.gmra.mrb[214].mxu1 %vm1174_vm2, %v3144_v31  ;;  %8612 = vmatmul.mubr.msk.f32.gmra.mrb[66].mxu0 %vm1174_vm2, %v4740_v27  ;;  %v8288_v7 = vpop.f32.mrb[217].mxu0  ;;  %v3146_v27 = vld [vmem:[#allocation2 + $0x112] sm:$0xff] }
 0x2a2   :  { %8201 = vmatprep.mubr.msk.f32.mxu1 %vm9085_vm1, %v12142_v38  ;;  %8614 = vmatprep.mubr.msk.f32.mxu0 %vm9085_vm1, %v12142_v38 }
 0x2a3   :  { %v10567_v49 = vadd.f32 %v9991_v55, %v2165_v0  ;;  %v4742_v0 = vld [vmem:[#allocation2 + $0x21b] sm:$0xff] }
 0x2a4   :  { %v2062_v54 = vpop.f32.mrb[110].mxu1  ;;  %v10569_v8 = vpop.f32.mrb[218].mxu0 }
 0x2a5   :  { %v2166_v23 = vadd.f32 %v2062_v54, %v10276_v42  ;;  %v7887_v18 = vpop.f32.mrb[111].mxu1  ;;  %8202 = vmatmul.mubr.msk.f32.gmra.mrb[216].mxu1 %vm1174_vm2, %v3145_v53  ;;  %8615 = vmatmul.mubr.msk.f32.gmra.mrb[68].mxu0 %vm1174_vm2, %v4741_v33  ;;  %v8291_v37 = vpop.f32.mrb[219].mxu0  ;;  %v3147_v33 = vld [vmem:[#allocation2 + $0x11a] sm:$0xff] }
 0x2a6   :  { %8204 = vmatprep.mubr.msk.f32.mxu1 %vm9085_vm1, %v12142_v38  ;;  %8617 = vmatprep.mubr.msk.f32.mxu0 %vm9085_vm1, %v12142_v38 }
 0x2a7   :  { %v10579_v55 = vadd.f32 %v10001_v61, %v2166_v23  ;;  %v4743_v23 = vld [vmem:[#allocation2 + $0x223] sm:$0xff] }
 0x2a8   :  { %v2067_v31 = vpop.f32.mrb[112].mxu1  ;;  %v10581_v13 = vpop.f32.mrb[220].mxu0 }
 0x2a9   :  { %v2167_v42 = vadd.f32 %v2067_v31, %v10289_v60  ;;  %v7890_v7 = vpop.f32.mrb[113].mxu1  ;;  %8205 = vmatmul.mubr.msk.f32.gmra.mrb[218].mxu1 %vm1174_vm2, %v3146_v27  ;;  %8618 = vmatmul.mubr.msk.f32.gmra.mrb[70].mxu0 %vm1174_vm2, %v4742_v0  ;;  %v8294_v54 = vpop.f32.mrb[221].mxu0  ;;  %v3148_v0 = vld [vmem:[#allocation2 + $0x122] sm:$0xff] }
 0x2aa   :  { %8207 = vmatprep.mubr.msk.f32.mxu1 %vm9085_vm1, %v12142_v38  ;;  %8620 = vmatprep.mubr.msk.f32.mxu0 %vm9085_vm1, %v12142_v38 }
 0x2ab   :  { %v10591_v61 = vadd.f32 %v10011_v5, %v2167_v42  ;;  %v4744_v42 = vld [vmem:[#allocation2 + $0x22b] sm:$0xff] }
 0x2ac   :  { %v2072_v53 = vpop.f32.mrb[114].mxu1  ;;  %v10593_v18 = vpop.f32.mrb[222].mxu0 }
 0x2ad   :  { %v2168_v60 = vadd.f32 %v2072_v53, %v10300_v4  ;;  %v7893_v37 = vpop.f32.mrb[115].mxu1  ;;  %8208 = vmatmul.mubr.msk.f32.gmra.mrb[220].mxu1 %vm1174_vm2, %v3147_v33  ;;  %8621 = vmatmul.mubr.msk.f32.gmra.mrb[72].mxu0 %vm1174_vm2, %v4743_v23  ;;  %v8297_v31 = vpop.f32.mrb[223].mxu0  ;;  %v3149_v23 = vld [vmem:[#allocation2 + $0x12a] sm:$0xff] }
 0x2ae   :  { %8210 = vmatprep.mubr.msk.f32.mxu1 %vm9085_vm1, %v12142_v38  ;;  %8623 = vmatprep.mubr.msk.f32.mxu0 %vm9085_vm1, %v12142_v38 }
 0x2af   :  { %v10603_v5 = vadd.f32 %v10021_v10, %v2168_v60  ;;  %v4745_v60 = vld [vmem:[#allocation2 + $0x233] sm:$0xff] }
 0x2b0   :  { %v2077_v27 = vpop.f32.mrb[116].mxu1  ;;  %v10605_v7 = vpop.f32.mrb[224].mxu0 }
 0x2b1   :  { %v2169_v4 = vadd.f32 %v2077_v27, %v10311_v9  ;;  %v7896_v54 = vpop.f32.mrb[117].mxu1  ;;  %8211 = vmatmul.mubr.msk.f32.gmra.mrb[222].mxu1 %vm1174_vm2, %v3148_v0  ;;  %8624 = vmatmul.mubr.msk.f32.gmra.mrb[74].mxu0 %vm1174_vm2, %v4744_v42  ;;  %v8300_v53 = vpop.f32.mrb[225].mxu0  ;;  %v3150_v42 = vld [vmem:[#allocation2 + $0x132] sm:$0xff] }
 0x2b2   :  { %8213 = vmatprep.mubr.msk.f32.mxu1 %vm9085_vm1, %v12142_v38  ;;  %8626 = vmatprep.mubr.msk.f32.mxu0 %vm9085_vm1, %v12142_v38 }
 0x2b3   :  { %v10615_v10 = vadd.f32 %v10031_v16, %v2169_v4  ;;  %v4746_v4 = vld [vmem:[#allocation2 + $0x23b] sm:$0xff] }
 0x2b4   :  { %v2082_v33 = vpop.f32.mrb[118].mxu1  ;;  %v10617_v37 = vpop.f32.mrb[226].mxu0 }
 0x2b5   :  { %v2170_v9 = vadd.f32 %v2082_v33, %v10322_v15  ;;  %v7899_v31 = vpop.f32.mrb[119].mxu1  ;;  %8214 = vmatmul.mubr.msk.f32.gmra.mrb[224].mxu1 %vm1174_vm2, %v3149_v23  ;;  %8627 = vmatmul.mubr.msk.f32.gmra.mrb[76].mxu0 %vm1174_vm2, %v4745_v60  ;;  %v8303_v27 = vpop.f32.mrb[227].mxu0  ;;  %v3151_v60 = vld [vmem:[#allocation2 + $0x13a] sm:$0xff] }
 0x2b6   :  { %8216 = vmatprep.mubr.msk.f32.mxu1 %vm9085_vm1, %v12142_v38  ;;  %8629 = vmatprep.mubr.msk.f32.mxu0 %vm9085_vm1, %v12142_v38 }
 0x2b7   :  { %v10627_v16 = vadd.f32 %v10041_v22, %v2170_v9  ;;  %v4747_v9 = vld [vmem:[#allocation2 + $0x243] sm:$0xff] }
 0x2b8   :  { %v2087_v0 = vpop.f32.mrb[120].mxu1  ;;  %v10629_v54 = vpop.f32.mrb[228].mxu0 }
 0x2b9   :  { %v2171_v15 = vadd.f32 %v2087_v0, %v10333_v21  ;;  %v7902_v53 = vpop.f32.mrb[121].mxu1  ;;  %8217 = vmatmul.mubr.msk.f32.gmra.mrb[226].mxu1 %vm1174_vm2, %v3150_v42  ;;  %8630 = vmatmul.mubr.msk.f32.gmra.mrb[78].mxu0 %vm1174_vm2, %v4746_v4  ;;  %v8306_v33 = vpop.f32.mrb[229].mxu0  ;;  %v3152_v4 = vld [vmem:[#allocation2 + $0x142] sm:$0xff] }
 0x2ba   :  { %8219 = vmatprep.mubr.msk.f32.mxu1 %vm9085_vm1, %v12142_v38  ;;  %8632 = vmatprep.mubr.msk.f32.mxu0 %vm9085_vm1, %v12142_v38 }
 0x2bb   :  { %v10639_v22 = vadd.f32 %v10051_v26, %v2171_v15  ;;  %v4748_v15 = vld [vmem:[#allocation2 + $0x24b] sm:$0xff] }
 0x2bc   :  { %v2092_v23 = vpop.f32.mrb[122].mxu1  ;;  %v10641_v31 = vpop.f32.mrb[230].mxu0 }
 0x2bd   :  { %v2172_v21 = vadd.f32 %v2092_v23, %v10344_v25  ;;  %v7905_v27 = vpop.f32.mrb[123].mxu1  ;;  %8220 = vmatmul.mubr.msk.f32.gmra.mrb[228].mxu1 %vm1174_vm2, %v3151_v60  ;;  %8633 = vmatmul.mubr.msk.f32.gmra.mrb[80].mxu0 %vm1174_vm2, %v4747_v9  ;;  %v8309_v0 = vpop.f32.mrb[231].mxu0  ;;  %v3153_v9 = vld [vmem:[#allocation2 + $0x14a] sm:$0xff] }
 0x2be   :  { %8222 = vmatprep.mubr.msk.f32.mxu1 %vm9085_vm1, %v12142_v38  ;;  %8635 = vmatprep.mubr.msk.f32.mxu0 %vm9085_vm1, %v12142_v38 }
 0x2bf   :  { %v10651_v26 = vadd.f32 %v10061_v39, %v2172_v21  ;;  %v4749_v21 = vld [vmem:[#allocation2 + $0x253] sm:$0xff] }
 0x2c0   :  { %v2097_v42 = vpop.f32.mrb[124].mxu1  ;;  %v10653_v53 = vpop.f32.mrb[232].mxu0 }
 0x2c1   :  { %v2173_v25 = vadd.f32 %v2097_v42, %v10355_v35  ;;  %v7908_v33 = vpop.f32.mrb[125].mxu1  ;;  %8223 = vmatmul.mubr.msk.f32.gmra.mrb[230].mxu1 %vm1174_vm2, %v3152_v4  ;;  %8636 = vmatmul.mubr.msk.f32.gmra.mrb[82].mxu0 %vm1174_vm2, %v4748_v15  ;;  %v8312_v23 = vpop.f32.mrb[233].mxu0  ;;  %v3154_v15 = vld [vmem:[#allocation2 + $0x152] sm:$0xff] }
 0x2c2   :  { %8225 = vmatprep.mubr.msk.f32.mxu1 %vm9085_vm1, %v12142_v38  ;;  %8638 = vmatprep.mubr.msk.f32.mxu0 %vm9085_vm1, %v12142_v38 }
 0x2c3   :  { %v10663_v39 = vadd.f32 %v10071_v47, %v2173_v25  ;;  %v4750_v25 = vld [vmem:[#allocation2 + $0x25b] sm:$0xff] }
 0x2c4   :  { %v2102_v60 = vpop.f32.mrb[126].mxu1  ;;  %v10665_v27 = vpop.f32.mrb[234].mxu0 }
 0x2c5   :  { %v2174_v35 = vadd.f32 %v2102_v60, %v10366_v46  ;;  %v7911_v0 = vpop.f32.mrb[127].mxu1  ;;  %8226 = vmatmul.mubr.msk.f32.gmra.mrb[232].mxu1 %vm1174_vm2, %v3153_v9  ;;  %8639 = vmatmul.mubr.msk.f32.gmra.mrb[84].mxu0 %vm1174_vm2, %v4749_v21  ;;  %v8315_v42 = vpop.f32.mrb[235].mxu0  ;;  %v3155_v21 = vld [vmem:[#allocation2 + $0x15a] sm:$0xff] }
 0x2c6   :  { %8228 = vmatprep.mubr.msk.f32.mxu1 %vm9085_vm1, %v12142_v38  ;;  %8641 = vmatprep.mubr.msk.f32.mxu0 %vm9085_vm1, %v12142_v38 }
 0x2c7   :  { %v10675_v47 = vadd.f32 %v10081_v57, %v2174_v35  ;;  %v4751_v35 = vld [vmem:[#allocation2 + $0x263] sm:$0xff] }
 0x2c8   :  { %v2107_v4 = vpop.f32.mrb[128].mxu1  ;;  %v10677_v33 = vpop.f32.mrb[236].mxu0 }
 0x2c9   :  { %v2175_v46 = vadd.f32 %v2107_v4, %v10377_v56  ;;  %v7914_v23 = vpop.f32.mrb[129].mxu1  ;;  %8229 = vmatmul.mubr.msk.f32.gmra.mrb[234].mxu1 %vm1174_vm2, %v3154_v15  ;;  %8642 = vmatmul.mubr.msk.f32.gmra.mrb[86].mxu0 %vm1174_vm2, %v4750_v25  ;;  %v8318_v60 = vpop.f32.mrb[237].mxu0  ;;  %v3156_v25 = vld [vmem:[#allocation2 + $0x162] sm:$0xff] }
 0x2ca   :  { %8231 = vmatprep.mubr.msk.f32.mxu1 %vm9085_vm1, %v12142_v38  ;;  %8644 = vmatprep.mubr.msk.f32.mxu0 %vm9085_vm1, %v12142_v38 }
 0x2cb   :  { %v10687_v57 = vadd.f32 %v10091_v3, %v2175_v46  ;;  %v4752_v46 = vld [vmem:[#allocation2 + $0x26b] sm:$0xff] }
 0x2cc   :  { %v2112_v9 = vpop.f32.mrb[130].mxu1  ;;  %v10689_v0 = vpop.f32.mrb[238].mxu0 }
 0x2cd   :  { %v2176_v56 = vadd.f32 %v2112_v9, %v10388_v1  ;;  %v7917_v42 = vpop.f32.mrb[131].mxu1  ;;  %8232 = vmatmul.mubr.msk.f32.gmra.mrb[236].mxu1 %vm1174_vm2, %v3155_v21  ;;  %8645 = vmatmul.mubr.msk.f32.gmra.mrb[88].mxu0 %vm1174_vm2, %v4751_v35  ;;  %v8321_v4 = vpop.f32.mrb[239].mxu0  ;;  %v3157_v35 = vld [vmem:[#allocation2 + $0x16a] sm:$0xff] }
 0x2ce   :  { %8234 = vmatprep.mubr.msk.f32.mxu1 %vm9085_vm1, %v12142_v38  ;;  %8647 = vmatprep.mubr.msk.f32.mxu0 %vm9085_vm1, %v12142_v38 }
 0x2cf   :  { %v10699_v3 = vadd.f32 %v10101_v12, %v2176_v56  ;;  %v4753_v56 = vld [vmem:[#allocation2 + $0x273] sm:$0xff] }
 0x2d0   :  { %v2117_v15 = vpop.f32.mrb[132].mxu1  ;;  %v10701_v23 = vpop.f32.mrb[240].mxu0 }
 0x2d1   :  { %v2177_v1 = vadd.f32 %v2117_v15, %v10399_v11  ;;  %v7920_v60 = vpop.f32.mrb[133].mxu1  ;;  %8235 = vmatmul.mubr.msk.f32.gmra.mrb[238].mxu1 %vm1174_vm2, %v3156_v25  ;;  %8648 = vmatmul.mubr.msk.f32.gmra.mrb[90].mxu0 %vm1174_vm2, %v4752_v46  ;;  %v8324_v9 = vpop.f32.mrb[241].mxu0 }
 0x2d2   :  { %8237 = vmatprep.mubr.msk.f32.mxu1 %vm9085_vm1, %v12142_v38  ;;  %8650 = vmatprep.mubr.msk.f32.mxu0 %vm9085_vm1, %v12142_v38  ;;  %v7025_v9 = vld [vmem:[%s12136_s3 + $0xf8] sm:$0xff] }
 0x2d3   :  { %v10711_v12 = vadd.f32 %v10111_v20, %v2177_v1  ;;  %v3158_v20 = vld [vmem:[#allocation2 + $0x172] sm:$0xff]  ;;  %v4754_v1 = vld [vmem:[#allocation2 + $0x27b] sm:$0xff] }
 0x2d4   :  { %v2122_v21 = vpop.f32.mrb[134].mxu1  ;;  %v10713_v42 = vpop.f32.mrb[242].mxu0 }
 0x2d5   :  { %v2178_v11 = vadd.f32 %v2122_v21, %v10410_v19  ;;  %v7923_v4 = vpop.f32.mrb[135].mxu1  ;;  %8238 = vmatmul.mubr.msk.f32.gmra.mrb[240].mxu1 %vm1174_vm2, %v3157_v35  ;;  %8651 = vmatmul.mubr.msk.f32.gmra.mrb[92].mxu0 %vm1174_vm2, %v4753_v56  ;;  %v8327_v15 = vpop.f32.mrb[243].mxu0  ;;  %v7024_v19 = vld [vmem:[%s12136_s3 + $0xf0] sm:$0xff] }
 0x2d6   :  { %8240 = vmatprep.mubr.msk.f32.mxu1 %vm9085_vm1, %v12142_v38  ;;  %8653 = vmatprep.mubr.msk.f32.mxu0 %vm9085_vm1, %v12142_v38  ;;  %v9018_v56 = vpack.c.bf16 %v7025_v9, %v7024_v19  ;;  %v3159_v15 = vld [vmem:[#allocation2 + $0x17a] sm:$0xff]  ;;  %v3160_v9 = vld [vmem:[#allocation2 + $0x182] sm:$0xff] }
 0x2d7   :  { %v10723_v25 = vadd.f32 %v10121_v30, %v2178_v11 }
 0x2d8   :  { %v2127_v46 = vpop.f32.mrb[136].mxu1  ;;  %v10725_v60 = vpop.f32.mrb[244].mxu0 }
 0x2d9   :  { %12171 = vst [vmem:[#allocation29_spill] sm:$0xff] %v10725_v60  ;;  %v2179_v21 = vadd.f32 %v2127_v46, %v10427_v36  ;;  %v7926_v35 = vpop.f32.mrb[137].mxu1  ;;  %8241 = vmatmul.mubr.msk.f32.gmra.mrb[242].mxu1 %vm1174_vm2, %v3158_v20  ;;  %8654 = vmatmul.mubr.msk.f32.gmra.mrb[94].mxu0 %vm1174_vm2, %v4754_v1  ;;  %v8330_v30 = vpop.f32.mrb[245].mxu0  ;;  %v5366_v60 = vld [vmem:[#allocation2 + $0x289] sm:$0xff] }
 0x2da   :  { %8243 = vmatprep.mubr.msk.f32.mxu1 %vm9085_vm1, %v12142_v38  ;;  %8739 = vmatprep.mubr.msk.f32.mxu0 %vm9085_vm1, %v12142_v38 }
 0x2db   :  { %v10741_v11 = vadd.f32 %v10131_v45, %v2179_v21  ;;  %v5367_v21 = vld [vmem:[#allocation2 + $0x291] sm:$0xff] }
 0x2dc   :  { %v2132_v4 = vpop.f32.mrb[138].mxu1  ;;  %v10743_v36 = vpop.f32.mrb[246].mxu0 }
 0x2dd   :  { %v2180_v20 = vadd.f32 %v2132_v4, %v10438_v44  ;;  %v7929_v46 = vpop.f32.mrb[139].mxu1  ;;  %8244 = vmatmul.mubr.msk.f32.gmra.mrb[244].mxu1 %vm1174_vm2, %v3159_v15  ;;  %8740 = vmatmul.mubr.msk.f32.vlgmr.msra.gmra.mrb[96].mxu0 %vm1174_vm2, %v5366_v60  ;;  %v8333_v1 = vpop.f32.mrb[247].mxu0  ;;  %v3161_v4 = vld [vmem:[#allocation2 + $0x18a] sm:$0xff]  ;;  %v5368_v15 = vld [vmem:[#allocation2 + $0x299] sm:$0xff] }
 0x2de   :  { %8246 = vmatprep.mubr.msk.f32.mxu1 %vm9085_vm1, %v12142_v38  ;;  %8742 = vmatprep.mubr.msk.f32.mxu0 %vm9085_vm1, %v12142_v38 }
 0x2df   :  { %9019 = vmatpush3.bf16.msra.mxu0 %v9018_v56  ;;  %v10753_v45 = vadd.f32 %v10147_v6, %v2180_v20 }
 0x2e0   :  { %v2137_v19 = vpop.f32.mrb[140].mxu1  ;;  %v10755_v44 = vpop.f32.mrb[248].mxu0 }
 0x2e1   :  { %v2181_v35 = vadd.f32 %v2137_v19, %v10450_v52  ;;  %v7932_v30 = vpop.f32.mrb[141].mxu1  ;;  %8247 = vmatmul.mubr.msk.f32.gmra.mrb[246].mxu1 %vm1174_vm2, %v3160_v9  ;;  %8743 = vmatmul.mubr.msk.f32.gmra.mrb[98].mxu0 %vm1174_vm2, %v5367_v21  ;;  %v8336_v60 = vpop.f32.mrb[249].mxu0  ;;  %v3162_v9 = vld [vmem:[#allocation2 + $0x192] sm:$0xff]  ;;  %v5369_v21 = vld [vmem:[#allocation2 + $0x2a1] sm:$0xff] }
 0x2e2   :  { %8249 = vmatprep.mubr.msk.f32.mxu1 %vm9085_vm1, %v12142_v38  ;;  %8745 = vmatprep.mubr.msk.f32.mxu0 %vm9085_vm1, %v12142_v38 }
 0x2e3   :  { %v10765_v6 = vadd.f32 %v10157_v17, %v2181_v35 }
 0x2e4   :  { %v2142_v56 = vpop.f32.mrb[142].mxu1  ;;  %v10767_v20 = vpop.f32.mrb[250].mxu0 }
 0x2e5   :  { %v2182_v52 = vadd.f32 %v2142_v56, %v10461_v14  ;;  %v7935_v46 = vpop.f32.mrb[143].mxu1  ;;  %8250 = vmatmul.mubr.msk.f32.gmra.mrb[248].mxu1 %vm1174_vm2, %v3161_v4  ;;  %8746 = vmatmul.mubr.msk.f32.gmra.mrb[100].mxu0 %vm1174_vm2, %v5368_v15  ;;  %v8339_v1 = vpop.f32.mrb[251].mxu0  ;;  %v3163_v56 = vld [vmem:[#allocation2 + $0x19a] sm:$0xff]  ;;  %v5370_v4 = vld [vmem:[#allocation2 + $0x2a9] sm:$0xff] }
 0x2e6   :  { %8252 = vmatprep.mubr.msk.f32.mxu1 %vm9085_vm1, %v12142_v38  ;;  %8748 = vmatprep.mubr.msk.f32.mxu0 %vm9085_vm1, %v12142_v38  ;;  %v6889_v1 = vld [vmem:[%s12136_s3 + $0xa0] sm:$0xff] }
 0x2e7   :  { %v10777_v17 = vadd.f32 %v10174_v40, %v2182_v52 }
 0x2e8   :  { %v2147_v19 = vpop.f32.mrb[144].mxu1  ;;  %v10779_v35 = vpop.f32.mrb[252].mxu0 }
 0x2e9   :  { %12172 = vst [vmem:[#allocation30_spill] sm:$0xff] %v10779_v35  ;;  %v2183_v14 = vadd.f32 %v2147_v19, %v10472_v32  ;;  %v7938_v30 = vpop.f32.mrb[145].mxu1  ;;  %8253 = vmatmul.mubr.msk.f32.gmra.mrb[250].mxu1 %vm1174_vm2, %v3162_v9  ;;  %8749 = vmatmul.mubr.msk.f32.gmra.mrb[102].mxu0 %vm1174_vm2, %v5369_v21  ;;  %v8425_v60 = vpop.f32.mrb[253].mxu0  ;;  %v3164_v9 = vld [vmem:[#allocation2 + $0x1a2] sm:$0xff]  ;;  %v5371_v21 = vld [vmem:[#allocation2 + $0x2b1] sm:$0xff] }
 0x2ea   :  { %8255 = vmatprep.mubr.msk.f32.mxu1 %vm9085_vm1, %v12142_v38  ;;  %8751 = vmatprep.mubr.msk.f32.mxu0 %vm9085_vm1, %v12142_v38 }
 0x2ec   :  { %v2152_v40 = vpop.f32.mrb[146].mxu1  ;;  %v10788_v15 = vpop.f32.mrb[254].mxu0 }
 0x2ed   :  { %12173 = vst [vmem:[#allocation31_spill] sm:$0xff] %v10788_v15  ;;  %v2184_v52 = vadd.f32 %v2152_v40, %v10483_v58  ;;  %v7941_v32 = vpop.f32.mrb[147].mxu1  ;;  %8256 = vmatmul.mubr.msk.f32.gmra.mrb[252].mxu1 %vm1174_vm2, %v3163_v56  ;;  %8752 = vmatmul.mubr.msk.f32.gmra.mrb[104].mxu0 %vm1174_vm2, %v5370_v4  ;;  %v8428_v46 = vpop.f32.mrb[255].mxu0  ;;  %v6890_v58 = vld [vmem:[%s12136_s3 + $0xa8] sm:$0xff]  ;;  %v5372_v15 = vld [vmem:[#allocation2 + $0x2b9] sm:$0xff] }
 0x2ee   :  { %8258 = vmatprep.mubr.msk.f32.mxu1 %vm9085_vm1, %v12142_v38  ;;  %8754 = vmatprep.mubr.msk.f32.mxu0 %vm9085_vm1, %v12142_v38  ;;  %v9003_v4 = vpack.c.bf16 %v6890_v58, %v6889_v1  ;;  %v3776_v46 = vld [vmem:[#allocation2 + $0x1b0] sm:$0xff]  ;;  %v3777_v58 = vld [vmem:[#allocation2 + $0x1b8] sm:$0xff] }
 0x2f0   :  { %v2157_v19 = vpop.f32.mrb[148].mxu1  ;;  %v10803_v30 = vpop.f32.mrb[0].mxu0 }
 0x2f1   :  { %12174 = vst [vmem:[#allocation32_spill] sm:$0xff] %v10803_v30  ;;  %v2185_v60 = vadd.f32 %v2157_v19, %v10500_v29  ;;  %v7944_v40 = vpop.f32.mrb[149].mxu1  ;;  %8259 = vmatmul.mubr.msk.f32.gmra.mrb[254].mxu1 %vm1174_vm2, %v3164_v9  ;;  %8755 = vmatmul.mubr.msk.f32.gmra.mrb[106].mxu0 %vm1174_vm2, %v5371_v21  ;;  %v8431_v56 = vpop.f32.mrb[1].mxu0  ;;  %v5373_v9 = vld [vmem:[#allocation2 + $0x2c1] sm:$0xff] }
 0x2f2   :  { %8344 = vmatprep.mubr.msk.f32.mxu1 %vm9085_vm1, %v12142_v38  ;;  %8757 = vmatprep.mubr.msk.f32.mxu0 %vm9085_vm1, %v12142_v38  ;;  %v3778_v56 = vld [vmem:[#allocation2 + $0x1c0] sm:$0xff] }
 0x2f4   :  { %v2465_v32 = vpop.f32.mrb[150].mxu1  ;;  %v10812_v35 = vpop.f32.mrb[2].mxu0 }
 0x2f5   :  { %v8017_v30 = vpop.f32.mrb[151].mxu1  ;;  %8345 = vmatmul.mubr.msk.f32.vlgmr.msra.gmra.mrb[0].mxu1 %vm1174_vm2, %v3776_v46  ;;  %8758 = vmatmul.mubr.msk.f32.gmra.mrb[108].mxu0 %vm1174_vm2, %v5372_v15  ;;  %v8434_v29 = vpop.f32.mrb[3].mxu0  ;;  %v10816_v19 = vadd.f32 %v2465_v32, %v2183_v14 }
 0x2f6   :  { %9004 = vmatpush3.bf16.msra.mxu1 %v9003_v4  ;;  %8347 = vmatprep.mubr.msk.f32.mxu1 %vm9085_vm1, %v12142_v38  ;;  %v5374_v4 = vld [vmem:[#allocation2 + $0x2c9] sm:$0xff] }
 0x2f7   :  { %8760 = vmatprep.mubr.msk.f32.mxu0 %vm9085_vm1, %v12142_v38  ;;  %9008 = vmatprep.subr.bf16.mxu1 %v12166_v63 }
 0x2f8   :  { %v2470_v1 = vpop.f32.mrb[152].mxu1  ;;  %v10823_v21 = vpop.f32.mrb[4].mxu0 }
 0x2f9   :  { %v8020_v30 = vpop.f32.mrb[153].mxu1  ;;  %8348 = vmatmul.mubr.msk.f32.gmra.mrb[2].mxu1 %vm1174_vm2, %v3777_v58  ;;  %8761 = vmatmul.mubr.msk.f32.gmra.mrb[110].mxu0 %vm1174_vm2, %v5373_v9  ;;  %v8437_v14 = vpop.f32.mrb[5].mxu0  ;;  %v10827_v15 = vadd.f32 %v2470_v1, %v2184_v52  ;;  %v3779_v1 = vld [vmem:[#allocation2 + $0x1c8] sm:$0xff]  ;;  %v5375_v9 = vld [vmem:[#allocation2 + $0x2d1] sm:$0xff] }
 0x2fa   :  { %8350 = vmatprep.mubr.msk.f32.mxu1 %vm9085_vm1, %v12142_v38  ;;  %8763 = vmatprep.mubr.msk.f32.mxu0 %vm9085_vm1, %v12142_v38 }
 0x2fc   :  { %v2475_v40 = vpop.f32.mrb[154].mxu1  ;;  %v10833_v32 = vpop.f32.mrb[6].mxu0 }
 0x2fd   :  { %v8023_v46 = vpop.f32.mrb[155].mxu1  ;;  %8351 = vmatmul.mubr.msk.f32.gmra.mrb[4].mxu1 %vm1174_vm2, %v3778_v56  ;;  %8764 = vmatmul.mubr.msk.f32.gmra.mrb[112].mxu0 %vm1174_vm2, %v5374_v4  ;;  %v8440_v29 = vpop.f32.mrb[7].mxu0  ;;  %v10837_v58 = vadd.f32 %v2475_v40, %v2185_v60  ;;  %v3780_v4 = vld [vmem:[#allocation2 + $0x1d0] sm:$0xff] }
 0x2fe   :  { %8353 = vmatprep.mubr.msk.f32.mxu1 %vm9085_vm1, %v12142_v38  ;;  %8766 = vmatprep.mubr.msk.f32.mxu0 %vm9085_vm1, %v12142_v38  ;;  %v5376_v29 = vld [vmem:[#allocation2 + $0x2d9] sm:$0xff] }
 0x300   :  { %v2673_v52 = vpop.f32.mrb[156].mxu1  ;;  %v10843_v30 = vpop.f32.mrb[8].mxu0 }
 0x301   :  { %12175 = vst [vmem:[#allocation33_spill] sm:$0xff] %v10843_v30  ;;  %v2797_v14 = vadd.f32 %v2673_v52, %v10519_v2  ;;  %v8030_v46 = vpop.f32.mrb[157].mxu1  ;;  %8354 = vmatmul.mubr.msk.f32.gmra.mrb[6].mxu1 %vm1174_vm2, %v3779_v1  ;;  %8767 = vmatmul.mubr.msk.f32.gmra.mrb[114].mxu0 %vm1174_vm2, %v5375_v9  ;;  %v8443_v60 = vpop.f32.mrb[9].mxu0 }
 0x302   :  { %8356 = vmatprep.mubr.msk.f32.mxu1 %vm9085_vm1, %v12142_v38  ;;  %8769 = vmatprep.mubr.msk.f32.mxu0 %vm9085_vm1, %v12142_v38  ;;  %v5377_v46 = vld [vmem:[#allocation2 + $0x2e1] sm:$0xff] }
 0x303   :  { %v10853_v40 = vadd.f32 %v10184_v62, %v2797_v14  ;;  %v3781_v14 = vld [vmem:[#allocation2 + $0x1d8] sm:$0xff] }
 0x304   :  { %v2678_v56 = vpop.f32.mrb[158].mxu1  ;;  %v10855_v30 = vpop.f32.mrb[10].mxu0 }
 0x305   :  { %12176 = vst [vmem:[#allocation34_spill] sm:$0xff] %v10855_v30  ;;  %v2798_v2 = vadd.f32 %v2678_v56, %v10531_v28  ;;  %v8033_v52 = vpop.f32.mrb[159].mxu1  ;;  %8357 = vmatmul.mubr.msk.f32.gmra.mrb[8].mxu1 %vm1174_vm2, %v3780_v4  ;;  %8770 = vmatmul.mubr.msk.f32.gmra.mrb[116].mxu0 %vm1174_vm2, %v5376_v29  ;;  %v8446_v1 = vpop.f32.mrb[11].mxu0 }
 0x306   :  { %8359 = vmatprep.mubr.msk.f32.mxu1 %vm9085_vm1, %v12142_v38  ;;  %8772 = vmatprep.mubr.msk.f32.mxu0 %vm9085_vm1, %v12142_v38  ;;  %v3782_v52 = vld [vmem:[#allocation2 + $0x1e0] sm:$0xff]  ;;  %v5378_v1 = vld [vmem:[#allocation2 + $0x2e9] sm:$0xff] }
 0x307   :  { %v10865_v62 = vadd.f32 %v10230_v24, %v2798_v2  ;;  %v12178_v24 = vld [vmem:[#allocation3_spill] sm:$0xff] }
 0x308   :  { %v2683_v9 = vpop.f32.mrb[160].mxu1  ;;  %v10867_v60 = vpop.f32.mrb[12].mxu0 }
 0x309   :  { %12177 = vst [vmem:[#allocation35_spill] sm:$0xff] %v10867_v60  ;;  %v2799_v28 = vadd.f32 %v2683_v9, %v10543_v34  ;;  %v8036_v56 = vpop.f32.mrb[161].mxu1  ;;  %8360 = vmatmul.mubr.msk.f32.gmra.mrb[10].mxu1 %vm1174_vm2, %v3781_v14  ;;  %8773 = vmatmul.mubr.msk.f32.gmra.mrb[118].mxu0 %vm1174_vm2, %v5377_v46  ;;  %v8449_v4 = vpop.f32.mrb[13].mxu0  ;;  %v12180_v46 = vld [vmem:[#allocation4_spill] sm:$0xff] }
 0x30a   :  { %8362 = vmatprep.mubr.msk.f32.mxu1 %vm9085_vm1, %v12142_v38  ;;  %8775 = vmatprep.mubr.msk.f32.mxu0 %vm9085_vm1, %v12142_v38  ;;  %v3783_v4 = vld [vmem:[#allocation2 + $0x1e8] sm:$0xff] }
 0x30b   :  { %v10877_v29 = vadd.f32 %v12178_v24, %v2799_v28  ;;  %v5379_v24 = vld [vmem:[#allocation2 + $0x2f1] sm:$0xff] }
 0x30c   :  { %v2688_v2 = vpop.f32.mrb[162].mxu1  ;;  %v10879_v60 = vpop.f32.mrb[14].mxu0 }
 0x30d   :  { %12179 = vst [vmem:[#allocation3_spill] sm:$0xff] %v10879_v60  ;;  %v2800_v34 = vadd.f32 %v2688_v2, %v10555_v43  ;;  %v8039_v9 = vpop.f32.mrb[163].mxu1  ;;  %8363 = vmatmul.mubr.msk.f32.gmra.mrb[12].mxu1 %vm1174_vm2, %v3782_v52  ;;  %8776 = vmatmul.mubr.msk.f32.gmra.mrb[120].mxu0 %vm1174_vm2, %v5378_v1  ;;  %v8452_v14 = vpop.f32.mrb[15].mxu0  ;;  %v12182_v1 = vld [vmem:[#allocation5_spill] sm:$0xff] }
 0x30e   :  { %8365 = vmatprep.mubr.msk.f32.mxu1 %vm9085_vm1, %v12142_v38  ;;  %8778 = vmatprep.mubr.msk.f32.mxu0 %vm9085_vm1, %v12142_v38  ;;  %v3784_v14 = vld [vmem:[#allocation2 + $0x1f0] sm:$0xff] }
 0x30f   :  { %v10889_v28 = vadd.f32 %v12180_v46, %v2800_v34  ;;  %v5380_v46 = vld [vmem:[#allocation2 + $0x2f9] sm:$0xff] }
 0x310   :  { %v2693_v56 = vpop.f32.mrb[164].mxu1  ;;  %v10891_v60 = vpop.f32.mrb[16].mxu0 }
 0x311   :  { %12181 = vst [vmem:[#allocation4_spill] sm:$0xff] %v10891_v60  ;;  %v2801_v43 = vadd.f32 %v2693_v56, %v10567_v49  ;;  %v8042_v2 = vpop.f32.mrb[165].mxu1  ;;  %8366 = vmatmul.mubr.msk.f32.gmra.mrb[14].mxu1 %vm1174_vm2, %v3783_v4  ;;  %8779 = vmatmul.mubr.msk.f32.gmra.mrb[122].mxu0 %vm1174_vm2, %v5379_v24  ;;  %v8455_v52 = vpop.f32.mrb[17].mxu0  ;;  %v12184_v24 = vld [vmem:[#allocation6_spill] sm:$0xff] }
 0x312   :  { %8368 = vmatprep.mubr.msk.f32.mxu1 %vm9085_vm1, %v12142_v38  ;;  %8781 = vmatprep.mubr.msk.f32.mxu0 %vm9085_vm1, %v12142_v38  ;;  %v3785_v52 = vld [vmem:[#allocation2 + $0x1f8] sm:$0xff] }
 0x313   :  { %v10901_v34 = vadd.f32 %v12182_v1, %v2801_v43  ;;  %v5381_v1 = vld [vmem:[#allocation2 + $0x301] sm:$0xff] }
 0x314   :  { %v2698_v9 = vpop.f32.mrb[166].mxu1  ;;  %v10903_v60 = vpop.f32.mrb[18].mxu0 }
 0x315   :  { %12183 = vst [vmem:[#allocation5_spill] sm:$0xff] %v10903_v60  ;;  %v2802_v49 = vadd.f32 %v2698_v9, %v10579_v55  ;;  %v8045_v56 = vpop.f32.mrb[167].mxu1  ;;  %8369 = vmatmul.mubr.msk.f32.gmra.mrb[16].mxu1 %vm1174_vm2, %v3784_v14  ;;  %8782 = vmatmul.mubr.msk.f32.gmra.mrb[124].mxu0 %vm1174_vm2, %v5380_v46  ;;  %v8458_v4 = vpop.f32.mrb[19].mxu0  ;;  %v12186_v46 = vld [vmem:[#allocation7_spill] sm:$0xff] }
 0x316   :  { %8371 = vmatprep.mubr.msk.f32.mxu1 %vm9085_vm1, %v12142_v38  ;;  %8784 = vmatprep.mubr.msk.f32.mxu0 %vm9085_vm1, %v12142_v38  ;;  %v3786_v4 = vld [vmem:[#allocation2 + $0x200] sm:$0xff] }
 0x317   :  { %v10913_v43 = vadd.f32 %v12184_v24, %v2802_v49  ;;  %v5382_v24 = vld [vmem:[#allocation2 + $0x309] sm:$0xff] }
 0x318   :  { %v2703_v2 = vpop.f32.mrb[168].mxu1  ;;  %v10915_v60 = vpop.f32.mrb[20].mxu0 }
 0x319   :  { %12185 = vst [vmem:[#allocation6_spill] sm:$0xff] %v10915_v60  ;;  %v2803_v55 = vadd.f32 %v2703_v2, %v10591_v61  ;;  %v8048_v9 = vpop.f32.mrb[169].mxu1  ;;  %8372 = vmatmul.mubr.msk.f32.gmra.mrb[18].mxu1 %vm1174_vm2, %v3785_v52  ;;  %8785 = vmatmul.mubr.msk.f32.gmra.mrb[126].mxu0 %vm1174_vm2, %v5381_v1  ;;  %v8461_v14 = vpop.f32.mrb[21].mxu0  ;;  %v12188_v1 = vld [vmem:[#allocation8_spill] sm:$0xff] }
 0x31a   :  { %8374 = vmatprep.mubr.msk.f32.mxu1 %vm9085_vm1, %v12142_v38  ;;  %8787 = vmatprep.mubr.msk.f32.mxu0 %vm9085_vm1, %v12142_v38  ;;  %v3787_v14 = vld [vmem:[#allocation2 + $0x208] sm:$0xff] }
 0x31b   :  { %v10925_v49 = vadd.f32 %v12186_v46, %v2803_v55  ;;  %v5383_v46 = vld [vmem:[#allocation2 + $0x311] sm:$0xff] }
 0x31c   :  { %v2708_v56 = vpop.f32.mrb[170].mxu1  ;;  %v10927_v60 = vpop.f32.mrb[22].mxu0 }
 0x31d   :  { %12187 = vst [vmem:[#allocation7_spill] sm:$0xff] %v10927_v60  ;;  %v2804_v61 = vadd.f32 %v2708_v56, %v10603_v5  ;;  %v8051_v2 = vpop.f32.mrb[171].mxu1  ;;  %8375 = vmatmul.mubr.msk.f32.gmra.mrb[20].mxu1 %vm1174_vm2, %v3786_v4  ;;  %8788 = vmatmul.mubr.msk.f32.gmra.mrb[128].mxu0 %vm1174_vm2, %v5382_v24  ;;  %v8464_v52 = vpop.f32.mrb[23].mxu0  ;;  %v12190_v24 = vld [vmem:[#allocation9_spill] sm:$0xff] }
 0x31e   :  { %8377 = vmatprep.mubr.msk.f32.mxu1 %vm9085_vm1, %v12142_v38  ;;  %8790 = vmatprep.mubr.msk.f32.mxu0 %vm9085_vm1, %v12142_v38  ;;  %v3788_v52 = vld [vmem:[#allocation2 + $0x210] sm:$0xff] }
 0x31f   :  { %v10937_v55 = vadd.f32 %v12188_v1, %v2804_v61  ;;  %v5384_v1 = vld [vmem:[#allocation2 + $0x319] sm:$0xff] }
 0x320   :  { %v2713_v9 = vpop.f32.mrb[172].mxu1  ;;  %v10939_v60 = vpop.f32.mrb[24].mxu0 }
 0x321   :  { %12189 = vst [vmem:[#allocation8_spill] sm:$0xff] %v10939_v60  ;;  %v2805_v5 = vadd.f32 %v2713_v9, %v10615_v10  ;;  %v8054_v56 = vpop.f32.mrb[173].mxu1  ;;  %8378 = vmatmul.mubr.msk.f32.gmra.mrb[22].mxu1 %vm1174_vm2, %v3787_v14  ;;  %8791 = vmatmul.mubr.msk.f32.gmra.mrb[130].mxu0 %vm1174_vm2, %v5383_v46  ;;  %v8467_v4 = vpop.f32.mrb[25].mxu0  ;;  %v12192_v46 = vld [vmem:[#allocation10_spill] sm:$0xff] }
 0x322   :  { %8380 = vmatprep.mubr.msk.f32.mxu1 %vm9085_vm1, %v12142_v38  ;;  %8793 = vmatprep.mubr.msk.f32.mxu0 %vm9085_vm1, %v12142_v38  ;;  %v3789_v4 = vld [vmem:[#allocation2 + $0x218] sm:$0xff] }
 0x323   :  { %v10949_v61 = vadd.f32 %v12190_v24, %v2805_v5  ;;  %v5385_v24 = vld [vmem:[#allocation2 + $0x321] sm:$0xff] }
 0x324   :  { %v2718_v2 = vpop.f32.mrb[174].mxu1  ;;  %v10951_v60 = vpop.f32.mrb[26].mxu0 }
 0x325   :  { %12191 = vst [vmem:[#allocation9_spill] sm:$0xff] %v10951_v60  ;;  %v2806_v10 = vadd.f32 %v2718_v2, %v10627_v16  ;;  %v8057_v9 = vpop.f32.mrb[175].mxu1  ;;  %8381 = vmatmul.mubr.msk.f32.gmra.mrb[24].mxu1 %vm1174_vm2, %v3788_v52  ;;  %8794 = vmatmul.mubr.msk.f32.gmra.mrb[132].mxu0 %vm1174_vm2, %v5384_v1  ;;  %v8470_v14 = vpop.f32.mrb[27].mxu0  ;;  %v12194_v1 = vld [vmem:[#allocation11_spill] sm:$0xff] }
 0x326   :  { %8383 = vmatprep.mubr.msk.f32.mxu1 %vm9085_vm1, %v12142_v38  ;;  %8796 = vmatprep.mubr.msk.f32.mxu0 %vm9085_vm1, %v12142_v38  ;;  %v3790_v14 = vld [vmem:[#allocation2 + $0x220] sm:$0xff] }
 0x327   :  { %v10961_v5 = vadd.f32 %v12192_v46, %v2806_v10  ;;  %v5386_v46 = vld [vmem:[#allocation2 + $0x329] sm:$0xff] }
 0x328   :  { %v2723_v56 = vpop.f32.mrb[176].mxu1  ;;  %v10963_v60 = vpop.f32.mrb[28].mxu0 }
 0x329   :  { %12193 = vst [vmem:[#allocation10_spill] sm:$0xff] %v10963_v60  ;;  %v2807_v16 = vadd.f32 %v2723_v56, %v10639_v22  ;;  %v8060_v2 = vpop.f32.mrb[177].mxu1  ;;  %8384 = vmatmul.mubr.msk.f32.gmra.mrb[26].mxu1 %vm1174_vm2, %v3789_v4  ;;  %8797 = vmatmul.mubr.msk.f32.gmra.mrb[134].mxu0 %vm1174_vm2, %v5385_v24  ;;  %v8473_v52 = vpop.f32.mrb[29].mxu0  ;;  %v12196_v24 = vld [vmem:[#allocation12_spill] sm:$0xff] }
 0x32a   :  { %8386 = vmatprep.mubr.msk.f32.mxu1 %vm9085_vm1, %v12142_v38  ;;  %8799 = vmatprep.mubr.msk.f32.mxu0 %vm9085_vm1, %v12142_v38  ;;  %v3791_v52 = vld [vmem:[#allocation2 + $0x228] sm:$0xff] }
 0x32b   :  { %v10973_v10 = vadd.f32 %v12194_v1, %v2807_v16  ;;  %v5387_v1 = vld [vmem:[#allocation2 + $0x331] sm:$0xff] }
 0x32c   :  { %v2728_v9 = vpop.f32.mrb[178].mxu1  ;;  %v10975_v60 = vpop.f32.mrb[30].mxu0 }
 0x32d   :  { %12195 = vst [vmem:[#allocation11_spill] sm:$0xff] %v10975_v60  ;;  %v2808_v22 = vadd.f32 %v2728_v9, %v10651_v26  ;;  %v8063_v56 = vpop.f32.mrb[179].mxu1  ;;  %8387 = vmatmul.mubr.msk.f32.gmra.mrb[28].mxu1 %vm1174_vm2, %v3790_v14  ;;  %8800 = vmatmul.mubr.msk.f32.gmra.mrb[136].mxu0 %vm1174_vm2, %v5386_v46  ;;  %v8476_v4 = vpop.f32.mrb[31].mxu0  ;;  %v12198_v46 = vld [vmem:[#allocation13_spill] sm:$0xff] }
 0x32e   :  { %8389 = vmatprep.mubr.msk.f32.mxu1 %vm9085_vm1, %v12142_v38  ;;  %8802 = vmatprep.mubr.msk.f32.mxu0 %vm9085_vm1, %v12142_v38  ;;  %v3792_v4 = vld [vmem:[#allocation2 + $0x230] sm:$0xff] }
 0x32f   :  { %v10985_v16 = vadd.f32 %v12196_v24, %v2808_v22  ;;  %v5388_v24 = vld [vmem:[#allocation2 + $0x339] sm:$0xff] }
 0x330   :  { %v2733_v2 = vpop.f32.mrb[180].mxu1  ;;  %v10987_v60 = vpop.f32.mrb[32].mxu0 }
 0x331   :  { %12197 = vst [vmem:[#allocation12_spill] sm:$0xff] %v10987_v60  ;;  %v2809_v26 = vadd.f32 %v2733_v2, %v10663_v39  ;;  %v8066_v9 = vpop.f32.mrb[181].mxu1  ;;  %8390 = vmatmul.mubr.msk.f32.gmra.mrb[30].mxu1 %vm1174_vm2, %v3791_v52  ;;  %8803 = vmatmul.mubr.msk.f32.gmra.mrb[138].mxu0 %vm1174_vm2, %v5387_v1  ;;  %v8479_v14 = vpop.f32.mrb[33].mxu0  ;;  %v12200_v1 = vld [vmem:[#allocation14_spill] sm:$0xff] }
 0x332   :  { %8392 = vmatprep.mubr.msk.f32.mxu1 %vm9085_vm1, %v12142_v38  ;;  %8805 = vmatprep.mubr.msk.f32.mxu0 %vm9085_vm1, %v12142_v38  ;;  %v3793_v14 = vld [vmem:[#allocation2 + $0x238] sm:$0xff] }
 0x333   :  { %v10997_v22 = vadd.f32 %v12198_v46, %v2809_v26  ;;  %v5389_v46 = vld [vmem:[#allocation2 + $0x341] sm:$0xff] }
 0x334   :  { %v2738_v56 = vpop.f32.mrb[182].mxu1  ;;  %v10999_v60 = vpop.f32.mrb[34].mxu0 }
 0x335   :  { %12199 = vst [vmem:[#allocation13_spill] sm:$0xff] %v10999_v60  ;;  %v2810_v39 = vadd.f32 %v2738_v56, %v10675_v47  ;;  %v8069_v2 = vpop.f32.mrb[183].mxu1  ;;  %8393 = vmatmul.mubr.msk.f32.gmra.mrb[32].mxu1 %vm1174_vm2, %v3792_v4  ;;  %8806 = vmatmul.mubr.msk.f32.gmra.mrb[140].mxu0 %vm1174_vm2, %v5388_v24  ;;  %v8482_v52 = vpop.f32.mrb[35].mxu0  ;;  %v12202_v24 = vld [vmem:[#allocation15_spill] sm:$0xff] }
 0x336   :  { %8395 = vmatprep.mubr.msk.f32.mxu1 %vm9085_vm1, %v12142_v38  ;;  %8808 = vmatprep.mubr.msk.f32.mxu0 %vm9085_vm1, %v12142_v38  ;;  %v3794_v52 = vld [vmem:[#allocation2 + $0x240] sm:$0xff] }
 0x337   :  { %v11009_v26 = vadd.f32 %v12200_v1, %v2810_v39  ;;  %v5390_v1 = vld [vmem:[#allocation2 + $0x349] sm:$0xff] }
 0x338   :  { %v2743_v9 = vpop.f32.mrb[184].mxu1  ;;  %v11011_v60 = vpop.f32.mrb[36].mxu0 }
 0x339   :  { %12201 = vst [vmem:[#allocation14_spill] sm:$0xff] %v11011_v60  ;;  %v2811_v47 = vadd.f32 %v2743_v9, %v10687_v57  ;;  %v8072_v56 = vpop.f32.mrb[185].mxu1  ;;  %8396 = vmatmul.mubr.msk.f32.gmra.mrb[34].mxu1 %vm1174_vm2, %v3793_v14  ;;  %8809 = vmatmul.mubr.msk.f32.gmra.mrb[142].mxu0 %vm1174_vm2, %v5389_v46  ;;  %v8485_v4 = vpop.f32.mrb[37].mxu0  ;;  %v12204_v46 = vld [vmem:[#allocation16_spill] sm:$0xff] }
 0x33a   :  { %8398 = vmatprep.mubr.msk.f32.mxu1 %vm9085_vm1, %v12142_v38  ;;  %8811 = vmatprep.mubr.msk.f32.mxu0 %vm9085_vm1, %v12142_v38  ;;  %v3795_v4 = vld [vmem:[#allocation2 + $0x248] sm:$0xff] }
 0x33b   :  { %v11021_v39 = vadd.f32 %v12202_v24, %v2811_v47  ;;  %v6002_v24 = vld [vmem:[#allocation2 + $0x293] sm:$0xff] }
 0x33c   :  { %v2748_v2 = vpop.f32.mrb[186].mxu1  ;;  %v11023_v60 = vpop.f32.mrb[38].mxu0 }
 0x33d   :  { %12203 = vst [vmem:[#allocation15_spill] sm:$0xff] %v11023_v60  ;;  %v2812_v57 = vadd.f32 %v2748_v2, %v10699_v3  ;;  %v8075_v9 = vpop.f32.mrb[187].mxu1  ;;  %8399 = vmatmul.mubr.msk.f32.gmra.mrb[36].mxu1 %vm1174_vm2, %v3794_v52  ;;  %8812 = vmatmul.mubr.msk.f32.gmra.mrb[144].mxu0 %vm1174_vm2, %v5390_v1  ;;  %v8488_v14 = vpop.f32.mrb[39].mxu0  ;;  %v12206_v1 = vld [vmem:[#allocation17_spill] sm:$0xff] }
 0x33e   :  { %8401 = vmatprep.mubr.msk.f32.mxu1 %vm9085_vm1, %v12142_v38  ;;  %8897 = vmatprep.mubr.msk.f32.mxu0 %vm9085_vm1, %v12142_v38  ;;  %v3796_v14 = vld [vmem:[#allocation2 + $0x250] sm:$0xff] }
 0x33f   :  { %v11033_v47 = vadd.f32 %v12204_v46, %v2812_v57  ;;  %v6003_v46 = vld [vmem:[#allocation2 + $0x29b] sm:$0xff] }
 0x340   :  { %v2753_v56 = vpop.f32.mrb[188].mxu1  ;;  %v11035_v60 = vpop.f32.mrb[40].mxu0 }
 0x341   :  { %12205 = vst [vmem:[#allocation16_spill] sm:$0xff] %v11035_v60  ;;  %v2813_v3 = vadd.f32 %v2753_v56, %v10711_v12  ;;  %v8078_v2 = vpop.f32.mrb[189].mxu1  ;;  %8402 = vmatmul.mubr.msk.f32.gmra.mrb[38].mxu1 %vm1174_vm2, %v3795_v4  ;;  %8898 = vmatmul.mubr.msk.f32.vlgmr.msra.gmra.mrb[146].mxu0 %vm1174_vm2, %v6002_v24  ;;  %v8491_v52 = vpop.f32.mrb[41].mxu0  ;;  %v12208_v24 = vld [vmem:[#allocation18_spill] sm:$0xff] }
 0x342   :  { %8404 = vmatprep.mubr.msk.f32.mxu1 %vm9085_vm1, %v12142_v38  ;;  %8900 = vmatprep.mubr.msk.f32.mxu0 %vm9085_vm1, %v12142_v38  ;;  %v3797_v52 = vld [vmem:[#allocation2 + $0x258] sm:$0xff] }
 0x343   :  { %v11045_v57 = vadd.f32 %v12206_v1, %v2813_v3 }
 0x344   :  { %v2758_v9 = vpop.f32.mrb[190].mxu1  ;;  %v11047_v60 = vpop.f32.mrb[42].mxu0 }
 0x345   :  { %12207 = vst [vmem:[#allocation17_spill] sm:$0xff] %v11047_v60  ;;  %v2814_v12 = vadd.f32 %v2758_v9, %v10723_v25  ;;  %v8081_v56 = vpop.f32.mrb[191].mxu1  ;;  %8405 = vmatmul.mubr.msk.f32.gmra.mrb[40].mxu1 %vm1174_vm2, %v3796_v14  ;;  %8901 = vmatmul.mubr.msk.f32.gmra.mrb[148].mxu0 %vm1174_vm2, %v6003_v46  ;;  %v8494_v4 = vpop.f32.mrb[43].mxu0  ;;  %v6004_v25 = vld [vmem:[#allocation2 + $0x2a3] sm:$0xff] }
 0x346   :  { %8407 = vmatprep.mubr.msk.f32.mxu1 %vm9085_vm1, %v12142_v38  ;;  %8903 = vmatprep.mubr.msk.f32.mxu0 %vm9085_vm1, %v12142_v38 }
 0x347   :  { %v11057_v3 = vadd.f32 %v12208_v24, %v2814_v12  ;;  %v12210_v12 = vld [vmem:[#allocation19_spill] sm:$0xff] }
 0x348   :  { %v2763_v2 = vpop.f32.mrb[192].mxu1  ;;  %v11059_v1 = vpop.f32.mrb[44].mxu0 }
 0x349   :  { %12209 = vst [vmem:[#allocation18_spill] sm:$0xff] %v11059_v1  ;;  %v2815_v9 = vadd.f32 %v2763_v2, %v10741_v11  ;;  %v8084_v14 = vpop.f32.mrb[193].mxu1  ;;  %8408 = vmatmul.mubr.msk.f32.gmra.mrb[42].mxu1 %vm1174_vm2, %v3797_v52  ;;  %8904 = vmatmul.mubr.msk.f32.gmra.mrb[150].mxu0 %vm1174_vm2, %v6004_v25  ;;  %v8497_v46 = vpop.f32.mrb[45].mxu0  ;;  %v3798_v1 = vld [vmem:[#allocation2 + $0x260] sm:$0xff]  ;;  %v6005_v11 = vld [vmem:[#allocation2 + $0x2ab] sm:$0xff] }
 0x34a   :  { %8410 = vmatprep.mubr.msk.f32.mxu1 %vm9085_vm1, %v12142_v38  ;;  %8906 = vmatprep.mubr.msk.f32.mxu0 %vm9085_vm1, %v12142_v38 }
 0x34b   :  { %v11069_v56 = vadd.f32 %v12210_v12, %v2815_v9  ;;  %v12212_v9 = vld [vmem:[#allocation20_spill] sm:$0xff] }
 0x34c   :  { %v2768_v4 = vpop.f32.mrb[194].mxu1  ;;  %v11071_v24 = vpop.f32.mrb[46].mxu0 }
 0x34d   :  { %12211 = vst [vmem:[#allocation19_spill] sm:$0xff] %v11071_v24  ;;  %v2816_v2 = vadd.f32 %v2768_v4, %v10753_v45  ;;  %v8087_v52 = vpop.f32.mrb[195].mxu1  ;;  %8411 = vmatmul.mubr.msk.f32.gmra.mrb[44].mxu1 %vm1174_vm2, %v3798_v1  ;;  %v8583_v25 = vpop.f32.mrb[47].mxu0  ;;  %8907 = vmatmul.mubr.msk.f32.gmra.mrb[152].mxu0 %vm1174_vm2, %v6005_v11  ;;  %v3799_v24 = vld [vmem:[#allocation2 + $0x268] sm:$0xff]  ;;  %v6006_v45 = vld [vmem:[#allocation2 + $0x2b3] sm:$0xff] }
 0x34e   :  { %8413 = vmatprep.mubr.msk.f32.mxu1 %vm9085_vm1, %v12142_v38  ;;  %8909 = vmatprep.mubr.msk.f32.mxu0 %vm9085_vm1, %v12142_v38  ;;  %v12214_v52 = vld [vmem:[#allocation21_spill] sm:$0xff] }
 0x34f   :  { %v11081_v14 = vadd.f32 %v12212_v9, %v2816_v2  ;;  %v6943_v2 = vld [vmem:[%s12136_s3 + $0xc0] sm:$0xff] }
 0x350   :  { %v2773_v46 = vpop.f32.mrb[196].mxu1  ;;  %v11083_v12 = vpop.f32.mrb[48].mxu0 }
 0x351   :  { %12213 = vst [vmem:[#allocation20_spill] sm:$0xff] %v11083_v12  ;;  %v2817_v4 = vadd.f32 %v2773_v46, %v10765_v6  ;;  %v8090_v1 = vpop.f32.mrb[197].mxu1  ;;  %8414 = vmatmul.mubr.msk.f32.gmra.mrb[46].mxu1 %vm1174_vm2, %v3799_v24  ;;  %v8586_v11 = vpop.f32.mrb[49].mxu0  ;;  %8910 = vmatmul.mubr.msk.f32.gmra.mrb[154].mxu0 %vm1174_vm2, %v6006_v45  ;;  %v6944_v6 = vld [vmem:[%s12136_s3 + $0xc8] sm:$0xff]  ;;  %v3800_v46 = vld [vmem:[#allocation2 + $0x270] sm:$0xff]  ;;  %v6007_v45 = vld [vmem:[#allocation2 + $0x2bb] sm:$0xff] }
 0x352   :  { %8416 = vmatprep.mubr.msk.f32.mxu1 %vm9085_vm1, %v12142_v38  ;;  %8912 = vmatprep.mubr.msk.f32.mxu0 %vm9085_vm1, %v12142_v38  ;;  %v12216_v12 = vmov 0.0  }
 0x353   :  { %v11099_v25 = vadd.f32 %v12214_v52, %v2817_v4  ;;  %v9009_v4 = vpack.c.bf16 %v6944_v6, %v6943_v2  ;;  %v12217_v52 = vld [vmem:[#allocation22_spill] sm:$0xff]  ;;  %v12218_v2 = vld [vmem:[#allocation23_spill] sm:$0xff] }
 0x354   :  { %v2778_v24 = vpop.f32.mrb[198].mxu1  ;;  %v11101_v9 = vpop.f32.mrb[50].mxu0 }
 0x355   :  { %12215 = vst [vmem:[#allocation21_spill] sm:$0xff] %v11101_v9  ;;  %v2818_v1 = vadd.f32 %v2778_v24, %v10777_v17  ;;  %v8093_v11 = vpop.f32.mrb[199].mxu1  ;;  %8417 = vmatmul.mubr.msk.f32.gmra.mrb[48].mxu1 %vm1174_vm2, %v3800_v46  ;;  %v8589_v38 = vpop.f32.mrb[51].mxu0  ;;  %8913 = vmatmul.mubr.msk.f32.gmra.mrb[156].mxu0 %vm1174_vm2, %v6007_v45  ;;  %v4412_v17 = vld [vmem:[#allocation2 + $0x1ba] sm:$0xff]  ;;  %v6008_v24 = vld [vmem:[#allocation2 + $0x2c3] sm:$0xff] }
 0x356   :  { %8502 = vmatprep.mubr.msk.f32.mxu1 %vm9085_vm1, %v12216_v12  ;;  %8915 = vmatprep.mubr.msk.f32.mxu0 %vm9085_vm1, %v12216_v12  ;;  %v6009_v11 = vld [vmem:[#allocation2 + $0x2cb] sm:$0xff] }
 0x357   :  { %v11111_v60 = vadd.f32 %v12217_v52, %v2818_v1 }
 0x358   :  { %v2783_v9 = vpop.f32.mrb[200].mxu1  ;;  %v11113_v30 = vpop.f32.mrb[52].mxu0 }
 0x359   :  { %v2819_v46 = vadd.f32 %v2783_v9, %v10816_v19  ;;  %v8096_v38 = vpop.f32.mrb[201].mxu1  ;;  %8503 = vmatmul.mubr.msk.f32.vlgmr.msra.gmra.mrb[50].mxu1 %vm1174_vm2, %v4412_v17  ;;  %v8592_v45 = vpop.f32.mrb[53].mxu0  ;;  %8916 = vmatmul.mubr.msk.f32.gmra.mrb[158].mxu0 %vm1174_vm2, %v6008_v24  ;;  %v4413_v9 = vld [vmem:[#allocation2 + $0x1c2] sm:$0xff] }
 0x35a   :  { %9010 = vmatpush3.bf16.msra.mxu1 %v9009_v4  ;;  %8505 = vmatprep.mubr.msk.f32.mxu1 %vm9085_vm1, %v12216_v12  ;;  %v4414_v45 = vld [vmem:[#allocation2 + $0x1ca] sm:$0xff] }
 0x35b   :  { %8918 = vmatprep.mubr.msk.f32.mxu0 %vm9085_vm1, %v12216_v12  ;;  %v11123_v6 = vadd.f32 %v12218_v2, %v2819_v46  ;;  %9014 = vmatprep.subr.bf16.mxu1 %v12166_v63  ;;  %v12219_v63 = vld [vmem:[#allocation24_spill] sm:$0xff] }
 0x35c   :  { %v2788_v1 = vpop.f32.mrb[202].mxu1  ;;  %v11126_v19 = vpop.f32.mrb[54].mxu0 }
 0x35d   :  { %v2820_v52 = vadd.f32 %v2788_v1, %v10827_v15  ;;  %v8099_v17 = vpop.f32.mrb[203].mxu1  ;;  %8506 = vmatmul.mubr.msk.f32.gmra.mrb[52].mxu1 %vm1174_vm2, %v4413_v9  ;;  %v8595_v4 = vpop.f32.mrb[55].mxu0  ;;  %8919 = vmatmul.mubr.msk.f32.gmra.mrb[160].mxu0 %vm1174_vm2, %v6009_v11  ;;  %v6010_v15 = vld [vmem:[#allocation2 + $0x2d3] sm:$0xff] }
 0x35e   :  { %8508 = vmatprep.mubr.msk.f32.mxu1 %vm9085_vm1, %v12216_v12  ;;  %8921 = vmatprep.mubr.msk.f32.mxu0 %vm9085_vm1, %v12216_v12  ;;  %v12220_v11 = vld [vmem:[#allocation25_spill] sm:$0xff] }
 0x35f   :  { %v11136_v24 = vadd.f32 %v12219_v63, %v2820_v52  ;;  %v4415_v63 = vld [vmem:[#allocation2 + $0x1d2] sm:$0xff] }
 0x360   :  { %v2793_v46 = vpop.f32.mrb[204].mxu1  ;;  %v11138_v38 = vpop.f32.mrb[56].mxu0 }
 0x361   :  { %v2821_v2 = vadd.f32 %v2793_v46, %v10837_v58  ;;  %v8102_v1 = vpop.f32.mrb[205].mxu1  ;;  %8509 = vmatmul.mubr.msk.f32.gmra.mrb[54].mxu1 %vm1174_vm2, %v4414_v45  ;;  %v8598_v9 = vpop.f32.mrb[57].mxu0  ;;  %8922 = vmatmul.mubr.msk.f32.gmra.mrb[162].mxu0 %vm1174_vm2, %v6010_v15  ;;  %v6011_v58 = vld [vmem:[#allocation2 + $0x2db] sm:$0xff] }
 0x362   :  { %8511 = vmatprep.mubr.msk.f32.mxu1 %vm9085_vm1, %v12216_v12  ;;  %8924 = vmatprep.mubr.msk.f32.mxu0 %vm9085_vm1, %v12216_v12 }
 0x363   :  { %v11148_v52 = vadd.f32 %v12220_v11, %v2821_v2  ;;  %v12222_v2 = vld [vmem:[#allocation26_spill] sm:$0xff] }
 0x364   :  { %v3309_v17 = vpop.f32.mrb[206].mxu1  ;;  %v11150_v4 = vpop.f32.mrb[58].mxu0 }
 0x365   :  { %12221 = vst [vmem:[#allocation22_spill] sm:$0xff] %v11150_v4  ;;  %v3433_v46 = vadd.f32 %v3309_v17, %v10853_v40  ;;  %v8188_v45 = vpop.f32.mrb[207].mxu1  ;;  %8512 = vmatmul.mubr.msk.f32.gmra.mrb[56].mxu1 %vm1174_vm2, %v4415_v63  ;;  %v8601_v15 = vpop.f32.mrb[59].mxu0  ;;  %8925 = vmatmul.mubr.msk.f32.gmra.mrb[164].mxu0 %vm1174_vm2, %v6011_v58  ;;  %v4416_v4 = vld [vmem:[#allocation2 + $0x1da] sm:$0xff]  ;;  %v6012_v40 = vld [vmem:[#allocation2 + $0x2e3] sm:$0xff] }
 0x366   :  { %8514 = vmatprep.mubr.msk.f32.mxu1 %vm9085_vm1, %v12216_v12  ;;  %8927 = vmatprep.mubr.msk.f32.mxu0 %vm9085_vm1, %v12216_v12 }
 0x367   :  { %v11160_v1 = vadd.f32 %v12222_v2, %v3433_v46  ;;  %v12224_v46 = vld [vmem:[#allocation27_spill] sm:$0xff] }
 0x368   :  { %v3314_v9 = vpop.f32.mrb[208].mxu1  ;;  %v11162_v11 = vpop.f32.mrb[60].mxu0 }
 0x369   :  { %12223 = vst [vmem:[#allocation23_spill] sm:$0xff] %v11162_v11  ;;  %v3434_v17 = vadd.f32 %v3314_v9, %v10865_v62  ;;  %v8191_v63 = vpop.f32.mrb[209].mxu1  ;;  %8515 = vmatmul.mubr.msk.f32.gmra.mrb[58].mxu1 %vm1174_vm2, %v4416_v4  ;;  %v8604_v58 = vpop.f32.mrb[61].mxu0  ;;  %8928 = vmatmul.mubr.msk.f32.gmra.mrb[166].mxu0 %vm1174_vm2, %v6012_v40  ;;  %v4417_v11 = vld [vmem:[#allocation2 + $0x1e2] sm:$0xff]  ;;  %v6013_v62 = vld [vmem:[#allocation2 + $0x2eb] sm:$0xff] }
 0x36a   :  { %8517 = vmatprep.mubr.msk.f32.mxu1 %vm9085_vm1, %v12216_v12  ;;  %8930 = vmatprep.mubr.msk.f32.mxu0 %vm9085_vm1, %v12216_v12 }
 0x36b   :  { %v11172_v45 = vadd.f32 %v12224_v46, %v3434_v17  ;;  %v12226_v17 = vld [vmem:[#allocation28_spill] sm:$0xff] }
 0x36c   :  { %v3319_v15 = vpop.f32.mrb[210].mxu1  ;;  %v11174_v2 = vpop.f32.mrb[62].mxu0 }
 0x36d   :  { %12225 = vst [vmem:[#allocation24_spill] sm:$0xff] %v11174_v2  ;;  %v3435_v9 = vadd.f32 %v3319_v15, %v10877_v29  ;;  %v8194_v4 = vpop.f32.mrb[211].mxu1  ;;  %8518 = vmatmul.mubr.msk.f32.gmra.mrb[60].mxu1 %vm1174_vm2, %v4417_v11  ;;  %v8607_v40 = vpop.f32.mrb[63].mxu0  ;;  %8931 = vmatmul.mubr.msk.f32.gmra.mrb[168].mxu0 %vm1174_vm2, %v6013_v62  ;;  %v4418_v2 = vld [vmem:[#allocation2 + $0x1ea] sm:$0xff]  ;;  %v6014_v29 = vld [vmem:[#allocation2 + $0x2f3] sm:$0xff] }
 0x36e   :  { %8520 = vmatprep.mubr.msk.f32.mxu1 %vm9085_vm1, %v12216_v12  ;;  %8933 = vmatprep.mubr.msk.f32.mxu0 %vm9085_vm1, %v12216_v12 }
 0x36f   :  { %v11184_v63 = vadd.f32 %v12226_v17, %v3435_v9  ;;  %v4419_v17 = vld [vmem:[#allocation2 + $0x1f2] sm:$0xff] }
 0x370   :  { %v3324_v58 = vpop.f32.mrb[212].mxu1  ;;  %v11186_v46 = vpop.f32.mrb[64].mxu0 }
 0x371   :  { %v3436_v15 = vadd.f32 %v3324_v58, %v10889_v28  ;;  %v8197_v11 = vpop.f32.mrb[213].mxu1  ;;  %8521 = vmatmul.mubr.msk.f32.gmra.mrb[62].mxu1 %vm1174_vm2, %v4418_v2  ;;  %v8610_v62 = vpop.f32.mrb[65].mxu0  ;;  %8934 = vmatmul.mubr.msk.f32.gmra.mrb[170].mxu0 %vm1174_vm2, %v6014_v29  ;;  %v6015_v28 = vld [vmem:[#allocation2 + $0x2fb] sm:$0xff] }
 0x372   :  { %8523 = vmatprep.mubr.msk.f32.mxu1 %vm9085_vm1, %v12216_v12  ;;  %8936 = vmatprep.mubr.msk.f32.mxu0 %vm9085_vm1, %v12216_v12  ;;  %v4420_v62 = vld [vmem:[#allocation2 + $0x1fa] sm:$0xff] }
 0x373   :  { %v11196_v9 = vadd.f32 %v10508_v41, %v3436_v15 }
 0x374   :  { %v3329_v4 = vpop.f32.mrb[214].mxu1  ;;  %v11198_v40 = vpop.f32.mrb[66].mxu0 }
 0x375   :  { %v3437_v58 = vadd.f32 %v3329_v4, %v10901_v34  ;;  %v8200_v2 = vpop.f32.mrb[215].mxu1  ;;  %8524 = vmatmul.mubr.msk.f32.gmra.mrb[64].mxu1 %vm1174_vm2, %v4419_v17  ;;  %v8613_v29 = vpop.f32.mrb[67].mxu0  ;;  %8937 = vmatmul.mubr.msk.f32.gmra.mrb[172].mxu0 %vm1174_vm2, %v6015_v28  ;;  %v6016_v34 = vld [vmem:[#allocation2 + $0x303] sm:$0xff] }
 0x376   :  { %8526 = vmatprep.mubr.msk.f32.mxu1 %vm9085_vm1, %v12216_v12  ;;  %8939 = vmatprep.mubr.msk.f32.mxu0 %vm9085_vm1, %v12216_v12  ;;  %v4421_v29 = vld [vmem:[#allocation2 + $0x202] sm:$0xff] }
 0x377   :  { %v11208_v41 = vadd.f32 %v10521_v59, %v3437_v58 }
 0x378   :  { %v3334_v15 = vpop.f32.mrb[216].mxu1  ;;  %v11210_v11 = vpop.f32.mrb[68].mxu0 }
 0x379   :  { %v3438_v4 = vadd.f32 %v3334_v15, %v10913_v43  ;;  %v8203_v17 = vpop.f32.mrb[217].mxu1  ;;  %8527 = vmatmul.mubr.msk.f32.gmra.mrb[66].mxu1 %vm1174_vm2, %v4420_v62  ;;  %v8616_v28 = vpop.f32.mrb[69].mxu0  ;;  %8940 = vmatmul.mubr.msk.f32.gmra.mrb[174].mxu0 %vm1174_vm2, %v6016_v34  ;;  %v6017_v43 = vld [vmem:[#allocation2 + $0x30b] sm:$0xff] }
 0x37a   :  { %8529 = vmatprep.mubr.msk.f32.mxu1 %vm9085_vm1, %v12216_v12  ;;  %8942 = vmatprep.mubr.msk.f32.mxu0 %vm9085_vm1, %v12216_v12  ;;  %v4422_v28 = vld [vmem:[#allocation2 + $0x20a] sm:$0xff] }
 0x37b   :  { %v11220_v59 = vadd.f32 %v10533_v50, %v3438_v4 }
 0x37c   :  { %v3339_v58 = vpop.f32.mrb[218].mxu1  ;;  %v11222_v2 = vpop.f32.mrb[70].mxu0 }
 0x37d   :  { %v3439_v15 = vadd.f32 %v3339_v58, %v10925_v49  ;;  %v8206_v62 = vpop.f32.mrb[219].mxu1  ;;  %8530 = vmatmul.mubr.msk.f32.gmra.mrb[68].mxu1 %vm1174_vm2, %v4421_v29  ;;  %v8619_v34 = vpop.f32.mrb[71].mxu0  ;;  %8943 = vmatmul.mubr.msk.f32.gmra.mrb[176].mxu0 %vm1174_vm2, %v6017_v43  ;;  %v6018_v49 = vld [vmem:[#allocation2 + $0x313] sm:$0xff] }
 0x37e   :  { %8532 = vmatprep.mubr.msk.f32.mxu1 %vm9085_vm1, %v12216_v12  ;;  %8945 = vmatprep.mubr.msk.f32.mxu0 %vm9085_vm1, %v12216_v12  ;;  %v4423_v34 = vld [vmem:[#allocation2 + $0x212] sm:$0xff] }
 0x37f   :  { %v11232_v50 = vadd.f32 %v10545_v48, %v3439_v15 }
 0x380   :  { %v3344_v4 = vpop.f32.mrb[220].mxu1  ;;  %v11234_v17 = vpop.f32.mrb[72].mxu0 }
 0x381   :  { %v3440_v58 = vadd.f32 %v3344_v4, %v10937_v55  ;;  %v8209_v29 = vpop.f32.mrb[221].mxu1  ;;  %8533 = vmatmul.mubr.msk.f32.gmra.mrb[70].mxu1 %vm1174_vm2, %v4422_v28  ;;  %v8622_v43 = vpop.f32.mrb[73].mxu0  ;;  %8946 = vmatmul.mubr.msk.f32.gmra.mrb[178].mxu0 %vm1174_vm2, %v6018_v49  ;;  %v6019_v55 = vld [vmem:[#allocation2 + $0x31b] sm:$0xff] }
 0x382   :  { %8535 = vmatprep.mubr.msk.f32.mxu1 %vm9085_vm1, %v12216_v12  ;;  %8948 = vmatprep.mubr.msk.f32.mxu0 %vm9085_vm1, %v12216_v12  ;;  %v4424_v43 = vld [vmem:[#allocation2 + $0x21a] sm:$0xff] }
 0x383   :  { %v11244_v48 = vadd.f32 %v10557_v51, %v3440_v58 }
 0x384   :  { %v3349_v15 = vpop.f32.mrb[222].mxu1  ;;  %v11246_v62 = vpop.f32.mrb[74].mxu0 }
 0x385   :  { %v3441_v4 = vadd.f32 %v3349_v15, %v10949_v61  ;;  %v8212_v28 = vpop.f32.mrb[223].mxu1  ;;  %8536 = vmatmul.mubr.msk.f32.gmra.mrb[72].mxu1 %vm1174_vm2, %v4423_v34  ;;  %v8625_v49 = vpop.f32.mrb[75].mxu0  ;;  %8949 = vmatmul.mubr.msk.f32.gmra.mrb[180].mxu0 %vm1174_vm2, %v6019_v55  ;;  %v6020_v61 = vld [vmem:[#allocation2 + $0x323] sm:$0xff] }
 0x386   :  { %8538 = vmatprep.mubr.msk.f32.mxu1 %vm9085_vm1, %v12216_v12  ;;  %8951 = vmatprep.mubr.msk.f32.mxu0 %vm9085_vm1, %v12216_v12  ;;  %v4425_v49 = vld [vmem:[#allocation2 + $0x222] sm:$0xff] }
 0x387   :  { %v11256_v51 = vadd.f32 %v10569_v8, %v3441_v4 }
 0x388   :  { %v3354_v58 = vpop.f32.mrb[224].mxu1  ;;  %v11258_v29 = vpop.f32.mrb[76].mxu0 }
 0x389   :  { %v3442_v15 = vadd.f32 %v3354_v58, %v10961_v5  ;;  %v8215_v34 = vpop.f32.mrb[225].mxu1  ;;  %8539 = vmatmul.mubr.msk.f32.gmra.mrb[74].mxu1 %vm1174_vm2, %v4424_v43  ;;  %v8628_v55 = vpop.f32.mrb[77].mxu0  ;;  %8952 = vmatmul.mubr.msk.f32.gmra.mrb[182].mxu0 %vm1174_vm2, %v6020_v61  ;;  %v6021_v5 = vld [vmem:[#allocation2 + $0x32b] sm:$0xff] }
 0x38a   :  { %8541 = vmatprep.mubr.msk.f32.mxu1 %vm9085_vm1, %v12216_v12  ;;  %8954 = vmatprep.mubr.msk.f32.mxu0 %vm9085_vm1, %v12216_v12  ;;  %v4426_v55 = vld [vmem:[#allocation2 + $0x22a] sm:$0xff] }
 0x38b   :  { %v11268_v8 = vadd.f32 %v10581_v13, %v3442_v15 }
 0x38c   :  { %v3359_v4 = vpop.f32.mrb[226].mxu1  ;;  %v11270_v28 = vpop.f32.mrb[78].mxu0 }
 0x38d   :  { %v3443_v58 = vadd.f32 %v3359_v4, %v10973_v10  ;;  %v8218_v43 = vpop.f32.mrb[227].mxu1  ;;  %8542 = vmatmul.mubr.msk.f32.gmra.mrb[76].mxu1 %vm1174_vm2, %v4425_v49  ;;  %v8631_v61 = vpop.f32.mrb[79].mxu0  ;;  %8955 = vmatmul.mubr.msk.f32.gmra.mrb[184].mxu0 %vm1174_vm2, %v6021_v5  ;;  %v6022_v10 = vld [vmem:[#allocation2 + $0x333] sm:$0xff] }
 0x38e   :  { %8544 = vmatprep.mubr.msk.f32.mxu1 %vm9085_vm1, %v12216_v12  ;;  %8957 = vmatprep.mubr.msk.f32.mxu0 %vm9085_vm1, %v12216_v12  ;;  %v4427_v61 = vld [vmem:[#allocation2 + $0x232] sm:$0xff] }
 0x38f   :  { %v11280_v13 = vadd.f32 %v10593_v18, %v3443_v58 }
 0x390   :  { %v3364_v15 = vpop.f32.mrb[228].mxu1  ;;  %v11282_v34 = vpop.f32.mrb[80].mxu0 }
 0x391   :  { %v3444_v4 = vadd.f32 %v3364_v15, %v10985_v16  ;;  %v8221_v49 = vpop.f32.mrb[229].mxu1  ;;  %8545 = vmatmul.mubr.msk.f32.gmra.mrb[78].mxu1 %vm1174_vm2, %v4426_v55  ;;  %v8634_v5 = vpop.f32.mrb[81].mxu0  ;;  %8958 = vmatmul.mubr.msk.f32.gmra.mrb[186].mxu0 %vm1174_vm2, %v6022_v10  ;;  %v6023_v16 = vld [vmem:[#allocation2 + $0x33b] sm:$0xff] }
 0x392   :  { %8547 = vmatprep.mubr.msk.f32.mxu1 %vm9085_vm1, %v12216_v12  ;;  %8960 = vmatprep.mubr.msk.f32.mxu0 %vm9085_vm1, %v12216_v12  ;;  %v4428_v5 = vld [vmem:[#allocation2 + $0x23a] sm:$0xff] }
 0x393   :  { %v11292_v18 = vadd.f32 %v10605_v7, %v3444_v4 }
 0x394   :  { %v3369_v58 = vpop.f32.mrb[230].mxu1  ;;  %v11294_v43 = vpop.f32.mrb[82].mxu0 }
 0x395   :  { %v3445_v15 = vadd.f32 %v3369_v58, %v10997_v22  ;;  %v8224_v55 = vpop.f32.mrb[231].mxu1  ;;  %8548 = vmatmul.mubr.msk.f32.gmra.mrb[80].mxu1 %vm1174_vm2, %v4427_v61  ;;  %v8637_v10 = vpop.f32.mrb[83].mxu0  ;;  %8961 = vmatmul.mubr.msk.f32.gmra.mrb[188].mxu0 %vm1174_vm2, %v6023_v16  ;;  %v6024_v22 = vld [vmem:[#allocation2 + $0x343] sm:$0xff] }
 0x396   :  { %8550 = vmatprep.mubr.msk.f32.mxu1 %vm9085_vm1, %v12216_v12  ;;  %8963 = vmatprep.mubr.msk.f32.mxu0 %vm9085_vm1, %v12216_v12  ;;  %v4429_v10 = vld [vmem:[#allocation2 + $0x242] sm:$0xff] }
 0x397   :  { %v11304_v7 = vadd.f32 %v10617_v37, %v3445_v15 }
 0x398   :  { %v3374_v4 = vpop.f32.mrb[232].mxu1  ;;  %v11306_v49 = vpop.f32.mrb[84].mxu0 }
 0x399   :  { %v3446_v58 = vadd.f32 %v3374_v4, %v11009_v26  ;;  %v8227_v61 = vpop.f32.mrb[233].mxu1  ;;  %8551 = vmatmul.mubr.msk.f32.gmra.mrb[82].mxu1 %vm1174_vm2, %v4428_v5  ;;  %v8640_v16 = vpop.f32.mrb[85].mxu0  ;;  %8964 = vmatmul.mubr.msk.f32.gmra.mrb[190].mxu0 %vm1174_vm2, %v6024_v22  ;;  %v6025_v26 = vld [vmem:[#allocation2 + $0x34b] sm:$0xff] }
 0x39a   :  { %8553 = vmatprep.mubr.msk.f32.mxu1 %vm9085_vm1, %v12216_v12  ;;  %8966 = vmatprep.mubr.msk.f32.mxu0 %vm9085_vm1, %v12216_v12  ;;  %v4430_v16 = vld [vmem:[#allocation2 + $0x24a] sm:$0xff] }
 0x39b   :  { %v11316_v37 = vadd.f32 %v10629_v54, %v3446_v58 }
 0x39c   :  { %v3379_v15 = vpop.f32.mrb[234].mxu1  ;;  %v11318_v55 = vpop.f32.mrb[86].mxu0 }
 0x39d   :  { %12227 = vst [vmem:[#allocation25_spill] sm:$0xff] %v11318_v55  ;;  %v3447_v4 = vadd.f32 %v3379_v15, %v11021_v39  ;;  %v8230_v5 = vpop.f32.mrb[235].mxu1  ;;  %8554 = vmatmul.mubr.msk.f32.gmra.mrb[84].mxu1 %vm1174_vm2, %v4429_v10  ;;  %v8643_v22 = vpop.f32.mrb[87].mxu0  ;;  %8967 = vmatmul.mubr.msk.f32.gmra.mrb[192].mxu0 %vm1174_vm2, %v6025_v26  ;;  %v6026_v39 = vld [vmem:[#allocation2 + $0x353] sm:$0xff] }
 0x39e   :  { %8556 = vmatprep.mubr.msk.f32.mxu1 %vm9085_vm1, %v12216_v12  ;;  %8969 = vmatprep.mubr.msk.f32.mxu0 %vm9085_vm1, %v12216_v12  ;;  %v4431_v22 = vld [vmem:[#allocation2 + $0x252] sm:$0xff] }
 0x39f   :  { %v11328_v54 = vadd.f32 %v10641_v31, %v3447_v4 }
 0x3a0   :  { %v3384_v58 = vpop.f32.mrb[236].mxu1  ;;  %v11330_v61 = vpop.f32.mrb[88].mxu0 }
 0x3a1   :  { %12228 = vst [vmem:[#allocation26_spill] sm:$0xff] %v11330_v61  ;;  %v3448_v15 = vadd.f32 %v3384_v58, %v11033_v47  ;;  %v8233_v10 = vpop.f32.mrb[237].mxu1  ;;  %8557 = vmatmul.mubr.msk.f32.gmra.mrb[86].mxu1 %vm1174_vm2, %v4430_v16  ;;  %v8646_v26 = vpop.f32.mrb[89].mxu0  ;;  %8970 = vmatmul.mubr.msk.f32.gmra.mrb[194].mxu0 %vm1174_vm2, %v6026_v39 }
 0x3a2   :  { %8559 = vmatprep.mubr.msk.f32.mxu1 %vm9085_vm1, %v12216_v12 }
 0x3a3   :  { %v11338_v5 = vadd.f32 %v10653_v53, %v3448_v15  ;;  %v4432_v53 = vld [vmem:[#allocation2 + $0x25a] sm:$0xff] }
 0x3a4   :  { %v3389_v31 = vpop.f32.mrb[238].mxu1  ;;  %v11340_v4 = vpop.f32.mrb[90].mxu0 }
 0x3a5   :  { %v3449_v61 = vadd.f32 %v3389_v31, %v11045_v57  ;;  %v8236_v55 = vpop.f32.mrb[239].mxu1  ;;  %8560 = vmatmul.mubr.msk.f32.gmra.mrb[88].mxu1 %vm1174_vm2, %v4431_v22  ;;  %v8649_v47 = vpop.f32.mrb[91].mxu0 }
 0x3a6   :  { %8562 = vmatprep.mubr.msk.f32.mxu1 %vm9085_vm1, %v12216_v12 }
 0x3a7   :  { %v11347_v58 = vadd.f32 %v10665_v27, %v3449_v61  ;;  %v4433_v27 = vld [vmem:[#allocation2 + $0x262] sm:$0xff] }
 0x3a8   :  { %v3394_v16 = vpop.f32.mrb[240].mxu1  ;;  %v11349_v39 = vpop.f32.mrb[92].mxu0 }
 0x3a9   :  { %v3450_v15 = vadd.f32 %v3394_v16, %v11057_v3  ;;  %v8239_v10 = vpop.f32.mrb[241].mxu1  ;;  %8563 = vmatmul.mubr.msk.f32.gmra.mrb[90].mxu1 %vm1174_vm2, %v4432_v53  ;;  %v8652_v57 = vpop.f32.mrb[93].mxu0 }
 0x3aa   :  { %8565 = vmatprep.mubr.msk.f32.mxu1 %vm9085_vm1, %v12216_v12 }
 0x3ab   :  { %v11356_v55 = vadd.f32 %v10677_v33, %v3450_v15  ;;  %v4434_v33 = vld [vmem:[#allocation2 + $0x26a] sm:$0xff] }
 0x3ac   :  { %v3399_v26 = vpop.f32.mrb[242].mxu1  ;;  %v11358_v31 = vpop.f32.mrb[94].mxu0 }
 0x3ad   :  { %v3451_v61 = vadd.f32 %v3399_v26, %v11069_v56  ;;  %v8242_v22 = vpop.f32.mrb[243].mxu1  ;;  %8566 = vmatmul.mubr.msk.f32.gmra.mrb[92].mxu1 %vm1174_vm2, %v4433_v27  ;;  %v8655_v3 = vpop.f32.mrb[95].mxu0 }
 0x3ae   :  { %8568 = vmatprep.mubr.msk.f32.mxu1 %vm9085_vm1, %v12216_v12  ;;  %v6997_v3 = vld [vmem:[%s12136_s3 + $0xe0] sm:$0xff] }
 0x3af   :  { %v11365_v47 = vadd.f32 %v10689_v0, %v3451_v61  ;;  %v4435_v0 = vld [vmem:[#allocation2 + $0x272] sm:$0xff] }
 0x3b0   :  { %v3404_v16 = vpop.f32.mrb[244].mxu1  ;;  %v11367_v53 = vpop.f32.mrb[96].mxu0 }
 0x3b1   :  { %12229 = vst [vmem:[#allocation27_spill] sm:$0xff] %v11367_v53  ;;  %v3452_v15 = vadd.f32 %v3404_v16, %v11081_v14  ;;  %v8245_v10 = vpop.f32.mrb[245].mxu1  ;;  %8569 = vmatmul.mubr.msk.f32.gmra.mrb[94].mxu1 %vm1174_vm2, %v4434_v33  ;;  %v8741_v56 = vpop.f32.mrb[97].mxu0 }
 0x3b2   :  { %8571 = vmatprep.mubr.msk.f32.mxu1 %vm9085_vm1, %v12216_v12 }
 0x3b3   :  { %v11374_v57 = vadd.f32 %v10701_v23, %v3452_v15  ;;  %v6998_v23 = vld [vmem:[%s12136_s3 + $0xe8] sm:$0xff]  ;;  %v4436_v15 = vld [vmem:[#allocation2 + $0x27a] sm:$0xff] }
 0x3b4   :  { %v3409_v26 = vpop.f32.mrb[246].mxu1  ;;  %v11376_v27 = vpop.f32.mrb[98].mxu0 }
 0x3b5   :  { %12230 = vst [vmem:[#allocation28_spill] sm:$0xff] %v11376_v27  ;;  %v3453_v61 = vadd.f32 %v3409_v26, %v11099_v25  ;;  %v8248_v22 = vpop.f32.mrb[247].mxu1  ;;  %8572 = vmatmul.mubr.msk.f32.gmra.mrb[96].mxu1 %vm1174_vm2, %v4435_v0  ;;  %v8744_v14 = vpop.f32.mrb[99].mxu0  ;;  %v9015_v0 = vpack.c.bf16 %v6998_v23, %v6997_v3 }
 0x3b6   :  { %8574 = vmatprep.mubr.msk.f32.mxu1 %vm9085_vm1, %v12216_v12  ;;  %v12232_v22 = vld [vmem:[#allocation29_spill] sm:$0xff] }
 0x3b7   :  { %v11389_v16 = vadd.f32 %v10713_v42, %v3453_v61  ;;  %v5048_v61 = vld [vmem:[#allocation2 + $0x288] sm:$0xff] }
 0x3b8   :  { %v3414_v33 = vpop.f32.mrb[248].mxu1  ;;  %v11391_v25 = vpop.f32.mrb[100].mxu0 }
 0x3b9   :  { %12231 = vst [vmem:[#allocation36_spill] sm:$0xff] %v11391_v25  ;;  %v3454_v10 = vadd.f32 %v3414_v33, %v11111_v60  ;;  %v8251_v56 = vpop.f32.mrb[249].mxu1  ;;  %8575 = vmatmul.mubr.msk.f32.gmra.mrb[98].mxu1 %vm1174_vm2, %v4436_v15  ;;  %v8747_v26 = vpop.f32.mrb[101].mxu0  ;;  %v5049_v15 = vld [vmem:[#allocation2 + $0x290] sm:$0xff] }
 0x3ba   :  { %8660 = vmatprep.mubr.msk.f32.mxu1 %vm9085_vm1, %v12216_v12 }
 0x3bb   :  { %v11398_v14 = vadd.f32 %v12232_v22, %v3454_v10 }
 0x3bc   :  { %v3419_v27 = vpop.f32.mrb[250].mxu1  ;;  %v11400_v42 = vpop.f32.mrb[102].mxu0 }
 0x3bd   :  { %v3455_v25 = vadd.f32 %v3419_v27, %v11123_v6  ;;  %v8254_v53 = vpop.f32.mrb[251].mxu1  ;;  %8661 = vmatmul.mubr.msk.f32.vlgmr.msra.gmra.mrb[100].mxu1 %vm1174_vm2, %v5048_v61  ;;  %v8750_v60 = vpop.f32.mrb[103].mxu0 }
 0x3be   :  { %9016 = vmatpush3.bf16.msra.mxu1 %v9015_v0  ;;  %8663 = vmatprep.mubr.msk.f32.mxu1 %vm9085_vm1, %v12216_v12 }
 0x3bf   :  { %v11407_v33 = vadd.f32 %v10743_v36, %v3455_v25  ;;  %v5050_v36 = vld [vmem:[#allocation2 + $0x298] sm:$0xff] }
 0x3c0   :  { %v3424_v3 = vpop.f32.mrb[252].mxu1  ;;  %v11409_v23 = vpop.f32.mrb[104].mxu0 }
 0x3c1   :  { %v3456_v10 = vadd.f32 %v3424_v3, %v11136_v24  ;;  %v8257_v56 = vpop.f32.mrb[253].mxu1  ;;  %8664 = vmatmul.mubr.msk.f32.gmra.mrb[102].mxu1 %vm1174_vm2, %v5049_v15  ;;  %v8753_v6 = vpop.f32.mrb[105].mxu0 }
 0x3c2   :  { %8666 = vmatprep.mubr.msk.f32.mxu1 %vm9085_vm1, %v12216_v12 }
 0x3c3   :  { %v11416_v53 = vadd.f32 %v10755_v44, %v3456_v10  ;;  %v5051_v44 = vld [vmem:[#allocation2 + $0x2a0] sm:$0xff]  ;;  %v12233_v10 = vld [vmem:[#allocation30_spill] sm:$0xff] }
 0x3c4   :  { %v3429_v27 = vpop.f32.mrb[254].mxu1  ;;  %v11418_v26 = vpop.f32.mrb[106].mxu0 }
 0x3c5   :  { %v3457_v25 = vadd.f32 %v3429_v27, %v11148_v52  ;;  %v8260_v0 = vpop.f32.mrb[255].mxu1  ;;  %8667 = vmatmul.mubr.msk.f32.gmra.mrb[104].mxu1 %vm1174_vm2, %v5050_v36  ;;  %v8756_v24 = vpop.f32.mrb[107].mxu0 }
 0x3c6   :  { %8669 = vmatprep.mubr.msk.f32.mxu1 %vm9085_vm1, %v12216_v12  ;;  %v12234_v0 = vld [vmem:[#allocation31_spill] sm:$0xff] }
 0x3c7   :  { %v11425_v22 = vadd.f32 %v10767_v20, %v3457_v25  ;;  %v5052_v20 = vld [vmem:[#allocation2 + $0x2a8] sm:$0xff] }
 0x3c8   :  { %v3945_v61 = vpop.f32.mrb[0].mxu1  ;;  %v11427_v60 = vpop.f32.mrb[108].mxu0 }
 0x3c9   :  { %v4069_v3 = vadd.f32 %v3945_v61, %v11160_v1  ;;  %v8346_v15 = vpop.f32.mrb[1].mxu1  ;;  %8670 = vmatmul.mubr.msk.f32.gmra.mrb[106].mxu1 %vm1174_vm2, %v5051_v44  ;;  %v8759_v52 = vpop.f32.mrb[109].mxu0 }
 0x3ca   :  { %8672 = vmatprep.mubr.msk.f32.mxu1 %vm9085_vm1, %v12216_v12 }
 0x3cb   :  { %v11434_v56 = vadd.f32 %v12233_v10, %v4069_v3  ;;  %v5053_v3 = vld [vmem:[#allocation2 + $0x2b0] sm:$0xff]  ;;  %v12235_v10 = vld [vmem:[#allocation32_spill] sm:$0xff] }
 0x3cc   :  { %v3950_v6 = vpop.f32.mrb[2].mxu1  ;;  %v11436_v27 = vpop.f32.mrb[110].mxu0 }
 0x3cd   :  { %v4070_v36 = vadd.f32 %v3950_v6, %v11172_v45  ;;  %v8349_v25 = vpop.f32.mrb[3].mxu1  ;;  %8673 = vmatmul.mubr.msk.f32.gmra.mrb[108].mxu1 %vm1174_vm2, %v5052_v20  ;;  %v8762_v1 = vpop.f32.mrb[111].mxu0 }
 0x3ce   :  { %8675 = vmatprep.mubr.msk.f32.mxu1 %vm9085_vm1, %v12216_v12 }
 0x3cf   :  { %v11443_v24 = vadd.f32 %v12234_v0, %v4070_v36  ;;  %v5054_v36 = vld [vmem:[#allocation2 + $0x2b8] sm:$0xff] }
 0x3d0   :  { %v3955_v61 = vpop.f32.mrb[4].mxu1  ;;  %v11445_v44 = vpop.f32.mrb[112].mxu0 }
 0x3d1   :  { %v4071_v15 = vadd.f32 %v3955_v61, %v11184_v63  ;;  %v8352_v52 = vpop.f32.mrb[5].mxu1  ;;  %8676 = vmatmul.mubr.msk.f32.gmra.mrb[110].mxu1 %vm1174_vm2, %v5053_v3  ;;  %v8765_v45 = vpop.f32.mrb[113].mxu0 }
 0x3d2   :  { %8678 = vmatprep.mubr.msk.f32.mxu1 %vm9085_vm1, %v12216_v12 }
 0x3d3   :  { %v11452_v6 = vadd.f32 %v12235_v10, %v4071_v15  ;;  %v5055_v15 = vld [vmem:[#allocation2 + $0x2c0] sm:$0xff] }
 0x3d4   :  { %v3960_v20 = vpop.f32.mrb[6].mxu1  ;;  %v11454_v25 = vpop.f32.mrb[114].mxu0 }
 0x3d5   :  { %v4072_v1 = vadd.f32 %v3960_v20, %v11196_v9  ;;  %v8355_v0 = vpop.f32.mrb[7].mxu1  ;;  %8679 = vmatmul.mubr.msk.f32.gmra.mrb[112].mxu1 %vm1174_vm2, %v5054_v36  ;;  %v8768_v63 = vpop.f32.mrb[115].mxu0 }
 0x3d6   :  { %8681 = vmatprep.mubr.msk.f32.mxu1 %vm9085_vm1, %v12216_v12 }
 0x3d7   :  { %v11461_v61 = vadd.f32 %v10812_v35, %v4072_v1  ;;  %v5056_v35 = vld [vmem:[#allocation2 + $0x2c8] sm:$0xff] }
 0x3d8   :  { %v3965_v3 = vpop.f32.mrb[8].mxu1  ;;  %v11463_v52 = vpop.f32.mrb[116].mxu0 }
 0x3d9   :  { %v4073_v45 = vadd.f32 %v3965_v3, %v11208_v41  ;;  %v8358_v10 = vpop.f32.mrb[9].mxu1  ;;  %8682 = vmatmul.mubr.msk.f32.gmra.mrb[114].mxu1 %vm1174_vm2, %v5055_v15  ;;  %v8771_v9 = vpop.f32.mrb[117].mxu0 }
 0x3da   :  { %8684 = vmatprep.mubr.msk.f32.mxu1 %vm9085_vm1, %v12216_v12 }
 0x3db   :  { %v11470_v20 = vadd.f32 %v10823_v21, %v4073_v45  ;;  %v5057_v21 = vld [vmem:[#allocation2 + $0x2d0] sm:$0xff] }
 0x3dc   :  { %v3970_v36 = vpop.f32.mrb[10].mxu1  ;;  %v11472_v0 = vpop.f32.mrb[118].mxu0 }
 0x3dd   :  { %v4074_v1 = vadd.f32 %v3970_v36, %v11220_v59  ;;  %v8361_v63 = vpop.f32.mrb[11].mxu1  ;;  %8685 = vmatmul.mubr.msk.f32.gmra.mrb[116].mxu1 %vm1174_vm2, %v5056_v35  ;;  %v8774_v41 = vpop.f32.mrb[119].mxu0  ;;  %v12237_v36 = vld [vmem:[#allocation33_spill] sm:$0xff] }
 0x3de   :  { %8687 = vmatprep.mubr.msk.f32.mxu1 %vm9085_vm1, %v12216_v12 }
 0x3df   :  { %v11479_v3 = vadd.f32 %v10833_v32, %v4074_v1  ;;  %v5058_v32 = vld [vmem:[#allocation2 + $0x2d8] sm:$0xff] }
 0x3e0   :  { %v3975_v15 = vpop.f32.mrb[12].mxu1  ;;  %v11481_v10 = vpop.f32.mrb[120].mxu0 }
 0x3e1   :  { %12236 = vst [vmem:[#allocation29_spill] sm:$0xff] %v11481_v10  ;;  %v4075_v45 = vadd.f32 %v3975_v15, %v11232_v50  ;;  %v8364_v9 = vpop.f32.mrb[13].mxu1  ;;  %8688 = vmatmul.mubr.msk.f32.gmra.mrb[118].mxu1 %vm1174_vm2, %v5057_v21  ;;  %v8777_v59 = vpop.f32.mrb[121].mxu0  ;;  %v12239_v15 = vld [vmem:[#allocation34_spill] sm:$0xff] }
 0x3e2   :  { %8690 = vmatprep.mubr.msk.f32.mxu1 %vm9085_vm1, %v12216_v12 }
 0x3e3   :  { %v11488_v35 = vadd.f32 %v12237_v36, %v4075_v45  ;;  %v5059_v45 = vld [vmem:[#allocation2 + $0x2e0] sm:$0xff] }
 0x3e4   :  { %v3980_v63 = vpop.f32.mrb[14].mxu1  ;;  %v11490_v41 = vpop.f32.mrb[122].mxu0 }
 0x3e5   :  { %12238 = vst [vmem:[#allocation30_spill] sm:$0xff] %v11490_v41  ;;  %v4076_v1 = vadd.f32 %v3980_v63, %v11244_v48  ;;  %v8367_v10 = vpop.f32.mrb[15].mxu1  ;;  %8691 = vmatmul.mubr.msk.f32.gmra.mrb[120].mxu1 %vm1174_vm2, %v5058_v32  ;;  %v8780_v50 = vpop.f32.mrb[123].mxu0 }
 0x3e6   :  { %8693 = vmatprep.mubr.msk.f32.mxu1 %vm9085_vm1, %v12216_v12  ;;  %v12241_v10 = vld [vmem:[#allocation35_spill] sm:$0xff] }
 0x3e7   :  { %v11497_v21 = vadd.f32 %v12239_v15, %v4076_v1  ;;  %v5060_v1 = vld [vmem:[#allocation2 + $0x2e8] sm:$0xff] }
 0x3e8   :  { %v3985_v9 = vpop.f32.mrb[16].mxu1  ;;  %v11499_v59 = vpop.f32.mrb[124].mxu0 }
 0x3e9   :  { %12240 = vst [vmem:[#allocation31_spill] sm:$0xff] %v11499_v59  ;;  %v4077_v36 = vadd.f32 %v3985_v9, %v11256_v51  ;;  %v8370_v41 = vpop.f32.mrb[17].mxu1  ;;  %8694 = vmatmul.mubr.msk.f32.gmra.mrb[122].mxu1 %vm1174_vm2, %v5059_v45  ;;  %v8783_v48 = vpop.f32.mrb[125].mxu0 }
 0x3ea   :  { %8696 = vmatprep.mubr.msk.f32.mxu1 %vm9085_vm1, %v12216_v12  ;;  %v12243_v41 = vld [vmem:[#allocation3_spill] sm:$0xff] }
 0x3eb   :  { %v11506_v63 = vadd.f32 %v12241_v10, %v4077_v36  ;;  %v5061_v36 = vld [vmem:[#allocation2 + $0x2f0] sm:$0xff] }
 0x3ec   :  { %v3990_v32 = vpop.f32.mrb[18].mxu1  ;;  %v11508_v50 = vpop.f32.mrb[126].mxu0 }
 0x3ed   :  { %12242 = vst [vmem:[#allocation32_spill] sm:$0xff] %v11508_v50  ;;  %v4078_v15 = vadd.f32 %v3990_v32, %v11268_v8  ;;  %v8373_v59 = vpop.f32.mrb[19].mxu1  ;;  %8697 = vmatmul.mubr.msk.f32.gmra.mrb[124].mxu1 %vm1174_vm2, %v5060_v1  ;;  %v8786_v51 = vpop.f32.mrb[127].mxu0 }
 0x3ee   :  { %8699 = vmatprep.mubr.msk.f32.mxu1 %vm9085_vm1, %v12216_v12  ;;  %v12245_v59 = vld [vmem:[#allocation4_spill] sm:$0xff] }
 0x3ef   :  { %v11515_v9 = vadd.f32 %v12243_v41, %v4078_v15  ;;  %v5062_v15 = vld [vmem:[#allocation2 + $0x2f8] sm:$0xff] }
 0x3f0   :  { %v3995_v45 = vpop.f32.mrb[20].mxu1  ;;  %v11517_v48 = vpop.f32.mrb[128].mxu0 }
 0x3f1   :  { %12244 = vst [vmem:[#allocation33_spill] sm:$0xff] %v11517_v48  ;;  %v4079_v10 = vadd.f32 %v3995_v45, %v11280_v13  ;;  %v8376_v50 = vpop.f32.mrb[21].mxu1  ;;  %8700 = vmatmul.mubr.msk.f32.gmra.mrb[126].mxu1 %vm1174_vm2, %v5061_v36  ;;  %v8789_v8 = vpop.f32.mrb[129].mxu0 }
 0x3f2   :  { %8702 = vmatprep.mubr.msk.f32.mxu1 %vm9085_vm1, %v12216_v12  ;;  %v12247_v50 = vld [vmem:[#allocation5_spill] sm:$0xff] }
 0x3f3   :  { %v11524_v32 = vadd.f32 %v12245_v59, %v4079_v10  ;;  %v5063_v10 = vld [vmem:[#allocation2 + $0x300] sm:$0xff] }
 0x3f4   :  { %v4000_v1 = vpop.f32.mrb[22].mxu1  ;;  %v11526_v51 = vpop.f32.mrb[130].mxu0 }
 0x3f5   :  { %12246 = vst [vmem:[#allocation34_spill] sm:$0xff] %v11526_v51  ;;  %v4080_v41 = vadd.f32 %v4000_v1, %v11292_v18  ;;  %v8379_v48 = vpop.f32.mrb[23].mxu1  ;;  %8703 = vmatmul.mubr.msk.f32.gmra.mrb[128].mxu1 %vm1174_vm2, %v5062_v15  ;;  %v8792_v13 = vpop.f32.mrb[131].mxu0 }
 0x3f6   :  { %8705 = vmatprep.mubr.msk.f32.mxu1 %vm9085_vm1, %v12216_v12  ;;  %v12249_v48 = vld [vmem:[#allocation6_spill] sm:$0xff] }
 0x3f7   :  { %v11533_v45 = vadd.f32 %v12247_v50, %v4080_v41  ;;  %v5064_v41 = vld [vmem:[#allocation2 + $0x308] sm:$0xff] }
 0x3f8   :  { %v4005_v36 = vpop.f32.mrb[24].mxu1  ;;  %v11535_v8 = vpop.f32.mrb[132].mxu0 }
 0x3f9   :  { %12248 = vst [vmem:[#allocation35_spill] sm:$0xff] %v11535_v8  ;;  %v4081_v59 = vadd.f32 %v4005_v36, %v11304_v7  ;;  %v8382_v51 = vpop.f32.mrb[25].mxu1  ;;  %8706 = vmatmul.mubr.msk.f32.gmra.mrb[130].mxu1 %vm1174_vm2, %v5063_v10  ;;  %v8795_v18 = vpop.f32.mrb[133].mxu0 }
 0x3fa   :  { %8708 = vmatprep.mubr.msk.f32.mxu1 %vm9085_vm1, %v12216_v12  ;;  %v12251_v51 = vld [vmem:[#allocation7_spill] sm:$0xff] }
 0x3fb   :  { %v11542_v1 = vadd.f32 %v12249_v48, %v4081_v59  ;;  %v5065_v59 = vld [vmem:[#allocation2 + $0x310] sm:$0xff] }
 0x3fc   :  { %v4010_v15 = vpop.f32.mrb[26].mxu1  ;;  %v11544_v13 = vpop.f32.mrb[134].mxu0 }
 0x3fd   :  { %12250 = vst [vmem:[#allocation3_spill] sm:$0xff] %v11544_v13  ;;  %v4082_v50 = vadd.f32 %v4010_v15, %v11316_v37  ;;  %v8385_v8 = vpop.f32.mrb[27].mxu1  ;;  %8709 = vmatmul.mubr.msk.f32.gmra.mrb[132].mxu1 %vm1174_vm2, %v5064_v41  ;;  %v8798_v7 = vpop.f32.mrb[135].mxu0 }
 0x3fe   :  { %8711 = vmatprep.mubr.msk.f32.mxu1 %vm9085_vm1, %v12216_v12  ;;  %v12253_v8 = vld [vmem:[#allocation8_spill] sm:$0xff] }
 0x3ff   :  { %v11551_v36 = vadd.f32 %v12251_v51, %v4082_v50  ;;  %v5066_v50 = vld [vmem:[#allocation2 + $0x318] sm:$0xff] }
 0x400   :  { %v4015_v10 = vpop.f32.mrb[28].mxu1  ;;  %v11553_v18 = vpop.f32.mrb[136].mxu0 }
 0x401   :  { %12252 = vst [vmem:[#allocation4_spill] sm:$0xff] %v11553_v18  ;;  %v4083_v48 = vadd.f32 %v4015_v10, %v11328_v54  ;;  %v8388_v13 = vpop.f32.mrb[29].mxu1  ;;  %8712 = vmatmul.mubr.msk.f32.gmra.mrb[134].mxu1 %vm1174_vm2, %v5065_v59  ;;  %v8801_v37 = vpop.f32.mrb[137].mxu0 }
 0x402   :  { %8714 = vmatprep.mubr.msk.f32.mxu1 %vm9085_vm1, %v12216_v12  ;;  %v12255_v13 = vld [vmem:[#allocation9_spill] sm:$0xff] }
 0x403   :  { %v11560_v15 = vadd.f32 %v12253_v8, %v4083_v48  ;;  %v5067_v48 = vld [vmem:[#allocation2 + $0x320] sm:$0xff] }
 0x404   :  { %v4020_v41 = vpop.f32.mrb[30].mxu1  ;;  %v11562_v7 = vpop.f32.mrb[138].mxu0 }
 0x405   :  { %12254 = vst [vmem:[#allocation5_spill] sm:$0xff] %v11562_v7  ;;  %v4084_v51 = vadd.f32 %v4020_v41, %v11338_v5  ;;  %v8391_v18 = vpop.f32.mrb[31].mxu1  ;;  %8715 = vmatmul.mubr.msk.f32.gmra.mrb[136].mxu1 %vm1174_vm2, %v5066_v50  ;;  %v8804_v54 = vpop.f32.mrb[139].mxu0 }
 0x406   :  { %8717 = vmatprep.mubr.msk.f32.mxu1 %vm9085_vm1, %v12216_v12  ;;  %v12257_v18 = vld [vmem:[#allocation10_spill] sm:$0xff] }
 0x407   :  { %v11569_v10 = vadd.f32 %v12255_v13, %v4084_v51  ;;  %v5068_v51 = vld [vmem:[#allocation2 + $0x328] sm:$0xff] }
 0x408   :  { %v4025_v59 = vpop.f32.mrb[32].mxu1  ;;  %v11571_v37 = vpop.f32.mrb[140].mxu0 }
 0x409   :  { %12256 = vst [vmem:[#allocation6_spill] sm:$0xff] %v11571_v37  ;;  %v4085_v8 = vadd.f32 %v4025_v59, %v11347_v58  ;;  %v8394_v7 = vpop.f32.mrb[33].mxu1  ;;  %8718 = vmatmul.mubr.msk.f32.gmra.mrb[138].mxu1 %vm1174_vm2, %v5067_v48  ;;  %v8807_v5 = vpop.f32.mrb[141].mxu0 }
 0x40a   :  { %8720 = vmatprep.mubr.msk.f32.mxu1 %vm9085_vm1, %v12216_v12  ;;  %v12259_v7 = vld [vmem:[#allocation11_spill] sm:$0xff] }
 0x40b   :  { %v11578_v41 = vadd.f32 %v12257_v18, %v4085_v8  ;;  %v5069_v8 = vld [vmem:[#allocation2 + $0x330] sm:$0xff] }
 0x40c   :  { %v4030_v50 = vpop.f32.mrb[34].mxu1  ;;  %v11580_v54 = vpop.f32.mrb[142].mxu0 }
 0x40d   :  { %12258 = vst [vmem:[#allocation7_spill] sm:$0xff] %v11580_v54  ;;  %v4086_v13 = vadd.f32 %v4030_v50, %v11356_v55  ;;  %v8397_v37 = vpop.f32.mrb[35].mxu1  ;;  %8721 = vmatmul.mubr.msk.f32.gmra.mrb[140].mxu1 %vm1174_vm2, %v5068_v51  ;;  %v8810_v58 = vpop.f32.mrb[143].mxu0 }
 0x40e   :  { %8723 = vmatprep.mubr.msk.f32.mxu1 %vm9085_vm1, %v12216_v12  ;;  %v12261_v37 = vld [vmem:[#allocation12_spill] sm:$0xff] }
 0x40f   :  { %v11587_v59 = vadd.f32 %v12259_v7, %v4086_v13  ;;  %v5070_v13 = vld [vmem:[#allocation2 + $0x338] sm:$0xff] }
 0x410   :  { %v4035_v48 = vpop.f32.mrb[36].mxu1  ;;  %v11589_v5 = vpop.f32.mrb[144].mxu0 }
 0x411   :  { %12260 = vst [vmem:[#allocation8_spill] sm:$0xff] %v11589_v5  ;;  %v4087_v18 = vadd.f32 %v4035_v48, %v11365_v47  ;;  %v8400_v54 = vpop.f32.mrb[37].mxu1  ;;  %8724 = vmatmul.mubr.msk.f32.gmra.mrb[142].mxu1 %vm1174_vm2, %v5069_v8  ;;  %v8813_v55 = vpop.f32.mrb[145].mxu0 }
 0x412   :  { %8726 = vmatprep.mubr.msk.f32.mxu1 %vm9085_vm1, %v12216_v12  ;;  %v12263_v54 = vld [vmem:[#allocation13_spill] sm:$0xff] }
 0x413   :  { %v11596_v50 = vadd.f32 %v12261_v37, %v4087_v18  ;;  %v5071_v18 = vld [vmem:[#allocation2 + $0x340] sm:$0xff] }
 0x414   :  { %v4040_v51 = vpop.f32.mrb[38].mxu1  ;;  %v11598_v58 = vpop.f32.mrb[146].mxu0 }
 0x415   :  { %12262 = vst [vmem:[#allocation9_spill] sm:$0xff] %v11598_v58  ;;  %v4088_v7 = vadd.f32 %v4040_v51, %v11374_v57  ;;  %v8403_v5 = vpop.f32.mrb[39].mxu1  ;;  %8727 = vmatmul.mubr.msk.f32.gmra.mrb[144].mxu1 %vm1174_vm2, %v5070_v13  ;;  %v8899_v47 = vpop.f32.mrb[147].mxu0 }
 0x416   :  { %8729 = vmatprep.mubr.msk.f32.mxu1 %vm9085_vm1, %v12216_v12  ;;  %v12265_v5 = vld [vmem:[#allocation14_spill] sm:$0xff] }
 0x417   :  { %v11605_v48 = vadd.f32 %v12263_v54, %v4088_v7  ;;  %v5072_v7 = vld [vmem:[#allocation2 + $0x348] sm:$0xff] }
 0x418   :  { %v4045_v8 = vpop.f32.mrb[40].mxu1  ;;  %v11607_v55 = vpop.f32.mrb[148].mxu0 }
 0x419   :  { %12264 = vst [vmem:[#allocation10_spill] sm:$0xff] %v11607_v55  ;;  %v4089_v37 = vadd.f32 %v4045_v8, %v11389_v16  ;;  %v8406_v58 = vpop.f32.mrb[41].mxu1  ;;  %8730 = vmatmul.mubr.msk.f32.gmra.mrb[146].mxu1 %vm1174_vm2, %v5071_v18  ;;  %v8902_v57 = vpop.f32.mrb[149].mxu0 }
 0x41a   :  { %8732 = vmatprep.mubr.msk.f32.mxu1 %vm9085_vm1, %v12216_v12  ;;  %v12267_v58 = vld [vmem:[#allocation15_spill] sm:$0xff] }
 0x41b   :  { %v11614_v51 = vadd.f32 %v12265_v5, %v4089_v37  ;;  %v5684_v37 = vld [vmem:[#allocation2 + $0x292] sm:$0xff] }
 0x41c   :  { %v4050_v13 = vpop.f32.mrb[42].mxu1  ;;  %v11616_v47 = vpop.f32.mrb[150].mxu0 }
 0x41d   :  { %12266 = vst [vmem:[#allocation11_spill] sm:$0xff] %v11616_v47  ;;  %v4090_v54 = vadd.f32 %v4050_v13, %v11398_v14  ;;  %v8409_v55 = vpop.f32.mrb[43].mxu1  ;;  %8733 = vmatmul.mubr.msk.f32.gmra.mrb[148].mxu1 %vm1174_vm2, %v5072_v7  ;;  %v8905_v16 = vpop.f32.mrb[151].mxu0 }
 0x41e   :  { %8818 = vmatprep.mubr.msk.f32.mxu1 %vm9085_vm1, %v12216_v12  ;;  %v12269_v55 = vld [vmem:[#allocation16_spill] sm:$0xff] }
 0x41f   :  { %v11623_v8 = vadd.f32 %v12267_v58, %v4090_v54  ;;  %v5685_v54 = vld [vmem:[#allocation2 + $0x29a] sm:$0xff] }
 0x420   :  { %v4055_v18 = vpop.f32.mrb[44].mxu1  ;;  %v11625_v57 = vpop.f32.mrb[152].mxu0 }
 0x421   :  { %12268 = vst [vmem:[#allocation12_spill] sm:$0xff] %v11625_v57  ;;  %v4091_v5 = vadd.f32 %v4055_v18, %v11407_v33  ;;  %v8412_v47 = vpop.f32.mrb[45].mxu1  ;;  %8819 = vmatmul.mubr.msk.f32.vlgmr.msra.gmra.mrb[150].mxu1 %vm1174_vm2, %v5684_v37  ;;  %v8908_v14 = vpop.f32.mrb[153].mxu0 }
 0x422   :  { %8821 = vmatprep.mubr.msk.f32.mxu1 %vm9085_vm1, %v12216_v12  ;;  %v12271_v47 = vld [vmem:[#allocation17_spill] sm:$0xff] }
 0x423   :  { %v11632_v13 = vadd.f32 %v12269_v55, %v4091_v5  ;;  %v5686_v5 = vld [vmem:[#allocation2 + $0x2a2] sm:$0xff] }
 0x424   :  { %v4060_v7 = vpop.f32.mrb[46].mxu1  ;;  %v11634_v16 = vpop.f32.mrb[154].mxu0 }
 0x425   :  { %12270 = vst [vmem:[#allocation13_spill] sm:$0xff] %v11634_v16  ;;  %v4092_v58 = vadd.f32 %v4060_v7, %v11416_v53  ;;  %v8415_v57 = vpop.f32.mrb[47].mxu1  ;;  %8822 = vmatmul.mubr.msk.f32.gmra.mrb[152].mxu1 %vm1174_vm2, %v5685_v54  ;;  %v8911_v33 = vpop.f32.mrb[155].mxu0 }
 0x426   :  { %8824 = vmatprep.mubr.msk.f32.mxu1 %vm9085_vm1, %v12216_v12  ;;  %v12273_v57 = vld [vmem:[#allocation18_spill] sm:$0xff] }
 0x427   :  { %v11641_v18 = vadd.f32 %v12271_v47, %v4092_v58  ;;  %v5687_v58 = vld [vmem:[#allocation2 + $0x2aa] sm:$0xff] }
 0x428   :  { %v4065_v37 = vpop.f32.mrb[48].mxu1  ;;  %v11643_v14 = vpop.f32.mrb[156].mxu0 }
 0x429   :  { %12272 = vst [vmem:[#allocation14_spill] sm:$0xff] %v11643_v14  ;;  %v4093_v55 = vadd.f32 %v4065_v37, %v11425_v22  ;;  %v8418_v16 = vpop.f32.mrb[49].mxu1  ;;  %8825 = vmatmul.mubr.msk.f32.gmra.mrb[154].mxu1 %vm1174_vm2, %v5686_v5  ;;  %v8914_v53 = vpop.f32.mrb[157].mxu0 }
 0x42a   :  { %8827 = vmatprep.mubr.msk.f32.mxu1 %vm9085_vm1, %v12216_v12  ;;  %v12275_v16 = vld [vmem:[#allocation19_spill] sm:$0xff] }
 0x42b   :  { %v11650_v7 = vadd.f32 %v12273_v57, %v4093_v55  ;;  %v5688_v55 = vld [vmem:[#allocation2 + $0x2b2] sm:$0xff] }
 0x42c   :  { %v4581_v54 = vpop.f32.mrb[50].mxu1  ;;  %v11652_v33 = vpop.f32.mrb[158].mxu0 }
 0x42d   :  { %12274 = vst [vmem:[#allocation15_spill] sm:$0xff] %v11652_v33  ;;  %v4705_v47 = vadd.f32 %v4581_v54, %v11434_v56  ;;  %v8504_v14 = vpop.f32.mrb[51].mxu1  ;;  %8828 = vmatmul.mubr.msk.f32.gmra.mrb[156].mxu1 %vm1174_vm2, %v5687_v58  ;;  %v8917_v22 = vpop.f32.mrb[159].mxu0 }
 0x42e   :  { %8830 = vmatprep.mubr.msk.f32.mxu1 %vm9085_vm1, %v12216_v12  ;;  %v12277_v14 = vld [vmem:[#allocation20_spill] sm:$0xff] }
 0x42f   :  { %v11659_v37 = vadd.f32 %v12275_v16, %v4705_v47  ;;  %v5689_v47 = vld [vmem:[#allocation2 + $0x2ba] sm:$0xff] }
 0x430   :  { %v4586_v5 = vpop.f32.mrb[52].mxu1  ;;  %v11661_v53 = vpop.f32.mrb[160].mxu0 }
 0x431   :  { %12276 = vst [vmem:[#allocation16_spill] sm:$0xff] %v11661_v53  ;;  %v4706_v57 = vadd.f32 %v4586_v5, %v11443_v24  ;;  %v8507_v33 = vpop.f32.mrb[53].mxu1  ;;  %8831 = vmatmul.mubr.msk.f32.gmra.mrb[158].mxu1 %vm1174_vm2, %v5688_v55  ;;  %v8920_v56 = vpop.f32.mrb[161].mxu0 }
 0x432   :  { %8833 = vmatprep.mubr.msk.f32.mxu1 %vm9085_vm1, %v12216_v12  ;;  %v12279_v33 = vld [vmem:[#allocation21_spill] sm:$0xff] }
 0x433   :  { %v11668_v54 = vadd.f32 %v12277_v14, %v4706_v57  ;;  %v5690_v57 = vld [vmem:[#allocation2 + $0x2c2] sm:$0xff] }
 0x434   :  { %v4591_v58 = vpop.f32.mrb[54].mxu1  ;;  %v11670_v22 = vpop.f32.mrb[162].mxu0 }
 0x435   :  { %12278 = vst [vmem:[#allocation17_spill] sm:$0xff] %v11670_v22  ;;  %v4707_v16 = vadd.f32 %v4591_v58, %v11452_v6  ;;  %v8510_v53 = vpop.f32.mrb[55].mxu1  ;;  %8834 = vmatmul.mubr.msk.f32.gmra.mrb[160].mxu1 %vm1174_vm2, %v5689_v47  ;;  %v8923_v24 = vpop.f32.mrb[163].mxu0 }
 0x436   :  { %8836 = vmatprep.mubr.msk.f32.mxu1 %vm9085_vm1, %v12216_v12 }
 0x437   :  { %v11677_v5 = vadd.f32 %v12279_v33, %v4707_v16  ;;  %v5691_v16 = vld [vmem:[#allocation2 + $0x2ca] sm:$0xff] }
 0x438   :  { %v4596_v55 = vpop.f32.mrb[56].mxu1  ;;  %v11679_v56 = vpop.f32.mrb[164].mxu0 }
 0x439   :  { %v4708_v14 = vadd.f32 %v4596_v55, %v11461_v61  ;;  %v8513_v22 = vpop.f32.mrb[57].mxu1  ;;  %8837 = vmatmul.mubr.msk.f32.gmra.mrb[162].mxu1 %vm1174_vm2, %v5690_v57  ;;  %v8926_v6 = vpop.f32.mrb[165].mxu0 }
 0x43a   :  { %8839 = vmatprep.mubr.msk.f32.mxu1 %vm9085_vm1, %v12216_v12 }
 0x43b   :  { %v11686_v53 = vadd.f32 %v11113_v30, %v4708_v14  ;;  %v5692_v30 = vld [vmem:[#allocation2 + $0x2d2] sm:$0xff] }
 0x43c   :  { %v4601_v58 = vpop.f32.mrb[58].mxu1  ;;  %v11688_v47 = vpop.f32.mrb[166].mxu0 }
 0x43d   :  { %v4709_v24 = vadd.f32 %v4601_v58, %v11470_v20  ;;  %v8516_v33 = vpop.f32.mrb[59].mxu1  ;;  %8840 = vmatmul.mubr.msk.f32.gmra.mrb[164].mxu1 %vm1174_vm2, %v5691_v16  ;;  %v8929_v61 = vpop.f32.mrb[167].mxu0 }
 0x43e   :  { %8842 = vmatprep.mubr.msk.f32.mxu1 %vm9085_vm1, %v12216_v12 }
 0x43f   :  { %v11695_v22 = vadd.f32 %v11126_v19, %v4709_v24  ;;  %v5693_v19 = vld [vmem:[#allocation2 + $0x2da] sm:$0xff] }
 0x440   :  { %v4606_v55 = vpop.f32.mrb[60].mxu1  ;;  %v11697_v57 = vpop.f32.mrb[168].mxu0 }
 0x441   :  { %v4710_v14 = vadd.f32 %v4606_v55, %v11479_v3  ;;  %v8519_v6 = vpop.f32.mrb[61].mxu1  ;;  %8843 = vmatmul.mubr.msk.f32.gmra.mrb[166].mxu1 %vm1174_vm2, %v5692_v30  ;;  %v8932_v20 = vpop.f32.mrb[169].mxu0  ;;  %v12281_v55 = vld [vmem:[#allocation22_spill] sm:$0xff] }
 0x442   :  { %8845 = vmatprep.mubr.msk.f32.mxu1 %vm9085_vm1, %v12216_v12 }
 0x443   :  { %v11704_v58 = vadd.f32 %v11138_v38, %v4710_v14  ;;  %v5694_v38 = vld [vmem:[#allocation2 + $0x2e2] sm:$0xff] }
 0x444   :  { %v4611_v16 = vpop.f32.mrb[62].mxu1  ;;  %v11706_v33 = vpop.f32.mrb[170].mxu0 }
 0x445   :  { %12280 = vst [vmem:[#allocation18_spill] sm:$0xff] %v11706_v33  ;;  %v4711_v24 = vadd.f32 %v4611_v16, %v11488_v35  ;;  %v8522_v61 = vpop.f32.mrb[63].mxu1  ;;  %8846 = vmatmul.mubr.msk.f32.gmra.mrb[168].mxu1 %vm1174_vm2, %v5693_v19  ;;  %v8935_v3 = vpop.f32.mrb[171].mxu0  ;;  %v12283_v16 = vld [vmem:[#allocation23_spill] sm:$0xff] }
 0x446   :  { %8848 = vmatprep.mubr.msk.f32.mxu1 %vm9085_vm1, %v12216_v12 }
 0x447   :  { %v11713_v30 = vadd.f32 %v12281_v55, %v4711_v24  ;;  %v5695_v24 = vld [vmem:[#allocation2 + $0x2ea] sm:$0xff] }
 0x448   :  { %v4616_v6 = vpop.f32.mrb[64].mxu1  ;;  %v11715_v20 = vpop.f32.mrb[172].mxu0 }
 0x449   :  { %12282 = vst [vmem:[#allocation19_spill] sm:$0xff] %v11715_v20  ;;  %v4712_v14 = vadd.f32 %v4616_v6, %v11497_v21  ;;  %v8525_v33 = vpop.f32.mrb[65].mxu1  ;;  %8849 = vmatmul.mubr.msk.f32.gmra.mrb[170].mxu1 %vm1174_vm2, %v5694_v38  ;;  %v8938_v35 = vpop.f32.mrb[173].mxu0 }
 0x44a   :  { %8851 = vmatprep.mubr.msk.f32.mxu1 %vm9085_vm1, %v12216_v12  ;;  %v12285_v33 = vld [vmem:[#allocation24_spill] sm:$0xff] }
 0x44b   :  { %v11722_v19 = vadd.f32 %v12283_v16, %v4712_v14  ;;  %v5696_v14 = vld [vmem:[#allocation2 + $0x2f2] sm:$0xff] }
 0x44c   :  { %v4621_v61 = vpop.f32.mrb[66].mxu1  ;;  %v11724_v3 = vpop.f32.mrb[174].mxu0 }
 0x44d   :  { %12284 = vst [vmem:[#allocation20_spill] sm:$0xff] %v11724_v3  ;;  %v4713_v55 = vadd.f32 %v4621_v61, %v11506_v63  ;;  %v8528_v20 = vpop.f32.mrb[67].mxu1  ;;  %8852 = vmatmul.mubr.msk.f32.gmra.mrb[172].mxu1 %vm1174_vm2, %v5695_v24  ;;  %v8941_v21 = vpop.f32.mrb[175].mxu0 }
 0x44e   :  { %8854 = vmatprep.mubr.msk.f32.mxu1 %vm9085_vm1, %v12216_v12 }
 0x44f   :  { %v11731_v6 = vadd.f32 %v12285_v33, %v4713_v55  ;;  %v5697_v55 = vld [vmem:[#allocation2 + $0x2fa] sm:$0xff] }
 0x450   :  { %v4626_v38 = vpop.f32.mrb[68].mxu1  ;;  %v11733_v35 = vpop.f32.mrb[176].mxu0 }
 0x451   :  { %v4714_v16 = vadd.f32 %v4626_v38, %v11515_v9  ;;  %v8531_v3 = vpop.f32.mrb[69].mxu1  ;;  %8855 = vmatmul.mubr.msk.f32.gmra.mrb[174].mxu1 %vm1174_vm2, %v5696_v14  ;;  %v8944_v63 = vpop.f32.mrb[177].mxu0 }
 0x452   :  { %8857 = vmatprep.mubr.msk.f32.mxu1 %vm9085_vm1, %v12216_v12 }
 0x453   :  { %v11740_v20 = vadd.f32 %v11186_v46, %v4714_v16  ;;  %v5698_v46 = vld [vmem:[#allocation2 + $0x302] sm:$0xff] }
 0x454   :  { %v4631_v61 = vpop.f32.mrb[70].mxu1  ;;  %v11742_v24 = vpop.f32.mrb[178].mxu0 }
 0x455   :  { %v4715_v21 = vadd.f32 %v4631_v61, %v11524_v32  ;;  %v8534_v33 = vpop.f32.mrb[71].mxu1  ;;  %8858 = vmatmul.mubr.msk.f32.gmra.mrb[176].mxu1 %vm1174_vm2, %v5697_v55  ;;  %v8947_v9 = vpop.f32.mrb[179].mxu0 }
 0x456   :  { %8860 = vmatprep.mubr.msk.f32.mxu1 %vm9085_vm1, %v12216_v12 }
 0x457   :  { %v11749_v3 = vadd.f32 %v11198_v40, %v4715_v21  ;;  %v5699_v40 = vld [vmem:[#allocation2 + $0x30a] sm:$0xff] }
 0x458   :  { %v4636_v38 = vpop.f32.mrb[72].mxu1  ;;  %v11751_v14 = vpop.f32.mrb[180].mxu0 }
 0x459   :  { %v4716_v16 = vadd.f32 %v4636_v38, %v11533_v45  ;;  %v8537_v63 = vpop.f32.mrb[73].mxu1  ;;  %8861 = vmatmul.mubr.msk.f32.gmra.mrb[178].mxu1 %vm1174_vm2, %v5698_v46  ;;  %v8950_v32 = vpop.f32.mrb[181].mxu0 }
 0x45a   :  { %8863 = vmatprep.mubr.msk.f32.mxu1 %vm9085_vm1, %v12216_v12 }
 0x45b   :  { %v11758_v61 = vadd.f32 %v11210_v11, %v4716_v16  ;;  %v5700_v11 = vld [vmem:[#allocation2 + $0x312] sm:$0xff] }
 0x45c   :  { %v4641_v55 = vpop.f32.mrb[74].mxu1  ;;  %v11760_v33 = vpop.f32.mrb[182].mxu0 }
 0x45d   :  { %v4717_v21 = vadd.f32 %v4641_v55, %v11542_v1  ;;  %v8540_v9 = vpop.f32.mrb[75].mxu1  ;;  %8864 = vmatmul.mubr.msk.f32.gmra.mrb[180].mxu1 %vm1174_vm2, %v5699_v40  ;;  %v8953_v45 = vpop.f32.mrb[183].mxu0 }
 0x45e   :  { %8866 = vmatprep.mubr.msk.f32.mxu1 %vm9085_vm1, %v12216_v12 }
 0x45f   :  { %v11767_v38 = vadd.f32 %v11222_v2, %v4717_v21  ;;  %v5701_v2 = vld [vmem:[#allocation2 + $0x31a] sm:$0xff] }
 0x460   :  { %v4646_v46 = vpop.f32.mrb[76].mxu1  ;;  %v11769_v63 = vpop.f32.mrb[184].mxu0 }
 0x461   :  { %v4718_v16 = vadd.f32 %v4646_v46, %v11551_v36  ;;  %v8543_v32 = vpop.f32.mrb[77].mxu1  ;;  %8867 = vmatmul.mubr.msk.f32.gmra.mrb[182].mxu1 %vm1174_vm2, %v5700_v11  ;;  %v8956_v1 = vpop.f32.mrb[185].mxu0 }
 0x462   :  { %8869 = vmatprep.mubr.msk.f32.mxu1 %vm9085_vm1, %v12216_v12 }
 0x463   :  { %v11776_v55 = vadd.f32 %v11234_v17, %v4718_v16  ;;  %v5702_v17 = vld [vmem:[#allocation2 + $0x322] sm:$0xff] }
 0x464   :  { %v4651_v40 = vpop.f32.mrb[78].mxu1  ;;  %v11778_v9 = vpop.f32.mrb[186].mxu0 }
 0x465   :  { %v4719_v21 = vadd.f32 %v4651_v40, %v11560_v15  ;;  %v8546_v45 = vpop.f32.mrb[79].mxu1  ;;  %8870 = vmatmul.mubr.msk.f32.gmra.mrb[184].mxu1 %vm1174_vm2, %v5701_v2  ;;  %v8959_v36 = vpop.f32.mrb[187].mxu0 }
 0x466   :  { %8872 = vmatprep.mubr.msk.f32.mxu1 %vm9085_vm1, %v12216_v12 }
 0x467   :  { %v11785_v46 = vadd.f32 %v11246_v62, %v4719_v21  ;;  %v5703_v62 = vld [vmem:[#allocation2 + $0x32a] sm:$0xff] }
 0x468   :  { %v4656_v11 = vpop.f32.mrb[80].mxu1  ;;  %v11787_v32 = vpop.f32.mrb[188].mxu0 }
 0x469   :  { %v4720_v16 = vadd.f32 %v4656_v11, %v11569_v10  ;;  %v8549_v1 = vpop.f32.mrb[81].mxu1  ;;  %8873 = vmatmul.mubr.msk.f32.gmra.mrb[186].mxu1 %vm1174_vm2, %v5702_v17  ;;  %v8962_v15 = vpop.f32.mrb[189].mxu0 }
 0x46a   :  { %8875 = vmatprep.mubr.msk.f32.mxu1 %vm9085_vm1, %v12216_v12 }
 0x46b   :  { %v11794_v40 = vadd.f32 %v11258_v29, %v4720_v16  ;;  %v5704_v29 = vld [vmem:[#allocation2 + $0x332] sm:$0xff] }
 0x46c   :  { %v4661_v2 = vpop.f32.mrb[82].mxu1  ;;  %v11796_v45 = vpop.f32.mrb[190].mxu0 }
 0x46d   :  { %v4721_v21 = vadd.f32 %v4661_v2, %v11578_v41  ;;  %v8552_v36 = vpop.f32.mrb[83].mxu1  ;;  %8876 = vmatmul.mubr.msk.f32.gmra.mrb[188].mxu1 %vm1174_vm2, %v5703_v62  ;;  %v8965_v10 = vpop.f32.mrb[191].mxu0 }
 0x46e   :  { %8878 = vmatprep.mubr.msk.f32.mxu1 %vm9085_vm1, %v12216_v12 }
 0x46f   :  { %v11803_v11 = vadd.f32 %v11270_v28, %v4721_v21  ;;  %v5705_v28 = vld [vmem:[#allocation2 + $0x33a] sm:$0xff] }
 0x470   :  { %v4666_v17 = vpop.f32.mrb[84].mxu1  ;;  %v11805_v1 = vpop.f32.mrb[192].mxu0 }
 0x471   :  { %v4722_v16 = vadd.f32 %v4666_v17, %v11587_v59  ;;  %v8555_v15 = vpop.f32.mrb[85].mxu1  ;;  %8879 = vmatmul.mubr.msk.f32.gmra.mrb[190].mxu1 %vm1174_vm2, %v5704_v29  ;;  %v8968_v41 = vpop.f32.mrb[193].mxu0 }
 0x472   :  { %8881 = vmatprep.mubr.msk.f32.mxu1 %vm9085_vm1, %v12216_v12  ;;  %v5706_v15 = vld [vmem:[#allocation2 + $0x342] sm:$0xff] }
 0x473   :  { %v11812_v2 = vadd.f32 %v11282_v34, %v4722_v16 }
 0x474   :  { %v4671_v62 = vpop.f32.mrb[86].mxu1  ;;  %v11814_v36 = vpop.f32.mrb[194].mxu0 }
 0x475   :  { %v4723_v21 = vadd.f32 %v4671_v62, %v11596_v50  ;;  %v8558_v10 = vpop.f32.mrb[87].mxu1  ;;  %8882 = vmatmul.mubr.msk.f32.gmra.mrb[192].mxu1 %vm1174_vm2, %v5705_v28  ;;  %v8971_v59 = vpop.f32.mrb[195].mxu0  ;;  %v5707_v62 = vld [vmem:[#allocation2 + $0x34a] sm:$0xff] }
 0x476   :  { %8884 = vmatprep.mubr.msk.f32.mxu1 %vm9085_vm1, %v12216_v12  ;;  %v5708_v59 = vld [vmem:[#allocation2 + $0x352] sm:$0xff] }
 0x477   :  { %v11821_v17 = vadd.f32 %v11294_v43, %v4723_v21  ;;  %v12286_v43 = vld [vmem:[#allocation25_spill] sm:$0xff] }
 0x478   :  { %v4676_v29 = vpop.f32.mrb[88].mxu1 }
 0x479   :  { %v4724_v34 = vadd.f32 %v4676_v29, %v11605_v48  ;;  %v8561_v16 = vpop.f32.mrb[89].mxu1  ;;  %8885 = vmatmul.mubr.msk.f32.gmra.mrb[194].mxu1 %vm1174_vm2, %v5706_v15 }
 0x47a   :  { %8887 = vmatprep.mubr.msk.f32.mxu1 %vm9085_vm1, %v12216_v12 }
 0x47b   :  { %v11828_v50 = vadd.f32 %v11306_v49, %v4724_v34  ;;  %v12287_v49 = vld [vmem:[#allocation26_spill] sm:$0xff] }
 0x47c   :  { %v4681_v41 = vpop.f32.mrb[90].mxu1 }
 0x47d   :  { %v4725_v28 = vadd.f32 %v4681_v41, %v11614_v51  ;;  %v8564_v10 = vpop.f32.mrb[91].mxu1  ;;  %8888 = vmatmul.mubr.msk.f32.gmra.mrb[196].mxu1 %vm1174_vm2, %v5707_v62 }
 0x47e   :  { %8890 = vmatprep.mubr.msk.f32.mxu1 %vm9085_vm1, %v12216_v12 }
 0x47f   :  { %v11835_v48 = vadd.f32 %v12286_v43, %v4725_v28 }
 0x480   :  { %v4686_v21 = vpop.f32.mrb[92].mxu1 }
 0x481   :  { %v4726_v29 = vadd.f32 %v4686_v21, %v11623_v8  ;;  %v8567_v15 = vpop.f32.mrb[93].mxu1  ;;  %8891 = vmatmul.mubr.msk.f32.gmra.mrb[198].mxu1 %vm1174_vm2, %v5708_v59 }
 0x483   :  { %v11840_v34 = vadd.f32 %v12287_v49, %v4726_v29 }
 0x484   :  { %v4691_v51 = vpop.f32.mrb[94].mxu1 }
 0x485   :  { %v4727_v16 = vadd.f32 %v4691_v51, %v11632_v13  ;;  %v8570_v41 = vpop.f32.mrb[95].mxu1 }
 0x487   :  { %v11844_v62 = vadd.f32 %v11340_v4, %v4727_v16  ;;  %v12288_v4 = vld [vmem:[#allocation27_spill] sm:$0xff] }
 0x488   :  { %v4696_v12 = vpop.f32.mrb[96].mxu1 }
 0x489   :  { %v4728_v28 = vadd.f32 %v4696_v12, %v11641_v18  ;;  %v8573_v10 = vpop.f32.mrb[97].mxu1 }
 0x48b   :  { %v11848_v43 = vadd.f32 %v11349_v39, %v4728_v28  ;;  %v12289_v39 = vld [vmem:[#allocation28_spill] sm:$0xff] }
 0x48c   :  { %v4701_v8 = vpop.f32.mrb[98].mxu1 }
 0x48d   :  { %v4729_v21 = vadd.f32 %v4701_v8, %v11650_v7  ;;  %v8576_v59 = vpop.f32.mrb[99].mxu1 }
 0x48f   :  { %v11852_v29 = vadd.f32 %v11358_v31, %v4729_v21  ;;  %v12290_v31 = vld [vmem:[#allocation36_spill] sm:$0xff] }
 0x490   :  { %v5217_v15 = vpop.f32.mrb[100].mxu1 }
 0x491   :  { %v5341_v13 = vadd.f32 %v5217_v15, %v11659_v37  ;;  %v8662_v49 = vpop.f32.mrb[101].mxu1 }
 0x493   :  { %v11856_v51 = vadd.f32 %v12288_v4, %v5341_v13 }
 0x494   :  { %v5222_v16 = vpop.f32.mrb[102].mxu1 }
 0x495   :  { %v5342_v18 = vadd.f32 %v5222_v16, %v11668_v54  ;;  %v8665_v41 = vpop.f32.mrb[103].mxu1 }
 0x497   :  { %v11860_v12 = vadd.f32 %v12289_v39, %v5342_v18 }
 0x498   :  { %v5227_v28 = vpop.f32.mrb[104].mxu1 }
 0x499   :  { %v5343_v7 = vadd.f32 %v5227_v28, %v11677_v5  ;;  %v8668_v10 = vpop.f32.mrb[105].mxu1 }
 0x49b   :  { %v11864_v8 = vadd.f32 %v12290_v31, %v5343_v7 }
 0x49c   :  { %v5232_v21 = vpop.f32.mrb[106].mxu1 }
 0x49d   :  { %v5344_v37 = vadd.f32 %v5232_v21, %v11686_v53  ;;  %v8671_v59 = vpop.f32.mrb[107].mxu1 }
 0x49f   :  { %v11868_v15 = vadd.f32 %v11400_v42, %v5344_v37 }
 0x4a0   :  { %v5237_v13 = vpop.f32.mrb[108].mxu1 }
 0x4a1   :  { %v5345_v54 = vadd.f32 %v5237_v13, %v11695_v22  ;;  %v8674_v49 = vpop.f32.mrb[109].mxu1 }
 0x4a3   :  { %v11872_v4 = vadd.f32 %v11409_v23, %v5345_v54 }
 0x4a4   :  { %v5242_v16 = vpop.f32.mrb[110].mxu1 }
 0x4a5   :  { %v5346_v5 = vadd.f32 %v5242_v16, %v11704_v58  ;;  %v8677_v18 = vpop.f32.mrb[111].mxu1 }
 0x4a7   :  { %v11876_v41 = vadd.f32 %v11418_v26, %v5346_v5 }
 0x4a8   :  { %v5247_v39 = vpop.f32.mrb[112].mxu1 }
 0x4a9   :  { %v5347_v53 = vadd.f32 %v5247_v39, %v11713_v30  ;;  %v8680_v28 = vpop.f32.mrb[113].mxu1 }
 0x4ab   :  { %v11880_v42 = vadd.f32 %v11427_v60, %v5347_v53 }
 0x4ac   :  { %v5252_v7 = vpop.f32.mrb[114].mxu1 }
 0x4ad   :  { %v5348_v22 = vadd.f32 %v5252_v7, %v11722_v19  ;;  %v8683_v10 = vpop.f32.mrb[115].mxu1 }
 0x4af   :  { %v11884_v23 = vadd.f32 %v11436_v27, %v5348_v22 }
 0x4b0   :  { %v5257_v31 = vpop.f32.mrb[116].mxu1 }
 0x4b1   :  { %v5349_v58 = vadd.f32 %v5257_v31, %v11731_v6  ;;  %v8686_v21 = vpop.f32.mrb[117].mxu1 }
 0x4b3   :  { %v11888_v26 = vadd.f32 %v11445_v44, %v5349_v58 }
 0x4b4   :  { %v5262_v37 = vpop.f32.mrb[118].mxu1 }
 0x4b5   :  { %v5350_v30 = vadd.f32 %v5262_v37, %v11740_v20  ;;  %v8689_v59 = vpop.f32.mrb[119].mxu1  ;;  %v12294_v37 = vld [vmem:[#allocation32_spill] sm:$0xff] }
 0x4b7   :  { %v11892_v60 = vadd.f32 %v11454_v25, %v5350_v30  ;;  %v12291_v25 = vld [vmem:[#allocation29_spill] sm:$0xff] }
 0x4b8   :  { %v5267_v13 = vpop.f32.mrb[120].mxu1 }
 0x4b9   :  { %v5351_v19 = vadd.f32 %v5267_v13, %v11749_v3  ;;  %v8692_v54 = vpop.f32.mrb[121].mxu1 }
 0x4bb   :  { %v11896_v27 = vadd.f32 %v11463_v52, %v5351_v19  ;;  %v12292_v52 = vld [vmem:[#allocation30_spill] sm:$0xff]  ;;  %v12295_v19 = vld [vmem:[#allocation33_spill] sm:$0xff] }
 0x4bc   :  { %v5272_v49 = vpop.f32.mrb[122].mxu1 }
 0x4bd   :  { %v5352_v6 = vadd.f32 %v5272_v49, %v11758_v61  ;;  %v8695_v16 = vpop.f32.mrb[123].mxu1 }
 0x4be   :  { %v12296_v16 = vld [vmem:[#allocation34_spill] sm:$0xff] }
 0x4bf   :  { %v11900_v44 = vadd.f32 %v11472_v0, %v5352_v6  ;;  %v12293_v0 = vld [vmem:[#allocation31_spill] sm:$0xff] }
 0x4c0   :  { %v5277_v5 = vpop.f32.mrb[124].mxu1 }
 0x4c1   :  { %v5353_v20 = vadd.f32 %v5277_v5, %v11767_v38  ;;  %v8698_v18 = vpop.f32.mrb[125].mxu1 }
 0x4c3   :  { %v11904_v39 = vadd.f32 %v12291_v25, %v5353_v20  ;;  %v12297_v25 = vld [vmem:[#allocation35_spill] sm:$0xff] }
 0x4c4   :  { %v5282_v53 = vpop.f32.mrb[126].mxu1 }
 0x4c5   :  { %v5354_v3 = vadd.f32 %v5282_v53, %v11776_v55  ;;  %v8701_v28 = vpop.f32.mrb[127].mxu1 }
 0x4c7   :  { %v11908_v7 = vadd.f32 %v12292_v52, %v5354_v3  ;;  %v12298_v52 = vld [vmem:[#allocation3_spill] sm:$0xff] }
 0x4c8   :  { %v5287_v22 = vpop.f32.mrb[128].mxu1 }
 0x4c9   :  { %v5355_v61 = vadd.f32 %v5287_v22, %v11785_v46  ;;  %v8704_v10 = vpop.f32.mrb[129].mxu1 }
 0x4cb   :  { %v11912_v31 = vadd.f32 %v12293_v0, %v5355_v61  ;;  %v12299_v0 = vld [vmem:[#allocation4_spill] sm:$0xff] }
 0x4cc   :  { %v5292_v58 = vpop.f32.mrb[130].mxu1 }
 0x4cd   :  { %v5356_v38 = vadd.f32 %v5292_v58, %v11794_v40  ;;  %v8707_v21 = vpop.f32.mrb[131].mxu1 }
 0x4cf   :  { %v11916_v30 = vadd.f32 %v12294_v37, %v5356_v38  ;;  %v12300_v37 = vld [vmem:[#allocation5_spill] sm:$0xff] }
 0x4d0   :  { %v5297_v59 = vpop.f32.mrb[132].mxu1 }
 0x4d1   :  { %v5357_v55 = vadd.f32 %v5297_v59, %v11803_v11  ;;  %v8710_v13 = vpop.f32.mrb[133].mxu1 }
 0x4d3   :  { %v11920_v54 = vadd.f32 %v12295_v19, %v5357_v55  ;;  %v12301_v19 = vld [vmem:[#allocation6_spill] sm:$0xff] }
 0x4d4   :  { %v5302_v49 = vpop.f32.mrb[134].mxu1 }
 0x4d5   :  { %v5358_v46 = vadd.f32 %v5302_v49, %v11812_v2  ;;  %v8713_v6 = vpop.f32.mrb[135].mxu1 }
 0x4d7   :  { %v11924_v5 = vadd.f32 %v12296_v16, %v5358_v46  ;;  %v12302_v16 = vld [vmem:[#allocation7_spill] sm:$0xff] }
 0x4d8   :  { %v5307_v20 = vpop.f32.mrb[136].mxu1 }
 0x4d9   :  { %v5359_v40 = vadd.f32 %v5307_v20, %v11821_v17  ;;  %v8716_v18 = vpop.f32.mrb[137].mxu1 }
 0x4db   :  { %v11928_v53 = vadd.f32 %v12297_v25, %v5359_v40  ;;  %v12303_v25 = vld [vmem:[#allocation8_spill] sm:$0xff] }
 0x4dc   :  { %v5312_v3 = vpop.f32.mrb[138].mxu1 }
 0x4dd   :  { %v5360_v11 = vadd.f32 %v5312_v3, %v11828_v50  ;;  %v8719_v28 = vpop.f32.mrb[139].mxu1 }
 0x4df   :  { %v11932_v22 = vadd.f32 %v12298_v52, %v5360_v11  ;;  %v11958_v52 = vld [vmem:[%s12138_s4] ss:$0 sm:$0xff] }
 0x4e0   :  { %v5317_v61 = vpop.f32.mrb[140].mxu1 }
 0x4e1   :  { %v5361_v2 = vadd.f32 %v5317_v61, %v11835_v48  ;;  %v8722_v10 = vpop.f32.mrb[141].mxu1 }
 0x4e3   :  { %v11936_v58 = vadd.f32 %v12299_v0, %v5361_v2 }
 0x4e4   :  { %v5322_v38 = vpop.f32.mrb[142].mxu1 }
 0x4e5   :  { %v5362_v17 = vadd.f32 %v5322_v38, %v11840_v34  ;;  %v8725_v21 = vpop.f32.mrb[143].mxu1 }
 0x4e7   :  { %v11940_v59 = vadd.f32 %v12300_v37, %v5362_v17  ;;  %v12305_v17 = vld [vmem:[#allocation10_spill] sm:$0xff] }
 0x4e8   :  { %v5327_v55 = vpop.f32.mrb[144].mxu1 }
 0x4e9   :  { %v5363_v50 = vadd.f32 %v5327_v55, %v11844_v62  ;;  %v8728_v13 = vpop.f32.mrb[145].mxu1 }
 0x4eb   :  { %v11944_v49 = vadd.f32 %v12301_v19, %v5363_v50 }
 0x4ec   :  { %v5332_v46 = vpop.f32.mrb[146].mxu1 }
 0x4ed   :  { %v5364_v48 = vadd.f32 %v5332_v46, %v11848_v43  ;;  %v8731_v6 = vpop.f32.mrb[147].mxu1  ;;  %v12304_v43 = vld [vmem:[#allocation9_spill] sm:$0xff]  ;;  %v12306_v46 = vld [vmem:[#allocation11_spill] sm:$0xff] }
 0x4ef   :  { %v11948_v20 = vadd.f32 %v12302_v16, %v5364_v48 }
 0x4f0   :  { %v5337_v40 = vpop.f32.mrb[148].mxu1 }
 0x4f1   :  { %v5365_v34 = vadd.f32 %v5337_v40, %v11852_v29  ;;  %v8734_v18 = vpop.f32.mrb[149].mxu1 }
 0x4f2   :  { %v12307_v18 = vld [vmem:[#allocation12_spill] sm:$0xff] }
 0x4f3   :  { %v11952_v3 = vadd.f32 %v12303_v25, %v5365_v34 }
 0x4f4   :  { %v5853_v11 = vpop.f32.mrb[150].mxu1 }
 0x4f5   :  { %v5977_v62 = vadd.f32 %v5853_v11, %v11856_v51  ;;  %v8820_v28 = vpop.f32.mrb[151].mxu1 }
 0x4f7   :  { %v6295_v61 = vadd.f32 %v12304_v43, %v5977_v62 }
 0x4f8   :  { %v5858_v2 = vpop.f32.mrb[152].mxu1 }
 0x4f9   :  { %v6327_v10 = vadd.f32 %v11958_v52, %v6295_v61  ;;  %v5978_v29 = vadd.f32 %v5858_v2, %v11860_v12  ;;  %v8823_v0 = vpop.f32.mrb[153].mxu1  ;;  %v12308_v2 = vld [vmem:[#allocation13_spill] sm:$0xff] }
 0x4fb   :  { %v6352_v38 = vmax.f32 %v6327_v10, 0.0  ;;  %v6296_v21 = vadd.f32 %v12305_v17, %v5978_v29 }
 0x4fc   :  { %v5863_v37 = vpop.f32.mrb[154].mxu1 }
 0x4fd   :  { %v7077_v51 = vpack.c.bf16 %v6352_v38, %v6352_v38  ;;  %v6328_v55 = vadd.f32 %v11958_v52, %v6296_v21  ;;  %v5979_v50 = vadd.f32 %v5863_v37, %v11864_v8  ;;  %v8826_v13 = vpop.f32.mrb[155].mxu1  ;;  %v12309_v37 = vld [vmem:[#allocation14_spill] sm:$0xff] }
 0x4ff   :  { %6479 = vst.msk [vmem:[%s12139_s5] sm:$0xf] %vm6478_vm3, %v7077_v51  ;;  %v6353_v19 = vmax.f32 %v6328_v55, 0.0  ;;  %v6297_v12 = vadd.f32 %v12306_v46, %v5979_v50 }
 0x500   :  { %v5868_v48 = vpop.f32.mrb[156].mxu1 }
 0x501   :  { %v7078_v6 = vpack.c.bf16 %v6353_v19, %v6353_v19  ;;  %v6329_v16 = vadd.f32 %v11958_v52, %v6297_v12  ;;  %v5980_v40 = vadd.f32 %v5868_v48, %v11868_v15  ;;  %v8829_v34 = vpop.f32.mrb[157].mxu1  ;;  %v12310_v12 = vld [vmem:[#allocation15_spill] sm:$0xff] }
 0x503   :  { %6480 = vst.msk [vmem:[%s12139_s5 + $0x4] sm:$0xf] %vm6478_vm3, %v7078_v6  ;;  %v6354_v8 = vmax.f32 %v6329_v16, 0.0  ;;  %v6298_v25 = vadd.f32 %v12307_v18, %v5980_v40  ;;  %v12311_v18 = vld [vmem:[#allocation16_spill] sm:$0xff] }
 0x504   :  { %v5873_v11 = vpop.f32.mrb[158].mxu1 }
 0x505   :  { %v7079_v62 = vpack.c.bf16 %v6354_v8, %v6354_v8  ;;  %v6330_v28 = vadd.f32 %v11958_v52, %v6298_v25  ;;  %v5981_v43 = vadd.f32 %v5873_v11, %v11872_v4  ;;  %v8832_v61 = vpop.f32.mrb[159].mxu1 }
 0x507   :  { %6481 = vst.msk [vmem:[%s12139_s5 + $0x8] sm:$0xf] %vm6478_vm3, %v7079_v62  ;;  %v6355_v15 = vmax.f32 %v6330_v28, 0.0  ;;  %v6299_v10 = vadd.f32 %v12308_v2, %v5981_v43 }
 0x508   :  { %v5878_v29 = vpop.f32.mrb[160].mxu1 }
 0x509   :  { %v7080_v0 = vpack.c.bf16 %v6355_v15, %v6355_v15  ;;  %v6331_v38 = vadd.f32 %v11958_v52, %v6299_v10  ;;  %v5982_v17 = vadd.f32 %v5878_v29, %v11876_v41  ;;  %v8835_v21 = vpop.f32.mrb[161].mxu1  ;;  %v12312_v15 = vld [vmem:[#allocation17_spill] sm:$0xff] }
 0x50b   :  { %6482 = vst.msk [vmem:[%s12139_s5 + $0xc] sm:$0xf] %vm6478_vm3, %v7080_v0  ;;  %v6356_v4 = vmax.f32 %v6331_v38, 0.0  ;;  %v6300_v51 = vadd.f32 %v12309_v37, %v5982_v17 }
 0x50c   :  { %v5883_v55 = vpop.f32.mrb[162].mxu1 }
 0x50d   :  { %v7081_v50 = vpack.c.bf16 %v6356_v4, %v6356_v4  ;;  %v6332_v13 = vadd.f32 %v11958_v52, %v6300_v51  ;;  %v5983_v19 = vadd.f32 %v5883_v55, %v11880_v42  ;;  %v8838_v46 = vpop.f32.mrb[163].mxu1 }
 0x50f   :  { %6483 = vst.msk [vmem:[%s12139_s5 + $0x10] sm:$0xf] %vm6478_vm3, %v7081_v50  ;;  %v6357_v41 = vmax.f32 %v6332_v13, 0.0  ;;  %v6301_v48 = vadd.f32 %v12310_v12, %v5983_v19 }
 0x510   :  { %v5888_v6 = vpop.f32.mrb[164].mxu1 }
 0x511   :  { %v7082_v16 = vpack.c.bf16 %v6357_v41, %v6357_v41  ;;  %v6333_v40 = vadd.f32 %v11958_v52, %v6301_v48  ;;  %v5984_v34 = vadd.f32 %v5888_v6, %v11884_v23  ;;  %v8841_v8 = vpop.f32.mrb[165].mxu1 }
 0x512   :  { %v12313_v8 = vld [vmem:[#allocation18_spill] sm:$0xff] }
 0x513   :  { %6484 = vst.msk [vmem:[%s12139_s5 + $0x14] sm:$0xf] %vm6478_vm3, %v7082_v16  ;;  %v6358_v42 = vmax.f32 %v6333_v40, 0.0  ;;  %v6302_v25 = vadd.f32 %v12311_v18, %v5984_v34 }
 0x514   :  { %v5893_v11 = vpop.f32.mrb[166].mxu1 }
 0x515   :  { %v7083_v62 = vpack.c.bf16 %v6358_v42, %v6358_v42  ;;  %v6334_v28 = vadd.f32 %v11958_v52, %v6302_v25  ;;  %v5985_v43 = vadd.f32 %v5893_v11, %v11888_v26  ;;  %v8844_v61 = vpop.f32.mrb[167].mxu1 }
 0x517   :  { %6485 = vst.msk [vmem:[%s12139_s5 + $0x18] sm:$0xf] %vm6478_vm3, %v7083_v62  ;;  %v6359_v23 = vmax.f32 %v6334_v28, 0.0  ;;  %v6303_v2 = vadd.f32 %v12312_v15, %v5985_v43  ;;  %v12314_v28 = vld [vmem:[#allocation19_spill] sm:$0xff] }
 0x518   :  { %v5898_v10 = vpop.f32.mrb[168].mxu1 }
 0x519   :  { %v7084_v29 = vpack.c.bf16 %v6359_v23, %v6359_v23  ;;  %v6335_v0 = vadd.f32 %v11958_v52, %v6303_v2  ;;  %v5986_v38 = vadd.f32 %v5898_v10, %v11892_v60  ;;  %v8847_v17 = vpop.f32.mrb[169].mxu1 }
 0x51b   :  { %6486 = vst.msk [vmem:[%s12139_s5 + $0x1c] sm:$0xf] %vm6478_vm3, %v7084_v29  ;;  %v6360_v26 = vmax.f32 %v6335_v0, 0.0  ;;  %v6304_v21 = vadd.f32 %v11679_v56, %v5986_v38  ;;  %v12315_v29 = vld [vmem:[#allocation20_spill] sm:$0xff] }
 0x51c   :  { %v5903_v4 = vpop.f32.mrb[170].mxu1 }
 0x51d   :  { %v7085_v37 = vpack.c.bf16 %v6360_v26, %v6360_v26  ;;  %v6336_v51 = vadd.f32 %v11958_v52, %v6304_v21  ;;  %v5987_v55 = vadd.f32 %v5903_v4, %v11896_v27  ;;  %v8850_v50 = vpop.f32.mrb[171].mxu1 }
 0x51f   :  { %6487 = vst.msk [vmem:[%s12139_s5 + $0x20] sm:$0xf] %vm6478_vm3, %v7085_v37  ;;  %v6361_v60 = vmax.f32 %v6336_v51, 0.0  ;;  %v6305_v13 = vadd.f32 %v11688_v47, %v5987_v55 }
 0x520   :  { %v5908_v19 = vpop.f32.mrb[172].mxu1 }
 0x521   :  { %v7086_v46 = vpack.c.bf16 %v6361_v60, %v6361_v60  ;;  %v6337_v41 = vadd.f32 %v11958_v52, %v6305_v13  ;;  %v5988_v56 = vadd.f32 %v5908_v19, %v11900_v44  ;;  %v8853_v12 = vpop.f32.mrb[173].mxu1 }
 0x523   :  { %6488 = vst.msk [vmem:[%s12139_s5 + $0x24] sm:$0xf] %vm6478_vm3, %v7086_v46  ;;  %v6362_v27 = vmax.f32 %v6337_v41, 0.0  ;;  %v6306_v48 = vadd.f32 %v11697_v57, %v5988_v56 }
 0x524   :  { %v5913_v6 = vpop.f32.mrb[174].mxu1 }
 0x525   :  { %v7087_v16 = vpack.c.bf16 %v6362_v27, %v6362_v27  ;;  %v6338_v40 = vadd.f32 %v11958_v52, %v6306_v48  ;;  %v5989_v47 = vadd.f32 %v5913_v6, %v11904_v39  ;;  %v8856_v34 = vpop.f32.mrb[175].mxu1 }
 0x527   :  { %6489 = vst.msk [vmem:[%s12139_s5 + $0x28] sm:$0xf] %vm6478_vm3, %v7087_v16  ;;  %v6363_v44 = vmax.f32 %v6338_v40, 0.0  ;;  %v6307_v42 = vadd.f32 %v12313_v8, %v5989_v47 }
 0x528   :  { %v5918_v18 = vpop.f32.mrb[176].mxu1 }
 0x529   :  { %v7088_v25 = vpack.c.bf16 %v6363_v44, %v6363_v44  ;;  %v6339_v11 = vadd.f32 %v11958_v52, %v6307_v42  ;;  %v5990_v57 = vadd.f32 %v5918_v18, %v11908_v7  ;;  %v8859_v62 = vpop.f32.mrb[177].mxu1 }
 0x52b   :  { %6490 = vst.msk [vmem:[%s12139_s5 + $0x2c] sm:$0xf] %vm6478_vm3, %v7088_v25  ;;  %v6364_v39 = vmax.f32 %v6339_v11, 0.0  ;;  %v6308_v43 = vadd.f32 %v12314_v28, %v5990_v57 }
 0x52c   :  { %v5923_v61 = vpop.f32.mrb[178].mxu1 }
 0x52d   :  { %v7089_v23 = vpack.c.bf16 %v6364_v39, %v6364_v39  ;;  %v6340_v15 = vadd.f32 %v11958_v52, %v6308_v43  ;;  %v5991_v2 = vadd.f32 %v5923_v61, %v11912_v31  ;;  %v8862_v10 = vpop.f32.mrb[179].mxu1 }
 0x52f   :  { %6491 = vst.msk [vmem:[%s12139_s5 + $0x30] sm:$0xf] %vm6478_vm3, %v7089_v23  ;;  %v6365_v7 = vmax.f32 %v6340_v15, 0.0  ;;  %v6309_v0 = vadd.f32 %v12315_v29, %v5991_v2 }
 0x530   :  { %v5928_v38 = vpop.f32.mrb[180].mxu1 }
 0x531   :  { %v7090_v17 = vpack.c.bf16 %v6365_v7, %v6365_v7  ;;  %v6341_v26 = vadd.f32 %v11958_v52, %v6309_v0  ;;  %v5992_v21 = vadd.f32 %v5928_v38, %v11916_v30  ;;  %v8865_v4 = vpop.f32.mrb[181].mxu1 }
 0x533   :  { %6492 = vst.msk [vmem:[%s12139_s5 + $0x34] sm:$0xf] %vm6478_vm3, %v7090_v17  ;;  %v6366_v31 = vmax.f32 %v6341_v26, 0.0  ;;  %v6310_v37 = vadd.f32 %v11733_v35, %v5992_v21 }
 0x534   :  { %v5933_v51 = vpop.f32.mrb[182].mxu1 }
 0x535   :  { %v7091_v55 = vpack.c.bf16 %v6366_v31, %v6366_v31  ;;  %v6342_v50 = vadd.f32 %v11958_v52, %v6310_v37  ;;  %v5993_v60 = vadd.f32 %v5933_v51, %v11920_v54  ;;  %v8868_v13 = vpop.f32.mrb[183].mxu1 }
 0x537   :  { %6493 = vst.msk [vmem:[%s12139_s5 + $0x38] sm:$0xf] %vm6478_vm3, %v7091_v55  ;;  %v6367_v30 = vmax.f32 %v6342_v50, 0.0  ;;  %v6311_v19 = vadd.f32 %v11742_v24, %v5993_v60 }
 0x538   :  { %v5938_v46 = vpop.f32.mrb[184].mxu1 }
 0x539   :  { %v7092_v41 = vpack.c.bf16 %v6367_v30, %v6367_v30  ;;  %v6343_v56 = vadd.f32 %v11958_v52, %v6311_v19  ;;  %v5994_v35 = vadd.f32 %v5938_v46, %v11924_v5  ;;  %v8871_v12 = vpop.f32.mrb[185].mxu1 }
 0x53b   :  { %6494 = vst.msk [vmem:[%s12139_s5 + $0x3c] sm:$0xf] %vm6478_vm3, %v7092_v41  ;;  %v6368_v54 = vmax.f32 %v6343_v56, 0.0  ;;  %v6312_v27 = vadd.f32 %v11751_v14, %v5994_v35 }
 0x53c   :  { %v5943_v48 = vpop.f32.mrb[186].mxu1 }
 0x53d   :  { %v7093_v6 = vpack.c.bf16 %v6368_v54, %v6368_v54  ;;  %v6344_v16 = vadd.f32 %v11958_v52, %v6312_v27  ;;  %v5995_v24 = vadd.f32 %v5943_v48, %v11928_v53  ;;  %v8874_v40 = vpop.f32.mrb[187].mxu1 }
 0x53f   :  { %6495 = vst.msk [vmem:[%s12139_s5 + $0x40] sm:$0xf] %vm6478_vm3, %v7093_v6  ;;  %v6369_v5 = vmax.f32 %v6344_v16, 0.0  ;;  %v6313_v47 = vadd.f32 %v11760_v33, %v5995_v24 }
 0x540   :  { %v5948_v34 = vpop.f32.mrb[188].mxu1 }
 0x541   :  { %v7094_v44 = vpack.c.bf16 %v6369_v5, %v6369_v5  ;;  %v6345_v8 = vadd.f32 %v11958_v52, %v6313_v47  ;;  %v5996_v14 = vadd.f32 %v5948_v34, %v11932_v22  ;;  %v8877_v42 = vpop.f32.mrb[189].mxu1 }
 0x543   :  { %6496 = vst.msk [vmem:[%s12139_s5 + $0x44] sm:$0xf] %vm6478_vm3, %v7094_v44  ;;  %v6370_v53 = vmax.f32 %v6345_v8, 0.0  ;;  %v6314_v18 = vadd.f32 %v11769_v63, %v5996_v14 }
 0x544   :  { %v5953_v25 = vpop.f32.mrb[190].mxu1 }
 0x545   :  { %v7095_v11 = vpack.c.bf16 %v6370_v53, %v6370_v53  ;;  %v6346_v57 = vadd.f32 %v11958_v52, %v6314_v18  ;;  %v5997_v33 = vadd.f32 %v5953_v25, %v11936_v58  ;;  %v8880_v62 = vpop.f32.mrb[191].mxu1 }
 0x547   :  { %6497 = vst.msk [vmem:[%s12139_s5 + $0x48] sm:$0xf] %vm6478_vm3, %v7095_v11  ;;  %v6371_v22 = vmax.f32 %v6346_v57, 0.0  ;;  %v6315_v39 = vadd.f32 %v11778_v9, %v5997_v33 }
 0x548   :  { %v5958_v28 = vpop.f32.mrb[192].mxu1 }
 0x549   :  { %v7096_v43 = vpack.c.bf16 %v6371_v22, %v6371_v22  ;;  %v6347_v61 = vadd.f32 %v11958_v52, %v6315_v39  ;;  %v5998_v63 = vadd.f32 %v5958_v28, %v11940_v59  ;;  %v8883_v23 = vpop.f32.mrb[193].mxu1 }
 0x54b   :  { %6498 = vst.msk [vmem:[%s12139_s5 + $0x4c] sm:$0xf] %vm6478_vm3, %v7096_v43  ;;  %v6372_v58 = vmax.f32 %v6347_v61, 0.0  ;;  %v6316_v15 = vadd.f32 %v11787_v32, %v5998_v63 }
 0x54c   :  { %v5963_v2 = vpop.f32.mrb[194].mxu1 }
 0x54d   :  { %v7097_v10 = vpack.c.bf16 %v6372_v58, %v6372_v58  ;;  %v6348_v7 = vadd.f32 %v11958_v52, %v6316_v15  ;;  %v5999_v9 = vadd.f32 %v5963_v2, %v11944_v49  ;;  %v8886_v29 = vpop.f32.mrb[195].mxu1 }
 0x54f   :  { %6499 = vst.msk [vmem:[%s12139_s5 + $0x50] sm:$0xf] %vm6478_vm3, %v7097_v10  ;;  %v6373_v59 = vmax.f32 %v6348_v7, 0.0  ;;  %v6317_v0 = vadd.f32 %v11796_v45, %v5999_v9 }
 0x550   :  { %v5968_v38 = vpop.f32.mrb[196].mxu1 }
 0x551   :  { %v7098_v17 = vpack.c.bf16 %v6373_v59, %v6373_v59  ;;  %v6349_v26 = vadd.f32 %v11958_v52, %v6317_v0  ;;  %v6000_v32 = vadd.f32 %v5968_v38, %v11948_v20  ;;  %v8889_v21 = vpop.f32.mrb[197].mxu1 }
 0x553   :  { %6500 = vst.msk [vmem:[%s12139_s5 + $0x54] sm:$0xf] %vm6478_vm3, %v7098_v17  ;;  %v6374_v49 = vmax.f32 %v6349_v26, 0.0  ;;  %v6318_v4 = vadd.f32 %v11805_v1, %v6000_v32 }
 0x554   :  { %v5973_v31 = vpop.f32.mrb[198].mxu1 }
 0x555   :  { %v7099_v37 = vpack.c.bf16 %v6374_v49, %v6374_v49  ;;  %v6350_v51 = vadd.f32 %v11958_v52, %v6318_v4  ;;  %v6001_v45 = vadd.f32 %v5973_v31, %v11952_v3  ;;  %v8892_v55 = vpop.f32.mrb[199].mxu1 }
 0x557   :  { %6501 = vst.msk [vmem:[%s12139_s5 + $0x58] sm:$0xf] %vm6478_vm3, %v7099_v37  ;;  %v6375_v20 = vmax.f32 %v6350_v51, 0.0  ;;  %v6319_v50 = vadd.f32 %v11814_v36, %v6001_v45 }
 0x559   :  { %v7100_v60 = vpack.c.bf16 %v6375_v20, %v6375_v20  ;;  %v6351_v13 = vadd.f32 %v11958_v52, %v6319_v50 }
 0x55b   :  { %6502 = vst.msk [vmem:[%s12139_s5 + $0x5c] sm:$0xf] %vm6478_vm3, %v7100_v60  ;;  %v6376_v1 = vmax.f32 %v6351_v13, 0.0 }
 0x55d   :  { %v7101_v30 = vpack.c.bf16 %v6376_v1, %v6376_v1 }
 0x55f   :  { %6503 = vst.msk [vmem:[%s12139_s5 + $0x60] sm:$0xf] %vm6478_vm3, %v7101_v30 }

</bundles_post_ra>
